<compile_context>
chip_gen: v5e
topology: v5e:2x2
jax: 0.10.0
libtpu: 0.0.40
codegen_flags: <defaults>
</compile_context>

<pallas_src>
import functools
import numpy as np
import jax
import jax.numpy as jnp
from jax.experimental import pallas as pl
from jax.experimental.pallas import tpu as pltpu

VMEM_LIMIT = 32 * 1024 * 1024  # explicit scoped-VMEM budget (fits v5e/v6e/v7x)


# ---------------------------------------------------------------------------
# helpers
# ---------------------------------------------------------------------------

def _row_tile(m):
    """Largest row tile (multiple of 8) that divides m, else the full extent."""
    for t in (512, 256, 128, 64, 32, 16, 8):
        if t <= m and m % t == 0:
            return t
    return m


def _cparams(n_axes=1):
    return pltpu.CompilerParams(
        dimension_semantics=("parallel",) * n_axes,
        vmem_limit_bytes=VMEM_LIMIT)


# ---------------------------------------------------------------------------
# Pallas kernels
# ---------------------------------------------------------------------------

def matmul_kernel(x_ref, w_ref, ps_ref, pb_ref, ob_ref, o_ref, *, pre_relu, post_relu):
    """o = post( relu?(x*ps+pb) @ w + ob ).
    Used for conv0 (im2col patches), transition 1x1 convs and the conv6 head.
    Post-BN scale is folded into w by the wrapper; operands are cast to bf16 for
    the MXU, accumulation / epilogue stay f32."""
    a = x_ref[...]
    if pre_relu:                       # folded BN + ReLU on the conv input
        a = jnp.maximum(a * ps_ref[...] + pb_ref[...], 0.0)
    acc = jnp.dot(a.astype(jnp.bfloat16), w_ref[...],
                  preferred_element_type=jnp.float32)
    y = acc + ob_ref[...]
    if post_relu:
        y = jnp.maximum(y, 0.0)
    o_ref[...] = y.astype(o_ref.dtype)


def dense_layer_kernel(x_ref, w1_ref, s1_ref, b1_ref, b2_ref, mask_ref, w2_ref,
                       o_ref, *, Wp, Mp):
    """One fused _DenseLayer per image (grid over N):
       new = conv2_3x3( relu(BN2( conv1_1x1( relu(BN1(x)) ) )) )
    x_ref is the spatially zero-padded feature map flattened to a row canvas
    (Hc rows = (H+2)*(W+2) + 2*Wp + 2 tail rows).  Each 3x3 tap is a static row
    shift of the bottleneck activation kept in VMEM; mask zeroes the halo rows so
    the implicit conv2 padding is exact."""
    x = x_ref[0]                                                  # (Hc, K) f32
    a = jnp.maximum(x * s1_ref[...] + b1_ref[...], 0.0)           # BN1 + ReLU1
    t = jnp.dot(a.astype(jnp.bfloat16), w1_ref[...],              # 1x1 conv1 (BN2
                preferred_element_type=jnp.float32)               #  scale folded)
    bneck = jnp.maximum(t + b2_ref[...], 0.0) * mask_ref[...]     # BN2 bias+ReLU2+halo
    c2 = o_ref.shape[-1]
    acc = jnp.zeros((Mp, c2), jnp.float32)
    for tap in range(9):                                          # implicit-GEMM 3x3
        off = (tap // 3) * Wp + (tap % 3)
        a2 = bneck[off:off + Mp, :].astype(jnp.bfloat16)
        acc = acc + jnp.dot(a2, w2_ref[tap], preferred_element_type=jnp.float32)
    o_ref[0] = acc.astype(o_ref.dtype)


def maxpool_kernel(x_ref, o_ref):
    """Max over the leading (tap) axis of a (9, rows, C) window stack."""
    r = x_ref[0]
    for k in range(1, x_ref.shape[0]):
        r = jnp.maximum(r, x_ref[k])
    o_ref[...] = r


def avgpool_h2_kernel(x_ref, o_ref):
    """AvgPool2d((2,1), stride (2,1)) on a (rows, 2, W*C) view."""
    v = x_ref[...]
    o_ref[...] = 0.5 * (v[:, 0, :] + v[:, 1, :])


# ---------------------------------------------------------------------------
# layer wrappers
# ---------------------------------------------------------------------------

def fused_matmul(x2d, w, pre_scale, pre_bias, out_bias, pre_relu, post_relu):
    m, k = x2d.shape
    c = w.shape[-1]
    tm = _row_tile(m)
    return pl.pallas_call(
        functools.partial(matmul_kernel, pre_relu=pre_relu, post_relu=post_relu),
        out_shape=jax.ShapeDtypeStruct((m, c), jnp.float32),
        grid=(m // tm,),
        in_specs=[
            pl.BlockSpec((tm, k), lambda i: (i, 0)),
            pl.BlockSpec((k, c), lambda i: (0, 0)),
            pl.BlockSpec((1, k), lambda i: (0, 0)),
            pl.BlockSpec((1, k), lambda i: (0, 0)),
            pl.BlockSpec((1, c), lambda i: (0, 0)),
        ],
        out_specs=pl.BlockSpec((tm, c), lambda i: (i, 0)),
        compiler_params=_cparams(1),
    )(x2d, w.astype(jnp.bfloat16), pre_scale.reshape(1, k),
      pre_bias.reshape(1, k), out_bias.reshape(1, c))


def conv0_bn_relu(x_nhwc, w, bn_scale, bn_bias):
    """Conv2d(Cin, F0, 7, stride 2, pad 3, bias=False) + BN + ReLU."""
    n, h, wd, cin = x_nhwc.shape
    ho = (h + 6 - 7) // 2 + 1
    wo = (wd + 6 - 7) // 2 + 1
    xp = jnp.pad(x_nhwc, ((0, 0), (3, 3), (3, 3), (0, 0)))
    cols = [xp[:, i:i + 2 * ho - 1:2, j:j + 2 * wo - 1:2, :]
            for i in range(7) for j in range(7)]
    patches = jnp.concatenate(cols, axis=-1).reshape(n * ho * wo, 49 * cin)
    f0 = w.shape[-1]
    wmat = w.reshape(49 * cin, f0) * bn_scale[None, :]          # fold BN scale
    dummy = jnp.zeros((49 * cin,), jnp.float32)
    out = fused_matmul(patches, wmat, dummy, dummy, bn_bias,
                       pre_relu=False, post_relu=True)
    return out.reshape(n, ho, wo, f0)


def maxpool0(x_nhwc):
    """MaxPool2d(kernel 3, stride 2, padding 1)."""
    n, h, wd, c = x_nhwc.shape
    ho = (h + 2 - 3) // 2 + 1
    wo = (wd + 2 - 3) // 2 + 1
    neg = jnp.finfo(jnp.float32).min
    xp = jnp.pad(x_nhwc, ((0, 0), (1, 1), (1, 1), (0, 0)), constant_values=neg)
    wins = [xp[:, i:i + 2 * ho - 1:2, j:j + 2 * wo - 1:2, :]
            for i in range(3) for j in range(3)]
    wins = jnp.stack(wins, axis=0).reshape(9, n * ho * wo, c)
    m = n * ho * wo
    tm = _row_tile(m)
    out = pl.pallas_call(
        maxpool_kernel,
        out_shape=jax.ShapeDtypeStruct((m, c), jnp.float32),
        grid=(m // tm,),
        in_specs=[pl.BlockSpec((9, tm, c), lambda i: (0, i, 0))],
        out_specs=pl.BlockSpec((tm, c), lambda i: (i, 0)),
        compiler_params=_cparams(1),
    )(wins)
    return out.reshape(n, ho, wo, c)


def avgpool_h2(x_nhwc):
    """AvgPool2d(kernel (2,1), stride (2,1)) without layout transposes."""
    n, h, wd, c = x_nhwc.shape
    ho = h // 2
    x = x_nhwc[:, :2 * ho].reshape(n * ho, 2, wd * c)
    r = n * ho
    tr = _row_tile(r)
    out = pl.pallas_call(
        avgpool_h2_kernel,
        out_shape=jax.ShapeDtypeStruct((r, wd * c), jnp.float32),
        grid=(r // tr,),
        in_specs=[pl.BlockSpec((tr, 2, wd * c), lambda i: (i, 0, 0))],
        out_specs=pl.BlockSpec((tr, wd * c), lambda i: (i, 0)),
        compiler_params=_cparams(1),
    )(x)
    return out.reshape(n, ho, wd, c)


def _canvas_mask(h, wd):
    hp, wp = h + 2, wd + 2
    mp = hp * wp
    hc = mp + 2 * wp + 2
    mm = np.zeros((hp, wp), np.float32)
    mm[1:h + 1, 1:wd + 1] = 1.0
    mask = np.zeros((hc, 1), np.float32)
    mask[:mp, 0] = mm.reshape(-1)
    return jnp.asarray(mask)


def dense_layer(x_nhwc, lp):
    """One fused _DenseLayer -> new features (growth_rate channels)."""
    n, h, wd, k = x_nhwc.shape
    hp, wp = h + 2, wd + 2
    mp = hp * wp
    hc = mp + 2 * wp + 2
    c1 = lp["conv1_w"].shape[-1]
    c2 = lp["conv2_w"].shape[-1]

    # padded-canvas layout: spatial zero pad -> flatten rows -> tail rows so all
    # static tap shifts stay in-bounds.
    xp = jnp.pad(x_nhwc, ((0, 0), (1, 1), (1, 1), (0, 0)))
    xc = jnp.pad(xp.reshape(n, mp, k), ((0, 0), (0, 2 * wp + 2), (0, 0)))

    mask = _canvas_mask(h, wd)                                        # (Hc, 1)
    w1 = (lp["conv1_w"] * lp["bn2_scale"][None, :]).astype(jnp.bfloat16)
    w2 = lp["conv2_w"].reshape(9, c1, c2).astype(jnp.bfloat16)

    out = pl.pallas_call(
        functools.partial(dense_layer_kernel, Wp=wp, Mp=mp),
        out_shape=jax.ShapeDtypeStruct((n, mp, c2), jnp.float32),
        grid=(n,),
        in_specs=[
            pl.BlockSpec((1, hc, k), lambda b: (b, 0, 0)),
            pl.BlockSpec((k, c1), lambda b: (0, 0)),
            pl.BlockSpec((1, k), lambda b: (0, 0)),
            pl.BlockSpec((1, k), lambda b: (0, 0)),
            pl.BlockSpec((1, c1), lambda b: (0, 0)),
            pl.BlockSpec((hc, 1), lambda b: (0, 0)),
            pl.BlockSpec((9, c1, c2), lambda b: (0, 0, 0)),
        ],
        out_specs=pl.BlockSpec((1, mp, c2), lambda b: (b, 0, 0)),
        compiler_params=_cparams(1),
    )(xc, w1, lp["bn1_scale"].reshape(1, k), lp["bn1_bias"].reshape(1, k),
      lp["bn2_bias"].reshape(1, c1), mask, w2)

    return out.reshape(n, hp, wp, c2)[:, :h, :wd, :]


def transition(x_nhwc, tp):
    """BN + ReLU + 1x1 conv + AvgPool2d((2,1),(2,1))."""
    n, h, wd, k = x_nhwc.shape
    c = tp["conv_w"].shape[-1]
    y = fused_matmul(x_nhwc.reshape(n * h * wd, k), tp["conv_w"],
                     tp["bn_scale"], tp["bn_bias"],
                     jnp.zeros((c,), jnp.float32),
                     pre_relu=True, post_relu=False)
    return avgpool_h2(y.reshape(n, h, wd, c))


def final_head(x_nhwc, params):
    """block5 (BN+ReLU) + block6 (1x1 conv + BN) + forward's final ReLU."""
    n, h, wd, k = x_nhwc.shape
    c = params["conv6_w"].shape[-1]
    w = params["conv6_w"] * params["bn6_scale"][None, :]
    y = fused_matmul(x_nhwc.reshape(n * h * wd, k), w,
                     params["bn5_scale"], params["bn5_bias"],
                     params["bn6_bias"], pre_relu=True, post_relu=True)
    return y.reshape(n, h, wd, c)


def densenet_forward(x_nchw, params):
    x = jnp.transpose(x_nchw, (0, 2, 3, 1)).astype(jnp.float32)   # NCHW -> NHWC
    x = conv0_bn_relu(x, params["conv0_w"], params["bn0_scale"], params["bn0_bias"])
    x = maxpool0(x)
    nb = len(params["blocks"])
    for bi, block in enumerate(params["blocks"]):
        for lp in block:                                          # _DenseBlock
            new = dense_layer(x, lp)
            x = jnp.concatenate([x, new], axis=-1)
        if bi != nb - 1:
            x = transition(x, params["transitions"][bi])
    x = final_head(x, params)
    return jnp.transpose(x, (0, 3, 1, 2))                         # NHWC -> NCHW


# ---------------------------------------------------------------------------
# deterministic synthetic parameters (inference-mode BN folded to scale/bias)
# ---------------------------------------------------------------------------

def init_params(key, input_channel, output_channel, growth_rate, block_config,
                num_init_features, bn_size):
    keys = iter(jax.random.split(key, 4096))

    def nk():
        return next(keys)

    def conv_w(shape):                       # kaiming-normal-ish
        fan_in = int(np.prod(shape[:-1]))
        std = float(np.sqrt(2.0 / fan_in))
        return (std * jax.random.normal(nk(), shape)).astype(jnp.float32)

    def bn(c):                               # folded inference BatchNorm
        gamma = jax.random.uniform(nk(), (c,), minval=0.8, maxval=1.2)
        beta = 0.05 * jax.random.normal(nk(), (c,))
        mean = 0.05 * jax.random.normal(nk(), (c,))
        var = jax.random.uniform(nk(), (c,), minval=0.8, maxval=1.2)
        scale = gamma / jnp.sqrt(var + 1e-5)
        bias = beta - mean * scale
        return scale.astype(jnp.float32), bias.astype(jnp.float32)

    p = {"conv0_w": conv_w((7, 7, input_channel, num_init_features))}
    p["bn0_scale"], p["bn0_bias"] = bn(num_init_features)

    nf = num_init_features
    blocks, transitions = [], []
    for bi, nlayers in enumerate(block_config):
        layers = []
        for li in range(nlayers):
            k_in = nf + li * growth_rate
            c1 = bn_size * growth_rate
            lp = {}
            lp["bn1_scale"], lp["bn1_bias"] = bn(k_in)
            lp["conv1_w"] = conv_w((k_in, c1))                 # 1x1, no bias
            lp["bn2_scale"], lp["bn2_bias"] = bn(c1)
            lp["conv2_w"] = conv_w((3, 3, c1, growth_rate))    # 3x3, no bias
            layers.append(lp)
        blocks.append(layers)
        nf = nf + nlayers * growth_rate
        if bi != len(block_config) - 1:
            tp = {}
            tp["bn_scale"], tp["bn_bias"] = bn(nf)
            tp["conv_w"] = conv_w((nf, nf // 2))               # 1x1, no bias
            transitions.append(tp)
            nf = nf // 2
    p["blocks"] = blocks
    p["transitions"] = transitions
    p["bn5_scale"], p["bn5_bias"] = bn(nf)
    p["conv6_w"] = conv_w((nf, output_channel))
    p["bn6_scale"], p["bn6_bias"] = bn(output_channel)
    return p


# ---------------------------------------------------------------------------

if __name__ == "__main__":
    # small DenseNet-BC config consistent with the module's constructor
    GROWTH = 8
    BLOCK_CONFIG = (2, 2, 2, 2)
    NUM_INIT = 16
    BN_SIZE = 2
    IN_C = 4
    OUT_C = 32

    key = jax.random.PRNGKey(0)
    kp, kx = jax.random.split(key)
    params = init_params(kp, IN_C, OUT_C, GROWTH, BLOCK_CONFIG, NUM_INIT, BN_SIZE)
    x = jax.random.normal(kx, (2, IN_C, 32, 16), dtype=jnp.float32)   # NCHW

    fwd = jax.jit(lambda inp: densenet_forward(inp, params))
    out = jax.block_until_ready(fwd(x))

    # 32x16 -> conv0 s2 -> 16x8 -> pool0 -> 8x4 -> three (2,1) avg pools -> 1x4
    assert out.shape == (2, OUT_C, 1, 4), out.shape
    assert bool(jnp.all(jnp.isfinite(out)))
    assert bool(jnp.all(out >= 0.0))          # final ReLU
    print("KERNEL_OK")
</pallas_src>

<mosaic_0001>
module attributes {stable_mosaic.version = 11 : i64} {
  func.func @matmul_kernel(%arg0: i32, %arg1: memref<256x196xf32, #tpu.memory_space<vmem>>, %arg2: memref<196x16xbf16, #tpu.memory_space<vmem>>, %arg3: memref<1x196xf32, #tpu.memory_space<vmem>>, %arg4: memref<1x196xf32, #tpu.memory_space<vmem>>, %arg5: memref<1x16xf32, #tpu.memory_space<vmem>>, %arg6: memref<256x16xf32, #tpu.memory_space<vmem>>) attributes {dimension_semantics = [#tpu.dimension_semantics<parallel>], iteration_bounds = array<i64: 1>, scalar_prefetch = 0 : i64, scratch_operands = 0 : i64, tpu.core_type = #tpu.core_type<tc>, window_params = [{transform_indices = @transform_0, window_bounds = array<i64: 256, 196>}, {pipeline_mode = #tpu.pipeline_mode<synchronous>, transform_indices = @transform_1, window_bounds = array<i64: 196, 16>}, {pipeline_mode = #tpu.pipeline_mode<synchronous>, transform_indices = @transform_2, window_bounds = array<i64: 1, 196>}, {pipeline_mode = #tpu.pipeline_mode<synchronous>, transform_indices = @transform_3, window_bounds = array<i64: 1, 196>}, {pipeline_mode = #tpu.pipeline_mode<synchronous>, transform_indices = @transform_4, window_bounds = array<i64: 1, 16>}, {transform_indices = @transform_5, window_bounds = array<i64: 256, 16>}]} {
    %c0 = arith.constant 0 : index
    %c0_0 = arith.constant 0 : index
    %0 = vector.load %arg1[%c0, %c0_0] : memref<256x196xf32, #tpu.memory_space<vmem>>, vector<256x196xf32>
    %1 = arith.truncf %0 : vector<256x196xf32> to vector<256x196xbf16>
    %c0_1 = arith.constant 0 : index
    %c0_2 = arith.constant 0 : index
    %2 = vector.load %arg2[%c0_1, %c0_2] : memref<196x16xbf16, #tpu.memory_space<vmem>>, vector<196x16xbf16>
    %cst = arith.constant dense<0.000000e+00> : vector<256x16xf32>
    %3 = tpu.matmul %1, %2, %cst {dimension_numbers = #tpu.dot_dimension_numbers<[1], [0], [0], [1], [0, 0, 1, 1], [], []>} : vector<256x196xbf16>, vector<196x16xbf16>, vector<256x16xf32> -> vector<256x16xf32>
    %c0_3 = arith.constant 0 : index
    %c0_4 = arith.constant 0 : index
    %4 = vector.load %arg5[%c0_3, %c0_4] : memref<1x16xf32, #tpu.memory_space<vmem>>, vector<1x16xf32>
    %5 = vector.broadcast %4 : vector<1x16xf32> to vector<256x16xf32>
    %6 = arith.addf %3, %5 : vector<256x16xf32>
    %cst_5 = arith.constant 0.000000e+00 : f32
    %7 = vector.broadcast %cst_5 : f32 to vector<256x16xf32>
    %8 = arith.maximumf %6, %7 : vector<256x16xf32>
    %c0_6 = arith.constant 0 : index
    %c0_7 = arith.constant 0 : index
    %9 = vector.load %arg6[%c0_6, %c0_7] : memref<256x16xf32, #tpu.memory_space<vmem>>, vector<256x16xf32>
    tpu.vector_store %arg6[%c0_6, %c0_7], %8 {strides = array<i32>} : memref<256x16xf32, #tpu.memory_space<vmem>>, vector<256x16xf32>,
    return
  }
  func.func @transform_0(%arg0: i32) -> (i32, i32) {
    %c0_i32 = arith.constant 0 : i32
    %c0_i32_0 = arith.constant 0 : i32
    return %arg0, %c0_i32 : i32, i32
  }
  func.func @transform_1(%arg0: i32) -> (i32, i32) {
    %c0_i32 = arith.constant 0 : i32
    %c0_i32_0 = arith.constant 0 : i32
    %c0_i32_1 = arith.constant 0 : i32
    return %c0_i32, %c0_i32_0 : i32, i32
  }
  func.func @transform_2(%arg0: i32) -> (i32, i32) {
    %c0_i32 = arith.constant 0 : i32
    %c0_i32_0 = arith.constant 0 : i32
    %c0_i32_1 = arith.constant 0 : i32
    return %c0_i32, %c0_i32_0 : i32, i32
  }
  func.func @transform_3(%arg0: i32) -> (i32, i32) {
    %c0_i32 = arith.constant 0 : i32
    %c0_i32_0 = arith.constant 0 : i32
    %c0_i32_1 = arith.constant 0 : i32
    return %c0_i32, %c0_i32_0 : i32, i32
  }
  func.func @transform_4(%arg0: i32) -> (i32, i32) {
    %c0_i32 = arith.constant 0 : i32
    %c0_i32_0 = arith.constant 0 : i32
    %c0_i32_1 = arith.constant 0 : i32
    return %c0_i32, %c0_i32_0 : i32, i32
  }
  func.func @transform_5(%arg0: i32) -> (i32, i32) {
    %c0_i32 = arith.constant 0 : i32
    %c0_i32_0 = arith.constant 0 : i32
    return %arg0, %c0_i32 : i32, i32
  }
}

module attributes {stable_mosaic.version = 11 : i64} {
  func.func @maxpool_kernel(%arg0: i32, %arg1: memref<9x64x16xf32, #tpu.memory_space<vmem>>, %arg2: memref<64x16xf32, #tpu.memory_space<vmem>>) attributes {dimension_semantics = [#tpu.dimension_semantics<parallel>], iteration_bounds = array<i64: 1>, scalar_prefetch = 0 : i64, scratch_operands = 0 : i64, tpu.core_type = #tpu.core_type<tc>, window_params = [{transform_indices = @transform_0, window_bounds = array<i64: 9, 64, 16>}, {transform_indices = @transform_1, window_bounds = array<i64: 64, 16>}]} {
    %c0 = arith.constant 0 : index
    %c0_0 = arith.constant 0 : index
    %c0_1 = arith.constant 0 : index
    %0 = vector.load %arg1[%c0, %c0_0, %c0_1] : memref<9x64x16xf32, #tpu.memory_space<vmem>>, vector<1x64x16xf32>
    %1 = vector.shape_cast %0 : vector<1x64x16xf32> to vector<64x16xf32>
    %c1 = arith.constant 1 : index
    %c0_2 = arith.constant 0 : index
    %c0_3 = arith.constant 0 : index
    %2 = vector.load %arg1[%c1, %c0_2, %c0_3] : memref<9x64x16xf32, #tpu.memory_space<vmem>>, vector<1x64x16xf32>
    %3 = vector.shape_cast %2 : vector<1x64x16xf32> to vector<64x16xf32>
    %4 = arith.maximumf %1, %3 : vector<64x16xf32>
    %c2 = arith.constant 2 : index
    %c0_4 = arith.constant 0 : index
    %c0_5 = arith.constant 0 : index
    %5 = vector.load %arg1[%c2, %c0_4, %c0_5] : memref<9x64x16xf32, #tpu.memory_space<vmem>>, vector<1x64x16xf32>
    %6 = vector.shape_cast %5 : vector<1x64x16xf32> to vector<64x16xf32>
    %7 = arith.maximumf %4, %6 : vector<64x16xf32>
    %c3 = arith.constant 3 : index
    %c0_6 = arith.constant 0 : index
    %c0_7 = arith.constant 0 : index
    %8 = vector.load %arg1[%c3, %c0_6, %c0_7] : memref<9x64x16xf32, #tpu.memory_space<vmem>>, vector<1x64x16xf32>
    %9 = vector.shape_cast %8 : vector<1x64x16xf32> to vector<64x16xf32>
    %10 = arith.maximumf %7, %9 : vector<64x16xf32>
    %c4 = arith.constant 4 : index
    %c0_8 = arith.constant 0 : index
    %c0_9 = arith.constant 0 : index
    %11 = vector.load %arg1[%c4, %c0_8, %c0_9] : memref<9x64x16xf32, #tpu.memory_space<vmem>>, vector<1x64x16xf32>
    %12 = vector.shape_cast %11 : vector<1x64x16xf32> to vector<64x16xf32>
    %13 = arith.maximumf %10, %12 : vector<64x16xf32>
    %c5 = arith.constant 5 : index
    %c0_10 = arith.constant 0 : index
    %c0_11 = arith.constant 0 : index
    %14 = vector.load %arg1[%c5, %c0_10, %c0_11] : memref<9x64x16xf32, #tpu.memory_space<vmem>>, vector<1x64x16xf32>
    %15 = vector.shape_cast %14 : vector<1x64x16xf32> to vector<64x16xf32>
    %16 = arith.maximumf %13, %15 : vector<64x16xf32>
    %c6 = arith.constant 6 : index
    %c0_12 = arith.constant 0 : index
    %c0_13 = arith.constant 0 : index
    %17 = vector.load %arg1[%c6, %c0_12, %c0_13] : memref<9x64x16xf32, #tpu.memory_space<vmem>>, vector<1x64x16xf32>
    %18 = vector.shape_cast %17 : vector<1x64x16xf32> to vector<64x16xf32>
    %19 = arith.maximumf %16, %18 : vector<64x16xf32>
    %c7 = arith.constant 7 : index
    %c0_14 = arith.constant 0 : index
    %c0_15 = arith.constant 0 : index
    %20 = vector.load %arg1[%c7, %c0_14, %c0_15] : memref<9x64x16xf32, #tpu.memory_space<vmem>>, vector<1x64x16xf32>
    %21 = vector.shape_cast %20 : vector<1x64x16xf32> to vector<64x16xf32>
    %22 = arith.maximumf %19, %21 : vector<64x16xf32>
    %c8 = arith.constant 8 : index
    %c0_16 = arith.constant 0 : index
    %c0_17 = arith.constant 0 : index
    %23 = vector.load %arg1[%c8, %c0_16, %c0_17] : memref<9x64x16xf32, #tpu.memory_space<vmem>>, vector<1x64x16xf32>
    %24 = vector.shape_cast %23 : vector<1x64x16xf32> to vector<64x16xf32>
    %25 = arith.maximumf %22, %24 : vector<64x16xf32>
    %c0_18 = arith.constant 0 : index
    %c0_19 = arith.constant 0 : index
    %26 = vector.load %arg2[%c0_18, %c0_19] : memref<64x16xf32, #tpu.memory_space<vmem>>, vector<64x16xf32>
    tpu.vector_store %arg2[%c0_18, %c0_19], %25 {strides = array<i32>} : memref<64x16xf32, #tpu.memory_space<vmem>>, vector<64x16xf32>,
    return
  }
  func.func @transform_0(%arg0: i32) -> (i32, i32, i32) {
    %c0_i32 = arith.constant 0 : i32
    %c0_i32_0 = arith.constant 0 : i32
    %c0_i32_1 = arith.constant 0 : i32
    return %c0_i32, %arg0, %c0_i32_0 : i32, i32, i32
  }
  func.func @transform_1(%arg0: i32) -> (i32, i32) {
    %c0_i32 = arith.constant 0 : i32
    %c0_i32_0 = arith.constant 0 : i32
    return %arg0, %c0_i32 : i32, i32
  }
}

module attributes {stable_mosaic.version = 11 : i64} {
  func.func @dense_layer_kernel(%arg0: i32, %arg1: memref<1x74x16xf32, #tpu.memory_space<vmem>>, %arg2: memref<16x16xbf16, #tpu.memory_space<vmem>>, %arg3: memref<1x16xf32, #tpu.memory_space<vmem>>, %arg4: memref<1x16xf32, #tpu.memory_space<vmem>>, %arg5: memref<1x16xf32, #tpu.memory_space<vmem>>, %arg6: memref<74x1xf32, #tpu.memory_space<vmem>>, %arg7: memref<9x16x8xbf16, #tpu.memory_space<vmem>>, %arg8: memref<1x60x8xf32, #tpu.memory_space<vmem>>) attributes {dimension_semantics = [#tpu.dimension_semantics<parallel>], iteration_bounds = array<i64: 2>, scalar_prefetch = 0 : i64, scratch_operands = 0 : i64, tpu.core_type = #tpu.core_type<tc>, window_params = [{transform_indices = @transform_0, window_bounds = array<i64: 1, 74, 16>}, {pipeline_mode = #tpu.pipeline_mode<synchronous>, transform_indices = @transform_1, window_bounds = array<i64: 16, 16>}, {pipeline_mode = #tpu.pipeline_mode<synchronous>, transform_indices = @transform_2, window_bounds = array<i64: 1, 16>}, {pipeline_mode = #tpu.pipeline_mode<synchronous>, transform_indices = @transform_3, window_bounds = array<i64: 1, 16>}, {pipeline_mode = #tpu.pipeline_mode<synchronous>, transform_indices = @transform_4, window_bounds = array<i64: 1, 16>}, {pipeline_mode = #tpu.pipeline_mode<synchronous>, transform_indices = @transform_5, window_bounds = array<i64: 74, 1>}, {pipeline_mode = #tpu.pipeline_mode<synchronous>, transform_indices = @transform_6, window_bounds = array<i64: 9, 16, 8>}, {transform_indices = @transform_7, window_bounds = array<i64: 1, 60, 8>}]} {
    %c0 = arith.constant 0 : index
    %c0_0 = arith.constant 0 : index
    %c0_1 = arith.constant 0 : index
    %0 = vector.load %arg1[%c0, %c0_0, %c0_1] : memref<1x74x16xf32, #tpu.memory_space<vmem>>, vector<1x74x16xf32>
    %1 = vector.shape_cast %0 : vector<1x74x16xf32> to vector<74x16xf32>
    %c0_2 = arith.constant 0 : index
    %c0_3 = arith.constant 0 : index
    %2 = vector.load %arg3[%c0_2, %c0_3] : memref<1x16xf32, #tpu.memory_space<vmem>>, vector<1x16xf32>
    %3 = vector.broadcast %2 : vector<1x16xf32> to vector<74x16xf32>
    %4 = arith.mulf %1, %3 : vector<74x16xf32>
    %c0_4 = arith.constant 0 : index
    %c0_5 = arith.constant 0 : index
    %5 = vector.load %arg4[%c0_4, %c0_5] : memref<1x16xf32, #tpu.memory_space<vmem>>, vector<1x16xf32>
    %6 = vector.broadcast %5 : vector<1x16xf32> to vector<74x16xf32>
    %7 = arith.addf %4, %6 : vector<74x16xf32>
    %cst = arith.constant 0.000000e+00 : f32
    %8 = vector.broadcast %cst : f32 to vector<74x16xf32>
    %9 = arith.maximumf %7, %8 : vector<74x16xf32>
    %10 = arith.truncf %9 : vector<74x16xf32> to vector<74x16xbf16>
    %c0_6 = arith.constant 0 : index
    %c0_7 = arith.constant 0 : index
    %11 = vector.load %arg2[%c0_6, %c0_7] : memref<16x16xbf16, #tpu.memory_space<vmem>>, vector<16x16xbf16>
    %cst_8 = arith.constant dense<0.000000e+00> : vector<74x16xf32>
    %12 = tpu.matmul %10, %11, %cst_8 {dimension_numbers = #tpu.dot_dimension_numbers<[1], [0], [0], [1], [0, 0, 1, 1], [], []>} : vector<74x16xbf16>, vector<16x16xbf16>, vector<74x16xf32> -> vector<74x16xf32>
    %c0_9 = arith.constant 0 : index
    %c0_10 = arith.constant 0 : index
    %13 = vector.load %arg5[%c0_9, %c0_10] : memref<1x16xf32, #tpu.memory_space<vmem>>, vector<1x16xf32>
    %14 = vector.broadcast %13 : vector<1x16xf32> to vector<74x16xf32>
    %15 = arith.addf %12, %14 : vector<74x16xf32>
    %cst_11 = arith.constant 0.000000e+00 : f32
    %16 = vector.broadcast %cst_11 : f32 to vector<74x16xf32>
    %17 = arith.maximumf %15, %16 : vector<74x16xf32>
    %c0_12 = arith.constant 0 : index
    %c0_13 = arith.constant 0 : index
    %18 = vector.load %arg6[%c0_12, %c0_13] : memref<74x1xf32, #tpu.memory_space<vmem>>, vector<74x1xf32>
    %19 = vector.broadcast %18 : vector<74x1xf32> to vector<74x16xf32>
    %20 = arith.mulf %17, %19 : vector<74x16xf32>
    %cst_14 = arith.constant 0.000000e+00 : f32
    %21 = vector.broadcast %cst_14 : f32 to vector<60x8xf32>
    %22 = vector.extract_strided_slice %20 {offsets = [0, 0], sizes = [60, 16], strides = [1, 1]} : vector<74x16xf32> to vector<60x16xf32>
    %23 = arith.truncf %22 : vector<60x16xf32> to vector<60x16xbf16>
    %c0_15 = arith.constant 0 : index
    %c0_16 = arith.constant 0 : index
    %c0_17 = arith.constant 0 : index
    %24 = vector.load %arg7[%c0_15, %c0_16, %c0_17] : memref<9x16x8xbf16, #tpu.memory_space<vmem>>, vector<1x16x8xbf16>
    %25 = vector.shape_cast %24 : vector<1x16x8xbf16> to vector<16x8xbf16>
    %cst_18 = arith.constant dense<0.000000e+00> : vector<60x8xf32>
    %26 = tpu.matmul %23, %25, %cst_18 {dimension_numbers = #tpu.dot_dimension_numbers<[1], [0], [0], [1], [0, 0, 1, 1], [], []>} : vector<60x16xbf16>, vector<16x8xbf16>, vector<60x8xf32> -> vector<60x8xf32>
    %27 = arith.addf %21, %26 : vector<60x8xf32>
    %28 = vector.extract_strided_slice %20 {offsets = [1, 0], sizes = [60, 16], strides = [1, 1]} : vector<74x16xf32> to vector<60x16xf32>
    %29 = arith.truncf %28 : vector<60x16xf32> to vector<60x16xbf16>
    %c1 = arith.constant 1 : index
    %c0_19 = arith.constant 0 : index
    %c0_20 = arith.constant 0 : index
    %30 = vector.load %arg7[%c1, %c0_19, %c0_20] : memref<9x16x8xbf16, #tpu.memory_space<vmem>>, vector<1x16x8xbf16>
    %31 = vector.shape_cast %30 : vector<1x16x8xbf16> to vector<16x8xbf16>
    %cst_21 = arith.constant dense<0.000000e+00> : vector<60x8xf32>
    %32 = tpu.matmul %29, %31, %cst_21 {dimension_numbers = #tpu.dot_dimension_numbers<[1], [0], [0], [1], [0, 0, 1, 1], [], []>} : vector<60x16xbf16>, vector<16x8xbf16>, vector<60x8xf32> -> vector<60x8xf32>
    %33 = arith.addf %27, %32 : vector<60x8xf32>
    %34 = vector.extract_strided_slice %20 {offsets = [2, 0], sizes = [60, 16], strides = [1, 1]} : vector<74x16xf32> to vector<60x16xf32>
    %35 = arith.truncf %34 : vector<60x16xf32> to vector<60x16xbf16>
    %c2 = arith.constant 2 : index
    %c0_22 = arith.constant 0 : index
    %c0_23 = arith.constant 0 : index
    %36 = vector.load %arg7[%c2, %c0_22, %c0_23] : memref<9x16x8xbf16, #tpu.memory_space<vmem>>, vector<1x16x8xbf16>
    %37 = vector.shape_cast %36 : vector<1x16x8xbf16> to vector<16x8xbf16>
    %cst_24 = arith.constant dense<0.000000e+00> : vector<60x8xf32>
    %38 = tpu.matmul %35, %37, %cst_24 {dimension_numbers = #tpu.dot_dimension_numbers<[1], [0], [0], [1], [0, 0, 1, 1], [], []>} : vector<60x16xbf16>, vector<16x8xbf16>, vector<60x8xf32> -> vector<60x8xf32>
    %39 = arith.addf %33, %38 : vector<60x8xf32>
    %40 = vector.extract_strided_slice %20 {offsets = [6, 0], sizes = [60, 16], strides = [1, 1]} : vector<74x16xf32> to vector<60x16xf32>
    %41 = arith.truncf %40 : vector<60x16xf32> to vector<60x16xbf16>
    %c3 = arith.constant 3 : index
    %c0_25 = arith.constant 0 : index
    %c0_26 = arith.constant 0 : index
    %42 = vector.load %arg7[%c3, %c0_25, %c0_26] : memref<9x16x8xbf16, #tpu.memory_space<vmem>>, vector<1x16x8xbf16>
    %43 = vector.shape_cast %42 : vector<1x16x8xbf16> to vector<16x8xbf16>
    %cst_27 = arith.constant dense<0.000000e+00> : vector<60x8xf32>
    %44 = tpu.matmul %41, %43, %cst_27 {dimension_numbers = #tpu.dot_dimension_numbers<[1], [0], [0], [1], [0, 0, 1, 1], [], []>} : vector<60x16xbf16>, vector<16x8xbf16>, vector<60x8xf32> -> vector<60x8xf32>
    %45 = arith.addf %39, %44 : vector<60x8xf32>
    %46 = vector.extract_strided_slice %20 {offsets = [7, 0], sizes = [60, 16], strides = [1, 1]} : vector<74x16xf32> to vector<60x16xf32>
    %47 = arith.truncf %46 : vector<60x16xf32> to vector<60x16xbf16>
    %c4 = arith.constant 4 : index
    %c0_28 = arith.constant 0 : index
    %c0_29 = arith.constant 0 : index
    %48 = vector.load %arg7[%c4, %c0_28, %c0_29] : memref<9x16x8xbf16, #tpu.memory_space<vmem>>, vector<1x16x8xbf16>
    %49 = vector.shape_cast %48 : vector<1x16x8xbf16> to vector<16x8xbf16>
    %cst_30 = arith.constant dense<0.000000e+00> : vector<60x8xf32>
    %50 = tpu.matmul %47, %49, %cst_30 {dimension_numbers = #tpu.dot_dimension_numbers<[1], [0], [0], [1], [0, 0, 1, 1], [], []>} : vector<60x16xbf16>, vector<16x8xbf16>, vector<60x8xf32> -> vector<60x8xf32>
    %51 = arith.addf %45, %50 : vector<60x8xf32>
    %52 = vector.extract_strided_slice %20 {offsets = [8, 0], sizes = [60, 16], strides = [1, 1]} : vector<74x16xf32> to vector<60x16xf32>
    %53 = arith.truncf %52 : vector<60x16xf32> to vector<60x16xbf16>
    %c5 = arith.constant 5 : index
    %c0_31 = arith.constant 0 : index
    %c0_32 = arith.constant 0 : index
    %54 = vector.load %arg7[%c5, %c0_31, %c0_32] : memref<9x16x8xbf16, #tpu.memory_space<vmem>>, vector<1x16x8xbf16>
    %55 = vector.shape_cast %54 : vector<1x16x8xbf16> to vector<16x8xbf16>
    %cst_33 = arith.constant dense<0.000000e+00> : vector<60x8xf32>
    %56 = tpu.matmul %53, %55, %cst_33 {dimension_numbers = #tpu.dot_dimension_numbers<[1], [0], [0], [1], [0, 0, 1, 1], [], []>} : vector<60x16xbf16>, vector<16x8xbf16>, vector<60x8xf32> -> vector<60x8xf32>
    %57 = arith.addf %51, %56 : vector<60x8xf32>
    %58 = vector.extract_strided_slice %20 {offsets = [12, 0], sizes = [60, 16], strides = [1, 1]} : vector<74x16xf32> to vector<60x16xf32>
    %59 = arith.truncf %58 : vector<60x16xf32> to vector<60x16xbf16>
    %c6 = arith.constant 6 : index
    %c0_34 = arith.constant 0 : index
    %c0_35 = arith.constant 0 : index
    %60 = vector.load %arg7[%c6, %c0_34, %c0_35] : memref<9x16x8xbf16, #tpu.memory_space<vmem>>, vector<1x16x8xbf16>
    %61 = vector.shape_cast %60 : vector<1x16x8xbf16> to vector<16x8xbf16>
    %cst_36 = arith.constant dense<0.000000e+00> : vector<60x8xf32>
    %62 = tpu.matmul %59, %61, %cst_36 {dimension_numbers = #tpu.dot_dimension_numbers<[1], [0], [0], [1], [0, 0, 1, 1], [], []>} : vector<60x16xbf16>, vector<16x8xbf16>, vector<60x8xf32> -> vector<60x8xf32>
    %63 = arith.addf %57, %62 : vector<60x8xf32>
    %64 = vector.extract_strided_slice %20 {offsets = [13, 0], sizes = [60, 16], strides = [1, 1]} : vector<74x16xf32> to vector<60x16xf32>
    %65 = arith.truncf %64 : vector<60x16xf32> to vector<60x16xbf16>
    %c7 = arith.constant 7 : index
    %c0_37 = arith.constant 0 : index
    %c0_38 = arith.constant 0 : index
    %66 = vector.load %arg7[%c7, %c0_37, %c0_38] : memref<9x16x8xbf16, #tpu.memory_space<vmem>>, vector<1x16x8xbf16>
    %67 = vector.shape_cast %66 : vector<1x16x8xbf16> to vector<16x8xbf16>
    %cst_39 = arith.constant dense<0.000000e+00> : vector<60x8xf32>
    %68 = tpu.matmul %65, %67, %cst_39 {dimension_numbers = #tpu.dot_dimension_numbers<[1], [0], [0], [1], [0, 0, 1, 1], [], []>} : vector<60x16xbf16>, vector<16x8xbf16>, vector<60x8xf32> -> vector<60x8xf32>
    %69 = arith.addf %63, %68 : vector<60x8xf32>
    %70 = vector.extract_strided_slice %20 {offsets = [14, 0], sizes = [60, 16], strides = [1, 1]} : vector<74x16xf32> to vector<60x16xf32>
    %71 = arith.truncf %70 : vector<60x16xf32> to vector<60x16xbf16>
    %c8 = arith.constant 8 : index
    %c0_40 = arith.constant 0 : index
    %c0_41 = arith.constant 0 : index
    %72 = vector.load %arg7[%c8, %c0_40, %c0_41] : memref<9x16x8xbf16, #tpu.memory_space<vmem>>, vector<1x16x8xbf16>
    %73 = vector.shape_cast %72 : vector<1x16x8xbf16> to vector<16x8xbf16>
    %cst_42 = arith.constant dense<0.000000e+00> : vector<60x8xf32>
    %74 = tpu.matmul %71, %73, %cst_42 {dimension_numbers = #tpu.dot_dimension_numbers<[1], [0], [0], [1], [0, 0, 1, 1], [], []>} : vector<60x16xbf16>, vector<16x8xbf16>, vector<60x8xf32> -> vector<60x8xf32>
    %75 = arith.addf %69, %74 : vector<60x8xf32>
    %c0_43 = arith.constant 0 : index
    %c0_44 = arith.constant 0 : index
    %c0_45 = arith.constant 0 : index
    %76 = vector.load %arg8[%c0_43, %c0_44, %c0_45] : memref<1x60x8xf32, #tpu.memory_space<vmem>>, vector<1x60x8xf32>
    %77 = vector.shape_cast %76 : vector<1x60x8xf32> to vector<60x8xf32>
    %78 = vector.shape_cast %75 : vector<60x8xf32> to vector<1x60x8xf32>
    tpu.vector_store %arg8[%c0_43, %c0_44, %c0_45], %78 {strides = array<i32>} : memref<1x60x8xf32, #tpu.memory_space<vmem>>, vector<1x60x8xf32>,
    return
  }
  func.func @transform_0(%arg0: i32) -> (i32, i32, i32) {
    %c0_i32 = arith.constant 0 : i32
    %c0_i32_0 = arith.constant 0 : i32
    %c0_i32_1 = arith.constant 0 : i32
    return %arg0, %c0_i32, %c0_i32_0 : i32, i32, i32
  }
  func.func @transform_1(%arg0: i32) -> (i32, i32) {
    %c0_i32 = arith.constant 0 : i32
    %c0_i32_0 = arith.constant 0 : i32
    %c0_i32_1 = arith.constant 0 : i32
    return %c0_i32, %c0_i32_0 : i32, i32
  }
  func.func @transform_2(%arg0: i32) -> (i32, i32) {
    %c0_i32 = arith.constant 0 : i32
    %c0_i32_0 = arith.constant 0 : i32
    %c0_i32_1 = arith.constant 0 : i32
    return %c0_i32, %c0_i32_0 : i32, i32
  }
  func.func @transform_3(%arg0: i32) -> (i32, i32) {
    %c0_i32 = arith.constant 0 : i32
    %c0_i32_0 = arith.constant 0 : i32
    %c0_i32_1 = arith.constant 0 : i32
    return %c0_i32, %c0_i32_0 : i32, i32
  }
  func.func @transform_4(%arg0: i32) -> (i32, i32) {
    %c0_i32 = arith.constant 0 : i32
    %c0_i32_0 = arith.constant 0 : i32
    %c0_i32_1 = arith.constant 0 : i32
    return %c0_i32, %c0_i32_0 : i32, i32
  }
  func.func @transform_5(%arg0: i32) -> (i32, i32) {
    %c0_i32 = arith.constant 0 : i32
    %c0_i32_0 = arith.constant 0 : i32
    %c0_i32_1 = arith.constant 0 : i32
    return %c0_i32, %c0_i32_0 : i32, i32
  }
  func.func @transform_6(%arg0: i32) -> (i32, i32, i32) {
    %c0_i32 = arith.constant 0 : i32
    %c0_i32_0 = arith.constant 0 : i32
    %c0_i32_1 = arith.constant 0 : i32
    %c0_i32_2 = arith.constant 0 : i32
    return %c0_i32, %c0_i32_0, %c0_i32_1 : i32, i32, i32
  }
  func.func @transform_7(%arg0: i32) -> (i32, i32, i32) {
    %c0_i32 = arith.constant 0 : i32
    %c0_i32_0 = arith.constant 0 : i32
    %c0_i32_1 = arith.constant 0 : i32
    return %arg0, %c0_i32, %c0_i32_0 : i32, i32, i32
  }
}

module attributes {stable_mosaic.version = 11 : i64} {
  func.func @dense_layer_kernel(%arg0: i32, %arg1: memref<1x74x24xf32, #tpu.memory_space<vmem>>, %arg2: memref<24x16xbf16, #tpu.memory_space<vmem>>, %arg3: memref<1x24xf32, #tpu.memory_space<vmem>>, %arg4: memref<1x24xf32, #tpu.memory_space<vmem>>, %arg5: memref<1x16xf32, #tpu.memory_space<vmem>>, %arg6: memref<74x1xf32, #tpu.memory_space<vmem>>, %arg7: memref<9x16x8xbf16, #tpu.memory_space<vmem>>, %arg8: memref<1x60x8xf32, #tpu.memory_space<vmem>>) attributes {dimension_semantics = [#tpu.dimension_semantics<parallel>], iteration_bounds = array<i64: 2>, scalar_prefetch = 0 : i64, scratch_operands = 0 : i64, tpu.core_type = #tpu.core_type<tc>, window_params = [{transform_indices = @transform_0, window_bounds = array<i64: 1, 74, 24>}, {pipeline_mode = #tpu.pipeline_mode<synchronous>, transform_indices = @transform_1, window_bounds = array<i64: 24, 16>}, {pipeline_mode = #tpu.pipeline_mode<synchronous>, transform_indices = @transform_2, window_bounds = array<i64: 1, 24>}, {pipeline_mode = #tpu.pipeline_mode<synchronous>, transform_indices = @transform_3, window_bounds = array<i64: 1, 24>}, {pipeline_mode = #tpu.pipeline_mode<synchronous>, transform_indices = @transform_4, window_bounds = array<i64: 1, 16>}, {pipeline_mode = #tpu.pipeline_mode<synchronous>, transform_indices = @transform_5, window_bounds = array<i64: 74, 1>}, {pipeline_mode = #tpu.pipeline_mode<synchronous>, transform_indices = @transform_6, window_bounds = array<i64: 9, 16, 8>}, {transform_indices = @transform_7, window_bounds = array<i64: 1, 60, 8>}]} {
    %c0 = arith.constant 0 : index
    %c0_0 = arith.constant 0 : index
    %c0_1 = arith.constant 0 : index
    %0 = vector.load %arg1[%c0, %c0_0, %c0_1] : memref<1x74x24xf32, #tpu.memory_space<vmem>>, vector<1x74x24xf32>
    %1 = vector.shape_cast %0 : vector<1x74x24xf32> to vector<74x24xf32>
    %c0_2 = arith.constant 0 : index
    %c0_3 = arith.constant 0 : index
    %2 = vector.load %arg3[%c0_2, %c0_3] : memref<1x24xf32, #tpu.memory_space<vmem>>, vector<1x24xf32>
    %3 = vector.broadcast %2 : vector<1x24xf32> to vector<74x24xf32>
    %4 = arith.mulf %1, %3 : vector<74x24xf32>
    %c0_4 = arith.constant 0 : index
    %c0_5 = arith.constant 0 : index
    %5 = vector.load %arg4[%c0_4, %c0_5] : memref<1x24xf32, #tpu.memory_space<vmem>>, vector<1x24xf32>
    %6 = vector.broadcast %5 : vector<1x24xf32> to vector<74x24xf32>
    %7 = arith.addf %4, %6 : vector<74x24xf32>
    %cst = arith.constant 0.000000e+00 : f32
    %8 = vector.broadcast %cst : f32 to vector<74x24xf32>
    %9 = arith.maximumf %7, %8 : vector<74x24xf32>
    %10 = arith.truncf %9 : vector<74x24xf32> to vector<74x24xbf16>
    %c0_6 = arith.constant 0 : index
    %c0_7 = arith.constant 0 : index
    %11 = vector.load %arg2[%c0_6, %c0_7] : memref<24x16xbf16, #tpu.memory_space<vmem>>, vector<24x16xbf16>
    %cst_8 = arith.constant dense<0.000000e+00> : vector<74x16xf32>
    %12 = tpu.matmul %10, %11, %cst_8 {dimension_numbers = #tpu.dot_dimension_numbers<[1], [0], [0], [1], [0, 0, 1, 1], [], []>} : vector<74x24xbf16>, vector<24x16xbf16>, vector<74x16xf32> -> vector<74x16xf32>
    %c0_9 = arith.constant 0 : index
    %c0_10 = arith.constant 0 : index
    %13 = vector.load %arg5[%c0_9, %c0_10] : memref<1x16xf32, #tpu.memory_space<vmem>>, vector<1x16xf32>
    %14 = vector.broadcast %13 : vector<1x16xf32> to vector<74x16xf32>
    %15 = arith.addf %12, %14 : vector<74x16xf32>
    %cst_11 = arith.constant 0.000000e+00 : f32
    %16 = vector.broadcast %cst_11 : f32 to vector<74x16xf32>
    %17 = arith.maximumf %15, %16 : vector<74x16xf32>
    %c0_12 = arith.constant 0 : index
    %c0_13 = arith.constant 0 : index
    %18 = vector.load %arg6[%c0_12, %c0_13] : memref<74x1xf32, #tpu.memory_space<vmem>>, vector<74x1xf32>
    %19 = vector.broadcast %18 : vector<74x1xf32> to vector<74x16xf32>
    %20 = arith.mulf %17, %19 : vector<74x16xf32>
    %cst_14 = arith.constant 0.000000e+00 : f32
    %21 = vector.broadcast %cst_14 : f32 to vector<60x8xf32>
    %22 = vector.extract_strided_slice %20 {offsets = [0, 0], sizes = [60, 16], strides = [1, 1]} : vector<74x16xf32> to vector<60x16xf32>
    %23 = arith.truncf %22 : vector<60x16xf32> to vector<60x16xbf16>
    %c0_15 = arith.constant 0 : index
    %c0_16 = arith.constant 0 : index
    %c0_17 = arith.constant 0 : index
    %24 = vector.load %arg7[%c0_15, %c0_16, %c0_17] : memref<9x16x8xbf16, #tpu.memory_space<vmem>>, vector<1x16x8xbf16>
    %25 = vector.shape_cast %24 : vector<1x16x8xbf16> to vector<16x8xbf16>
    %cst_18 = arith.constant dense<0.000000e+00> : vector<60x8xf32>
    %26 = tpu.matmul %23, %25, %cst_18 {dimension_numbers = #tpu.dot_dimension_numbers<[1], [0], [0], [1], [0, 0, 1, 1], [], []>} : vector<60x16xbf16>, vector<16x8xbf16>, vector<60x8xf32> -> vector<60x8xf32>
    %27 = arith.addf %21, %26 : vector<60x8xf32>
    %28 = vector.extract_strided_slice %20 {offsets = [1, 0], sizes = [60, 16], strides = [1, 1]} : vector<74x16xf32> to vector<60x16xf32>
    %29 = arith.truncf %28 : vector<60x16xf32> to vector<60x16xbf16>
    %c1 = arith.constant 1 : index
    %c0_19 = arith.constant 0 : index
    %c0_20 = arith.constant 0 : index
    %30 = vector.load %arg7[%c1, %c0_19, %c0_20] : memref<9x16x8xbf16, #tpu.memory_space<vmem>>, vector<1x16x8xbf16>
    %31 = vector.shape_cast %30 : vector<1x16x8xbf16> to vector<16x8xbf16>
    %cst_21 = arith.constant dense<0.000000e+00> : vector<60x8xf32>
    %32 = tpu.matmul %29, %31, %cst_21 {dimension_numbers = #tpu.dot_dimension_numbers<[1], [0], [0], [1], [0, 0, 1, 1], [], []>} : vector<60x16xbf16>, vector<16x8xbf16>, vector<60x8xf32> -> vector<60x8xf32>
    %33 = arith.addf %27, %32 : vector<60x8xf32>
    %34 = vector.extract_strided_slice %20 {offsets = [2, 0], sizes = [60, 16], strides = [1, 1]} : vector<74x16xf32> to vector<60x16xf32>
    %35 = arith.truncf %34 : vector<60x16xf32> to vector<60x16xbf16>
    %c2 = arith.constant 2 : index
    %c0_22 = arith.constant 0 : index
    %c0_23 = arith.constant 0 : index
    %36 = vector.load %arg7[%c2, %c0_22, %c0_23] : memref<9x16x8xbf16, #tpu.memory_space<vmem>>, vector<1x16x8xbf16>
    %37 = vector.shape_cast %36 : vector<1x16x8xbf16> to vector<16x8xbf16>
    %cst_24 = arith.constant dense<0.000000e+00> : vector<60x8xf32>
    %38 = tpu.matmul %35, %37, %cst_24 {dimension_numbers = #tpu.dot_dimension_numbers<[1], [0], [0], [1], [0, 0, 1, 1], [], []>} : vector<60x16xbf16>, vector<16x8xbf16>, vector<60x8xf32> -> vector<60x8xf32>
    %39 = arith.addf %33, %38 : vector<60x8xf32>
    %40 = vector.extract_strided_slice %20 {offsets = [6, 0], sizes = [60, 16], strides = [1, 1]} : vector<74x16xf32> to vector<60x16xf32>
    %41 = arith.truncf %40 : vector<60x16xf32> to vector<60x16xbf16>
    %c3 = arith.constant 3 : index
    %c0_25 = arith.constant 0 : index
    %c0_26 = arith.constant 0 : index
    %42 = vector.load %arg7[%c3, %c0_25, %c0_26] : memref<9x16x8xbf16, #tpu.memory_space<vmem>>, vector<1x16x8xbf16>
    %43 = vector.shape_cast %42 : vector<1x16x8xbf16> to vector<16x8xbf16>
    %cst_27 = arith.constant dense<0.000000e+00> : vector<60x8xf32>
    %44 = tpu.matmul %41, %43, %cst_27 {dimension_numbers = #tpu.dot_dimension_numbers<[1], [0], [0], [1], [0, 0, 1, 1], [], []>} : vector<60x16xbf16>, vector<16x8xbf16>, vector<60x8xf32> -> vector<60x8xf32>
    %45 = arith.addf %39, %44 : vector<60x8xf32>
    %46 = vector.extract_strided_slice %20 {offsets = [7, 0], sizes = [60, 16], strides = [1, 1]} : vector<74x16xf32> to vector<60x16xf32>
    %47 = arith.truncf %46 : vector<60x16xf32> to vector<60x16xbf16>
    %c4 = arith.constant 4 : index
    %c0_28 = arith.constant 0 : index
    %c0_29 = arith.constant 0 : index
    %48 = vector.load %arg7[%c4, %c0_28, %c0_29] : memref<9x16x8xbf16, #tpu.memory_space<vmem>>, vector<1x16x8xbf16>
    %49 = vector.shape_cast %48 : vector<1x16x8xbf16> to vector<16x8xbf16>
    %cst_30 = arith.constant dense<0.000000e+00> : vector<60x8xf32>
    %50 = tpu.matmul %47, %49, %cst_30 {dimension_numbers = #tpu.dot_dimension_numbers<[1], [0], [0], [1], [0, 0, 1, 1], [], []>} : vector<60x16xbf16>, vector<16x8xbf16>, vector<60x8xf32> -> vector<60x8xf32>
    %51 = arith.addf %45, %50 : vector<60x8xf32>
    %52 = vector.extract_strided_slice %20 {offsets = [8, 0], sizes = [60, 16], strides = [1, 1]} : vector<74x16xf32> to vector<60x16xf32>
    %53 = arith.truncf %52 : vector<60x16xf32> to vector<60x16xbf16>
    %c5 = arith.constant 5 : index
    %c0_31 = arith.constant 0 : index
    %c0_32 = arith.constant 0 : index
    %54 = vector.load %arg7[%c5, %c0_31, %c0_32] : memref<9x16x8xbf16, #tpu.memory_space<vmem>>, vector<1x16x8xbf16>
    %55 = vector.shape_cast %54 : vector<1x16x8xbf16> to vector<16x8xbf16>
    %cst_33 = arith.constant dense<0.000000e+00> : vector<60x8xf32>
    %56 = tpu.matmul %53, %55, %cst_33 {dimension_numbers = #tpu.dot_dimension_numbers<[1], [0], [0], [1], [0, 0, 1, 1], [], []>} : vector<60x16xbf16>, vector<16x8xbf16>, vector<60x8xf32> -> vector<60x8xf32>
    %57 = arith.addf %51, %56 : vector<60x8xf32>
    %58 = vector.extract_strided_slice %20 {offsets = [12, 0], sizes = [60, 16], strides = [1, 1]} : vector<74x16xf32> to vector<60x16xf32>
    %59 = arith.truncf %58 : vector<60x16xf32> to vector<60x16xbf16>
    %c6 = arith.constant 6 : index
    %c0_34 = arith.constant 0 : index
    %c0_35 = arith.constant 0 : index
    %60 = vector.load %arg7[%c6, %c0_34, %c0_35] : memref<9x16x8xbf16, #tpu.memory_space<vmem>>, vector<1x16x8xbf16>
    %61 = vector.shape_cast %60 : vector<1x16x8xbf16> to vector<16x8xbf16>
    %cst_36 = arith.constant dense<0.000000e+00> : vector<60x8xf32>
    %62 = tpu.matmul %59, %61, %cst_36 {dimension_numbers = #tpu.dot_dimension_numbers<[1], [0], [0], [1], [0, 0, 1, 1], [], []>} : vector<60x16xbf16>, vector<16x8xbf16>, vector<60x8xf32> -> vector<60x8xf32>
    %63 = arith.addf %57, %62 : vector<60x8xf32>
    %64 = vector.extract_strided_slice %20 {offsets = [13, 0], sizes = [60, 16], strides = [1, 1]} : vector<74x16xf32> to vector<60x16xf32>
    %65 = arith.truncf %64 : vector<60x16xf32> to vector<60x16xbf16>
    %c7 = arith.constant 7 : index
    %c0_37 = arith.constant 0 : index
    %c0_38 = arith.constant 0 : index
    %66 = vector.load %arg7[%c7, %c0_37, %c0_38] : memref<9x16x8xbf16, #tpu.memory_space<vmem>>, vector<1x16x8xbf16>
    %67 = vector.shape_cast %66 : vector<1x16x8xbf16> to vector<16x8xbf16>
    %cst_39 = arith.constant dense<0.000000e+00> : vector<60x8xf32>
    %68 = tpu.matmul %65, %67, %cst_39 {dimension_numbers = #tpu.dot_dimension_numbers<[1], [0], [0], [1], [0, 0, 1, 1], [], []>} : vector<60x16xbf16>, vector<16x8xbf16>, vector<60x8xf32> -> vector<60x8xf32>
    %69 = arith.addf %63, %68 : vector<60x8xf32>
    %70 = vector.extract_strided_slice %20 {offsets = [14, 0], sizes = [60, 16], strides = [1, 1]} : vector<74x16xf32> to vector<60x16xf32>
    %71 = arith.truncf %70 : vector<60x16xf32> to vector<60x16xbf16>
    %c8 = arith.constant 8 : index
    %c0_40 = arith.constant 0 : index
    %c0_41 = arith.constant 0 : index
    %72 = vector.load %arg7[%c8, %c0_40, %c0_41] : memref<9x16x8xbf16, #tpu.memory_space<vmem>>, vector<1x16x8xbf16>
    %73 = vector.shape_cast %72 : vector<1x16x8xbf16> to vector<16x8xbf16>
    %cst_42 = arith.constant dense<0.000000e+00> : vector<60x8xf32>
    %74 = tpu.matmul %71, %73, %cst_42 {dimension_numbers = #tpu.dot_dimension_numbers<[1], [0], [0], [1], [0, 0, 1, 1], [], []>} : vector<60x16xbf16>, vector<16x8xbf16>, vector<60x8xf32> -> vector<60x8xf32>
    %75 = arith.addf %69, %74 : vector<60x8xf32>
    %c0_43 = arith.constant 0 : index
    %c0_44 = arith.constant 0 : index
    %c0_45 = arith.constant 0 : index
    %76 = vector.load %arg8[%c0_43, %c0_44, %c0_45] : memref<1x60x8xf32, #tpu.memory_space<vmem>>, vector<1x60x8xf32>
    %77 = vector.shape_cast %76 : vector<1x60x8xf32> to vector<60x8xf32>
    %78 = vector.shape_cast %75 : vector<60x8xf32> to vector<1x60x8xf32>
    tpu.vector_store %arg8[%c0_43, %c0_44, %c0_45], %78 {strides = array<i32>} : memref<1x60x8xf32, #tpu.memory_space<vmem>>, vector<1x60x8xf32>,
    return
  }
  func.func @transform_0(%arg0: i32) -> (i32, i32, i32) {
    %c0_i32 = arith.constant 0 : i32
    %c0_i32_0 = arith.constant 0 : i32
    %c0_i32_1 = arith.constant 0 : i32
    return %arg0, %c0_i32, %c0_i32_0 : i32, i32, i32
  }
  func.func @transform_1(%arg0: i32) -> (i32, i32) {
    %c0_i32 = arith.constant 0 : i32
    %c0_i32_0 = arith.constant 0 : i32
    %c0_i32_1 = arith.constant 0 : i32
    return %c0_i32, %c0_i32_0 : i32, i32
  }
  func.func @transform_2(%arg0: i32) -> (i32, i32) {
    %c0_i32 = arith.constant 0 : i32
    %c0_i32_0 = arith.constant 0 : i32
    %c0_i32_1 = arith.constant 0 : i32
    return %c0_i32, %c0_i32_0 : i32, i32
  }
  func.func @transform_3(%arg0: i32) -> (i32, i32) {
    %c0_i32 = arith.constant 0 : i32
    %c0_i32_0 = arith.constant 0 : i32
    %c0_i32_1 = arith.constant 0 : i32
    return %c0_i32, %c0_i32_0 : i32, i32
  }
  func.func @transform_4(%arg0: i32) -> (i32, i32) {
    %c0_i32 = arith.constant 0 : i32
    %c0_i32_0 = arith.constant 0 : i32
    %c0_i32_1 = arith.constant 0 : i32
    return %c0_i32, %c0_i32_0 : i32, i32
  }
  func.func @transform_5(%arg0: i32) -> (i32, i32) {
    %c0_i32 = arith.constant 0 : i32
    %c0_i32_0 = arith.constant 0 : i32
    %c0_i32_1 = arith.constant 0 : i32
    return %c0_i32, %c0_i32_0 : i32, i32
  }
  func.func @transform_6(%arg0: i32) -> (i32, i32, i32) {
    %c0_i32 = arith.constant 0 : i32
    %c0_i32_0 = arith.constant 0 : i32
    %c0_i32_1 = arith.constant 0 : i32
    %c0_i32_2 = arith.constant 0 : i32
    return %c0_i32, %c0_i32_0, %c0_i32_1 : i32, i32, i32
  }
  func.func @transform_7(%arg0: i32) -> (i32, i32, i32) {
    %c0_i32 = arith.constant 0 : i32
    %c0_i32_0 = arith.constant 0 : i32
    %c0_i32_1 = arith.constant 0 : i32
    return %arg0, %c0_i32, %c0_i32_0 : i32, i32, i32
  }
}

module attributes {stable_mosaic.version = 11 : i64} {
  func.func @matmul_kernel(%arg0: i32, %arg1: memref<64x32xf32, #tpu.memory_space<vmem>>, %arg2: memref<32x16xbf16, #tpu.memory_space<vmem>>, %arg3: memref<1x32xf32, #tpu.memory_space<vmem>>, %arg4: memref<1x32xf32, #tpu.memory_space<vmem>>, %arg5: memref<1x16xf32, #tpu.memory_space<vmem>>, %arg6: memref<64x16xf32, #tpu.memory_space<vmem>>) attributes {dimension_semantics = [#tpu.dimension_semantics<parallel>], iteration_bounds = array<i64: 1>, scalar_prefetch = 0 : i64, scratch_operands = 0 : i64, tpu.core_type = #tpu.core_type<tc>, window_params = [{transform_indices = @transform_0, window_bounds = array<i64: 64, 32>}, {pipeline_mode = #tpu.pipeline_mode<synchronous>, transform_indices = @transform_1, window_bounds = array<i64: 32, 16>}, {pipeline_mode = #tpu.pipeline_mode<synchronous>, transform_indices = @transform_2, window_bounds = array<i64: 1, 32>}, {pipeline_mode = #tpu.pipeline_mode<synchronous>, transform_indices = @transform_3, window_bounds = array<i64: 1, 32>}, {pipeline_mode = #tpu.pipeline_mode<synchronous>, transform_indices = @transform_4, window_bounds = array<i64: 1, 16>}, {transform_indices = @transform_5, window_bounds = array<i64: 64, 16>}]} {
    %c0 = arith.constant 0 : index
    %c0_0 = arith.constant 0 : index
    %0 = vector.load %arg1[%c0, %c0_0] : memref<64x32xf32, #tpu.memory_space<vmem>>, vector<64x32xf32>
    %c0_1 = arith.constant 0 : index
    %c0_2 = arith.constant 0 : index
    %1 = vector.load %arg3[%c0_1, %c0_2] : memref<1x32xf32, #tpu.memory_space<vmem>>, vector<1x32xf32>
    %2 = vector.broadcast %1 : vector<1x32xf32> to vector<64x32xf32>
    %3 = arith.mulf %0, %2 : vector<64x32xf32>
    %c0_3 = arith.constant 0 : index
    %c0_4 = arith.constant 0 : index
    %4 = vector.load %arg4[%c0_3, %c0_4] : memref<1x32xf32, #tpu.memory_space<vmem>>, vector<1x32xf32>
    %5 = vector.broadcast %4 : vector<1x32xf32> to vector<64x32xf32>
    %6 = arith.addf %3, %5 : vector<64x32xf32>
    %cst = arith.constant 0.000000e+00 : f32
    %7 = vector.broadcast %cst : f32 to vector<64x32xf32>
    %8 = arith.maximumf %6, %7 : vector<64x32xf32>
    %9 = arith.truncf %8 : vector<64x32xf32> to vector<64x32xbf16>
    %c0_5 = arith.constant 0 : index
    %c0_6 = arith.constant 0 : index
    %10 = vector.load %arg2[%c0_5, %c0_6] : memref<32x16xbf16, #tpu.memory_space<vmem>>, vector<32x16xbf16>
    %cst_7 = arith.constant dense<0.000000e+00> : vector<64x16xf32>
    %11 = tpu.matmul %9, %10, %cst_7 {dimension_numbers = #tpu.dot_dimension_numbers<[1], [0], [0], [1], [0, 0, 1, 1], [], []>} : vector<64x32xbf16>, vector<32x16xbf16>, vector<64x16xf32> -> vector<64x16xf32>
    %c0_8 = arith.constant 0 : index
    %c0_9 = arith.constant 0 : index
    %12 = vector.load %arg5[%c0_8, %c0_9] : memref<1x16xf32, #tpu.memory_space<vmem>>, vector<1x16xf32>
    %13 = vector.broadcast %12 : vector<1x16xf32> to vector<64x16xf32>
    %14 = arith.addf %11, %13 : vector<64x16xf32>
    %c0_10 = arith.constant 0 : index
    %c0_11 = arith.constant 0 : index
    %15 = vector.load %arg6[%c0_10, %c0_11] : memref<64x16xf32, #tpu.memory_space<vmem>>, vector<64x16xf32>
    tpu.vector_store %arg6[%c0_10, %c0_11], %14 {strides = array<i32>} : memref<64x16xf32, #tpu.memory_space<vmem>>, vector<64x16xf32>,
    return
  }
  func.func @transform_0(%arg0: i32) -> (i32, i32) {
    %c0_i32 = arith.constant 0 : i32
    %c0_i32_0 = arith.constant 0 : i32
    return %arg0, %c0_i32 : i32, i32
  }
  func.func @transform_1(%arg0: i32) -> (i32, i32) {
    %c0_i32 = arith.constant 0 : i32
    %c0_i32_0 = arith.constant 0 : i32
    %c0_i32_1 = arith.constant 0 : i32
    return %c0_i32, %c0_i32_0 : i32, i32
  }
  func.func @transform_2(%arg0: i32) -> (i32, i32) {
    %c0_i32 = arith.constant 0 : i32
    %c0_i32_0 = arith.constant 0 : i32
    %c0_i32_1 = arith.constant 0 : i32
    return %c0_i32, %c0_i32_0 : i32, i32
  }
  func.func @transform_3(%arg0: i32) -> (i32, i32) {
    %c0_i32 = arith.constant 0 : i32
    %c0_i32_0 = arith.constant 0 : i32
    %c0_i32_1 = arith.constant 0 : i32
    return %c0_i32, %c0_i32_0 : i32, i32
  }
  func.func @transform_4(%arg0: i32) -> (i32, i32) {
    %c0_i32 = arith.constant 0 : i32
    %c0_i32_0 = arith.constant 0 : i32
    %c0_i32_1 = arith.constant 0 : i32
    return %c0_i32, %c0_i32_0 : i32, i32
  }
  func.func @transform_5(%arg0: i32) -> (i32, i32) {
    %c0_i32 = arith.constant 0 : i32
    %c0_i32_0 = arith.constant 0 : i32
    return %arg0, %c0_i32 : i32, i32
  }
}

module attributes {stable_mosaic.version = 11 : i64} {
  func.func @avgpool_h2_kernel(%arg0: i32, %arg1: memref<8x2x64xf32, #tpu.memory_space<vmem>>, %arg2: memref<8x64xf32, #tpu.memory_space<vmem>>) attributes {dimension_semantics = [#tpu.dimension_semantics<parallel>], iteration_bounds = array<i64: 1>, scalar_prefetch = 0 : i64, scratch_operands = 0 : i64, tpu.core_type = #tpu.core_type<tc>, window_params = [{transform_indices = @transform_0, window_bounds = array<i64: 8, 2, 64>}, {transform_indices = @transform_1, window_bounds = array<i64: 8, 64>}]} {
    %c0 = arith.constant 0 : index
    %c0_0 = arith.constant 0 : index
    %c0_1 = arith.constant 0 : index
    %0 = vector.load %arg1[%c0, %c0_0, %c0_1] : memref<8x2x64xf32, #tpu.memory_space<vmem>>, vector<8x2x64xf32>
    %1 = vector.extract_strided_slice %0 {offsets = [0, 0, 0], sizes = [8, 1, 64], strides = [1, 1, 1]} : vector<8x2x64xf32> to vector<8x1x64xf32>
    %2 = vector.shape_cast %1 : vector<8x1x64xf32> to vector<8x64xf32>
    %3 = vector.extract_strided_slice %0 {offsets = [0, 1, 0], sizes = [8, 1, 64], strides = [1, 1, 1]} : vector<8x2x64xf32> to vector<8x1x64xf32>
    %4 = vector.shape_cast %3 : vector<8x1x64xf32> to vector<8x64xf32>
    %5 = arith.addf %2, %4 : vector<8x64xf32>
    %cst = arith.constant 5.000000e-01 : f32
    %6 = vector.broadcast %cst : f32 to vector<8x64xf32>
    %7 = arith.mulf %6, %5 : vector<8x64xf32>
    %c0_2 = arith.constant 0 : index
    %c0_3 = arith.constant 0 : index
    %8 = vector.load %arg2[%c0_2, %c0_3] : memref<8x64xf32, #tpu.memory_space<vmem>>, vector<8x64xf32>
    tpu.vector_store %arg2[%c0_2, %c0_3], %7 {strides = array<i32>} : memref<8x64xf32, #tpu.memory_space<vmem>>, vector<8x64xf32>,
    return
  }
  func.func @transform_0(%arg0: i32) -> (i32, i32, i32) {
    %c0_i32 = arith.constant 0 : i32
    %c0_i32_0 = arith.constant 0 : i32
    %c0_i32_1 = arith.constant 0 : i32
    return %arg0, %c0_i32, %c0_i32_0 : i32, i32, i32
  }
  func.func @transform_1(%arg0: i32) -> (i32, i32) {
    %c0_i32 = arith.constant 0 : i32
    %c0_i32_0 = arith.constant 0 : i32
    return %arg0, %c0_i32 : i32, i32
  }
}

module attributes {stable_mosaic.version = 11 : i64} {
  func.func @dense_layer_kernel(%arg0: i32, %arg1: memref<1x50x16xf32, #tpu.memory_space<vmem>>, %arg2: memref<16x16xbf16, #tpu.memory_space<vmem>>, %arg3: memref<1x16xf32, #tpu.memory_space<vmem>>, %arg4: memref<1x16xf32, #tpu.memory_space<vmem>>, %arg5: memref<1x16xf32, #tpu.memory_space<vmem>>, %arg6: memref<50x1xf32, #tpu.memory_space<vmem>>, %arg7: memref<9x16x8xbf16, #tpu.memory_space<vmem>>, %arg8: memref<1x36x8xf32, #tpu.memory_space<vmem>>) attributes {dimension_semantics = [#tpu.dimension_semantics<parallel>], iteration_bounds = array<i64: 2>, scalar_prefetch = 0 : i64, scratch_operands = 0 : i64, tpu.core_type = #tpu.core_type<tc>, window_params = [{transform_indices = @transform_0, window_bounds = array<i64: 1, 50, 16>}, {pipeline_mode = #tpu.pipeline_mode<synchronous>, transform_indices = @transform_1, window_bounds = array<i64: 16, 16>}, {pipeline_mode = #tpu.pipeline_mode<synchronous>, transform_indices = @transform_2, window_bounds = array<i64: 1, 16>}, {pipeline_mode = #tpu.pipeline_mode<synchronous>, transform_indices = @transform_3, window_bounds = array<i64: 1, 16>}, {pipeline_mode = #tpu.pipeline_mode<synchronous>, transform_indices = @transform_4, window_bounds = array<i64: 1, 16>}, {pipeline_mode = #tpu.pipeline_mode<synchronous>, transform_indices = @transform_5, window_bounds = array<i64: 50, 1>}, {pipeline_mode = #tpu.pipeline_mode<synchronous>, transform_indices = @transform_6, window_bounds = array<i64: 9, 16, 8>}, {transform_indices = @transform_7, window_bounds = array<i64: 1, 36, 8>}]} {
    %c0 = arith.constant 0 : index
    %c0_0 = arith.constant 0 : index
    %c0_1 = arith.constant 0 : index
    %0 = vector.load %arg1[%c0, %c0_0, %c0_1] : memref<1x50x16xf32, #tpu.memory_space<vmem>>, vector<1x50x16xf32>
    %1 = vector.shape_cast %0 : vector<1x50x16xf32> to vector<50x16xf32>
    %c0_2 = arith.constant 0 : index
    %c0_3 = arith.constant 0 : index
    %2 = vector.load %arg3[%c0_2, %c0_3] : memref<1x16xf32, #tpu.memory_space<vmem>>, vector<1x16xf32>
    %3 = vector.broadcast %2 : vector<1x16xf32> to vector<50x16xf32>
    %4 = arith.mulf %1, %3 : vector<50x16xf32>
    %c0_4 = arith.constant 0 : index
    %c0_5 = arith.constant 0 : index
    %5 = vector.load %arg4[%c0_4, %c0_5] : memref<1x16xf32, #tpu.memory_space<vmem>>, vector<1x16xf32>
    %6 = vector.broadcast %5 : vector<1x16xf32> to vector<50x16xf32>
    %7 = arith.addf %4, %6 : vector<50x16xf32>
    %cst = arith.constant 0.000000e+00 : f32
    %8 = vector.broadcast %cst : f32 to vector<50x16xf32>
    %9 = arith.maximumf %7, %8 : vector<50x16xf32>
    %10 = arith.truncf %9 : vector<50x16xf32> to vector<50x16xbf16>
    %c0_6 = arith.constant 0 : index
    %c0_7 = arith.constant 0 : index
    %11 = vector.load %arg2[%c0_6, %c0_7] : memref<16x16xbf16, #tpu.memory_space<vmem>>, vector<16x16xbf16>
    %cst_8 = arith.constant dense<0.000000e+00> : vector<50x16xf32>
    %12 = tpu.matmul %10, %11, %cst_8 {dimension_numbers = #tpu.dot_dimension_numbers<[1], [0], [0], [1], [0, 0, 1, 1], [], []>} : vector<50x16xbf16>, vector<16x16xbf16>, vector<50x16xf32> -> vector<50x16xf32>
    %c0_9 = arith.constant 0 : index
    %c0_10 = arith.constant 0 : index
    %13 = vector.load %arg5[%c0_9, %c0_10] : memref<1x16xf32, #tpu.memory_space<vmem>>, vector<1x16xf32>
    %14 = vector.broadcast %13 : vector<1x16xf32> to vector<50x16xf32>
    %15 = arith.addf %12, %14 : vector<50x16xf32>
    %cst_11 = arith.constant 0.000000e+00 : f32
    %16 = vector.broadcast %cst_11 : f32 to vector<50x16xf32>
    %17 = arith.maximumf %15, %16 : vector<50x16xf32>
    %c0_12 = arith.constant 0 : index
    %c0_13 = arith.constant 0 : index
    %18 = vector.load %arg6[%c0_12, %c0_13] : memref<50x1xf32, #tpu.memory_space<vmem>>, vector<50x1xf32>
    %19 = vector.broadcast %18 : vector<50x1xf32> to vector<50x16xf32>
    %20 = arith.mulf %17, %19 : vector<50x16xf32>
    %cst_14 = arith.constant 0.000000e+00 : f32
    %21 = vector.broadcast %cst_14 : f32 to vector<36x8xf32>
    %22 = vector.extract_strided_slice %20 {offsets = [0, 0], sizes = [36, 16], strides = [1, 1]} : vector<50x16xf32> to vector<36x16xf32>
    %23 = arith.truncf %22 : vector<36x16xf32> to vector<36x16xbf16>
    %c0_15 = arith.constant 0 : index
    %c0_16 = arith.constant 0 : index
    %c0_17 = arith.constant 0 : index
    %24 = vector.load %arg7[%c0_15, %c0_16, %c0_17] : memref<9x16x8xbf16, #tpu.memory_space<vmem>>, vector<1x16x8xbf16>
    %25 = vector.shape_cast %24 : vector<1x16x8xbf16> to vector<16x8xbf16>
    %cst_18 = arith.constant dense<0.000000e+00> : vector<36x8xf32>
    %26 = tpu.matmul %23, %25, %cst_18 {dimension_numbers = #tpu.dot_dimension_numbers<[1], [0], [0], [1], [0, 0, 1, 1], [], []>} : vector<36x16xbf16>, vector<16x8xbf16>, vector<36x8xf32> -> vector<36x8xf32>
    %27 = arith.addf %21, %26 : vector<36x8xf32>
    %28 = vector.extract_strided_slice %20 {offsets = [1, 0], sizes = [36, 16], strides = [1, 1]} : vector<50x16xf32> to vector<36x16xf32>
    %29 = arith.truncf %28 : vector<36x16xf32> to vector<36x16xbf16>
    %c1 = arith.constant 1 : index
    %c0_19 = arith.constant 0 : index
    %c0_20 = arith.constant 0 : index
    %30 = vector.load %arg7[%c1, %c0_19, %c0_20] : memref<9x16x8xbf16, #tpu.memory_space<vmem>>, vector<1x16x8xbf16>
    %31 = vector.shape_cast %30 : vector<1x16x8xbf16> to vector<16x8xbf16>
    %cst_21 = arith.constant dense<0.000000e+00> : vector<36x8xf32>
    %32 = tpu.matmul %29, %31, %cst_21 {dimension_numbers = #tpu.dot_dimension_numbers<[1], [0], [0], [1], [0, 0, 1, 1], [], []>} : vector<36x16xbf16>, vector<16x8xbf16>, vector<36x8xf32> -> vector<36x8xf32>
    %33 = arith.addf %27, %32 : vector<36x8xf32>
    %34 = vector.extract_strided_slice %20 {offsets = [2, 0], sizes = [36, 16], strides = [1, 1]} : vector<50x16xf32> to vector<36x16xf32>
    %35 = arith.truncf %34 : vector<36x16xf32> to vector<36x16xbf16>
    %c2 = arith.constant 2 : index
    %c0_22 = arith.constant 0 : index
    %c0_23 = arith.constant 0 : index
    %36 = vector.load %arg7[%c2, %c0_22, %c0_23] : memref<9x16x8xbf16, #tpu.memory_space<vmem>>, vector<1x16x8xbf16>
    %37 = vector.shape_cast %36 : vector<1x16x8xbf16> to vector<16x8xbf16>
    %cst_24 = arith.constant dense<0.000000e+00> : vector<36x8xf32>
    %38 = tpu.matmul %35, %37, %cst_24 {dimension_numbers = #tpu.dot_dimension_numbers<[1], [0], [0], [1], [0, 0, 1, 1], [], []>} : vector<36x16xbf16>, vector<16x8xbf16>, vector<36x8xf32> -> vector<36x8xf32>
    %39 = arith.addf %33, %38 : vector<36x8xf32>
    %40 = vector.extract_strided_slice %20 {offsets = [6, 0], sizes = [36, 16], strides = [1, 1]} : vector<50x16xf32> to vector<36x16xf32>
    %41 = arith.truncf %40 : vector<36x16xf32> to vector<36x16xbf16>
    %c3 = arith.constant 3 : index
    %c0_25 = arith.constant 0 : index
    %c0_26 = arith.constant 0 : index
    %42 = vector.load %arg7[%c3, %c0_25, %c0_26] : memref<9x16x8xbf16, #tpu.memory_space<vmem>>, vector<1x16x8xbf16>
    %43 = vector.shape_cast %42 : vector<1x16x8xbf16> to vector<16x8xbf16>
    %cst_27 = arith.constant dense<0.000000e+00> : vector<36x8xf32>
    %44 = tpu.matmul %41, %43, %cst_27 {dimension_numbers = #tpu.dot_dimension_numbers<[1], [0], [0], [1], [0, 0, 1, 1], [], []>} : vector<36x16xbf16>, vector<16x8xbf16>, vector<36x8xf32> -> vector<36x8xf32>
    %45 = arith.addf %39, %44 : vector<36x8xf32>
    %46 = vector.extract_strided_slice %20 {offsets = [7, 0], sizes = [36, 16], strides = [1, 1]} : vector<50x16xf32> to vector<36x16xf32>
    %47 = arith.truncf %46 : vector<36x16xf32> to vector<36x16xbf16>
    %c4 = arith.constant 4 : index
    %c0_28 = arith.constant 0 : index
    %c0_29 = arith.constant 0 : index
    %48 = vector.load %arg7[%c4, %c0_28, %c0_29] : memref<9x16x8xbf16, #tpu.memory_space<vmem>>, vector<1x16x8xbf16>
    %49 = vector.shape_cast %48 : vector<1x16x8xbf16> to vector<16x8xbf16>
    %cst_30 = arith.constant dense<0.000000e+00> : vector<36x8xf32>
    %50 = tpu.matmul %47, %49, %cst_30 {dimension_numbers = #tpu.dot_dimension_numbers<[1], [0], [0], [1], [0, 0, 1, 1], [], []>} : vector<36x16xbf16>, vector<16x8xbf16>, vector<36x8xf32> -> vector<36x8xf32>
    %51 = arith.addf %45, %50 : vector<36x8xf32>
    %52 = vector.extract_strided_slice %20 {offsets = [8, 0], sizes = [36, 16], strides = [1, 1]} : vector<50x16xf32> to vector<36x16xf32>
    %53 = arith.truncf %52 : vector<36x16xf32> to vector<36x16xbf16>
    %c5 = arith.constant 5 : index
    %c0_31 = arith.constant 0 : index
    %c0_32 = arith.constant 0 : index
    %54 = vector.load %arg7[%c5, %c0_31, %c0_32] : memref<9x16x8xbf16, #tpu.memory_space<vmem>>, vector<1x16x8xbf16>
    %55 = vector.shape_cast %54 : vector<1x16x8xbf16> to vector<16x8xbf16>
    %cst_33 = arith.constant dense<0.000000e+00> : vector<36x8xf32>
    %56 = tpu.matmul %53, %55, %cst_33 {dimension_numbers = #tpu.dot_dimension_numbers<[1], [0], [0], [1], [0, 0, 1, 1], [], []>} : vector<36x16xbf16>, vector<16x8xbf16>, vector<36x8xf32> -> vector<36x8xf32>
    %57 = arith.addf %51, %56 : vector<36x8xf32>
    %58 = vector.extract_strided_slice %20 {offsets = [12, 0], sizes = [36, 16], strides = [1, 1]} : vector<50x16xf32> to vector<36x16xf32>
    %59 = arith.truncf %58 : vector<36x16xf32> to vector<36x16xbf16>
    %c6 = arith.constant 6 : index
    %c0_34 = arith.constant 0 : index
    %c0_35 = arith.constant 0 : index
    %60 = vector.load %arg7[%c6, %c0_34, %c0_35] : memref<9x16x8xbf16, #tpu.memory_space<vmem>>, vector<1x16x8xbf16>
    %61 = vector.shape_cast %60 : vector<1x16x8xbf16> to vector<16x8xbf16>
    %cst_36 = arith.constant dense<0.000000e+00> : vector<36x8xf32>
    %62 = tpu.matmul %59, %61, %cst_36 {dimension_numbers = #tpu.dot_dimension_numbers<[1], [0], [0], [1], [0, 0, 1, 1], [], []>} : vector<36x16xbf16>, vector<16x8xbf16>, vector<36x8xf32> -> vector<36x8xf32>
    %63 = arith.addf %57, %62 : vector<36x8xf32>
    %64 = vector.extract_strided_slice %20 {offsets = [13, 0], sizes = [36, 16], strides = [1, 1]} : vector<50x16xf32> to vector<36x16xf32>
    %65 = arith.truncf %64 : vector<36x16xf32> to vector<36x16xbf16>
    %c7 = arith.constant 7 : index
    %c0_37 = arith.constant 0 : index
    %c0_38 = arith.constant 0 : index
    %66 = vector.load %arg7[%c7, %c0_37, %c0_38] : memref<9x16x8xbf16, #tpu.memory_space<vmem>>, vector<1x16x8xbf16>
    %67 = vector.shape_cast %66 : vector<1x16x8xbf16> to vector<16x8xbf16>
    %cst_39 = arith.constant dense<0.000000e+00> : vector<36x8xf32>
    %68 = tpu.matmul %65, %67, %cst_39 {dimension_numbers = #tpu.dot_dimension_numbers<[1], [0], [0], [1], [0, 0, 1, 1], [], []>} : vector<36x16xbf16>, vector<16x8xbf16>, vector<36x8xf32> -> vector<36x8xf32>
    %69 = arith.addf %63, %68 : vector<36x8xf32>
    %70 = vector.extract_strided_slice %20 {offsets = [14, 0], sizes = [36, 16], strides = [1, 1]} : vector<50x16xf32> to vector<36x16xf32>
    %71 = arith.truncf %70 : vector<36x16xf32> to vector<36x16xbf16>
    %c8 = arith.constant 8 : index
    %c0_40 = arith.constant 0 : index
    %c0_41 = arith.constant 0 : index
    %72 = vector.load %arg7[%c8, %c0_40, %c0_41] : memref<9x16x8xbf16, #tpu.memory_space<vmem>>, vector<1x16x8xbf16>
    %73 = vector.shape_cast %72 : vector<1x16x8xbf16> to vector<16x8xbf16>
    %cst_42 = arith.constant dense<0.000000e+00> : vector<36x8xf32>
    %74 = tpu.matmul %71, %73, %cst_42 {dimension_numbers = #tpu.dot_dimension_numbers<[1], [0], [0], [1], [0, 0, 1, 1], [], []>} : vector<36x16xbf16>, vector<16x8xbf16>, vector<36x8xf32> -> vector<36x8xf32>
    %75 = arith.addf %69, %74 : vector<36x8xf32>
    %c0_43 = arith.constant 0 : index
    %c0_44 = arith.constant 0 : index
    %c0_45 = arith.constant 0 : index
    %76 = vector.load %arg8[%c0_43, %c0_44, %c0_45] : memref<1x36x8xf32, #tpu.memory_space<vmem>>, vector<1x36x8xf32>
    %77 = vector.shape_cast %76 : vector<1x36x8xf32> to vector<36x8xf32>
    %78 = vector.shape_cast %75 : vector<36x8xf32> to vector<1x36x8xf32>
    tpu.vector_store %arg8[%c0_43, %c0_44, %c0_45], %78 {strides = array<i32>} : memref<1x36x8xf32, #tpu.memory_space<vmem>>, vector<1x36x8xf32>,
    return
  }
  func.func @transform_0(%arg0: i32) -> (i32, i32, i32) {
    %c0_i32 = arith.constant 0 : i32
    %c0_i32_0 = arith.constant 0 : i32
    %c0_i32_1 = arith.constant 0 : i32
    return %arg0, %c0_i32, %c0_i32_0 : i32, i32, i32
  }
  func.func @transform_1(%arg0: i32) -> (i32, i32) {
    %c0_i32 = arith.constant 0 : i32
    %c0_i32_0 = arith.constant 0 : i32
    %c0_i32_1 = arith.constant 0 : i32
    return %c0_i32, %c0_i32_0 : i32, i32
  }
  func.func @transform_2(%arg0: i32) -> (i32, i32) {
    %c0_i32 = arith.constant 0 : i32
    %c0_i32_0 = arith.constant 0 : i32
    %c0_i32_1 = arith.constant 0 : i32
    return %c0_i32, %c0_i32_0 : i32, i32
  }
  func.func @transform_3(%arg0: i32) -> (i32, i32) {
    %c0_i32 = arith.constant 0 : i32
    %c0_i32_0 = arith.constant 0 : i32
    %c0_i32_1 = arith.constant 0 : i32
    return %c0_i32, %c0_i32_0 : i32, i32
  }
  func.func @transform_4(%arg0: i32) -> (i32, i32) {
    %c0_i32 = arith.constant 0 : i32
    %c0_i32_0 = arith.constant 0 : i32
    %c0_i32_1 = arith.constant 0 : i32
    return %c0_i32, %c0_i32_0 : i32, i32
  }
  func.func @transform_5(%arg0: i32) -> (i32, i32) {
    %c0_i32 = arith.constant 0 : i32
    %c0_i32_0 = arith.constant 0 : i32
    %c0_i32_1 = arith.constant 0 : i32
    return %c0_i32, %c0_i32_0 : i32, i32
  }
  func.func @transform_6(%arg0: i32) -> (i32, i32, i32) {
    %c0_i32 = arith.constant 0 : i32
    %c0_i32_0 = arith.constant 0 : i32
    %c0_i32_1 = arith.constant 0 : i32
    %c0_i32_2 = arith.constant 0 : i32
    return %c0_i32, %c0_i32_0, %c0_i32_1 : i32, i32, i32
  }
  func.func @transform_7(%arg0: i32) -> (i32, i32, i32) {
    %c0_i32 = arith.constant 0 : i32
    %c0_i32_0 = arith.constant 0 : i32
    %c0_i32_1 = arith.constant 0 : i32
    return %arg0, %c0_i32, %c0_i32_0 : i32, i32, i32
  }
}

module attributes {stable_mosaic.version = 11 : i64} {
  func.func @matmul_kernel(%arg0: i32, %arg1: memref<32x32xf32, #tpu.memory_space<vmem>>, %arg2: memref<32x16xbf16, #tpu.memory_space<vmem>>, %arg3: memref<1x32xf32, #tpu.memory_space<vmem>>, %arg4: memref<1x32xf32, #tpu.memory_space<vmem>>, %arg5: memref<1x16xf32, #tpu.memory_space<vmem>>, %arg6: memref<32x16xf32, #tpu.memory_space<vmem>>) attributes {dimension_semantics = [#tpu.dimension_semantics<parallel>], iteration_bounds = array<i64: 1>, scalar_prefetch = 0 : i64, scratch_operands = 0 : i64, tpu.core_type = #tpu.core_type<tc>, window_params = [{transform_indices = @transform_0, window_bounds = array<i64: 32, 32>}, {pipeline_mode = #tpu.pipeline_mode<synchronous>, transform_indices = @transform_1, window_bounds = array<i64: 32, 16>}, {pipeline_mode = #tpu.pipeline_mode<synchronous>, transform_indices = @transform_2, window_bounds = array<i64: 1, 32>}, {pipeline_mode = #tpu.pipeline_mode<synchronous>, transform_indices = @transform_3, window_bounds = array<i64: 1, 32>}, {pipeline_mode = #tpu.pipeline_mode<synchronous>, transform_indices = @transform_4, window_bounds = array<i64: 1, 16>}, {transform_indices = @transform_5, window_bounds = array<i64: 32, 16>}]} {
    %c0 = arith.constant 0 : index
    %c0_0 = arith.constant 0 : index
    %0 = vector.load %arg1[%c0, %c0_0] : memref<32x32xf32, #tpu.memory_space<vmem>>, vector<32x32xf32>
    %c0_1 = arith.constant 0 : index
    %c0_2 = arith.constant 0 : index
    %1 = vector.load %arg3[%c0_1, %c0_2] : memref<1x32xf32, #tpu.memory_space<vmem>>, vector<1x32xf32>
    %2 = vector.broadcast %1 : vector<1x32xf32> to vector<32x32xf32>
    %3 = arith.mulf %0, %2 : vector<32x32xf32>
    %c0_3 = arith.constant 0 : index
    %c0_4 = arith.constant 0 : index
    %4 = vector.load %arg4[%c0_3, %c0_4] : memref<1x32xf32, #tpu.memory_space<vmem>>, vector<1x32xf32>
    %5 = vector.broadcast %4 : vector<1x32xf32> to vector<32x32xf32>
    %6 = arith.addf %3, %5 : vector<32x32xf32>
    %cst = arith.constant 0.000000e+00 : f32
    %7 = vector.broadcast %cst : f32 to vector<32x32xf32>
    %8 = arith.maximumf %6, %7 : vector<32x32xf32>
    %9 = arith.truncf %8 : vector<32x32xf32> to vector<32x32xbf16>
    %c0_5 = arith.constant 0 : index
    %c0_6 = arith.constant 0 : index
    %10 = vector.load %arg2[%c0_5, %c0_6] : memref<32x16xbf16, #tpu.memory_space<vmem>>, vector<32x16xbf16>
    %cst_7 = arith.constant dense<0.000000e+00> : vector<32x16xf32>
    %11 = tpu.matmul %9, %10, %cst_7 {dimension_numbers = #tpu.dot_dimension_numbers<[1], [0], [0], [1], [0, 0, 1, 1], [], []>} : vector<32x32xbf16>, vector<32x16xbf16>, vector<32x16xf32> -> vector<32x16xf32>
    %c0_8 = arith.constant 0 : index
    %c0_9 = arith.constant 0 : index
    %12 = vector.load %arg5[%c0_8, %c0_9] : memref<1x16xf32, #tpu.memory_space<vmem>>, vector<1x16xf32>
    %13 = vector.broadcast %12 : vector<1x16xf32> to vector<32x16xf32>
    %14 = arith.addf %11, %13 : vector<32x16xf32>
    %c0_10 = arith.constant 0 : index
    %c0_11 = arith.constant 0 : index
    %15 = vector.load %arg6[%c0_10, %c0_11] : memref<32x16xf32, #tpu.memory_space<vmem>>, vector<32x16xf32>
    tpu.vector_store %arg6[%c0_10, %c0_11], %14 {strides = array<i32>} : memref<32x16xf32, #tpu.memory_space<vmem>>, vector<32x16xf32>,
    return
  }
  func.func @transform_0(%arg0: i32) -> (i32, i32) {
    %c0_i32 = arith.constant 0 : i32
    %c0_i32_0 = arith.constant 0 : i32
    return %arg0, %c0_i32 : i32, i32
  }
  func.func @transform_1(%arg0: i32) -> (i32, i32) {
    %c0_i32 = arith.constant 0 : i32
    %c0_i32_0 = arith.constant 0 : i32
    %c0_i32_1 = arith.constant 0 : i32
    return %c0_i32, %c0_i32_0 : i32, i32
  }
  func.func @transform_2(%arg0: i32) -> (i32, i32) {
    %c0_i32 = arith.constant 0 : i32
    %c0_i32_0 = arith.constant 0 : i32
    %c0_i32_1 = arith.constant 0 : i32
    return %c0_i32, %c0_i32_0 : i32, i32
  }
  func.func @transform_3(%arg0: i32) -> (i32, i32) {
    %c0_i32 = arith.constant 0 : i32
    %c0_i32_0 = arith.constant 0 : i32
    %c0_i32_1 = arith.constant 0 : i32
    return %c0_i32, %c0_i32_0 : i32, i32
  }
  func.func @transform_4(%arg0: i32) -> (i32, i32) {
    %c0_i32 = arith.constant 0 : i32
    %c0_i32_0 = arith.constant 0 : i32
    %c0_i32_1 = arith.constant 0 : i32
    return %c0_i32, %c0_i32_0 : i32, i32
  }
  func.func @transform_5(%arg0: i32) -> (i32, i32) {
    %c0_i32 = arith.constant 0 : i32
    %c0_i32_0 = arith.constant 0 : i32
    return %arg0, %c0_i32 : i32, i32
  }
}

module attributes {stable_mosaic.version = 11 : i64} {
  func.func @dense_layer_kernel(%arg0: i32, %arg1: memref<1x50x24xf32, #tpu.memory_space<vmem>>, %arg2: memref<24x16xbf16, #tpu.memory_space<vmem>>, %arg3: memref<1x24xf32, #tpu.memory_space<vmem>>, %arg4: memref<1x24xf32, #tpu.memory_space<vmem>>, %arg5: memref<1x16xf32, #tpu.memory_space<vmem>>, %arg6: memref<50x1xf32, #tpu.memory_space<vmem>>, %arg7: memref<9x16x8xbf16, #tpu.memory_space<vmem>>, %arg8: memref<1x36x8xf32, #tpu.memory_space<vmem>>) attributes {dimension_semantics = [#tpu.dimension_semantics<parallel>], iteration_bounds = array<i64: 2>, scalar_prefetch = 0 : i64, scratch_operands = 0 : i64, tpu.core_type = #tpu.core_type<tc>, window_params = [{transform_indices = @transform_0, window_bounds = array<i64: 1, 50, 24>}, {pipeline_mode = #tpu.pipeline_mode<synchronous>, transform_indices = @transform_1, window_bounds = array<i64: 24, 16>}, {pipeline_mode = #tpu.pipeline_mode<synchronous>, transform_indices = @transform_2, window_bounds = array<i64: 1, 24>}, {pipeline_mode = #tpu.pipeline_mode<synchronous>, transform_indices = @transform_3, window_bounds = array<i64: 1, 24>}, {pipeline_mode = #tpu.pipeline_mode<synchronous>, transform_indices = @transform_4, window_bounds = array<i64: 1, 16>}, {pipeline_mode = #tpu.pipeline_mode<synchronous>, transform_indices = @transform_5, window_bounds = array<i64: 50, 1>}, {pipeline_mode = #tpu.pipeline_mode<synchronous>, transform_indices = @transform_6, window_bounds = array<i64: 9, 16, 8>}, {transform_indices = @transform_7, window_bounds = array<i64: 1, 36, 8>}]} {
    %c0 = arith.constant 0 : index
    %c0_0 = arith.constant 0 : index
    %c0_1 = arith.constant 0 : index
    %0 = vector.load %arg1[%c0, %c0_0, %c0_1] : memref<1x50x24xf32, #tpu.memory_space<vmem>>, vector<1x50x24xf32>
    %1 = vector.shape_cast %0 : vector<1x50x24xf32> to vector<50x24xf32>
    %c0_2 = arith.constant 0 : index
    %c0_3 = arith.constant 0 : index
    %2 = vector.load %arg3[%c0_2, %c0_3] : memref<1x24xf32, #tpu.memory_space<vmem>>, vector<1x24xf32>
    %3 = vector.broadcast %2 : vector<1x24xf32> to vector<50x24xf32>
    %4 = arith.mulf %1, %3 : vector<50x24xf32>
    %c0_4 = arith.constant 0 : index
    %c0_5 = arith.constant 0 : index
    %5 = vector.load %arg4[%c0_4, %c0_5] : memref<1x24xf32, #tpu.memory_space<vmem>>, vector<1x24xf32>
    %6 = vector.broadcast %5 : vector<1x24xf32> to vector<50x24xf32>
    %7 = arith.addf %4, %6 : vector<50x24xf32>
    %cst = arith.constant 0.000000e+00 : f32
    %8 = vector.broadcast %cst : f32 to vector<50x24xf32>
    %9 = arith.maximumf %7, %8 : vector<50x24xf32>
    %10 = arith.truncf %9 : vector<50x24xf32> to vector<50x24xbf16>
    %c0_6 = arith.constant 0 : index
    %c0_7 = arith.constant 0 : index
    %11 = vector.load %arg2[%c0_6, %c0_7] : memref<24x16xbf16, #tpu.memory_space<vmem>>, vector<24x16xbf16>
    %cst_8 = arith.constant dense<0.000000e+00> : vector<50x16xf32>
    %12 = tpu.matmul %10, %11, %cst_8 {dimension_numbers = #tpu.dot_dimension_numbers<[1], [0], [0], [1], [0, 0, 1, 1], [], []>} : vector<50x24xbf16>, vector<24x16xbf16>, vector<50x16xf32> -> vector<50x16xf32>
    %c0_9 = arith.constant 0 : index
    %c0_10 = arith.constant 0 : index
    %13 = vector.load %arg5[%c0_9, %c0_10] : memref<1x16xf32, #tpu.memory_space<vmem>>, vector<1x16xf32>
    %14 = vector.broadcast %13 : vector<1x16xf32> to vector<50x16xf32>
    %15 = arith.addf %12, %14 : vector<50x16xf32>
    %cst_11 = arith.constant 0.000000e+00 : f32
    %16 = vector.broadcast %cst_11 : f32 to vector<50x16xf32>
    %17 = arith.maximumf %15, %16 : vector<50x16xf32>
    %c0_12 = arith.constant 0 : index
    %c0_13 = arith.constant 0 : index
    %18 = vector.load %arg6[%c0_12, %c0_13] : memref<50x1xf32, #tpu.memory_space<vmem>>, vector<50x1xf32>
    %19 = vector.broadcast %18 : vector<50x1xf32> to vector<50x16xf32>
    %20 = arith.mulf %17, %19 : vector<50x16xf32>
    %cst_14 = arith.constant 0.000000e+00 : f32
    %21 = vector.broadcast %cst_14 : f32 to vector<36x8xf32>
    %22 = vector.extract_strided_slice %20 {offsets = [0, 0], sizes = [36, 16], strides = [1, 1]} : vector<50x16xf32> to vector<36x16xf32>
    %23 = arith.truncf %22 : vector<36x16xf32> to vector<36x16xbf16>
    %c0_15 = arith.constant 0 : index
    %c0_16 = arith.constant 0 : index
    %c0_17 = arith.constant 0 : index
    %24 = vector.load %arg7[%c0_15, %c0_16, %c0_17] : memref<9x16x8xbf16, #tpu.memory_space<vmem>>, vector<1x16x8xbf16>
    %25 = vector.shape_cast %24 : vector<1x16x8xbf16> to vector<16x8xbf16>
    %cst_18 = arith.constant dense<0.000000e+00> : vector<36x8xf32>
    %26 = tpu.matmul %23, %25, %cst_18 {dimension_numbers = #tpu.dot_dimension_numbers<[1], [0], [0], [1], [0, 0, 1, 1], [], []>} : vector<36x16xbf16>, vector<16x8xbf16>, vector<36x8xf32> -> vector<36x8xf32>
    %27 = arith.addf %21, %26 : vector<36x8xf32>
    %28 = vector.extract_strided_slice %20 {offsets = [1, 0], sizes = [36, 16], strides = [1, 1]} : vector<50x16xf32> to vector<36x16xf32>
    %29 = arith.truncf %28 : vector<36x16xf32> to vector<36x16xbf16>
    %c1 = arith.constant 1 : index
    %c0_19 = arith.constant 0 : index
    %c0_20 = arith.constant 0 : index
    %30 = vector.load %arg7[%c1, %c0_19, %c0_20] : memref<9x16x8xbf16, #tpu.memory_space<vmem>>, vector<1x16x8xbf16>
    %31 = vector.shape_cast %30 : vector<1x16x8xbf16> to vector<16x8xbf16>
    %cst_21 = arith.constant dense<0.000000e+00> : vector<36x8xf32>
    %32 = tpu.matmul %29, %31, %cst_21 {dimension_numbers = #tpu.dot_dimension_numbers<[1], [0], [0], [1], [0, 0, 1, 1], [], []>} : vector<36x16xbf16>, vector<16x8xbf16>, vector<36x8xf32> -> vector<36x8xf32>
    %33 = arith.addf %27, %32 : vector<36x8xf32>
    %34 = vector.extract_strided_slice %20 {offsets = [2, 0], sizes = [36, 16], strides = [1, 1]} : vector<50x16xf32> to vector<36x16xf32>
    %35 = arith.truncf %34 : vector<36x16xf32> to vector<36x16xbf16>
    %c2 = arith.constant 2 : index
    %c0_22 = arith.constant 0 : index
    %c0_23 = arith.constant 0 : index
    %36 = vector.load %arg7[%c2, %c0_22, %c0_23] : memref<9x16x8xbf16, #tpu.memory_space<vmem>>, vector<1x16x8xbf16>
    %37 = vector.shape_cast %36 : vector<1x16x8xbf16> to vector<16x8xbf16>
    %cst_24 = arith.constant dense<0.000000e+00> : vector<36x8xf32>
    %38 = tpu.matmul %35, %37, %cst_24 {dimension_numbers = #tpu.dot_dimension_numbers<[1], [0], [0], [1], [0, 0, 1, 1], [], []>} : vector<36x16xbf16>, vector<16x8xbf16>, vector<36x8xf32> -> vector<36x8xf32>
    %39 = arith.addf %33, %38 : vector<36x8xf32>
    %40 = vector.extract_strided_slice %20 {offsets = [6, 0], sizes = [36, 16], strides = [1, 1]} : vector<50x16xf32> to vector<36x16xf32>
    %41 = arith.truncf %40 : vector<36x16xf32> to vector<36x16xbf16>
    %c3 = arith.constant 3 : index
    %c0_25 = arith.constant 0 : index
    %c0_26 = arith.constant 0 : index
    %42 = vector.load %arg7[%c3, %c0_25, %c0_26] : memref<9x16x8xbf16, #tpu.memory_space<vmem>>, vector<1x16x8xbf16>
    %43 = vector.shape_cast %42 : vector<1x16x8xbf16> to vector<16x8xbf16>
    %cst_27 = arith.constant dense<0.000000e+00> : vector<36x8xf32>
    %44 = tpu.matmul %41, %43, %cst_27 {dimension_numbers = #tpu.dot_dimension_numbers<[1], [0], [0], [1], [0, 0, 1, 1], [], []>} : vector<36x16xbf16>, vector<16x8xbf16>, vector<36x8xf32> -> vector<36x8xf32>
    %45 = arith.addf %39, %44 : vector<36x8xf32>
    %46 = vector.extract_strided_slice %20 {offsets = [7, 0], sizes = [36, 16], strides = [1, 1]} : vector<50x16xf32> to vector<36x16xf32>
    %47 = arith.truncf %46 : vector<36x16xf32> to vector<36x16xbf16>
    %c4 = arith.constant 4 : index
    %c0_28 = arith.constant 0 : index
    %c0_29 = arith.constant 0 : index
    %48 = vector.load %arg7[%c4, %c0_28, %c0_29] : memref<9x16x8xbf16, #tpu.memory_space<vmem>>, vector<1x16x8xbf16>
    %49 = vector.shape_cast %48 : vector<1x16x8xbf16> to vector<16x8xbf16>
    %cst_30 = arith.constant dense<0.000000e+00> : vector<36x8xf32>
    %50 = tpu.matmul %47, %49, %cst_30 {dimension_numbers = #tpu.dot_dimension_numbers<[1], [0], [0], [1], [0, 0, 1, 1], [], []>} : vector<36x16xbf16>, vector<16x8xbf16>, vector<36x8xf32> -> vector<36x8xf32>
    %51 = arith.addf %45, %50 : vector<36x8xf32>
    %52 = vector.extract_strided_slice %20 {offsets = [8, 0], sizes = [36, 16], strides = [1, 1]} : vector<50x16xf32> to vector<36x16xf32>
    %53 = arith.truncf %52 : vector<36x16xf32> to vector<36x16xbf16>
    %c5 = arith.constant 5 : index
    %c0_31 = arith.constant 0 : index
    %c0_32 = arith.constant 0 : index
    %54 = vector.load %arg7[%c5, %c0_31, %c0_32] : memref<9x16x8xbf16, #tpu.memory_space<vmem>>, vector<1x16x8xbf16>
    %55 = vector.shape_cast %54 : vector<1x16x8xbf16> to vector<16x8xbf16>
    %cst_33 = arith.constant dense<0.000000e+00> : vector<36x8xf32>
    %56 = tpu.matmul %53, %55, %cst_33 {dimension_numbers = #tpu.dot_dimension_numbers<[1], [0], [0], [1], [0, 0, 1, 1], [], []>} : vector<36x16xbf16>, vector<16x8xbf16>, vector<36x8xf32> -> vector<36x8xf32>
    %57 = arith.addf %51, %56 : vector<36x8xf32>
    %58 = vector.extract_strided_slice %20 {offsets = [12, 0], sizes = [36, 16], strides = [1, 1]} : vector<50x16xf32> to vector<36x16xf32>
    %59 = arith.truncf %58 : vector<36x16xf32> to vector<36x16xbf16>
    %c6 = arith.constant 6 : index
    %c0_34 = arith.constant 0 : index
    %c0_35 = arith.constant 0 : index
    %60 = vector.load %arg7[%c6, %c0_34, %c0_35] : memref<9x16x8xbf16, #tpu.memory_space<vmem>>, vector<1x16x8xbf16>
    %61 = vector.shape_cast %60 : vector<1x16x8xbf16> to vector<16x8xbf16>
    %cst_36 = arith.constant dense<0.000000e+00> : vector<36x8xf32>
    %62 = tpu.matmul %59, %61, %cst_36 {dimension_numbers = #tpu.dot_dimension_numbers<[1], [0], [0], [1], [0, 0, 1, 1], [], []>} : vector<36x16xbf16>, vector<16x8xbf16>, vector<36x8xf32> -> vector<36x8xf32>
    %63 = arith.addf %57, %62 : vector<36x8xf32>
    %64 = vector.extract_strided_slice %20 {offsets = [13, 0], sizes = [36, 16], strides = [1, 1]} : vector<50x16xf32> to vector<36x16xf32>
    %65 = arith.truncf %64 : vector<36x16xf32> to vector<36x16xbf16>
    %c7 = arith.constant 7 : index
    %c0_37 = arith.constant 0 : index
    %c0_38 = arith.constant 0 : index
    %66 = vector.load %arg7[%c7, %c0_37, %c0_38] : memref<9x16x8xbf16, #tpu.memory_space<vmem>>, vector<1x16x8xbf16>
    %67 = vector.shape_cast %66 : vector<1x16x8xbf16> to vector<16x8xbf16>
    %cst_39 = arith.constant dense<0.000000e+00> : vector<36x8xf32>
    %68 = tpu.matmul %65, %67, %cst_39 {dimension_numbers = #tpu.dot_dimension_numbers<[1], [0], [0], [1], [0, 0, 1, 1], [], []>} : vector<36x16xbf16>, vector<16x8xbf16>, vector<36x8xf32> -> vector<36x8xf32>
    %69 = arith.addf %63, %68 : vector<36x8xf32>
    %70 = vector.extract_strided_slice %20 {offsets = [14, 0], sizes = [36, 16], strides = [1, 1]} : vector<50x16xf32> to vector<36x16xf32>
    %71 = arith.truncf %70 : vector<36x16xf32> to vector<36x16xbf16>
    %c8 = arith.constant 8 : index
    %c0_40 = arith.constant 0 : index
    %c0_41 = arith.constant 0 : index
    %72 = vector.load %arg7[%c8, %c0_40, %c0_41] : memref<9x16x8xbf16, #tpu.memory_space<vmem>>, vector<1x16x8xbf16>
    %73 = vector.shape_cast %72 : vector<1x16x8xbf16> to vector<16x8xbf16>
    %cst_42 = arith.constant dense<0.000000e+00> : vector<36x8xf32>
    %74 = tpu.matmul %71, %73, %cst_42 {dimension_numbers = #tpu.dot_dimension_numbers<[1], [0], [0], [1], [0, 0, 1, 1], [], []>} : vector<36x16xbf16>, vector<16x8xbf16>, vector<36x8xf32> -> vector<36x8xf32>
    %75 = arith.addf %69, %74 : vector<36x8xf32>
    %c0_43 = arith.constant 0 : index
    %c0_44 = arith.constant 0 : index
    %c0_45 = arith.constant 0 : index
    %76 = vector.load %arg8[%c0_43, %c0_44, %c0_45] : memref<1x36x8xf32, #tpu.memory_space<vmem>>, vector<1x36x8xf32>
    %77 = vector.shape_cast %76 : vector<1x36x8xf32> to vector<36x8xf32>
    %78 = vector.shape_cast %75 : vector<36x8xf32> to vector<1x36x8xf32>
    tpu.vector_store %arg8[%c0_43, %c0_44, %c0_45], %78 {strides = array<i32>} : memref<1x36x8xf32, #tpu.memory_space<vmem>>, vector<1x36x8xf32>,
    return
  }
  func.func @transform_0(%arg0: i32) -> (i32, i32, i32) {
    %c0_i32 = arith.constant 0 : i32
    %c0_i32_0 = arith.constant 0 : i32
    %c0_i32_1 = arith.constant 0 : i32
    return %arg0, %c0_i32, %c0_i32_0 : i32, i32, i32
  }
  func.func @transform_1(%arg0: i32) -> (i32, i32) {
    %c0_i32 = arith.constant 0 : i32
    %c0_i32_0 = arith.constant 0 : i32
    %c0_i32_1 = arith.constant 0 : i32
    return %c0_i32, %c0_i32_0 : i32, i32
  }
  func.func @transform_2(%arg0: i32) -> (i32, i32) {
    %c0_i32 = arith.constant 0 : i32
    %c0_i32_0 = arith.constant 0 : i32
    %c0_i32_1 = arith.constant 0 : i32
    return %c0_i32, %c0_i32_0 : i32, i32
  }
  func.func @transform_3(%arg0: i32) -> (i32, i32) {
    %c0_i32 = arith.constant 0 : i32
    %c0_i32_0 = arith.constant 0 : i32
    %c0_i32_1 = arith.constant 0 : i32
    return %c0_i32, %c0_i32_0 : i32, i32
  }
  func.func @transform_4(%arg0: i32) -> (i32, i32) {
    %c0_i32 = arith.constant 0 : i32
    %c0_i32_0 = arith.constant 0 : i32
    %c0_i32_1 = arith.constant 0 : i32
    return %c0_i32, %c0_i32_0 : i32, i32
  }
  func.func @transform_5(%arg0: i32) -> (i32, i32) {
    %c0_i32 = arith.constant 0 : i32
    %c0_i32_0 = arith.constant 0 : i32
    %c0_i32_1 = arith.constant 0 : i32
    return %c0_i32, %c0_i32_0 : i32, i32
  }
  func.func @transform_6(%arg0: i32) -> (i32, i32, i32) {
    %c0_i32 = arith.constant 0 : i32
    %c0_i32_0 = arith.constant 0 : i32
    %c0_i32_1 = arith.constant 0 : i32
    %c0_i32_2 = arith.constant 0 : i32
    return %c0_i32, %c0_i32_0, %c0_i32_1 : i32, i32, i32
  }
  func.func @transform_7(%arg0: i32) -> (i32, i32, i32) {
    %c0_i32 = arith.constant 0 : i32
    %c0_i32_0 = arith.constant 0 : i32
    %c0_i32_1 = arith.constant 0 : i32
    return %arg0, %c0_i32, %c0_i32_0 : i32, i32, i32
  }
}

module attributes {stable_mosaic.version = 11 : i64} {
  func.func @avgpool_h2_kernel(%arg0: i32, %arg1: memref<4x2x64xf32, #tpu.memory_space<vmem>>, %arg2: memref<4x64xf32, #tpu.memory_space<vmem>>) attributes {dimension_semantics = [#tpu.dimension_semantics<parallel>], iteration_bounds = array<i64: 1>, scalar_prefetch = 0 : i64, scratch_operands = 0 : i64, tpu.core_type = #tpu.core_type<tc>, window_params = [{transform_indices = @transform_0, window_bounds = array<i64: 4, 2, 64>}, {transform_indices = @transform_1, window_bounds = array<i64: 4, 64>}]} {
    %c0 = arith.constant 0 : index
    %c0_0 = arith.constant 0 : index
    %c0_1 = arith.constant 0 : index
    %0 = vector.load %arg1[%c0, %c0_0, %c0_1] : memref<4x2x64xf32, #tpu.memory_space<vmem>>, vector<4x2x64xf32>
    %1 = vector.extract_strided_slice %0 {offsets = [0, 0, 0], sizes = [4, 1, 64], strides = [1, 1, 1]} : vector<4x2x64xf32> to vector<4x1x64xf32>
    %2 = vector.shape_cast %1 : vector<4x1x64xf32> to vector<4x64xf32>
    %3 = vector.extract_strided_slice %0 {offsets = [0, 1, 0], sizes = [4, 1, 64], strides = [1, 1, 1]} : vector<4x2x64xf32> to vector<4x1x64xf32>
    %4 = vector.shape_cast %3 : vector<4x1x64xf32> to vector<4x64xf32>
    %5 = arith.addf %2, %4 : vector<4x64xf32>
    %cst = arith.constant 5.000000e-01 : f32
    %6 = vector.broadcast %cst : f32 to vector<4x64xf32>
    %7 = arith.mulf %6, %5 : vector<4x64xf32>
    %c0_2 = arith.constant 0 : index
    %c0_3 = arith.constant 0 : index
    %8 = vector.load %arg2[%c0_2, %c0_3] : memref<4x64xf32, #tpu.memory_space<vmem>>, vector<4x64xf32>
    tpu.vector_store %arg2[%c0_2, %c0_3], %7 {strides = array<i32>} : memref<4x64xf32, #tpu.memory_space<vmem>>, vector<4x64xf32>,
    return
  }
  func.func @transform_0(%arg0: i32) -> (i32, i32, i32) {
    %c0_i32 = arith.constant 0 : i32
    %c0_i32_0 = arith.constant 0 : i32
    %c0_i32_1 = arith.constant 0 : i32
    return %arg0, %c0_i32, %c0_i32_0 : i32, i32, i32
  }
  func.func @transform_1(%arg0: i32) -> (i32, i32) {
    %c0_i32 = arith.constant 0 : i32
    %c0_i32_0 = arith.constant 0 : i32
    return %arg0, %c0_i32 : i32, i32
  }
}

module attributes {stable_mosaic.version = 11 : i64} {
  func.func @dense_layer_kernel(%arg0: i32, %arg1: memref<1x38x16xf32, #tpu.memory_space<vmem>>, %arg2: memref<16x16xbf16, #tpu.memory_space<vmem>>, %arg3: memref<1x16xf32, #tpu.memory_space<vmem>>, %arg4: memref<1x16xf32, #tpu.memory_space<vmem>>, %arg5: memref<1x16xf32, #tpu.memory_space<vmem>>, %arg6: memref<38x1xf32, #tpu.memory_space<vmem>>, %arg7: memref<9x16x8xbf16, #tpu.memory_space<vmem>>, %arg8: memref<1x24x8xf32, #tpu.memory_space<vmem>>) attributes {dimension_semantics = [#tpu.dimension_semantics<parallel>], iteration_bounds = array<i64: 2>, scalar_prefetch = 0 : i64, scratch_operands = 0 : i64, tpu.core_type = #tpu.core_type<tc>, window_params = [{transform_indices = @transform_0, window_bounds = array<i64: 1, 38, 16>}, {pipeline_mode = #tpu.pipeline_mode<synchronous>, transform_indices = @transform_1, window_bounds = array<i64: 16, 16>}, {pipeline_mode = #tpu.pipeline_mode<synchronous>, transform_indices = @transform_2, window_bounds = array<i64: 1, 16>}, {pipeline_mode = #tpu.pipeline_mode<synchronous>, transform_indices = @transform_3, window_bounds = array<i64: 1, 16>}, {pipeline_mode = #tpu.pipeline_mode<synchronous>, transform_indices = @transform_4, window_bounds = array<i64: 1, 16>}, {pipeline_mode = #tpu.pipeline_mode<synchronous>, transform_indices = @transform_5, window_bounds = array<i64: 38, 1>}, {pipeline_mode = #tpu.pipeline_mode<synchronous>, transform_indices = @transform_6, window_bounds = array<i64: 9, 16, 8>}, {transform_indices = @transform_7, window_bounds = array<i64: 1, 24, 8>}]} {
    %c0 = arith.constant 0 : index
    %c0_0 = arith.constant 0 : index
    %c0_1 = arith.constant 0 : index
    %0 = vector.load %arg1[%c0, %c0_0, %c0_1] : memref<1x38x16xf32, #tpu.memory_space<vmem>>, vector<1x38x16xf32>
    %1 = vector.shape_cast %0 : vector<1x38x16xf32> to vector<38x16xf32>
    %c0_2 = arith.constant 0 : index
    %c0_3 = arith.constant 0 : index
    %2 = vector.load %arg3[%c0_2, %c0_3] : memref<1x16xf32, #tpu.memory_space<vmem>>, vector<1x16xf32>
    %3 = vector.broadcast %2 : vector<1x16xf32> to vector<38x16xf32>
    %4 = arith.mulf %1, %3 : vector<38x16xf32>
    %c0_4 = arith.constant 0 : index
    %c0_5 = arith.constant 0 : index
    %5 = vector.load %arg4[%c0_4, %c0_5] : memref<1x16xf32, #tpu.memory_space<vmem>>, vector<1x16xf32>
    %6 = vector.broadcast %5 : vector<1x16xf32> to vector<38x16xf32>
    %7 = arith.addf %4, %6 : vector<38x16xf32>
    %cst = arith.constant 0.000000e+00 : f32
    %8 = vector.broadcast %cst : f32 to vector<38x16xf32>
    %9 = arith.maximumf %7, %8 : vector<38x16xf32>
    %10 = arith.truncf %9 : vector<38x16xf32> to vector<38x16xbf16>
    %c0_6 = arith.constant 0 : index
    %c0_7 = arith.constant 0 : index
    %11 = vector.load %arg2[%c0_6, %c0_7] : memref<16x16xbf16, #tpu.memory_space<vmem>>, vector<16x16xbf16>
    %cst_8 = arith.constant dense<0.000000e+00> : vector<38x16xf32>
    %12 = tpu.matmul %10, %11, %cst_8 {dimension_numbers = #tpu.dot_dimension_numbers<[1], [0], [0], [1], [0, 0, 1, 1], [], []>} : vector<38x16xbf16>, vector<16x16xbf16>, vector<38x16xf32> -> vector<38x16xf32>
    %c0_9 = arith.constant 0 : index
    %c0_10 = arith.constant 0 : index
    %13 = vector.load %arg5[%c0_9, %c0_10] : memref<1x16xf32, #tpu.memory_space<vmem>>, vector<1x16xf32>
    %14 = vector.broadcast %13 : vector<1x16xf32> to vector<38x16xf32>
    %15 = arith.addf %12, %14 : vector<38x16xf32>
    %cst_11 = arith.constant 0.000000e+00 : f32
    %16 = vector.broadcast %cst_11 : f32 to vector<38x16xf32>
    %17 = arith.maximumf %15, %16 : vector<38x16xf32>
    %c0_12 = arith.constant 0 : index
    %c0_13 = arith.constant 0 : index
    %18 = vector.load %arg6[%c0_12, %c0_13] : memref<38x1xf32, #tpu.memory_space<vmem>>, vector<38x1xf32>
    %19 = vector.broadcast %18 : vector<38x1xf32> to vector<38x16xf32>
    %20 = arith.mulf %17, %19 : vector<38x16xf32>
    %cst_14 = arith.constant 0.000000e+00 : f32
    %21 = vector.broadcast %cst_14 : f32 to vector<24x8xf32>
    %22 = vector.extract_strided_slice %20 {offsets = [0, 0], sizes = [24, 16], strides = [1, 1]} : vector<38x16xf32> to vector<24x16xf32>
    %23 = arith.truncf %22 : vector<24x16xf32> to vector<24x16xbf16>
    %c0_15 = arith.constant 0 : index
    %c0_16 = arith.constant 0 : index
    %c0_17 = arith.constant 0 : index
    %24 = vector.load %arg7[%c0_15, %c0_16, %c0_17] : memref<9x16x8xbf16, #tpu.memory_space<vmem>>, vector<1x16x8xbf16>
    %25 = vector.shape_cast %24 : vector<1x16x8xbf16> to vector<16x8xbf16>
    %cst_18 = arith.constant dense<0.000000e+00> : vector<24x8xf32>
    %26 = tpu.matmul %23, %25, %cst_18 {dimension_numbers = #tpu.dot_dimension_numbers<[1], [0], [0], [1], [0, 0, 1, 1], [], []>} : vector<24x16xbf16>, vector<16x8xbf16>, vector<24x8xf32> -> vector<24x8xf32>
    %27 = arith.addf %21, %26 : vector<24x8xf32>
    %28 = vector.extract_strided_slice %20 {offsets = [1, 0], sizes = [24, 16], strides = [1, 1]} : vector<38x16xf32> to vector<24x16xf32>
    %29 = arith.truncf %28 : vector<24x16xf32> to vector<24x16xbf16>
    %c1 = arith.constant 1 : index
    %c0_19 = arith.constant 0 : index
    %c0_20 = arith.constant 0 : index
    %30 = vector.load %arg7[%c1, %c0_19, %c0_20] : memref<9x16x8xbf16, #tpu.memory_space<vmem>>, vector<1x16x8xbf16>
    %31 = vector.shape_cast %30 : vector<1x16x8xbf16> to vector<16x8xbf16>
    %cst_21 = arith.constant dense<0.000000e+00> : vector<24x8xf32>
    %32 = tpu.matmul %29, %31, %cst_21 {dimension_numbers = #tpu.dot_dimension_numbers<[1], [0], [0], [1], [0, 0, 1, 1], [], []>} : vector<24x16xbf16>, vector<16x8xbf16>, vector<24x8xf32> -> vector<24x8xf32>
    %33 = arith.addf %27, %32 : vector<24x8xf32>
    %34 = vector.extract_strided_slice %20 {offsets = [2, 0], sizes = [24, 16], strides = [1, 1]} : vector<38x16xf32> to vector<24x16xf32>
    %35 = arith.truncf %34 : vector<24x16xf32> to vector<24x16xbf16>
    %c2 = arith.constant 2 : index
    %c0_22 = arith.constant 0 : index
    %c0_23 = arith.constant 0 : index
    %36 = vector.load %arg7[%c2, %c0_22, %c0_23] : memref<9x16x8xbf16, #tpu.memory_space<vmem>>, vector<1x16x8xbf16>
    %37 = vector.shape_cast %36 : vector<1x16x8xbf16> to vector<16x8xbf16>
    %cst_24 = arith.constant dense<0.000000e+00> : vector<24x8xf32>
    %38 = tpu.matmul %35, %37, %cst_24 {dimension_numbers = #tpu.dot_dimension_numbers<[1], [0], [0], [1], [0, 0, 1, 1], [], []>} : vector<24x16xbf16>, vector<16x8xbf16>, vector<24x8xf32> -> vector<24x8xf32>
    %39 = arith.addf %33, %38 : vector<24x8xf32>
    %40 = vector.extract_strided_slice %20 {offsets = [6, 0], sizes = [24, 16], strides = [1, 1]} : vector<38x16xf32> to vector<24x16xf32>
    %41 = arith.truncf %40 : vector<24x16xf32> to vector<24x16xbf16>
    %c3 = arith.constant 3 : index
    %c0_25 = arith.constant 0 : index
    %c0_26 = arith.constant 0 : index
    %42 = vector.load %arg7[%c3, %c0_25, %c0_26] : memref<9x16x8xbf16, #tpu.memory_space<vmem>>, vector<1x16x8xbf16>
    %43 = vector.shape_cast %42 : vector<1x16x8xbf16> to vector<16x8xbf16>
    %cst_27 = arith.constant dense<0.000000e+00> : vector<24x8xf32>
    %44 = tpu.matmul %41, %43, %cst_27 {dimension_numbers = #tpu.dot_dimension_numbers<[1], [0], [0], [1], [0, 0, 1, 1], [], []>} : vector<24x16xbf16>, vector<16x8xbf16>, vector<24x8xf32> -> vector<24x8xf32>
    %45 = arith.addf %39, %44 : vector<24x8xf32>
    %46 = vector.extract_strided_slice %20 {offsets = [7, 0], sizes = [24, 16], strides = [1, 1]} : vector<38x16xf32> to vector<24x16xf32>
    %47 = arith.truncf %46 : vector<24x16xf32> to vector<24x16xbf16>
    %c4 = arith.constant 4 : index
    %c0_28 = arith.constant 0 : index
    %c0_29 = arith.constant 0 : index
    %48 = vector.load %arg7[%c4, %c0_28, %c0_29] : memref<9x16x8xbf16, #tpu.memory_space<vmem>>, vector<1x16x8xbf16>
    %49 = vector.shape_cast %48 : vector<1x16x8xbf16> to vector<16x8xbf16>
    %cst_30 = arith.constant dense<0.000000e+00> : vector<24x8xf32>
    %50 = tpu.matmul %47, %49, %cst_30 {dimension_numbers = #tpu.dot_dimension_numbers<[1], [0], [0], [1], [0, 0, 1, 1], [], []>} : vector<24x16xbf16>, vector<16x8xbf16>, vector<24x8xf32> -> vector<24x8xf32>
    %51 = arith.addf %45, %50 : vector<24x8xf32>
    %52 = vector.extract_strided_slice %20 {offsets = [8, 0], sizes = [24, 16], strides = [1, 1]} : vector<38x16xf32> to vector<24x16xf32>
    %53 = arith.truncf %52 : vector<24x16xf32> to vector<24x16xbf16>
    %c5 = arith.constant 5 : index
    %c0_31 = arith.constant 0 : index
    %c0_32 = arith.constant 0 : index
    %54 = vector.load %arg7[%c5, %c0_31, %c0_32] : memref<9x16x8xbf16, #tpu.memory_space<vmem>>, vector<1x16x8xbf16>
    %55 = vector.shape_cast %54 : vector<1x16x8xbf16> to vector<16x8xbf16>
    %cst_33 = arith.constant dense<0.000000e+00> : vector<24x8xf32>
    %56 = tpu.matmul %53, %55, %cst_33 {dimension_numbers = #tpu.dot_dimension_numbers<[1], [0], [0], [1], [0, 0, 1, 1], [], []>} : vector<24x16xbf16>, vector<16x8xbf16>, vector<24x8xf32> -> vector<24x8xf32>
    %57 = arith.addf %51, %56 : vector<24x8xf32>
    %58 = vector.extract_strided_slice %20 {offsets = [12, 0], sizes = [24, 16], strides = [1, 1]} : vector<38x16xf32> to vector<24x16xf32>
    %59 = arith.truncf %58 : vector<24x16xf32> to vector<24x16xbf16>
    %c6 = arith.constant 6 : index
    %c0_34 = arith.constant 0 : index
    %c0_35 = arith.constant 0 : index
    %60 = vector.load %arg7[%c6, %c0_34, %c0_35] : memref<9x16x8xbf16, #tpu.memory_space<vmem>>, vector<1x16x8xbf16>
    %61 = vector.shape_cast %60 : vector<1x16x8xbf16> to vector<16x8xbf16>
    %cst_36 = arith.constant dense<0.000000e+00> : vector<24x8xf32>
    %62 = tpu.matmul %59, %61, %cst_36 {dimension_numbers = #tpu.dot_dimension_numbers<[1], [0], [0], [1], [0, 0, 1, 1], [], []>} : vector<24x16xbf16>, vector<16x8xbf16>, vector<24x8xf32> -> vector<24x8xf32>
    %63 = arith.addf %57, %62 : vector<24x8xf32>
    %64 = vector.extract_strided_slice %20 {offsets = [13, 0], sizes = [24, 16], strides = [1, 1]} : vector<38x16xf32> to vector<24x16xf32>
    %65 = arith.truncf %64 : vector<24x16xf32> to vector<24x16xbf16>
    %c7 = arith.constant 7 : index
    %c0_37 = arith.constant 0 : index
    %c0_38 = arith.constant 0 : index
    %66 = vector.load %arg7[%c7, %c0_37, %c0_38] : memref<9x16x8xbf16, #tpu.memory_space<vmem>>, vector<1x16x8xbf16>
    %67 = vector.shape_cast %66 : vector<1x16x8xbf16> to vector<16x8xbf16>
    %cst_39 = arith.constant dense<0.000000e+00> : vector<24x8xf32>
    %68 = tpu.matmul %65, %67, %cst_39 {dimension_numbers = #tpu.dot_dimension_numbers<[1], [0], [0], [1], [0, 0, 1, 1], [], []>} : vector<24x16xbf16>, vector<16x8xbf16>, vector<24x8xf32> -> vector<24x8xf32>
    %69 = arith.addf %63, %68 : vector<24x8xf32>
    %70 = vector.extract_strided_slice %20 {offsets = [14, 0], sizes = [24, 16], strides = [1, 1]} : vector<38x16xf32> to vector<24x16xf32>
    %71 = arith.truncf %70 : vector<24x16xf32> to vector<24x16xbf16>
    %c8 = arith.constant 8 : index
    %c0_40 = arith.constant 0 : index
    %c0_41 = arith.constant 0 : index
    %72 = vector.load %arg7[%c8, %c0_40, %c0_41] : memref<9x16x8xbf16, #tpu.memory_space<vmem>>, vector<1x16x8xbf16>
    %73 = vector.shape_cast %72 : vector<1x16x8xbf16> to vector<16x8xbf16>
    %cst_42 = arith.constant dense<0.000000e+00> : vector<24x8xf32>
    %74 = tpu.matmul %71, %73, %cst_42 {dimension_numbers = #tpu.dot_dimension_numbers<[1], [0], [0], [1], [0, 0, 1, 1], [], []>} : vector<24x16xbf16>, vector<16x8xbf16>, vector<24x8xf32> -> vector<24x8xf32>
    %75 = arith.addf %69, %74 : vector<24x8xf32>
    %c0_43 = arith.constant 0 : index
    %c0_44 = arith.constant 0 : index
    %c0_45 = arith.constant 0 : index
    %76 = vector.load %arg8[%c0_43, %c0_44, %c0_45] : memref<1x24x8xf32, #tpu.memory_space<vmem>>, vector<1x24x8xf32>
    %77 = vector.shape_cast %76 : vector<1x24x8xf32> to vector<24x8xf32>
    %78 = vector.shape_cast %75 : vector<24x8xf32> to vector<1x24x8xf32>
    tpu.vector_store %arg8[%c0_43, %c0_44, %c0_45], %78 {strides = array<i32>} : memref<1x24x8xf32, #tpu.memory_space<vmem>>, vector<1x24x8xf32>,
    return
  }
  func.func @transform_0(%arg0: i32) -> (i32, i32, i32) {
    %c0_i32 = arith.constant 0 : i32
    %c0_i32_0 = arith.constant 0 : i32
    %c0_i32_1 = arith.constant 0 : i32
    return %arg0, %c0_i32, %c0_i32_0 : i32, i32, i32
  }
  func.func @transform_1(%arg0: i32) -> (i32, i32) {
    %c0_i32 = arith.constant 0 : i32
    %c0_i32_0 = arith.constant 0 : i32
    %c0_i32_1 = arith.constant 0 : i32
    return %c0_i32, %c0_i32_0 : i32, i32
  }
  func.func @transform_2(%arg0: i32) -> (i32, i32) {
    %c0_i32 = arith.constant 0 : i32
    %c0_i32_0 = arith.constant 0 : i32
    %c0_i32_1 = arith.constant 0 : i32
    return %c0_i32, %c0_i32_0 : i32, i32
  }
  func.func @transform_3(%arg0: i32) -> (i32, i32) {
    %c0_i32 = arith.constant 0 : i32
    %c0_i32_0 = arith.constant 0 : i32
    %c0_i32_1 = arith.constant 0 : i32
    return %c0_i32, %c0_i32_0 : i32, i32
  }
  func.func @transform_4(%arg0: i32) -> (i32, i32) {
    %c0_i32 = arith.constant 0 : i32
    %c0_i32_0 = arith.constant 0 : i32
    %c0_i32_1 = arith.constant 0 : i32
    return %c0_i32, %c0_i32_0 : i32, i32
  }
  func.func @transform_5(%arg0: i32) -> (i32, i32) {
    %c0_i32 = arith.constant 0 : i32
    %c0_i32_0 = arith.constant 0 : i32
    %c0_i32_1 = arith.constant 0 : i32
    return %c0_i32, %c0_i32_0 : i32, i32
  }
  func.func @transform_6(%arg0: i32) -> (i32, i32, i32) {
    %c0_i32 = arith.constant 0 : i32
    %c0_i32_0 = arith.constant 0 : i32
    %c0_i32_1 = arith.constant 0 : i32
    %c0_i32_2 = arith.constant 0 : i32
    return %c0_i32, %c0_i32_0, %c0_i32_1 : i32, i32, i32
  }
  func.func @transform_7(%arg0: i32) -> (i32, i32, i32) {
    %c0_i32 = arith.constant 0 : i32
    %c0_i32_0 = arith.constant 0 : i32
    %c0_i32_1 = arith.constant 0 : i32
    return %arg0, %c0_i32, %c0_i32_0 : i32, i32, i32
  }
}

module attributes {stable_mosaic.version = 11 : i64} {
  func.func @dense_layer_kernel(%arg0: i32, %arg1: memref<1x38x24xf32, #tpu.memory_space<vmem>>, %arg2: memref<24x16xbf16, #tpu.memory_space<vmem>>, %arg3: memref<1x24xf32, #tpu.memory_space<vmem>>, %arg4: memref<1x24xf32, #tpu.memory_space<vmem>>, %arg5: memref<1x16xf32, #tpu.memory_space<vmem>>, %arg6: memref<38x1xf32, #tpu.memory_space<vmem>>, %arg7: memref<9x16x8xbf16, #tpu.memory_space<vmem>>, %arg8: memref<1x24x8xf32, #tpu.memory_space<vmem>>) attributes {dimension_semantics = [#tpu.dimension_semantics<parallel>], iteration_bounds = array<i64: 2>, scalar_prefetch = 0 : i64, scratch_operands = 0 : i64, tpu.core_type = #tpu.core_type<tc>, window_params = [{transform_indices = @transform_0, window_bounds = array<i64: 1, 38, 24>}, {pipeline_mode = #tpu.pipeline_mode<synchronous>, transform_indices = @transform_1, window_bounds = array<i64: 24, 16>}, {pipeline_mode = #tpu.pipeline_mode<synchronous>, transform_indices = @transform_2, window_bounds = array<i64: 1, 24>}, {pipeline_mode = #tpu.pipeline_mode<synchronous>, transform_indices = @transform_3, window_bounds = array<i64: 1, 24>}, {pipeline_mode = #tpu.pipeline_mode<synchronous>, transform_indices = @transform_4, window_bounds = array<i64: 1, 16>}, {pipeline_mode = #tpu.pipeline_mode<synchronous>, transform_indices = @transform_5, window_bounds = array<i64: 38, 1>}, {pipeline_mode = #tpu.pipeline_mode<synchronous>, transform_indices = @transform_6, window_bounds = array<i64: 9, 16, 8>}, {transform_indices = @transform_7, window_bounds = array<i64: 1, 24, 8>}]} {
    %c0 = arith.constant 0 : index
    %c0_0 = arith.constant 0 : index
    %c0_1 = arith.constant 0 : index
    %0 = vector.load %arg1[%c0, %c0_0, %c0_1] : memref<1x38x24xf32, #tpu.memory_space<vmem>>, vector<1x38x24xf32>
    %1 = vector.shape_cast %0 : vector<1x38x24xf32> to vector<38x24xf32>
    %c0_2 = arith.constant 0 : index
    %c0_3 = arith.constant 0 : index
    %2 = vector.load %arg3[%c0_2, %c0_3] : memref<1x24xf32, #tpu.memory_space<vmem>>, vector<1x24xf32>
    %3 = vector.broadcast %2 : vector<1x24xf32> to vector<38x24xf32>
    %4 = arith.mulf %1, %3 : vector<38x24xf32>
    %c0_4 = arith.constant 0 : index
    %c0_5 = arith.constant 0 : index
    %5 = vector.load %arg4[%c0_4, %c0_5] : memref<1x24xf32, #tpu.memory_space<vmem>>, vector<1x24xf32>
    %6 = vector.broadcast %5 : vector<1x24xf32> to vector<38x24xf32>
    %7 = arith.addf %4, %6 : vector<38x24xf32>
    %cst = arith.constant 0.000000e+00 : f32
    %8 = vector.broadcast %cst : f32 to vector<38x24xf32>
    %9 = arith.maximumf %7, %8 : vector<38x24xf32>
    %10 = arith.truncf %9 : vector<38x24xf32> to vector<38x24xbf16>
    %c0_6 = arith.constant 0 : index
    %c0_7 = arith.constant 0 : index
    %11 = vector.load %arg2[%c0_6, %c0_7] : memref<24x16xbf16, #tpu.memory_space<vmem>>, vector<24x16xbf16>
    %cst_8 = arith.constant dense<0.000000e+00> : vector<38x16xf32>
    %12 = tpu.matmul %10, %11, %cst_8 {dimension_numbers = #tpu.dot_dimension_numbers<[1], [0], [0], [1], [0, 0, 1, 1], [], []>} : vector<38x24xbf16>, vector<24x16xbf16>, vector<38x16xf32> -> vector<38x16xf32>
    %c0_9 = arith.constant 0 : index
    %c0_10 = arith.constant 0 : index
    %13 = vector.load %arg5[%c0_9, %c0_10] : memref<1x16xf32, #tpu.memory_space<vmem>>, vector<1x16xf32>
    %14 = vector.broadcast %13 : vector<1x16xf32> to vector<38x16xf32>
    %15 = arith.addf %12, %14 : vector<38x16xf32>
    %cst_11 = arith.constant 0.000000e+00 : f32
    %16 = vector.broadcast %cst_11 : f32 to vector<38x16xf32>
    %17 = arith.maximumf %15, %16 : vector<38x16xf32>
    %c0_12 = arith.constant 0 : index
    %c0_13 = arith.constant 0 : index
    %18 = vector.load %arg6[%c0_12, %c0_13] : memref<38x1xf32, #tpu.memory_space<vmem>>, vector<38x1xf32>
    %19 = vector.broadcast %18 : vector<38x1xf32> to vector<38x16xf32>
    %20 = arith.mulf %17, %19 : vector<38x16xf32>
    %cst_14 = arith.constant 0.000000e+00 : f32
    %21 = vector.broadcast %cst_14 : f32 to vector<24x8xf32>
    %22 = vector.extract_strided_slice %20 {offsets = [0, 0], sizes = [24, 16], strides = [1, 1]} : vector<38x16xf32> to vector<24x16xf32>
    %23 = arith.truncf %22 : vector<24x16xf32> to vector<24x16xbf16>
    %c0_15 = arith.constant 0 : index
    %c0_16 = arith.constant 0 : index
    %c0_17 = arith.constant 0 : index
    %24 = vector.load %arg7[%c0_15, %c0_16, %c0_17] : memref<9x16x8xbf16, #tpu.memory_space<vmem>>, vector<1x16x8xbf16>
    %25 = vector.shape_cast %24 : vector<1x16x8xbf16> to vector<16x8xbf16>
    %cst_18 = arith.constant dense<0.000000e+00> : vector<24x8xf32>
    %26 = tpu.matmul %23, %25, %cst_18 {dimension_numbers = #tpu.dot_dimension_numbers<[1], [0], [0], [1], [0, 0, 1, 1], [], []>} : vector<24x16xbf16>, vector<16x8xbf16>, vector<24x8xf32> -> vector<24x8xf32>
    %27 = arith.addf %21, %26 : vector<24x8xf32>
    %28 = vector.extract_strided_slice %20 {offsets = [1, 0], sizes = [24, 16], strides = [1, 1]} : vector<38x16xf32> to vector<24x16xf32>
    %29 = arith.truncf %28 : vector<24x16xf32> to vector<24x16xbf16>
    %c1 = arith.constant 1 : index
    %c0_19 = arith.constant 0 : index
    %c0_20 = arith.constant 0 : index
    %30 = vector.load %arg7[%c1, %c0_19, %c0_20] : memref<9x16x8xbf16, #tpu.memory_space<vmem>>, vector<1x16x8xbf16>
    %31 = vector.shape_cast %30 : vector<1x16x8xbf16> to vector<16x8xbf16>
    %cst_21 = arith.constant dense<0.000000e+00> : vector<24x8xf32>
    %32 = tpu.matmul %29, %31, %cst_21 {dimension_numbers = #tpu.dot_dimension_numbers<[1], [0], [0], [1], [0, 0, 1, 1], [], []>} : vector<24x16xbf16>, vector<16x8xbf16>, vector<24x8xf32> -> vector<24x8xf32>
    %33 = arith.addf %27, %32 : vector<24x8xf32>
    %34 = vector.extract_strided_slice %20 {offsets = [2, 0], sizes = [24, 16], strides = [1, 1]} : vector<38x16xf32> to vector<24x16xf32>
    %35 = arith.truncf %34 : vector<24x16xf32> to vector<24x16xbf16>
    %c2 = arith.constant 2 : index
    %c0_22 = arith.constant 0 : index
    %c0_23 = arith.constant 0 : index
    %36 = vector.load %arg7[%c2, %c0_22, %c0_23] : memref<9x16x8xbf16, #tpu.memory_space<vmem>>, vector<1x16x8xbf16>
    %37 = vector.shape_cast %36 : vector<1x16x8xbf16> to vector<16x8xbf16>
    %cst_24 = arith.constant dense<0.000000e+00> : vector<24x8xf32>
    %38 = tpu.matmul %35, %37, %cst_24 {dimension_numbers = #tpu.dot_dimension_numbers<[1], [0], [0], [1], [0, 0, 1, 1], [], []>} : vector<24x16xbf16>, vector<16x8xbf16>, vector<24x8xf32> -> vector<24x8xf32>
    %39 = arith.addf %33, %38 : vector<24x8xf32>
    %40 = vector.extract_strided_slice %20 {offsets = [6, 0], sizes = [24, 16], strides = [1, 1]} : vector<38x16xf32> to vector<24x16xf32>
    %41 = arith.truncf %40 : vector<24x16xf32> to vector<24x16xbf16>
    %c3 = arith.constant 3 : index
    %c0_25 = arith.constant 0 : index
    %c0_26 = arith.constant 0 : index
    %42 = vector.load %arg7[%c3, %c0_25, %c0_26] : memref<9x16x8xbf16, #tpu.memory_space<vmem>>, vector<1x16x8xbf16>
    %43 = vector.shape_cast %42 : vector<1x16x8xbf16> to vector<16x8xbf16>
    %cst_27 = arith.constant dense<0.000000e+00> : vector<24x8xf32>
    %44 = tpu.matmul %41, %43, %cst_27 {dimension_numbers = #tpu.dot_dimension_numbers<[1], [0], [0], [1], [0, 0, 1, 1], [], []>} : vector<24x16xbf16>, vector<16x8xbf16>, vector<24x8xf32> -> vector<24x8xf32>
    %45 = arith.addf %39, %44 : vector<24x8xf32>
    %46 = vector.extract_strided_slice %20 {offsets = [7, 0], sizes = [24, 16], strides = [1, 1]} : vector<38x16xf32> to vector<24x16xf32>
    %47 = arith.truncf %46 : vector<24x16xf32> to vector<24x16xbf16>
    %c4 = arith.constant 4 : index
    %c0_28 = arith.constant 0 : index
    %c0_29 = arith.constant 0 : index
    %48 = vector.load %arg7[%c4, %c0_28, %c0_29] : memref<9x16x8xbf16, #tpu.memory_space<vmem>>, vector<1x16x8xbf16>
    %49 = vector.shape_cast %48 : vector<1x16x8xbf16> to vector<16x8xbf16>
    %cst_30 = arith.constant dense<0.000000e+00> : vector<24x8xf32>
    %50 = tpu.matmul %47, %49, %cst_30 {dimension_numbers = #tpu.dot_dimension_numbers<[1], [0], [0], [1], [0, 0, 1, 1], [], []>} : vector<24x16xbf16>, vector<16x8xbf16>, vector<24x8xf32> -> vector<24x8xf32>
    %51 = arith.addf %45, %50 : vector<24x8xf32>
    %52 = vector.extract_strided_slice %20 {offsets = [8, 0], sizes = [24, 16], strides = [1, 1]} : vector<38x16xf32> to vector<24x16xf32>
    %53 = arith.truncf %52 : vector<24x16xf32> to vector<24x16xbf16>
    %c5 = arith.constant 5 : index
    %c0_31 = arith.constant 0 : index
    %c0_32 = arith.constant 0 : index
    %54 = vector.load %arg7[%c5, %c0_31, %c0_32] : memref<9x16x8xbf16, #tpu.memory_space<vmem>>, vector<1x16x8xbf16>
    %55 = vector.shape_cast %54 : vector<1x16x8xbf16> to vector<16x8xbf16>
    %cst_33 = arith.constant dense<0.000000e+00> : vector<24x8xf32>
    %56 = tpu.matmul %53, %55, %cst_33 {dimension_numbers = #tpu.dot_dimension_numbers<[1], [0], [0], [1], [0, 0, 1, 1], [], []>} : vector<24x16xbf16>, vector<16x8xbf16>, vector<24x8xf32> -> vector<24x8xf32>
    %57 = arith.addf %51, %56 : vector<24x8xf32>
    %58 = vector.extract_strided_slice %20 {offsets = [12, 0], sizes = [24, 16], strides = [1, 1]} : vector<38x16xf32> to vector<24x16xf32>
    %59 = arith.truncf %58 : vector<24x16xf32> to vector<24x16xbf16>
    %c6 = arith.constant 6 : index
    %c0_34 = arith.constant 0 : index
    %c0_35 = arith.constant 0 : index
    %60 = vector.load %arg7[%c6, %c0_34, %c0_35] : memref<9x16x8xbf16, #tpu.memory_space<vmem>>, vector<1x16x8xbf16>
    %61 = vector.shape_cast %60 : vector<1x16x8xbf16> to vector<16x8xbf16>
    %cst_36 = arith.constant dense<0.000000e+00> : vector<24x8xf32>
    %62 = tpu.matmul %59, %61, %cst_36 {dimension_numbers = #tpu.dot_dimension_numbers<[1], [0], [0], [1], [0, 0, 1, 1], [], []>} : vector<24x16xbf16>, vector<16x8xbf16>, vector<24x8xf32> -> vector<24x8xf32>
    %63 = arith.addf %57, %62 : vector<24x8xf32>
    %64 = vector.extract_strided_slice %20 {offsets = [13, 0], sizes = [24, 16], strides = [1, 1]} : vector<38x16xf32> to vector<24x16xf32>
    %65 = arith.truncf %64 : vector<24x16xf32> to vector<24x16xbf16>
    %c7 = arith.constant 7 : index
    %c0_37 = arith.constant 0 : index
    %c0_38 = arith.constant 0 : index
    %66 = vector.load %arg7[%c7, %c0_37, %c0_38] : memref<9x16x8xbf16, #tpu.memory_space<vmem>>, vector<1x16x8xbf16>
    %67 = vector.shape_cast %66 : vector<1x16x8xbf16> to vector<16x8xbf16>
    %cst_39 = arith.constant dense<0.000000e+00> : vector<24x8xf32>
    %68 = tpu.matmul %65, %67, %cst_39 {dimension_numbers = #tpu.dot_dimension_numbers<[1], [0], [0], [1], [0, 0, 1, 1], [], []>} : vector<24x16xbf16>, vector<16x8xbf16>, vector<24x8xf32> -> vector<24x8xf32>
    %69 = arith.addf %63, %68 : vector<24x8xf32>
    %70 = vector.extract_strided_slice %20 {offsets = [14, 0], sizes = [24, 16], strides = [1, 1]} : vector<38x16xf32> to vector<24x16xf32>
    %71 = arith.truncf %70 : vector<24x16xf32> to vector<24x16xbf16>
    %c8 = arith.constant 8 : index
    %c0_40 = arith.constant 0 : index
    %c0_41 = arith.constant 0 : index
    %72 = vector.load %arg7[%c8, %c0_40, %c0_41] : memref<9x16x8xbf16, #tpu.memory_space<vmem>>, vector<1x16x8xbf16>
    %73 = vector.shape_cast %72 : vector<1x16x8xbf16> to vector<16x8xbf16>
    %cst_42 = arith.constant dense<0.000000e+00> : vector<24x8xf32>
    %74 = tpu.matmul %71, %73, %cst_42 {dimension_numbers = #tpu.dot_dimension_numbers<[1], [0], [0], [1], [0, 0, 1, 1], [], []>} : vector<24x16xbf16>, vector<16x8xbf16>, vector<24x8xf32> -> vector<24x8xf32>
    %75 = arith.addf %69, %74 : vector<24x8xf32>
    %c0_43 = arith.constant 0 : index
    %c0_44 = arith.constant 0 : index
    %c0_45 = arith.constant 0 : index
    %76 = vector.load %arg8[%c0_43, %c0_44, %c0_45] : memref<1x24x8xf32, #tpu.memory_space<vmem>>, vector<1x24x8xf32>
    %77 = vector.shape_cast %76 : vector<1x24x8xf32> to vector<24x8xf32>
    %78 = vector.shape_cast %75 : vector<24x8xf32> to vector<1x24x8xf32>
    tpu.vector_store %arg8[%c0_43, %c0_44, %c0_45], %78 {strides = array<i32>} : memref<1x24x8xf32, #tpu.memory_space<vmem>>, vector<1x24x8xf32>,
    return
  }
  func.func @transform_0(%arg0: i32) -> (i32, i32, i32) {
    %c0_i32 = arith.constant 0 : i32
    %c0_i32_0 = arith.constant 0 : i32
    %c0_i32_1 = arith.constant 0 : i32
    return %arg0, %c0_i32, %c0_i32_0 : i32, i32, i32
  }
  func.func @transform_1(%arg0: i32) -> (i32, i32) {
    %c0_i32 = arith.constant 0 : i32
    %c0_i32_0 = arith.constant 0 : i32
    %c0_i32_1 = arith.constant 0 : i32
    return %c0_i32, %c0_i32_0 : i32, i32
  }
  func.func @transform_2(%arg0: i32) -> (i32, i32) {
    %c0_i32 = arith.constant 0 : i32
    %c0_i32_0 = arith.constant 0 : i32
    %c0_i32_1 = arith.constant 0 : i32
    return %c0_i32, %c0_i32_0 : i32, i32
  }
  func.func @transform_3(%arg0: i32) -> (i32, i32) {
    %c0_i32 = arith.constant 0 : i32
    %c0_i32_0 = arith.constant 0 : i32
    %c0_i32_1 = arith.constant 0 : i32
    return %c0_i32, %c0_i32_0 : i32, i32
  }
  func.func @transform_4(%arg0: i32) -> (i32, i32) {
    %c0_i32 = arith.constant 0 : i32
    %c0_i32_0 = arith.constant 0 : i32
    %c0_i32_1 = arith.constant 0 : i32
    return %c0_i32, %c0_i32_0 : i32, i32
  }
  func.func @transform_5(%arg0: i32) -> (i32, i32) {
    %c0_i32 = arith.constant 0 : i32
    %c0_i32_0 = arith.constant 0 : i32
    %c0_i32_1 = arith.constant 0 : i32
    return %c0_i32, %c0_i32_0 : i32, i32
  }
  func.func @transform_6(%arg0: i32) -> (i32, i32, i32) {
    %c0_i32 = arith.constant 0 : i32
    %c0_i32_0 = arith.constant 0 : i32
    %c0_i32_1 = arith.constant 0 : i32
    %c0_i32_2 = arith.constant 0 : i32
    return %c0_i32, %c0_i32_0, %c0_i32_1 : i32, i32, i32
  }
  func.func @transform_7(%arg0: i32) -> (i32, i32, i32) {
    %c0_i32 = arith.constant 0 : i32
    %c0_i32_0 = arith.constant 0 : i32
    %c0_i32_1 = arith.constant 0 : i32
    return %arg0, %c0_i32, %c0_i32_0 : i32, i32, i32
  }
}

module attributes {stable_mosaic.version = 11 : i64} {
  func.func @matmul_kernel(%arg0: i32, %arg1: memref<16x32xf32, #tpu.memory_space<vmem>>, %arg2: memref<32x16xbf16, #tpu.memory_space<vmem>>, %arg3: memref<1x32xf32, #tpu.memory_space<vmem>>, %arg4: memref<1x32xf32, #tpu.memory_space<vmem>>, %arg5: memref<1x16xf32, #tpu.memory_space<vmem>>, %arg6: memref<16x16xf32, #tpu.memory_space<vmem>>) attributes {dimension_semantics = [#tpu.dimension_semantics<parallel>], iteration_bounds = array<i64: 1>, scalar_prefetch = 0 : i64, scratch_operands = 0 : i64, tpu.core_type = #tpu.core_type<tc>, window_params = [{transform_indices = @transform_0, window_bounds = array<i64: 16, 32>}, {pipeline_mode = #tpu.pipeline_mode<synchronous>, transform_indices = @transform_1, window_bounds = array<i64: 32, 16>}, {pipeline_mode = #tpu.pipeline_mode<synchronous>, transform_indices = @transform_2, window_bounds = array<i64: 1, 32>}, {pipeline_mode = #tpu.pipeline_mode<synchronous>, transform_indices = @transform_3, window_bounds = array<i64: 1, 32>}, {pipeline_mode = #tpu.pipeline_mode<synchronous>, transform_indices = @transform_4, window_bounds = array<i64: 1, 16>}, {transform_indices = @transform_5, window_bounds = array<i64: 16, 16>}]} {
    %c0 = arith.constant 0 : index
    %c0_0 = arith.constant 0 : index
    %0 = vector.load %arg1[%c0, %c0_0] : memref<16x32xf32, #tpu.memory_space<vmem>>, vector<16x32xf32>
    %c0_1 = arith.constant 0 : index
    %c0_2 = arith.constant 0 : index
    %1 = vector.load %arg3[%c0_1, %c0_2] : memref<1x32xf32, #tpu.memory_space<vmem>>, vector<1x32xf32>
    %2 = vector.broadcast %1 : vector<1x32xf32> to vector<16x32xf32>
    %3 = arith.mulf %0, %2 : vector<16x32xf32>
    %c0_3 = arith.constant 0 : index
    %c0_4 = arith.constant 0 : index
    %4 = vector.load %arg4[%c0_3, %c0_4] : memref<1x32xf32, #tpu.memory_space<vmem>>, vector<1x32xf32>
    %5 = vector.broadcast %4 : vector<1x32xf32> to vector<16x32xf32>
    %6 = arith.addf %3, %5 : vector<16x32xf32>
    %cst = arith.constant 0.000000e+00 : f32
    %7 = vector.broadcast %cst : f32 to vector<16x32xf32>
    %8 = arith.maximumf %6, %7 : vector<16x32xf32>
    %9 = arith.truncf %8 : vector<16x32xf32> to vector<16x32xbf16>
    %c0_5 = arith.constant 0 : index
    %c0_6 = arith.constant 0 : index
    %10 = vector.load %arg2[%c0_5, %c0_6] : memref<32x16xbf16, #tpu.memory_space<vmem>>, vector<32x16xbf16>
    %cst_7 = arith.constant dense<0.000000e+00> : vector<16x16xf32>
    %11 = tpu.matmul %9, %10, %cst_7 {dimension_numbers = #tpu.dot_dimension_numbers<[1], [0], [0], [1], [0, 0, 1, 1], [], []>} : vector<16x32xbf16>, vector<32x16xbf16>, vector<16x16xf32> -> vector<16x16xf32>
    %c0_8 = arith.constant 0 : index
    %c0_9 = arith.constant 0 : index
    %12 = vector.load %arg5[%c0_8, %c0_9] : memref<1x16xf32, #tpu.memory_space<vmem>>, vector<1x16xf32>
    %13 = vector.broadcast %12 : vector<1x16xf32> to vector<16x16xf32>
    %14 = arith.addf %11, %13 : vector<16x16xf32>
    %c0_10 = arith.constant 0 : index
    %c0_11 = arith.constant 0 : index
    %15 = vector.load %arg6[%c0_10, %c0_11] : memref<16x16xf32, #tpu.memory_space<vmem>>, vector<16x16xf32>
    tpu.vector_store %arg6[%c0_10, %c0_11], %14 {strides = array<i32>} : memref<16x16xf32, #tpu.memory_space<vmem>>, vector<16x16xf32>,
    return
  }
  func.func @transform_0(%arg0: i32) -> (i32, i32) {
    %c0_i32 = arith.constant 0 : i32
    %c0_i32_0 = arith.constant 0 : i32
    return %arg0, %c0_i32 : i32, i32
  }
  func.func @transform_1(%arg0: i32) -> (i32, i32) {
    %c0_i32 = arith.constant 0 : i32
    %c0_i32_0 = arith.constant 0 : i32
    %c0_i32_1 = arith.constant 0 : i32
    return %c0_i32, %c0_i32_0 : i32, i32
  }
  func.func @transform_2(%arg0: i32) -> (i32, i32) {
    %c0_i32 = arith.constant 0 : i32
    %c0_i32_0 = arith.constant 0 : i32
    %c0_i32_1 = arith.constant 0 : i32
    return %c0_i32, %c0_i32_0 : i32, i32
  }
  func.func @transform_3(%arg0: i32) -> (i32, i32) {
    %c0_i32 = arith.constant 0 : i32
    %c0_i32_0 = arith.constant 0 : i32
    %c0_i32_1 = arith.constant 0 : i32
    return %c0_i32, %c0_i32_0 : i32, i32
  }
  func.func @transform_4(%arg0: i32) -> (i32, i32) {
    %c0_i32 = arith.constant 0 : i32
    %c0_i32_0 = arith.constant 0 : i32
    %c0_i32_1 = arith.constant 0 : i32
    return %c0_i32, %c0_i32_0 : i32, i32
  }
  func.func @transform_5(%arg0: i32) -> (i32, i32) {
    %c0_i32 = arith.constant 0 : i32
    %c0_i32_0 = arith.constant 0 : i32
    return %arg0, %c0_i32 : i32, i32
  }
}

module attributes {stable_mosaic.version = 11 : i64} {
  func.func @avgpool_h2_kernel(%arg0: i32, %arg1: memref<2x2x64xf32, #tpu.memory_space<vmem>>, %arg2: memref<2x64xf32, #tpu.memory_space<vmem>>) attributes {dimension_semantics = [#tpu.dimension_semantics<parallel>], iteration_bounds = array<i64: 1>, scalar_prefetch = 0 : i64, scratch_operands = 0 : i64, tpu.core_type = #tpu.core_type<tc>, window_params = [{transform_indices = @transform_0, window_bounds = array<i64: 2, 2, 64>}, {transform_indices = @transform_1, window_bounds = array<i64: 2, 64>}]} {
    %c0 = arith.constant 0 : index
    %c0_0 = arith.constant 0 : index
    %c0_1 = arith.constant 0 : index
    %0 = vector.load %arg1[%c0, %c0_0, %c0_1] : memref<2x2x64xf32, #tpu.memory_space<vmem>>, vector<2x2x64xf32>
    %1 = vector.extract_strided_slice %0 {offsets = [0, 0, 0], sizes = [2, 1, 64], strides = [1, 1, 1]} : vector<2x2x64xf32> to vector<2x1x64xf32>
    %2 = vector.shape_cast %1 : vector<2x1x64xf32> to vector<2x64xf32>
    %3 = vector.extract_strided_slice %0 {offsets = [0, 1, 0], sizes = [2, 1, 64], strides = [1, 1, 1]} : vector<2x2x64xf32> to vector<2x1x64xf32>
    %4 = vector.shape_cast %3 : vector<2x1x64xf32> to vector<2x64xf32>
    %5 = arith.addf %2, %4 : vector<2x64xf32>
    %cst = arith.constant 5.000000e-01 : f32
    %6 = vector.broadcast %cst : f32 to vector<2x64xf32>
    %7 = arith.mulf %6, %5 : vector<2x64xf32>
    %c0_2 = arith.constant 0 : index
    %c0_3 = arith.constant 0 : index
    %8 = vector.load %arg2[%c0_2, %c0_3] : memref<2x64xf32, #tpu.memory_space<vmem>>, vector<2x64xf32>
    tpu.vector_store %arg2[%c0_2, %c0_3], %7 {strides = array<i32>} : memref<2x64xf32, #tpu.memory_space<vmem>>, vector<2x64xf32>,
    return
  }
  func.func @transform_0(%arg0: i32) -> (i32, i32, i32) {
    %c0_i32 = arith.constant 0 : i32
    %c0_i32_0 = arith.constant 0 : i32
    %c0_i32_1 = arith.constant 0 : i32
    return %arg0, %c0_i32, %c0_i32_0 : i32, i32, i32
  }
  func.func @transform_1(%arg0: i32) -> (i32, i32) {
    %c0_i32 = arith.constant 0 : i32
    %c0_i32_0 = arith.constant 0 : i32
    return %arg0, %c0_i32 : i32, i32
  }
}

module attributes {stable_mosaic.version = 11 : i64} {
  func.func @dense_layer_kernel(%arg0: i32, %arg1: memref<1x32x16xf32, #tpu.memory_space<vmem>>, %arg2: memref<16x16xbf16, #tpu.memory_space<vmem>>, %arg3: memref<1x16xf32, #tpu.memory_space<vmem>>, %arg4: memref<1x16xf32, #tpu.memory_space<vmem>>, %arg5: memref<1x16xf32, #tpu.memory_space<vmem>>, %arg6: memref<32x1xf32, #tpu.memory_space<vmem>>, %arg7: memref<9x16x8xbf16, #tpu.memory_space<vmem>>, %arg8: memref<1x18x8xf32, #tpu.memory_space<vmem>>) attributes {dimension_semantics = [#tpu.dimension_semantics<parallel>], iteration_bounds = array<i64: 2>, scalar_prefetch = 0 : i64, scratch_operands = 0 : i64, tpu.core_type = #tpu.core_type<tc>, window_params = [{transform_indices = @transform_0, window_bounds = array<i64: 1, 32, 16>}, {pipeline_mode = #tpu.pipeline_mode<synchronous>, transform_indices = @transform_1, window_bounds = array<i64: 16, 16>}, {pipeline_mode = #tpu.pipeline_mode<synchronous>, transform_indices = @transform_2, window_bounds = array<i64: 1, 16>}, {pipeline_mode = #tpu.pipeline_mode<synchronous>, transform_indices = @transform_3, window_bounds = array<i64: 1, 16>}, {pipeline_mode = #tpu.pipeline_mode<synchronous>, transform_indices = @transform_4, window_bounds = array<i64: 1, 16>}, {pipeline_mode = #tpu.pipeline_mode<synchronous>, transform_indices = @transform_5, window_bounds = array<i64: 32, 1>}, {pipeline_mode = #tpu.pipeline_mode<synchronous>, transform_indices = @transform_6, window_bounds = array<i64: 9, 16, 8>}, {transform_indices = @transform_7, window_bounds = array<i64: 1, 18, 8>}]} {
    %c0 = arith.constant 0 : index
    %c0_0 = arith.constant 0 : index
    %c0_1 = arith.constant 0 : index
    %0 = vector.load %arg1[%c0, %c0_0, %c0_1] : memref<1x32x16xf32, #tpu.memory_space<vmem>>, vector<1x32x16xf32>
    %1 = vector.shape_cast %0 : vector<1x32x16xf32> to vector<32x16xf32>
    %c0_2 = arith.constant 0 : index
    %c0_3 = arith.constant 0 : index
    %2 = vector.load %arg3[%c0_2, %c0_3] : memref<1x16xf32, #tpu.memory_space<vmem>>, vector<1x16xf32>
    %3 = vector.broadcast %2 : vector<1x16xf32> to vector<32x16xf32>
    %4 = arith.mulf %1, %3 : vector<32x16xf32>
    %c0_4 = arith.constant 0 : index
    %c0_5 = arith.constant 0 : index
    %5 = vector.load %arg4[%c0_4, %c0_5] : memref<1x16xf32, #tpu.memory_space<vmem>>, vector<1x16xf32>
    %6 = vector.broadcast %5 : vector<1x16xf32> to vector<32x16xf32>
    %7 = arith.addf %4, %6 : vector<32x16xf32>
    %cst = arith.constant 0.000000e+00 : f32
    %8 = vector.broadcast %cst : f32 to vector<32x16xf32>
    %9 = arith.maximumf %7, %8 : vector<32x16xf32>
    %10 = arith.truncf %9 : vector<32x16xf32> to vector<32x16xbf16>
    %c0_6 = arith.constant 0 : index
    %c0_7 = arith.constant 0 : index
    %11 = vector.load %arg2[%c0_6, %c0_7] : memref<16x16xbf16, #tpu.memory_space<vmem>>, vector<16x16xbf16>
    %cst_8 = arith.constant dense<0.000000e+00> : vector<32x16xf32>
    %12 = tpu.matmul %10, %11, %cst_8 {dimension_numbers = #tpu.dot_dimension_numbers<[1], [0], [0], [1], [0, 0, 1, 1], [], []>} : vector<32x16xbf16>, vector<16x16xbf16>, vector<32x16xf32> -> vector<32x16xf32>
    %c0_9 = arith.constant 0 : index
    %c0_10 = arith.constant 0 : index
    %13 = vector.load %arg5[%c0_9, %c0_10] : memref<1x16xf32, #tpu.memory_space<vmem>>, vector<1x16xf32>
    %14 = vector.broadcast %13 : vector<1x16xf32> to vector<32x16xf32>
    %15 = arith.addf %12, %14 : vector<32x16xf32>
    %cst_11 = arith.constant 0.000000e+00 : f32
    %16 = vector.broadcast %cst_11 : f32 to vector<32x16xf32>
    %17 = arith.maximumf %15, %16 : vector<32x16xf32>
    %c0_12 = arith.constant 0 : index
    %c0_13 = arith.constant 0 : index
    %18 = vector.load %arg6[%c0_12, %c0_13] : memref<32x1xf32, #tpu.memory_space<vmem>>, vector<32x1xf32>
    %19 = vector.broadcast %18 : vector<32x1xf32> to vector<32x16xf32>
    %20 = arith.mulf %17, %19 : vector<32x16xf32>
    %cst_14 = arith.constant 0.000000e+00 : f32
    %21 = vector.broadcast %cst_14 : f32 to vector<18x8xf32>
    %22 = vector.extract_strided_slice %20 {offsets = [0, 0], sizes = [18, 16], strides = [1, 1]} : vector<32x16xf32> to vector<18x16xf32>
    %23 = arith.truncf %22 : vector<18x16xf32> to vector<18x16xbf16>
    %c0_15 = arith.constant 0 : index
    %c0_16 = arith.constant 0 : index
    %c0_17 = arith.constant 0 : index
    %24 = vector.load %arg7[%c0_15, %c0_16, %c0_17] : memref<9x16x8xbf16, #tpu.memory_space<vmem>>, vector<1x16x8xbf16>
    %25 = vector.shape_cast %24 : vector<1x16x8xbf16> to vector<16x8xbf16>
    %cst_18 = arith.constant dense<0.000000e+00> : vector<18x8xf32>
    %26 = tpu.matmul %23, %25, %cst_18 {dimension_numbers = #tpu.dot_dimension_numbers<[1], [0], [0], [1], [0, 0, 1, 1], [], []>} : vector<18x16xbf16>, vector<16x8xbf16>, vector<18x8xf32> -> vector<18x8xf32>
    %27 = arith.addf %21, %26 : vector<18x8xf32>
    %28 = vector.extract_strided_slice %20 {offsets = [1, 0], sizes = [18, 16], strides = [1, 1]} : vector<32x16xf32> to vector<18x16xf32>
    %29 = arith.truncf %28 : vector<18x16xf32> to vector<18x16xbf16>
    %c1 = arith.constant 1 : index
    %c0_19 = arith.constant 0 : index
    %c0_20 = arith.constant 0 : index
    %30 = vector.load %arg7[%c1, %c0_19, %c0_20] : memref<9x16x8xbf16, #tpu.memory_space<vmem>>, vector<1x16x8xbf16>
    %31 = vector.shape_cast %30 : vector<1x16x8xbf16> to vector<16x8xbf16>
    %cst_21 = arith.constant dense<0.000000e+00> : vector<18x8xf32>
    %32 = tpu.matmul %29, %31, %cst_21 {dimension_numbers = #tpu.dot_dimension_numbers<[1], [0], [0], [1], [0, 0, 1, 1], [], []>} : vector<18x16xbf16>, vector<16x8xbf16>, vector<18x8xf32> -> vector<18x8xf32>
    %33 = arith.addf %27, %32 : vector<18x8xf32>
    %34 = vector.extract_strided_slice %20 {offsets = [2, 0], sizes = [18, 16], strides = [1, 1]} : vector<32x16xf32> to vector<18x16xf32>
    %35 = arith.truncf %34 : vector<18x16xf32> to vector<18x16xbf16>
    %c2 = arith.constant 2 : index
    %c0_22 = arith.constant 0 : index
    %c0_23 = arith.constant 0 : index
    %36 = vector.load %arg7[%c2, %c0_22, %c0_23] : memref<9x16x8xbf16, #tpu.memory_space<vmem>>, vector<1x16x8xbf16>
    %37 = vector.shape_cast %36 : vector<1x16x8xbf16> to vector<16x8xbf16>
    %cst_24 = arith.constant dense<0.000000e+00> : vector<18x8xf32>
    %38 = tpu.matmul %35, %37, %cst_24 {dimension_numbers = #tpu.dot_dimension_numbers<[1], [0], [0], [1], [0, 0, 1, 1], [], []>} : vector<18x16xbf16>, vector<16x8xbf16>, vector<18x8xf32> -> vector<18x8xf32>
    %39 = arith.addf %33, %38 : vector<18x8xf32>
    %40 = vector.extract_strided_slice %20 {offsets = [6, 0], sizes = [18, 16], strides = [1, 1]} : vector<32x16xf32> to vector<18x16xf32>
    %41 = arith.truncf %40 : vector<18x16xf32> to vector<18x16xbf16>
    %c3 = arith.constant 3 : index
    %c0_25 = arith.constant 0 : index
    %c0_26 = arith.constant 0 : index
    %42 = vector.load %arg7[%c3, %c0_25, %c0_26] : memref<9x16x8xbf16, #tpu.memory_space<vmem>>, vector<1x16x8xbf16>
    %43 = vector.shape_cast %42 : vector<1x16x8xbf16> to vector<16x8xbf16>
    %cst_27 = arith.constant dense<0.000000e+00> : vector<18x8xf32>
    %44 = tpu.matmul %41, %43, %cst_27 {dimension_numbers = #tpu.dot_dimension_numbers<[1], [0], [0], [1], [0, 0, 1, 1], [], []>} : vector<18x16xbf16>, vector<16x8xbf16>, vector<18x8xf32> -> vector<18x8xf32>
    %45 = arith.addf %39, %44 : vector<18x8xf32>
    %46 = vector.extract_strided_slice %20 {offsets = [7, 0], sizes = [18, 16], strides = [1, 1]} : vector<32x16xf32> to vector<18x16xf32>
    %47 = arith.truncf %46 : vector<18x16xf32> to vector<18x16xbf16>
    %c4 = arith.constant 4 : index
    %c0_28 = arith.constant 0 : index
    %c0_29 = arith.constant 0 : index
    %48 = vector.load %arg7[%c4, %c0_28, %c0_29] : memref<9x16x8xbf16, #tpu.memory_space<vmem>>, vector<1x16x8xbf16>
    %49 = vector.shape_cast %48 : vector<1x16x8xbf16> to vector<16x8xbf16>
    %cst_30 = arith.constant dense<0.000000e+00> : vector<18x8xf32>
    %50 = tpu.matmul %47, %49, %cst_30 {dimension_numbers = #tpu.dot_dimension_numbers<[1], [0], [0], [1], [0, 0, 1, 1], [], []>} : vector<18x16xbf16>, vector<16x8xbf16>, vector<18x8xf32> -> vector<18x8xf32>
    %51 = arith.addf %45, %50 : vector<18x8xf32>
    %52 = vector.extract_strided_slice %20 {offsets = [8, 0], sizes = [18, 16], strides = [1, 1]} : vector<32x16xf32> to vector<18x16xf32>
    %53 = arith.truncf %52 : vector<18x16xf32> to vector<18x16xbf16>
    %c5 = arith.constant 5 : index
    %c0_31 = arith.constant 0 : index
    %c0_32 = arith.constant 0 : index
    %54 = vector.load %arg7[%c5, %c0_31, %c0_32] : memref<9x16x8xbf16, #tpu.memory_space<vmem>>, vector<1x16x8xbf16>
    %55 = vector.shape_cast %54 : vector<1x16x8xbf16> to vector<16x8xbf16>
    %cst_33 = arith.constant dense<0.000000e+00> : vector<18x8xf32>
    %56 = tpu.matmul %53, %55, %cst_33 {dimension_numbers = #tpu.dot_dimension_numbers<[1], [0], [0], [1], [0, 0, 1, 1], [], []>} : vector<18x16xbf16>, vector<16x8xbf16>, vector<18x8xf32> -> vector<18x8xf32>
    %57 = arith.addf %51, %56 : vector<18x8xf32>
    %58 = vector.extract_strided_slice %20 {offsets = [12, 0], sizes = [18, 16], strides = [1, 1]} : vector<32x16xf32> to vector<18x16xf32>
    %59 = arith.truncf %58 : vector<18x16xf32> to vector<18x16xbf16>
    %c6 = arith.constant 6 : index
    %c0_34 = arith.constant 0 : index
    %c0_35 = arith.constant 0 : index
    %60 = vector.load %arg7[%c6, %c0_34, %c0_35] : memref<9x16x8xbf16, #tpu.memory_space<vmem>>, vector<1x16x8xbf16>
    %61 = vector.shape_cast %60 : vector<1x16x8xbf16> to vector<16x8xbf16>
    %cst_36 = arith.constant dense<0.000000e+00> : vector<18x8xf32>
    %62 = tpu.matmul %59, %61, %cst_36 {dimension_numbers = #tpu.dot_dimension_numbers<[1], [0], [0], [1], [0, 0, 1, 1], [], []>} : vector<18x16xbf16>, vector<16x8xbf16>, vector<18x8xf32> -> vector<18x8xf32>
    %63 = arith.addf %57, %62 : vector<18x8xf32>
    %64 = vector.extract_strided_slice %20 {offsets = [13, 0], sizes = [18, 16], strides = [1, 1]} : vector<32x16xf32> to vector<18x16xf32>
    %65 = arith.truncf %64 : vector<18x16xf32> to vector<18x16xbf16>
    %c7 = arith.constant 7 : index
    %c0_37 = arith.constant 0 : index
    %c0_38 = arith.constant 0 : index
    %66 = vector.load %arg7[%c7, %c0_37, %c0_38] : memref<9x16x8xbf16, #tpu.memory_space<vmem>>, vector<1x16x8xbf16>
    %67 = vector.shape_cast %66 : vector<1x16x8xbf16> to vector<16x8xbf16>
    %cst_39 = arith.constant dense<0.000000e+00> : vector<18x8xf32>
    %68 = tpu.matmul %65, %67, %cst_39 {dimension_numbers = #tpu.dot_dimension_numbers<[1], [0], [0], [1], [0, 0, 1, 1], [], []>} : vector<18x16xbf16>, vector<16x8xbf16>, vector<18x8xf32> -> vector<18x8xf32>
    %69 = arith.addf %63, %68 : vector<18x8xf32>
    %70 = vector.extract_strided_slice %20 {offsets = [14, 0], sizes = [18, 16], strides = [1, 1]} : vector<32x16xf32> to vector<18x16xf32>
    %71 = arith.truncf %70 : vector<18x16xf32> to vector<18x16xbf16>
    %c8 = arith.constant 8 : index
    %c0_40 = arith.constant 0 : index
    %c0_41 = arith.constant 0 : index
    %72 = vector.load %arg7[%c8, %c0_40, %c0_41] : memref<9x16x8xbf16, #tpu.memory_space<vmem>>, vector<1x16x8xbf16>
    %73 = vector.shape_cast %72 : vector<1x16x8xbf16> to vector<16x8xbf16>
    %cst_42 = arith.constant dense<0.000000e+00> : vector<18x8xf32>
    %74 = tpu.matmul %71, %73, %cst_42 {dimension_numbers = #tpu.dot_dimension_numbers<[1], [0], [0], [1], [0, 0, 1, 1], [], []>} : vector<18x16xbf16>, vector<16x8xbf16>, vector<18x8xf32> -> vector<18x8xf32>
    %75 = arith.addf %69, %74 : vector<18x8xf32>
    %c0_43 = arith.constant 0 : index
    %c0_44 = arith.constant 0 : index
    %c0_45 = arith.constant 0 : index
    %76 = vector.load %arg8[%c0_43, %c0_44, %c0_45] : memref<1x18x8xf32, #tpu.memory_space<vmem>>, vector<1x18x8xf32>
    %77 = vector.shape_cast %76 : vector<1x18x8xf32> to vector<18x8xf32>
    %78 = vector.shape_cast %75 : vector<18x8xf32> to vector<1x18x8xf32>
    tpu.vector_store %arg8[%c0_43, %c0_44, %c0_45], %78 {strides = array<i32>} : memref<1x18x8xf32, #tpu.memory_space<vmem>>, vector<1x18x8xf32>,
    return
  }
  func.func @transform_0(%arg0: i32) -> (i32, i32, i32) {
    %c0_i32 = arith.constant 0 : i32
    %c0_i32_0 = arith.constant 0 : i32
    %c0_i32_1 = arith.constant 0 : i32
    return %arg0, %c0_i32, %c0_i32_0 : i32, i32, i32
  }
  func.func @transform_1(%arg0: i32) -> (i32, i32) {
    %c0_i32 = arith.constant 0 : i32
    %c0_i32_0 = arith.constant 0 : i32
    %c0_i32_1 = arith.constant 0 : i32
    return %c0_i32, %c0_i32_0 : i32, i32
  }
  func.func @transform_2(%arg0: i32) -> (i32, i32) {
    %c0_i32 = arith.constant 0 : i32
    %c0_i32_0 = arith.constant 0 : i32
    %c0_i32_1 = arith.constant 0 : i32
    return %c0_i32, %c0_i32_0 : i32, i32
  }
  func.func @transform_3(%arg0: i32) -> (i32, i32) {
    %c0_i32 = arith.constant 0 : i32
    %c0_i32_0 = arith.constant 0 : i32
    %c0_i32_1 = arith.constant 0 : i32
    return %c0_i32, %c0_i32_0 : i32, i32
  }
  func.func @transform_4(%arg0: i32) -> (i32, i32) {
    %c0_i32 = arith.constant 0 : i32
    %c0_i32_0 = arith.constant 0 : i32
    %c0_i32_1 = arith.constant 0 : i32
    return %c0_i32, %c0_i32_0 : i32, i32
  }
  func.func @transform_5(%arg0: i32) -> (i32, i32) {
    %c0_i32 = arith.constant 0 : i32
    %c0_i32_0 = arith.constant 0 : i32
    %c0_i32_1 = arith.constant 0 : i32
    return %c0_i32, %c0_i32_0 : i32, i32
  }
  func.func @transform_6(%arg0: i32) -> (i32, i32, i32) {
    %c0_i32 = arith.constant 0 : i32
    %c0_i32_0 = arith.constant 0 : i32
    %c0_i32_1 = arith.constant 0 : i32
    %c0_i32_2 = arith.constant 0 : i32
    return %c0_i32, %c0_i32_0, %c0_i32_1 : i32, i32, i32
  }
  func.func @transform_7(%arg0: i32) -> (i32, i32, i32) {
    %c0_i32 = arith.constant 0 : i32
    %c0_i32_0 = arith.constant 0 : i32
    %c0_i32_1 = arith.constant 0 : i32
    return %arg0, %c0_i32, %c0_i32_0 : i32, i32, i32
  }
}

module attributes {stable_mosaic.version = 11 : i64} {
  func.func @matmul_kernel(%arg0: i32, %arg1: memref<8x32xf32, #tpu.memory_space<vmem>>, %arg2: memref<32x32xbf16, #tpu.memory_space<vmem>>, %arg3: memref<1x32xf32, #tpu.memory_space<vmem>>, %arg4: memref<1x32xf32, #tpu.memory_space<vmem>>, %arg5: memref<1x32xf32, #tpu.memory_space<vmem>>, %arg6: memref<8x32xf32, #tpu.memory_space<vmem>>) attributes {dimension_semantics = [#tpu.dimension_semantics<parallel>], iteration_bounds = array<i64: 1>, scalar_prefetch = 0 : i64, scratch_operands = 0 : i64, tpu.core_type = #tpu.core_type<tc>, window_params = [{transform_indices = @transform_0, window_bounds = array<i64: 8, 32>}, {pipeline_mode = #tpu.pipeline_mode<synchronous>, transform_indices = @transform_1, window_bounds = array<i64: 32, 32>}, {pipeline_mode = #tpu.pipeline_mode<synchronous>, transform_indices = @transform_2, window_bounds = array<i64: 1, 32>}, {pipeline_mode = #tpu.pipeline_mode<synchronous>, transform_indices = @transform_3, window_bounds = array<i64: 1, 32>}, {pipeline_mode = #tpu.pipeline_mode<synchronous>, transform_indices = @transform_4, window_bounds = array<i64: 1, 32>}, {transform_indices = @transform_5, window_bounds = array<i64: 8, 32>}]} {
    %c0 = arith.constant 0 : index
    %c0_0 = arith.constant 0 : index
    %0 = vector.load %arg1[%c0, %c0_0] : memref<8x32xf32, #tpu.memory_space<vmem>>, vector<8x32xf32>
    %c0_1 = arith.constant 0 : index
    %c0_2 = arith.constant 0 : index
    %1 = vector.load %arg3[%c0_1, %c0_2] : memref<1x32xf32, #tpu.memory_space<vmem>>, vector<1x32xf32>
    %2 = vector.broadcast %1 : vector<1x32xf32> to vector<8x32xf32>
    %3 = arith.mulf %0, %2 : vector<8x32xf32>
    %c0_3 = arith.constant 0 : index
    %c0_4 = arith.constant 0 : index
    %4 = vector.load %arg4[%c0_3, %c0_4] : memref<1x32xf32, #tpu.memory_space<vmem>>, vector<1x32xf32>
    %5 = vector.broadcast %4 : vector<1x32xf32> to vector<8x32xf32>
    %6 = arith.addf %3, %5 : vector<8x32xf32>
    %cst = arith.constant 0.000000e+00 : f32
    %7 = vector.broadcast %cst : f32 to vector<8x32xf32>
    %8 = arith.maximumf %6, %7 : vector<8x32xf32>
    %9 = arith.truncf %8 : vector<8x32xf32> to vector<8x32xbf16>
    %c0_5 = arith.constant 0 : index
    %c0_6 = arith.constant 0 : index
    %10 = vector.load %arg2[%c0_5, %c0_6] : memref<32x32xbf16, #tpu.memory_space<vmem>>, vector<32x32xbf16>
    %cst_7 = arith.constant dense<0.000000e+00> : vector<8x32xf32>
    %11 = tpu.matmul %9, %10, %cst_7 {dimension_numbers = #tpu.dot_dimension_numbers<[1], [0], [0], [1], [0, 0, 1, 1], [], []>} : vector<8x32xbf16>, vector<32x32xbf16>, vector<8x32xf32> -> vector<8x32xf32>
    %c0_8 = arith.constant 0 : index
    %c0_9 = arith.constant 0 : index
    %12 = vector.load %arg5[%c0_8, %c0_9] : memref<1x32xf32, #tpu.memory_space<vmem>>, vector<1x32xf32>
    %13 = vector.broadcast %12 : vector<1x32xf32> to vector<8x32xf32>
    %14 = arith.addf %11, %13 : vector<8x32xf32>
    %cst_10 = arith.constant 0.000000e+00 : f32
    %15 = vector.broadcast %cst_10 : f32 to vector<8x32xf32>
    %16 = arith.maximumf %14, %15 : vector<8x32xf32>
    %c0_11 = arith.constant 0 : index
    %c0_12 = arith.constant 0 : index
    %17 = vector.load %arg6[%c0_11, %c0_12] : memref<8x32xf32, #tpu.memory_space<vmem>>, vector<8x32xf32>
    tpu.vector_store %arg6[%c0_11, %c0_12], %16 {strides = array<i32>} : memref<8x32xf32, #tpu.memory_space<vmem>>, vector<8x32xf32>,
    return
  }
  func.func @transform_0(%arg0: i32) -> (i32, i32) {
    %c0_i32 = arith.constant 0 : i32
    %c0_i32_0 = arith.constant 0 : i32
    return %arg0, %c0_i32 : i32, i32
  }
  func.func @transform_1(%arg0: i32) -> (i32, i32) {
    %c0_i32 = arith.constant 0 : i32
    %c0_i32_0 = arith.constant 0 : i32
    %c0_i32_1 = arith.constant 0 : i32
    return %c0_i32, %c0_i32_0 : i32, i32
  }
  func.func @transform_2(%arg0: i32) -> (i32, i32) {
    %c0_i32 = arith.constant 0 : i32
    %c0_i32_0 = arith.constant 0 : i32
    %c0_i32_1 = arith.constant 0 : i32
    return %c0_i32, %c0_i32_0 : i32, i32
  }
  func.func @transform_3(%arg0: i32) -> (i32, i32) {
    %c0_i32 = arith.constant 0 : i32
    %c0_i32_0 = arith.constant 0 : i32
    %c0_i32_1 = arith.constant 0 : i32
    return %c0_i32, %c0_i32_0 : i32, i32
  }
  func.func @transform_4(%arg0: i32) -> (i32, i32) {
    %c0_i32 = arith.constant 0 : i32
    %c0_i32_0 = arith.constant 0 : i32
    %c0_i32_1 = arith.constant 0 : i32
    return %c0_i32, %c0_i32_0 : i32, i32
  }
  func.func @transform_5(%arg0: i32) -> (i32, i32) {
    %c0_i32 = arith.constant 0 : i32
    %c0_i32_0 = arith.constant 0 : i32
    return %arg0, %c0_i32 : i32, i32
  }
}

module attributes {stable_mosaic.version = 11 : i64} {
  func.func @dense_layer_kernel(%arg0: i32, %arg1: memref<1x32x24xf32, #tpu.memory_space<vmem>>, %arg2: memref<24x16xbf16, #tpu.memory_space<vmem>>, %arg3: memref<1x24xf32, #tpu.memory_space<vmem>>, %arg4: memref<1x24xf32, #tpu.memory_space<vmem>>, %arg5: memref<1x16xf32, #tpu.memory_space<vmem>>, %arg6: memref<32x1xf32, #tpu.memory_space<vmem>>, %arg7: memref<9x16x8xbf16, #tpu.memory_space<vmem>>, %arg8: memref<1x18x8xf32, #tpu.memory_space<vmem>>) attributes {dimension_semantics = [#tpu.dimension_semantics<parallel>], iteration_bounds = array<i64: 2>, scalar_prefetch = 0 : i64, scratch_operands = 0 : i64, tpu.core_type = #tpu.core_type<tc>, window_params = [{transform_indices = @transform_0, window_bounds = array<i64: 1, 32, 24>}, {pipeline_mode = #tpu.pipeline_mode<synchronous>, transform_indices = @transform_1, window_bounds = array<i64: 24, 16>}, {pipeline_mode = #tpu.pipeline_mode<synchronous>, transform_indices = @transform_2, window_bounds = array<i64: 1, 24>}, {pipeline_mode = #tpu.pipeline_mode<synchronous>, transform_indices = @transform_3, window_bounds = array<i64: 1, 24>}, {pipeline_mode = #tpu.pipeline_mode<synchronous>, transform_indices = @transform_4, window_bounds = array<i64: 1, 16>}, {pipeline_mode = #tpu.pipeline_mode<synchronous>, transform_indices = @transform_5, window_bounds = array<i64: 32, 1>}, {pipeline_mode = #tpu.pipeline_mode<synchronous>, transform_indices = @transform_6, window_bounds = array<i64: 9, 16, 8>}, {transform_indices = @transform_7, window_bounds = array<i64: 1, 18, 8>}]} {
    %c0 = arith.constant 0 : index
    %c0_0 = arith.constant 0 : index
    %c0_1 = arith.constant 0 : index
    %0 = vector.load %arg1[%c0, %c0_0, %c0_1] : memref<1x32x24xf32, #tpu.memory_space<vmem>>, vector<1x32x24xf32>
    %1 = vector.shape_cast %0 : vector<1x32x24xf32> to vector<32x24xf32>
    %c0_2 = arith.constant 0 : index
    %c0_3 = arith.constant 0 : index
    %2 = vector.load %arg3[%c0_2, %c0_3] : memref<1x24xf32, #tpu.memory_space<vmem>>, vector<1x24xf32>
    %3 = vector.broadcast %2 : vector<1x24xf32> to vector<32x24xf32>
    %4 = arith.mulf %1, %3 : vector<32x24xf32>
    %c0_4 = arith.constant 0 : index
    %c0_5 = arith.constant 0 : index
    %5 = vector.load %arg4[%c0_4, %c0_5] : memref<1x24xf32, #tpu.memory_space<vmem>>, vector<1x24xf32>
    %6 = vector.broadcast %5 : vector<1x24xf32> to vector<32x24xf32>
    %7 = arith.addf %4, %6 : vector<32x24xf32>
    %cst = arith.constant 0.000000e+00 : f32
    %8 = vector.broadcast %cst : f32 to vector<32x24xf32>
    %9 = arith.maximumf %7, %8 : vector<32x24xf32>
    %10 = arith.truncf %9 : vector<32x24xf32> to vector<32x24xbf16>
    %c0_6 = arith.constant 0 : index
    %c0_7 = arith.constant 0 : index
    %11 = vector.load %arg2[%c0_6, %c0_7] : memref<24x16xbf16, #tpu.memory_space<vmem>>, vector<24x16xbf16>
    %cst_8 = arith.constant dense<0.000000e+00> : vector<32x16xf32>
    %12 = tpu.matmul %10, %11, %cst_8 {dimension_numbers = #tpu.dot_dimension_numbers<[1], [0], [0], [1], [0, 0, 1, 1], [], []>} : vector<32x24xbf16>, vector<24x16xbf16>, vector<32x16xf32> -> vector<32x16xf32>
    %c0_9 = arith.constant 0 : index
    %c0_10 = arith.constant 0 : index
    %13 = vector.load %arg5[%c0_9, %c0_10] : memref<1x16xf32, #tpu.memory_space<vmem>>, vector<1x16xf32>
    %14 = vector.broadcast %13 : vector<1x16xf32> to vector<32x16xf32>
    %15 = arith.addf %12, %14 : vector<32x16xf32>
    %cst_11 = arith.constant 0.000000e+00 : f32
    %16 = vector.broadcast %cst_11 : f32 to vector<32x16xf32>
    %17 = arith.maximumf %15, %16 : vector<32x16xf32>
    %c0_12 = arith.constant 0 : index
    %c0_13 = arith.constant 0 : index
    %18 = vector.load %arg6[%c0_12, %c0_13] : memref<32x1xf32, #tpu.memory_space<vmem>>, vector<32x1xf32>
    %19 = vector.broadcast %18 : vector<32x1xf32> to vector<32x16xf32>
    %20 = arith.mulf %17, %19 : vector<32x16xf32>
    %cst_14 = arith.constant 0.000000e+00 : f32
    %21 = vector.broadcast %cst_14 : f32 to vector<18x8xf32>
    %22 = vector.extract_strided_slice %20 {offsets = [0, 0], sizes = [18, 16], strides = [1, 1]} : vector<32x16xf32> to vector<18x16xf32>
    %23 = arith.truncf %22 : vector<18x16xf32> to vector<18x16xbf16>
    %c0_15 = arith.constant 0 : index
    %c0_16 = arith.constant 0 : index
    %c0_17 = arith.constant 0 : index
    %24 = vector.load %arg7[%c0_15, %c0_16, %c0_17] : memref<9x16x8xbf16, #tpu.memory_space<vmem>>, vector<1x16x8xbf16>
    %25 = vector.shape_cast %24 : vector<1x16x8xbf16> to vector<16x8xbf16>
    %cst_18 = arith.constant dense<0.000000e+00> : vector<18x8xf32>
    %26 = tpu.matmul %23, %25, %cst_18 {dimension_numbers = #tpu.dot_dimension_numbers<[1], [0], [0], [1], [0, 0, 1, 1], [], []>} : vector<18x16xbf16>, vector<16x8xbf16>, vector<18x8xf32> -> vector<18x8xf32>
    %27 = arith.addf %21, %26 : vector<18x8xf32>
    %28 = vector.extract_strided_slice %20 {offsets = [1, 0], sizes = [18, 16], strides = [1, 1]} : vector<32x16xf32> to vector<18x16xf32>
    %29 = arith.truncf %28 : vector<18x16xf32> to vector<18x16xbf16>
    %c1 = arith.constant 1 : index
    %c0_19 = arith.constant 0 : index
    %c0_20 = arith.constant 0 : index
    %30 = vector.load %arg7[%c1, %c0_19, %c0_20] : memref<9x16x8xbf16, #tpu.memory_space<vmem>>, vector<1x16x8xbf16>
    %31 = vector.shape_cast %30 : vector<1x16x8xbf16> to vector<16x8xbf16>
    %cst_21 = arith.constant dense<0.000000e+00> : vector<18x8xf32>
    %32 = tpu.matmul %29, %31, %cst_21 {dimension_numbers = #tpu.dot_dimension_numbers<[1], [0], [0], [1], [0, 0, 1, 1], [], []>} : vector<18x16xbf16>, vector<16x8xbf16>, vector<18x8xf32> -> vector<18x8xf32>
    %33 = arith.addf %27, %32 : vector<18x8xf32>
    %34 = vector.extract_strided_slice %20 {offsets = [2, 0], sizes = [18, 16], strides = [1, 1]} : vector<32x16xf32> to vector<18x16xf32>
    %35 = arith.truncf %34 : vector<18x16xf32> to vector<18x16xbf16>
    %c2 = arith.constant 2 : index
    %c0_22 = arith.constant 0 : index
    %c0_23 = arith.constant 0 : index
    %36 = vector.load %arg7[%c2, %c0_22, %c0_23] : memref<9x16x8xbf16, #tpu.memory_space<vmem>>, vector<1x16x8xbf16>
    %37 = vector.shape_cast %36 : vector<1x16x8xbf16> to vector<16x8xbf16>
    %cst_24 = arith.constant dense<0.000000e+00> : vector<18x8xf32>
    %38 = tpu.matmul %35, %37, %cst_24 {dimension_numbers = #tpu.dot_dimension_numbers<[1], [0], [0], [1], [0, 0, 1, 1], [], []>} : vector<18x16xbf16>, vector<16x8xbf16>, vector<18x8xf32> -> vector<18x8xf32>
    %39 = arith.addf %33, %38 : vector<18x8xf32>
    %40 = vector.extract_strided_slice %20 {offsets = [6, 0], sizes = [18, 16], strides = [1, 1]} : vector<32x16xf32> to vector<18x16xf32>
    %41 = arith.truncf %40 : vector<18x16xf32> to vector<18x16xbf16>
    %c3 = arith.constant 3 : index
    %c0_25 = arith.constant 0 : index
    %c0_26 = arith.constant 0 : index
    %42 = vector.load %arg7[%c3, %c0_25, %c0_26] : memref<9x16x8xbf16, #tpu.memory_space<vmem>>, vector<1x16x8xbf16>
    %43 = vector.shape_cast %42 : vector<1x16x8xbf16> to vector<16x8xbf16>
    %cst_27 = arith.constant dense<0.000000e+00> : vector<18x8xf32>
    %44 = tpu.matmul %41, %43, %cst_27 {dimension_numbers = #tpu.dot_dimension_numbers<[1], [0], [0], [1], [0, 0, 1, 1], [], []>} : vector<18x16xbf16>, vector<16x8xbf16>, vector<18x8xf32> -> vector<18x8xf32>
    %45 = arith.addf %39, %44 : vector<18x8xf32>
    %46 = vector.extract_strided_slice %20 {offsets = [7, 0], sizes = [18, 16], strides = [1, 1]} : vector<32x16xf32> to vector<18x16xf32>
    %47 = arith.truncf %46 : vector<18x16xf32> to vector<18x16xbf16>
    %c4 = arith.constant 4 : index
    %c0_28 = arith.constant 0 : index
    %c0_29 = arith.constant 0 : index
    %48 = vector.load %arg7[%c4, %c0_28, %c0_29] : memref<9x16x8xbf16, #tpu.memory_space<vmem>>, vector<1x16x8xbf16>
    %49 = vector.shape_cast %48 : vector<1x16x8xbf16> to vector<16x8xbf16>
    %cst_30 = arith.constant dense<0.000000e+00> : vector<18x8xf32>
    %50 = tpu.matmul %47, %49, %cst_30 {dimension_numbers = #tpu.dot_dimension_numbers<[1], [0], [0], [1], [0, 0, 1, 1], [], []>} : vector<18x16xbf16>, vector<16x8xbf16>, vector<18x8xf32> -> vector<18x8xf32>
    %51 = arith.addf %45, %50 : vector<18x8xf32>
    %52 = vector.extract_strided_slice %20 {offsets = [8, 0], sizes = [18, 16], strides = [1, 1]} : vector<32x16xf32> to vector<18x16xf32>
    %53 = arith.truncf %52 : vector<18x16xf32> to vector<18x16xbf16>
    %c5 = arith.constant 5 : index
    %c0_31 = arith.constant 0 : index
    %c0_32 = arith.constant 0 : index
    %54 = vector.load %arg7[%c5, %c0_31, %c0_32] : memref<9x16x8xbf16, #tpu.memory_space<vmem>>, vector<1x16x8xbf16>
    %55 = vector.shape_cast %54 : vector<1x16x8xbf16> to vector<16x8xbf16>
    %cst_33 = arith.constant dense<0.000000e+00> : vector<18x8xf32>
    %56 = tpu.matmul %53, %55, %cst_33 {dimension_numbers = #tpu.dot_dimension_numbers<[1], [0], [0], [1], [0, 0, 1, 1], [], []>} : vector<18x16xbf16>, vector<16x8xbf16>, vector<18x8xf32> -> vector<18x8xf32>
    %57 = arith.addf %51, %56 : vector<18x8xf32>
    %58 = vector.extract_strided_slice %20 {offsets = [12, 0], sizes = [18, 16], strides = [1, 1]} : vector<32x16xf32> to vector<18x16xf32>
    %59 = arith.truncf %58 : vector<18x16xf32> to vector<18x16xbf16>
    %c6 = arith.constant 6 : index
    %c0_34 = arith.constant 0 : index
    %c0_35 = arith.constant 0 : index
    %60 = vector.load %arg7[%c6, %c0_34, %c0_35] : memref<9x16x8xbf16, #tpu.memory_space<vmem>>, vector<1x16x8xbf16>
    %61 = vector.shape_cast %60 : vector<1x16x8xbf16> to vector<16x8xbf16>
    %cst_36 = arith.constant dense<0.000000e+00> : vector<18x8xf32>
    %62 = tpu.matmul %59, %61, %cst_36 {dimension_numbers = #tpu.dot_dimension_numbers<[1], [0], [0], [1], [0, 0, 1, 1], [], []>} : vector<18x16xbf16>, vector<16x8xbf16>, vector<18x8xf32> -> vector<18x8xf32>
    %63 = arith.addf %57, %62 : vector<18x8xf32>
    %64 = vector.extract_strided_slice %20 {offsets = [13, 0], sizes = [18, 16], strides = [1, 1]} : vector<32x16xf32> to vector<18x16xf32>
    %65 = arith.truncf %64 : vector<18x16xf32> to vector<18x16xbf16>
    %c7 = arith.constant 7 : index
    %c0_37 = arith.constant 0 : index
    %c0_38 = arith.constant 0 : index
    %66 = vector.load %arg7[%c7, %c0_37, %c0_38] : memref<9x16x8xbf16, #tpu.memory_space<vmem>>, vector<1x16x8xbf16>
    %67 = vector.shape_cast %66 : vector<1x16x8xbf16> to vector<16x8xbf16>
    %cst_39 = arith.constant dense<0.000000e+00> : vector<18x8xf32>
    %68 = tpu.matmul %65, %67, %cst_39 {dimension_numbers = #tpu.dot_dimension_numbers<[1], [0], [0], [1], [0, 0, 1, 1], [], []>} : vector<18x16xbf16>, vector<16x8xbf16>, vector<18x8xf32> -> vector<18x8xf32>
    %69 = arith.addf %63, %68 : vector<18x8xf32>
    %70 = vector.extract_strided_slice %20 {offsets = [14, 0], sizes = [18, 16], strides = [1, 1]} : vector<32x16xf32> to vector<18x16xf32>
    %71 = arith.truncf %70 : vector<18x16xf32> to vector<18x16xbf16>
    %c8 = arith.constant 8 : index
    %c0_40 = arith.constant 0 : index
    %c0_41 = arith.constant 0 : index
    %72 = vector.load %arg7[%c8, %c0_40, %c0_41] : memref<9x16x8xbf16, #tpu.memory_space<vmem>>, vector<1x16x8xbf16>
    %73 = vector.shape_cast %72 : vector<1x16x8xbf16> to vector<16x8xbf16>
    %cst_42 = arith.constant dense<0.000000e+00> : vector<18x8xf32>
    %74 = tpu.matmul %71, %73, %cst_42 {dimension_numbers = #tpu.dot_dimension_numbers<[1], [0], [0], [1], [0, 0, 1, 1], [], []>} : vector<18x16xbf16>, vector<16x8xbf16>, vector<18x8xf32> -> vector<18x8xf32>
    %75 = arith.addf %69, %74 : vector<18x8xf32>
    %c0_43 = arith.constant 0 : index
    %c0_44 = arith.constant 0 : index
    %c0_45 = arith.constant 0 : index
    %76 = vector.load %arg8[%c0_43, %c0_44, %c0_45] : memref<1x18x8xf32, #tpu.memory_space<vmem>>, vector<1x18x8xf32>
    %77 = vector.shape_cast %76 : vector<1x18x8xf32> to vector<18x8xf32>
    %78 = vector.shape_cast %75 : vector<18x8xf32> to vector<1x18x8xf32>
    tpu.vector_store %arg8[%c0_43, %c0_44, %c0_45], %78 {strides = array<i32>} : memref<1x18x8xf32, #tpu.memory_space<vmem>>, vector<1x18x8xf32>,
    return
  }
  func.func @transform_0(%arg0: i32) -> (i32, i32, i32) {
    %c0_i32 = arith.constant 0 : i32
    %c0_i32_0 = arith.constant 0 : i32
    %c0_i32_1 = arith.constant 0 : i32
    return %arg0, %c0_i32, %c0_i32_0 : i32, i32, i32
  }
  func.func @transform_1(%arg0: i32) -> (i32, i32) {
    %c0_i32 = arith.constant 0 : i32
    %c0_i32_0 = arith.constant 0 : i32
    %c0_i32_1 = arith.constant 0 : i32
    return %c0_i32, %c0_i32_0 : i32, i32
  }
  func.func @transform_2(%arg0: i32) -> (i32, i32) {
    %c0_i32 = arith.constant 0 : i32
    %c0_i32_0 = arith.constant 0 : i32
    %c0_i32_1 = arith.constant 0 : i32
    return %c0_i32, %c0_i32_0 : i32, i32
  }
  func.func @transform_3(%arg0: i32) -> (i32, i32) {
    %c0_i32 = arith.constant 0 : i32
    %c0_i32_0 = arith.constant 0 : i32
    %c0_i32_1 = arith.constant 0 : i32
    return %c0_i32, %c0_i32_0 : i32, i32
  }
  func.func @transform_4(%arg0: i32) -> (i32, i32) {
    %c0_i32 = arith.constant 0 : i32
    %c0_i32_0 = arith.constant 0 : i32
    %c0_i32_1 = arith.constant 0 : i32
    return %c0_i32, %c0_i32_0 : i32, i32
  }
  func.func @transform_5(%arg0: i32) -> (i32, i32) {
    %c0_i32 = arith.constant 0 : i32
    %c0_i32_0 = arith.constant 0 : i32
    %c0_i32_1 = arith.constant 0 : i32
    return %c0_i32, %c0_i32_0 : i32, i32
  }
  func.func @transform_6(%arg0: i32) -> (i32, i32, i32) {
    %c0_i32 = arith.constant 0 : i32
    %c0_i32_0 = arith.constant 0 : i32
    %c0_i32_1 = arith.constant 0 : i32
    %c0_i32_2 = arith.constant 0 : i32
    return %c0_i32, %c0_i32_0, %c0_i32_1 : i32, i32, i32
  }
  func.func @transform_7(%arg0: i32) -> (i32, i32, i32) {
    %c0_i32 = arith.constant 0 : i32
    %c0_i32_0 = arith.constant 0 : i32
    %c0_i32_1 = arith.constant 0 : i32
    return %arg0, %c0_i32, %c0_i32_0 : i32, i32, i32
  }
}

</mosaic_0001>

<bundles_post_ra>
// kernel: _lambda_.17
= control target key start
LH: loop header
LB: loop body
LE: loop exit
PB: predicated region body
PF: predicated region fallthrough
CT: control target
= control target key end

     0   :  { %vm270_vm0 = vcmask 1041408   ;;  %vm221_vm1 = vcmask 556032   ;;  %vm484_vm2 = vcmask 130048   ;;  %s1059_s1 = inlined_call_operand.vmem [shape: bf16[196,16], index: 1, kind: input, shape index: {}]   ;;  %s1060_s2 = inlined_call_operand.vmem [shape: f32[1,196], index: 2, kind: input, shape index: {}, may-alias: {2,3}]   ;;  %s1061_s3 = inlined_call_operand.vmem [shape: f32[1,196], index: 3, kind: input, shape index: {}, may-alias: {2,3}]   ;;  %s1062_s0 = inlined_call_operand.vmem [shape: f32[256,196], index: 0, kind: input, shape index: {}]   ;;  %s1063_s4 = inlined_call_operand.vmem [shape: f32[1,16], index: 4, kind: input, shape index: {}]   ;;  %s1064_s5 = inlined_call_operand.vmem [shape: f32[256,16], index: 5, kind: output, shape index: {}]  }
   0x1   :  { %v592_v0 = vld [vmem:[%s1059_s1 + $0x38] sm:$0xff]  ;;  %v141_v1 = vld [vmem:[%s1059_s1 + $0x60] sm:$0x3]  ;;  %v591_v3 = vld [vmem:[%s1059_s1 + $0x30] sm:$0xff] }
   0x2   :  { %v195_v2 = vunpack.c.l.b16 %v141_v1  ;;  %274 = vmatpush.bf16.msra.mxu0 %v592_v0  ;;  %597 = vmatpush.bf16.msra.mxu2 %v592_v0  ;;  %v596_v6 = vld [vmem:[%s1059_s1 + $0x58] sm:$0xff]  ;;  %v590_v7 = vld [vmem:[%s1059_s1 + $0x28] sm:$0xff]  ;;  %v595_v8 = vld [vmem:[%s1059_s1 + $0x50] sm:$0xff] }
   0x3   :  { %v589_v9 = vld [vmem:[%s1059_s1 + $0x20] sm:$0xff]  ;;  %v594_v10 = vld [vmem:[%s1059_s1 + $0x48] sm:$0xff]  ;;  %v588_v11 = vld [vmem:[%s1059_s1 + $0x18] sm:$0xff] }
   0x4   :  { %v208_v4 = vpack.c.b16 %v195_v2, %v195_v2  ;;  %v593_v12 = vld [vmem:[%s1059_s1 + $0x40] sm:$0xff]  ;;  %v587_v13 = vld [vmem:[%s1059_s1 + $0x10] sm:$0xff]  ;;  %v22_v14 = vld [vmem:[%s1062_s0 + $0x8] sm:$0xff] }
   0x5   :  { %v24_v15 = vld [vmem:[%s1062_s0 + $0x18] sm:$0xff]  ;;  %v58_v16 = vld [vmem:[%s1062_s0 + $0x128] sm:$0xff]  ;;  %v585_v21 = vld [vmem:[%s1059_s1] sm:$0xff] }
   0x6   :  { %v272_v5 = vsel %vm270_vm0, %v208_v4, 0  ;;  %275 = vmatpush.bf16.msra.mxu0 %v591_v3  ;;  %598 = vmatpush.bf16.msra.mxu2 %v591_v3  ;;  %v60_v17 = vld [vmem:[%s1062_s0 + $0x138] sm:$0xff]  ;;  %v86_v18 = vpack.c.bf16 %v24_v15, %v22_v14  ;;  %v586_v19 = vld [vmem:[%s1059_s1 + $0x8] sm:$0xff]  ;;  %v21_v22 = vld [vmem:[%s1062_s0] sm:$0xff] }
   0x7   :  { %366 = vmatpush.bf16.msra.mxu1 %v272_v5  ;;  %605 = vmatpush.bf16.msra.mxu3 %v272_v5  ;;  %v104_v20 = vpack.c.bf16 %v60_v17, %v58_v16  ;;  %v23_v23 = vld [vmem:[%s1062_s0 + $0x10] sm:$0xff]  ;;  %v53_v24 = vld [vmem:[%s1062_s0 + $0x100] sm:$0xff]  ;;  %v26_v28 = vld [vmem:[%s1062_s0 + $0x28] sm:$0xff] }
   0x8   :  { %v55_v25 = vld [vmem:[%s1062_s0 + $0x110] sm:$0xff]  ;;  %v85_v26 = vpack.c.bf16 %v23_v23, %v21_v22  ;;  %v28_v29 = vld [vmem:[%s1062_s0 + $0x38] sm:$0xff]  ;;  %v62_v30 = vld [vmem:[%s1062_s0 + $0x148] sm:$0xff] }
   0x9   :  { %v101_v27 = vpack.c.bf16 %v55_v25, %v53_v24  ;;  %v64_v31 = vld [vmem:[%s1062_s0 + $0x158] sm:$0xff]  ;;  %v88_v32 = vpack.c.bf16 %v28_v29, %v26_v28  ;;  %v25_v34 = vld [vmem:[%s1062_s0 + $0x20] sm:$0xff]  ;;  %v27_v35 = vld [vmem:[%s1062_s0 + $0x30] sm:$0xff] }
   0xa   :  { %276 = vmatpush.bf16.msra.mxu0 %v590_v7  ;;  %599 = vmatpush.bf16.msra.mxu2 %v590_v7  ;;  %v106_v33 = vpack.c.bf16 %v64_v31, %v62_v30  ;;  %v57_v36 = vld [vmem:[%s1062_s0 + $0x120] sm:$0xff]  ;;  %v59_v37 = vld [vmem:[%s1062_s0 + $0x130] sm:$0xff]  ;;  %v87_v38 = vpack.c.bf16 %v27_v35, %v25_v34  ;;  %v30_v40 = vld [vmem:[%s1062_s0 + $0x48] sm:$0xff] }
   0xb   :  { %367 = vmatpush.bf16.msra.mxu1 %v596_v6  ;;  %606 = vmatpush.bf16.msra.mxu3 %v596_v6  ;;  %v103_v39 = vpack.c.bf16 %v59_v37, %v57_v36  ;;  %v32_v41 = vld [vmem:[%s1062_s0 + $0x58] sm:$0xff]  ;;  %v66_v42 = vld [vmem:[%s1062_s0 + $0x168] sm:$0xff]  ;;  %v29_v46 = vld [vmem:[%s1062_s0 + $0x40] sm:$0xff] }
   0xc   :  { %v68_v43 = vld [vmem:[%s1062_s0 + $0x178] sm:$0xff]  ;;  %v90_v44 = vpack.c.bf16 %v32_v41, %v30_v40  ;;  %v31_v47 = vld [vmem:[%s1062_s0 + $0x50] sm:$0xff]  ;;  %v61_v48 = vld [vmem:[%s1062_s0 + $0x140] sm:$0xff] }
   0xd   :  { %v108_v45 = vpack.c.bf16 %v68_v43, %v66_v42  ;;  %v63_v49 = vld [vmem:[%s1062_s0 + $0x150] sm:$0xff]  ;;  %v89_v50 = vpack.c.bf16 %v31_v47, %v29_v46  ;;  %v34_v52 = vld [vmem:[%s1062_s0 + $0x68] sm:$0xff]  ;;  %v36_v53 = vld [vmem:[%s1062_s0 + $0x78] sm:$0xff] }
   0xe   :  { %277 = vmatpush.bf16.msra.mxu0 %v589_v9  ;;  %600 = vmatpush.bf16.msra.mxu2 %v589_v9  ;;  %v105_v51 = vpack.c.bf16 %v63_v49, %v61_v48  ;;  %v70_v54 = vld [vmem:[%s1062_s0 + $0x188] sm:$0xff]  ;;  %v72_v55 = vld [vmem:[%s1062_s0 + $0x198] sm:$0xff]  ;;  %v92_v56 = vpack.c.bf16 %v36_v53, %v34_v52  ;;  %v33_v58 = vld [vmem:[%s1062_s0 + $0x60] sm:$0xff] }
   0xf   :  { %368 = vmatpush.bf16.msra.mxu1 %v595_v8  ;;  %607 = vmatpush.bf16.msra.mxu3 %v595_v8  ;;  %v110_v57 = vpack.c.bf16 %v72_v55, %v70_v54  ;;  %v35_v59 = vld [vmem:[%s1062_s0 + $0x70] sm:$0xff]  ;;  %v65_v60 = vld [vmem:[%s1062_s0 + $0x160] sm:$0xff]  ;;  %v38_v0 = vld [vmem:[%s1062_s0 + $0x88] sm:$0xff] }
  0x10   :  { %v67_v61 = vld [vmem:[%s1062_s0 + $0x170] sm:$0xff]  ;;  %v91_v62 = vpack.c.bf16 %v35_v59, %v33_v58  ;;  %v40_v1 = vld [vmem:[%s1062_s0 + $0x98] sm:$0xff]  ;;  %v74_v2 = vld [vmem:[%s1062_s0 + $0x1a8] sm:$0xff] }
  0x11   :  { %v107_v63 = vpack.c.bf16 %v67_v61, %v65_v60  ;;  %v76_v3 = vld [vmem:[%s1062_s0 + $0x1b8] sm:$0xff]  ;;  %v94_v4 = vpack.c.bf16 %v40_v1, %v38_v0  ;;  %v37_v6 = vld [vmem:[%s1062_s0 + $0x80] sm:$0xff]  ;;  %v39_v7 = vld [vmem:[%s1062_s0 + $0x90] sm:$0xff] }
  0x12   :  { %278 = vmatpush.bf16.msra.mxu0 %v588_v11  ;;  %601 = vmatpush.bf16.msra.mxu2 %v588_v11  ;;  %v112_v5 = vpack.c.bf16 %v76_v3, %v74_v2  ;;  %v69_v8 = vld [vmem:[%s1062_s0 + $0x180] sm:$0xff]  ;;  %v71_v9 = vld [vmem:[%s1062_s0 + $0x190] sm:$0xff]  ;;  %v78_v14 = vld [vmem:[%s1062_s0 + $0x1c8] sm:$0xff] }
  0x13   :  { %369 = vmatpush.bf16.msra.mxu1 %v594_v10  ;;  %608 = vmatpush.bf16.msra.mxu3 %v594_v10  ;;  %v93_v10 = vpack.c.bf16 %v39_v7, %v37_v6  ;;  %v109_v11 = vpack.c.bf16 %v71_v9, %v69_v8  ;;  %v80_v15 = vld [vmem:[%s1062_s0 + $0x1d8] sm:$0xff]  ;;  %v46_v24 = vld [vmem:[%s1062_s0 + $0xc8] sm:$0xff]  ;;  %v45_v30 = vld [vmem:[%s1062_s0 + $0xc0] sm:$0xff] }
  0x14   :  { %v114_v17 = vpack.c.bf16 %v80_v15, %v78_v14  ;;  %v48_v25 = vld [vmem:[%s1062_s0 + $0xd8] sm:$0xff]  ;;  %v47_v31 = vld [vmem:[%s1062_s0 + $0xd0] sm:$0xff]  ;;  %v50_v36 = vld [vmem:[%s1062_s0 + $0xe8] sm:$0xff] }
  0x15   :  { %v98_v28 = vpack.c.bf16 %v48_v25, %v46_v24  ;;  %v97_v34 = vpack.c.bf16 %v47_v31, %v45_v30  ;;  %v52_v37 = vld [vmem:[%s1062_s0 + $0xf8] sm:$0xff]  ;;  %v51_v40 = vld [vmem:[%s1062_s0 + $0xf0] sm:$0xff]  ;;  %v81_v41 = vld [vmem:[%s1062_s0 + $0x1e0] sm:$0xff] }
  0x16   :  { %279 = vmatpush.bf16.msra.mxu0 %v587_v13  ;;  %602 = vmatpush.bf16.msra.mxu2 %v587_v13  ;;  %v44_v13 = vld [vmem:[%s1062_s0 + $0xb8] sm:$0xff]  ;;  %v83_v42 = vld [vmem:[%s1062_s0 + $0x1f0] sm:$0xff]  ;;  %v891_v49 = vld [vmem:[%s1063_s4] ss:$0 sm:$0xff] }
  0x17   :  { %370 = vmatpush.bf16.msra.mxu1 %v593_v12  ;;  %609 = vmatpush.bf16.msra.mxu3 %v593_v12  ;;  %v42_v12 = vld [vmem:[%s1062_s0 + $0xa8] sm:$0xff]  ;;  %v56_v46 = vld [vmem:[%s1062_s0 + $0x118] sm:$0xff] }
  0x18   :  { %v96_v16 = vpack.c.bf16 %v44_v13, %v42_v12 }
  0x1a   :  { %569 = vmatmul.msk.bf16.vlgmr.msra.gmra.mxu1 %vm221_vm1, %v86_v18  ;;  %280 = vmatpush.bf16.msra.mxu0 %v586_v19  ;;  %v41_v18 = vld [vmem:[%s1062_s0 + $0xa0] sm:$0xff] }
  0x1b   :  { %578 = vmatmul.msk.bf16.vlgmr.msra.gmra.mxu3 %vm221_vm1, %v104_v20  ;;  %603 = vmatpush.bf16.msra.mxu2 %v586_v19  ;;  %v43_v19 = vld [vmem:[%s1062_s0 + $0xb0] sm:$0xff]  ;;  %v73_v20 = vld [vmem:[%s1062_s0 + $0x1a0] sm:$0xff] }
  0x1c   :  { %v95_v22 = vpack.c.bf16 %v43_v19, %v41_v18 }
  0x1e   :  { %281 = vmatpush.bf16.msra.mxu0 %v585_v21 }
  0x1f   :  { %604 = vmatpush.bf16.msra.mxu2 %v585_v21  ;;  %v75_v21 = vld [vmem:[%s1062_s0 + $0x1b0] sm:$0xff] }
  0x20   :  { %v111_v23 = vpack.c.bf16 %v75_v21, %v73_v20 }
  0x21   :  { %282 = vmatmul.bf16.vlgmr.msra.gmra.mxu0 %v85_v26  ;;  %v82_v26 = vld [vmem:[%s1062_s0 + $0x1e8] sm:$0xff] }
  0x22   :  { %322 = vmatmul.bf16.vlgmr.msra.gmra.mxu2 %v101_v27  ;;  %v84_v27 = vld [vmem:[%s1062_s0 + $0x1f8] sm:$0xff] }
  0x23   :  { %v116_v29 = vpack.c.bf16 %v84_v27, %v82_v26 }
  0x2a   :  { %570 = vmatmul.msk.bf16.gmra.mxu1 %vm221_vm1, %v88_v32  ;;  %v77_v32 = vld [vmem:[%s1062_s0 + $0x1c0] sm:$0xff] }
  0x2b   :  { %579 = vmatmul.msk.bf16.gmra.mxu3 %vm221_vm1, %v106_v33  ;;  %v79_v33 = vld [vmem:[%s1062_s0 + $0x1d0] sm:$0xff] }
  0x2c   :  { %v113_v35 = vpack.c.bf16 %v79_v33, %v77_v32 }
  0x31   :  { %287 = vmatmul.bf16.gmra.mxu0 %v87_v38  ;;  %v100_v38 = vpack.c.bf16 %v52_v37, %v50_v36 }
  0x32   :  { %327 = vmatmul.bf16.gmra.mxu2 %v103_v39  ;;  %v49_v39 = vld [vmem:[%s1062_s0 + $0xe0] sm:$0xff] }
  0x33   :  { %v99_v43 = vpack.c.bf16 %v51_v40, %v49_v39 }
  0x3a   :  { %571 = vmatmul.msk.bf16.gmra.mxu1 %vm221_vm1, %v90_v44  ;;  %v115_v44 = vpack.c.bf16 %v83_v42, %v81_v41 }
  0x3b   :  { %580 = vmatmul.msk.bf16.gmra.mxu3 %vm221_vm1, %v108_v45  ;;  %v54_v45 = vld [vmem:[%s1062_s0 + $0x108] sm:$0xff] }
  0x3c   :  { %v102_v47 = vpack.c.bf16 %v56_v46, %v54_v45 }
  0x41   :  { %292 = vmatmul.bf16.gmra.mxu0 %v89_v50 }
  0x42   :  { %332 = vmatmul.bf16.gmra.mxu2 %v105_v51 }
  0x4a   :  { %572 = vmatmul.msk.bf16.gmra.mxu1 %vm221_vm1, %v92_v56 }
  0x4b   :  { %581 = vmatmul.msk.bf16.gmra.mxu3 %vm221_vm1, %v110_v57 }
  0x51   :  { %297 = vmatmul.bf16.gmra.mxu0 %v91_v62 }
  0x52   :  { %337 = vmatmul.bf16.gmra.mxu2 %v107_v63 }
  0x5a   :  { %573 = vmatmul.msk.bf16.gmra.mxu1 %vm221_vm1, %v94_v4 }
  0x5b   :  { %582 = vmatmul.msk.bf16.gmra.mxu3 %vm221_vm1, %v112_v5 }
  0x61   :  { %302 = vmatmul.bf16.gmra.mxu0 %v93_v10 }
  0x62   :  { %342 = vmatmul.bf16.gmra.mxu2 %v109_v11 }
  0x6a   :  { %574 = vmatmul.msk.bf16.gmra.mxu1 %vm221_vm1, %v96_v16 }
  0x6b   :  { %583 = vmatmul.msk.bf16.gmra.mxu3 %vm221_vm1, %v114_v17 }
  0x71   :  { %307 = vmatmul.bf16.gmra.mxu0 %v95_v22 }
  0x72   :  { %347 = vmatmul.bf16.gmra.mxu2 %v111_v23 }
  0x7a   :  { %575 = vmatmul.msk.bf16.gmra.mxu1 %vm221_vm1, %v98_v28 }
  0x7b   :  { %584 = vmatmul.msk.bf16.gmra.mxu3 %vm221_vm1, %v116_v29 }
  0x81   :  { %312 = vmatmul.bf16.gmra.mxu0 %v97_v34 }
  0x82   :  { %352 = vmatmul.bf16.gmra.mxu2 %v113_v35 }
  0x8a   :  { %576 = vmatmul.msk.bf16.gmra.mxu1 %vm221_vm1, %v100_v38 }
  0x91   :  { %317 = vmatmul.bf16.gmra.mxu0 %v99_v43 }
  0x92   :  { %357 = vmatmul.bf16.gmra.mxu2 %v115_v44 }
  0x97   :  { %v372_v48 = vpop.f32.mrf.mxu1 }
  0x9a   :  { %577 = vmatmul.msk.bf16.gmra.mxu1 %vm221_vm1, %v102_v47 }
  0x9e   :  { %v417_v50 = vpop.f32.mrf.mxu3  ;;  %v283_v52 = vpop.f32.mrf.mxu0 }
  0x9f   :  { %v374_v51 = vpop.f32.mrf.mxu1  ;;  %v284_v53 = vadd.f32 %v891_v49, %v283_v52 }
  0xa1   :  { %v373_v54 = vadd.f32 %v372_v48, %v284_v53 }
  0xa3   :  { %v452_v55 = vmax.f32 %v373_v54, 0.0 }
  0xa5   :  { %485 = vst.msk [vmem:[%s1064_s5] sm:$0xff] %vm484_vm2, %v452_v55  ;;  %v898_v56 = vpop.f32.mrf.mxu2 }
  0xa6   :  { %v285_v58 = vpop.f32.mrf.mxu0  ;;  %v419_v60 = vpop.f32.mrf.mxu3 }
  0xa7   :  { %v377_v57 = vpop.f32.mrf.mxu1  ;;  %v286_v59 = vadd.f32 %v891_v49, %v285_v58 }
  0xa9   :  { %v375_v61 = vadd.f32 %v374_v51, %v286_v59 }
  0xab   :  { %v453_v62 = vmax.f32 %v375_v61, 0.0 }
  0xad   :  { %486 = vst.msk [vmem:[%s1064_s5 + $0x8] sm:$0xff] %vm484_vm2, %v453_v62  ;;  %v905_v63 = vpop.f32.mrf.mxu2 }
  0xae   :  { %v288_v1 = vpop.f32.mrf.mxu0  ;;  %v422_v4 = vpop.f32.mrf.mxu3 }
  0xaf   :  { %v379_v0 = vpop.f32.mrf.mxu1  ;;  %v289_v2 = vadd.f32 %v891_v49, %v288_v1 }
  0xb1   :  { %v378_v3 = vadd.f32 %v377_v57, %v289_v2 }
  0xb3   :  { %v454_v5 = vmax.f32 %v378_v3, 0.0 }
  0xb5   :  { %487 = vst.msk [vmem:[%s1064_s5 + $0x10] sm:$0xff] %vm484_vm2, %v454_v5  ;;  %v328_v6 = vpop.f32.mrf.mxu2 }
  0xb6   :  { %v329_v7 = vadd.f32 %v891_v49, %v328_v6  ;;  %v290_v9 = vpop.f32.mrf.mxu0  ;;  %v424_v15 = vpop.f32.mrf.mxu3 }
  0xb7   :  { %v382_v8 = vpop.f32.mrf.mxu1  ;;  %v291_v10 = vadd.f32 %v891_v49, %v290_v9 }
  0xb8   :  { %v418_v11 = vadd.f32 %v417_v50, %v329_v7 }
  0xb9   :  { %v380_v12 = vadd.f32 %v379_v0, %v291_v10 }
  0xba   :  { %v470_v13 = vmax.f32 %v418_v11, 0.0 }
  0xbb   :  { %v455_v14 = vmax.f32 %v380_v12, 0.0 }
  0xbc   :  { %503 = vst.msk [vmem:[%s1064_s5 + $0x90] sm:$0xff] %vm484_vm2, %v470_v13 }
  0xbd   :  { %488 = vst.msk [vmem:[%s1064_s5 + $0x18] sm:$0xff] %vm484_vm2, %v455_v14  ;;  %v330_v16 = vpop.f32.mrf.mxu2 }
  0xbe   :  { %v331_v17 = vadd.f32 %v891_v49, %v330_v16  ;;  %v293_v19 = vpop.f32.mrf.mxu0  ;;  %v427_v26 = vpop.f32.mrf.mxu3 }
  0xbf   :  { %v384_v18 = vpop.f32.mrf.mxu1  ;;  %v294_v20 = vadd.f32 %v891_v49, %v293_v19 }
  0xc0   :  { %v420_v21 = vadd.f32 %v419_v60, %v331_v17 }
  0xc1   :  { %v383_v22 = vadd.f32 %v382_v8, %v294_v20 }
  0xc2   :  { %v471_v23 = vmax.f32 %v420_v21, 0.0 }
  0xc3   :  { %v456_v24 = vmax.f32 %v383_v22, 0.0 }
  0xc4   :  { %504 = vst.msk [vmem:[%s1064_s5 + $0x98] sm:$0xff] %vm484_vm2, %v471_v23 }
  0xc5   :  { %489 = vst.msk [vmem:[%s1064_s5 + $0x20] sm:$0xff] %vm484_vm2, %v456_v24  ;;  %v333_v25 = vpop.f32.mrf.mxu2 }
  0xc6   :  { %v334_v27 = vadd.f32 %v891_v49, %v333_v25  ;;  %v295_v29 = vpop.f32.mrf.mxu0  ;;  %v429_v40 = vpop.f32.mrf.mxu3 }
  0xc7   :  { %v387_v28 = vpop.f32.mrf.mxu1  ;;  %v296_v30 = vadd.f32 %v891_v49, %v295_v29 }
  0xc8   :  { %v423_v31 = vadd.f32 %v422_v4, %v334_v27 }
  0xc9   :  { %v385_v32 = vadd.f32 %v384_v18, %v296_v30 }
  0xca   :  { %v472_v33 = vmax.f32 %v423_v31, 0.0 }
  0xcb   :  { %v457_v34 = vmax.f32 %v385_v32, 0.0 }
  0xcc   :  { %505 = vst.msk [vmem:[%s1064_s5 + $0xa0] sm:$0xff] %vm484_vm2, %v472_v33 }
  0xcd   :  { %490 = vst.msk [vmem:[%s1064_s5 + $0x28] sm:$0xff] %vm484_vm2, %v457_v34  ;;  %v335_v35 = vpop.f32.mrf.mxu2 }
  0xce   :  { %v336_v36 = vadd.f32 %v891_v49, %v335_v35  ;;  %v298_v38 = vpop.f32.mrf.mxu0  ;;  %v432_v53 = vpop.f32.mrf.mxu3 }
  0xcf   :  { %v389_v37 = vpop.f32.mrf.mxu1  ;;  %v299_v39 = vadd.f32 %v891_v49, %v298_v38 }
  0xd0   :  { %v425_v41 = vadd.f32 %v424_v15, %v336_v36 }
  0xd1   :  { %v388_v42 = vadd.f32 %v387_v28, %v299_v39 }
  0xd2   :  { %v473_v43 = vmax.f32 %v425_v41, 0.0 }
  0xd3   :  { %v458_v44 = vmax.f32 %v388_v42, 0.0 }
  0xd4   :  { %506 = vst.msk [vmem:[%s1064_s5 + $0xa8] sm:$0xff] %vm484_vm2, %v473_v43 }
  0xd5   :  { %491 = vst.msk [vmem:[%s1064_s5 + $0x30] sm:$0xff] %vm484_vm2, %v458_v44  ;;  %v338_v45 = vpop.f32.mrf.mxu2 }
  0xd6   :  { %v339_v46 = vadd.f32 %v891_v49, %v338_v45  ;;  %v300_v48 = vpop.f32.mrf.mxu0  ;;  %v434_v3 = vpop.f32.mrf.mxu3 }
  0xd7   :  { %v392_v47 = vpop.f32.mrf.mxu1  ;;  %v301_v50 = vadd.f32 %v891_v49, %v300_v48 }
  0xd8   :  { %v428_v51 = vadd.f32 %v427_v26, %v339_v46 }
  0xd9   :  { %v390_v52 = vadd.f32 %v389_v37, %v301_v50 }
  0xda   :  { %v474_v54 = vmax.f32 %v428_v51, 0.0 }
  0xdb   :  { %v459_v55 = vmax.f32 %v390_v52, 0.0 }
  0xdc   :  { %507 = vst.msk [vmem:[%s1064_s5 + $0xb0] sm:$0xff] %vm484_vm2, %v474_v54 }
  0xdd   :  { %492 = vst.msk [vmem:[%s1064_s5 + $0x38] sm:$0xff] %vm484_vm2, %v459_v55  ;;  %v340_v57 = vpop.f32.mrf.mxu2 }
  0xde   :  { %v341_v58 = vadd.f32 %v891_v49, %v340_v57  ;;  %v303_v60 = vpop.f32.mrf.mxu0  ;;  %v437_v14 = vpop.f32.mrf.mxu3 }
  0xdf   :  { %v394_v59 = vpop.f32.mrf.mxu1  ;;  %v304_v61 = vadd.f32 %v891_v49, %v303_v60 }
  0xe0   :  { %v430_v62 = vadd.f32 %v429_v40, %v341_v58 }
  0xe1   :  { %v393_v0 = vadd.f32 %v392_v47, %v304_v61 }
  0xe2   :  { %v475_v1 = vmax.f32 %v430_v62, 0.0 }
  0xe3   :  { %v460_v2 = vmax.f32 %v393_v0, 0.0 }
  0xe4   :  { %508 = vst.msk [vmem:[%s1064_s5 + $0xb8] sm:$0xff] %vm484_vm2, %v475_v1  ;;  %v324_v1 = vadd.f32 %v891_v49, %v898_v56 }
  0xe5   :  { %493 = vst.msk [vmem:[%s1064_s5 + $0x40] sm:$0xff] %vm484_vm2, %v460_v2  ;;  %v343_v4 = vpop.f32.mrf.mxu2 }
  0xe6   :  { %v344_v5 = vadd.f32 %v891_v49, %v343_v4  ;;  %v305_v7 = vpop.f32.mrf.mxu0  ;;  %v439_v28 = vpop.f32.mrf.mxu3 }
  0xe7   :  { %v397_v6 = vpop.f32.mrf.mxu1  ;;  %v306_v8 = vadd.f32 %v891_v49, %v305_v7 }
  0xe8   :  { %v433_v9 = vadd.f32 %v432_v53, %v344_v5 }
  0xe9   :  { %v395_v10 = vadd.f32 %v394_v59, %v306_v8 }
  0xea   :  { %v476_v11 = vmax.f32 %v433_v9, 0.0 }
  0xeb   :  { %v461_v12 = vmax.f32 %v395_v10, 0.0 }
  0xec   :  { %509 = vst.msk [vmem:[%s1064_s5 + $0xc0] sm:$0xff] %vm484_vm2, %v476_v11 }
  0xed   :  { %494 = vst.msk [vmem:[%s1064_s5 + $0x48] sm:$0xff] %vm484_vm2, %v461_v12  ;;  %v345_v13 = vpop.f32.mrf.mxu2 }
  0xee   :  { %v346_v15 = vadd.f32 %v891_v49, %v345_v13  ;;  %v308_v17 = vpop.f32.mrf.mxu0  ;;  %v442_v40 = vpop.f32.mrf.mxu3  ;;  %v326_v13 = vadd.f32 %v891_v49, %v905_v63 }
  0xef   :  { %v399_v16 = vpop.f32.mrf.mxu1  ;;  %v309_v18 = vadd.f32 %v891_v49, %v308_v17 }
  0xf0   :  { %v435_v19 = vadd.f32 %v434_v3, %v346_v15 }
  0xf1   :  { %v398_v20 = vadd.f32 %v397_v6, %v309_v18 }
  0xf2   :  { %v477_v21 = vmax.f32 %v435_v19, 0.0 }
  0xf3   :  { %v462_v22 = vmax.f32 %v398_v20, 0.0 }
  0xf4   :  { %510 = vst.msk [vmem:[%s1064_s5 + $0xc8] sm:$0xff] %vm484_vm2, %v477_v21 }
  0xf5   :  { %495 = vst.msk [vmem:[%s1064_s5 + $0x50] sm:$0xff] %vm484_vm2, %v462_v22  ;;  %v348_v23 = vpop.f32.mrf.mxu2 }
  0xf6   :  { %v349_v24 = vadd.f32 %v891_v49, %v348_v23  ;;  %v310_v26 = vpop.f32.mrf.mxu0  ;;  %v444_v53 = vpop.f32.mrf.mxu3 }
  0xf7   :  { %v402_v25 = vpop.f32.mrf.mxu1  ;;  %v311_v27 = vadd.f32 %v891_v49, %v310_v26 }
  0xf8   :  { %v438_v29 = vadd.f32 %v437_v14, %v349_v24 }
  0xf9   :  { %v400_v30 = vadd.f32 %v399_v16, %v311_v27 }
  0xfa   :  { %v478_v31 = vmax.f32 %v438_v29, 0.0 }
  0xfb   :  { %v463_v32 = vmax.f32 %v400_v30, 0.0 }
  0xfc   :  { %511 = vst.msk [vmem:[%s1064_s5 + $0xd0] sm:$0xff] %vm484_vm2, %v478_v31 }
  0xfd   :  { %496 = vst.msk [vmem:[%s1064_s5 + $0x58] sm:$0xff] %vm484_vm2, %v463_v32  ;;  %v350_v33 = vpop.f32.mrf.mxu2 }
  0xfe   :  { %v351_v34 = vadd.f32 %v891_v49, %v350_v33  ;;  %v313_v36 = vpop.f32.mrf.mxu0  ;;  %v447_v2 = vpop.f32.mrf.mxu3 }
  0xff   :  { %v404_v35 = vpop.f32.mrf.mxu1  ;;  %v314_v37 = vadd.f32 %v891_v49, %v313_v36 }
 0x100   :  { %v440_v38 = vadd.f32 %v439_v28, %v351_v34 }
 0x101   :  { %v403_v39 = vadd.f32 %v402_v25, %v314_v37 }
 0x102   :  { %v479_v41 = vmax.f32 %v440_v38, 0.0 }
 0x103   :  { %v464_v42 = vmax.f32 %v403_v39, 0.0 }
 0x104   :  { %512 = vst.msk [vmem:[%s1064_s5 + $0xd8] sm:$0xff] %vm484_vm2, %v479_v41 }
 0x105   :  { %497 = vst.msk [vmem:[%s1064_s5 + $0x60] sm:$0xff] %vm484_vm2, %v464_v42  ;;  %v353_v43 = vpop.f32.mrf.mxu2 }
 0x106   :  { %v354_v44 = vadd.f32 %v891_v49, %v353_v43  ;;  %v315_v46 = vpop.f32.mrf.mxu0  ;;  %v449_v17 = vpop.f32.mrf.mxu3 }
 0x107   :  { %v407_v45 = vpop.f32.mrf.mxu1  ;;  %v316_v47 = vadd.f32 %v891_v49, %v315_v46 }
 0x108   :  { %v443_v48 = vadd.f32 %v442_v40, %v354_v44 }
 0x109   :  { %v405_v50 = vadd.f32 %v404_v35, %v316_v47 }
 0x10a   :  { %v480_v51 = vmax.f32 %v443_v48, 0.0 }
 0x10b   :  { %v465_v52 = vmax.f32 %v405_v50, 0.0 }
 0x10c   :  { %513 = vst.msk [vmem:[%s1064_s5 + $0xe0] sm:$0xff] %vm484_vm2, %v480_v51 }
 0x10d   :  { %498 = vst.msk [vmem:[%s1064_s5 + $0x68] sm:$0xff] %vm484_vm2, %v465_v52  ;;  %v355_v54 = vpop.f32.mrf.mxu2 }
 0x10e   :  { %v356_v55 = vadd.f32 %v891_v49, %v355_v54  ;;  %v318_v58 = vpop.f32.mrf.mxu0 }
 0x10f   :  { %v409_v57 = vpop.f32.mrf.mxu1  ;;  %v319_v59 = vadd.f32 %v891_v49, %v318_v58 }
 0x110   :  { %v445_v60 = vadd.f32 %v444_v53, %v356_v55 }
 0x111   :  { %v408_v61 = vadd.f32 %v407_v45, %v319_v59 }
 0x112   :  { %v481_v62 = vmax.f32 %v445_v60, 0.0 }
 0x113   :  { %v466_v0 = vmax.f32 %v408_v61, 0.0 }
 0x114   :  { %514 = vst.msk [vmem:[%s1064_s5 + $0xe8] sm:$0xff] %vm484_vm2, %v481_v62 }
 0x115   :  { %499 = vst.msk [vmem:[%s1064_s5 + $0x70] sm:$0xff] %vm484_vm2, %v466_v0  ;;  %v358_v3 = vpop.f32.mrf.mxu2 }
 0x116   :  { %v359_v4 = vadd.f32 %v891_v49, %v358_v3  ;;  %v320_v6 = vpop.f32.mrf.mxu0 }
 0x117   :  { %v412_v5 = vpop.f32.mrf.mxu1  ;;  %v321_v8 = vadd.f32 %v891_v49, %v320_v6 }
 0x118   :  { %v413_v7 = vadd.f32 %v412_v5, %v324_v1  ;;  %v448_v9 = vadd.f32 %v447_v2, %v359_v4 }
 0x119   :  { %v410_v11 = vadd.f32 %v409_v57, %v321_v8 }
 0x11a   :  { %v468_v10 = vmax.f32 %v413_v7, 0.0  ;;  %v482_v12 = vmax.f32 %v448_v9, 0.0 }
 0x11b   :  { %v467_v56 = vmax.f32 %v410_v11, 0.0 }
 0x11c   :  { %501 = vst.msk [vmem:[%s1064_s5 + $0x80] sm:$0xff] %vm484_vm2, %v468_v10 }
 0x11d   :  { %515 = vst.msk [vmem:[%s1064_s5 + $0xf0] sm:$0xff] %vm484_vm2, %v482_v12  ;;  %v360_v14 = vpop.f32.mrf.mxu2 }
 0x11e   :  { %500 = vst.msk [vmem:[%s1064_s5 + $0x78] sm:$0xff] %vm484_vm2, %v467_v56  ;;  %v361_v15 = vadd.f32 %v891_v49, %v360_v14 }
 0x11f   :  { %v414_v16 = vpop.f32.mrf.mxu1 }
 0x120   :  { %v415_v18 = vadd.f32 %v414_v16, %v326_v13  ;;  %v450_v19 = vadd.f32 %v449_v17, %v361_v15 }
 0x122   :  { %v469_v20 = vmax.f32 %v415_v18, 0.0  ;;  %v483_v21 = vmax.f32 %v450_v19, 0.0 }
 0x124   :  { %502 = vst.msk [vmem:[%s1064_s5 + $0x88] sm:$0xff] %vm484_vm2, %v469_v20 }
 0x125   :  { %516 = vst.msk [vmem:[%s1064_s5 + $0xf8] sm:$0xff] %vm484_vm2, %v483_v21 }

// kernel: _lambda_.18
= control target key start
LH: loop header
LB: loop body
LE: loop exit
PB: predicated region body
PF: predicated region fallthrough
CT: control target
= control target key end

     0   :  { %vm152_vm0 = vcmask 130048   ;;  %s487_s0 = inlined_call_operand.vmem [shape: f32[9,64,16], index: 0, kind: input, shape index: {}]   ;;  %s488_s1 = inlined_call_operand.vmem [shape: f32[64,16], index: 1, kind: output, shape index: {}]  }
   0x1   :  { %v8_v0 = vld [vmem:[%s487_s0] sm:$0xff]  ;;  %v9_v6 = vld [vmem:[%s487_s0 + $0x8] sm:$0xff]  ;;  %v10_v15 = vld [vmem:[%s487_s0 + $0x10] sm:$0xff] }
   0x2   :  { %v165_v1 = vld [vmem:[%s487_s0 + $0x40] sm:$0xff]  ;;  %v166_v7 = vld [vmem:[%s487_s0 + $0x48] sm:$0xff]  ;;  %v167_v16 = vld [vmem:[%s487_s0 + $0x50] sm:$0xff] }
   0x3   :  { %v173_v2 = vld [vmem:[%s487_s0 + $0x80] sm:$0xff]  ;;  %v25_v3 = vmax.f32 %v8_v0, %v165_v1  ;;  %v174_v8 = vld [vmem:[%s487_s0 + $0x88] sm:$0xff]  ;;  %v26_v10 = vmax.f32 %v9_v6, %v166_v7  ;;  %v175_v17 = vld [vmem:[%s487_s0 + $0x90] sm:$0xff]  ;;  %v27_v20 = vmax.f32 %v10_v15, %v167_v16 }
   0x4   :  { %v181_v4 = vld [vmem:[%s487_s0 + $0xc0] sm:$0xff]  ;;  %v182_v13 = vld [vmem:[%s487_s0 + $0xc8] sm:$0xff]  ;;  %v183_v24 = vld [vmem:[%s487_s0 + $0xd0] sm:$0xff] }
   0x5   :  { %v42_v5 = vmax.f32 %v25_v3, %v173_v2  ;;  %v189_v9 = vld [vmem:[%s487_s0 + $0x100] sm:$0xff]  ;;  %v43_v14 = vmax.f32 %v26_v10, %v174_v8  ;;  %v190_v19 = vld [vmem:[%s487_s0 + $0x108] sm:$0xff]  ;;  %v44_v26 = vmax.f32 %v27_v20, %v175_v17  ;;  %v11_v27 = vld [vmem:[%s487_s0 + $0x18] sm:$0xff] }
   0x6   :  { %v197_v12 = vld [vmem:[%s487_s0 + $0x140] sm:$0xff]  ;;  %v198_v23 = vld [vmem:[%s487_s0 + $0x148] sm:$0xff]  ;;  %v168_v28 = vld [vmem:[%s487_s0 + $0x58] sm:$0xff] }
   0x7   :  { %v59_v11 = vmax.f32 %v42_v5, %v181_v4  ;;  %v205_v21 = vld [vmem:[%s487_s0 + $0x180] sm:$0xff]  ;;  %v60_v22 = vmax.f32 %v43_v14, %v182_v13  ;;  %v176_v29 = vld [vmem:[%s487_s0 + $0x98] sm:$0xff]  ;;  %v191_v33 = vld [vmem:[%s487_s0 + $0x110] sm:$0xff]  ;;  %v28_v34 = vmax.f32 %v11_v27, %v168_v28  ;;  %v61_v37 = vmax.f32 %v44_v26, %v183_v24 }
   0x8   :  { %v213_v30 = vld [vmem:[%s487_s0 + $0x1c0] sm:$0xff]  ;;  %v206_v36 = vld [vmem:[%s487_s0 + $0x188] sm:$0xff]  ;;  %v199_v38 = vld [vmem:[%s487_s0 + $0x150] sm:$0xff] }
   0x9   :  { %v76_v18 = vmax.f32 %v59_v11, %v189_v9  ;;  %v221_v31 = vld [vmem:[%s487_s0 + $0x200] sm:$0xff]  ;;  %v77_v32 = vmax.f32 %v60_v22, %v190_v19  ;;  %v184_v39 = vld [vmem:[%s487_s0 + $0xd8] sm:$0xff]  ;;  %v45_v41 = vmax.f32 %v28_v34, %v176_v29  ;;  %v214_v46 = vld [vmem:[%s487_s0 + $0x1c8] sm:$0xff]  ;;  %v78_v48 = vmax.f32 %v61_v37, %v191_v33 }
   0xa   :  { %v12_v42 = vld [vmem:[%s487_s0 + $0x20] sm:$0xff]  ;;  %v222_v47 = vld [vmem:[%s487_s0 + $0x208] sm:$0xff]  ;;  %v192_v49 = vld [vmem:[%s487_s0 + $0x118] sm:$0xff] }
   0xb   :  { %v93_v25 = vmax.f32 %v76_v18, %v197_v12  ;;  %v94_v40 = vmax.f32 %v77_v32, %v198_v23  ;;  %v169_v43 = vld [vmem:[%s487_s0 + $0x60] sm:$0xff]  ;;  %v207_v52 = vld [vmem:[%s487_s0 + $0x190] sm:$0xff]  ;;  %v62_v53 = vmax.f32 %v45_v41, %v184_v39  ;;  %v200_v54 = vld [vmem:[%s487_s0 + $0x158] sm:$0xff]  ;;  %v95_v57 = vmax.f32 %v78_v48, %v199_v38 }
   0xc   :  { %v177_v44 = vld [vmem:[%s487_s0 + $0xa0] sm:$0xff]  ;;  %v29_v50 = vmax.f32 %v12_v42, %v169_v43  ;;  %v13_v59 = vld [vmem:[%s487_s0 + $0x28] sm:$0xff]  ;;  %v215_v63 = vld [vmem:[%s487_s0 + $0x1d0] sm:$0xff] }
   0xd   :  { %v110_v35 = vmax.f32 %v93_v25, %v205_v21  ;;  %v111_v51 = vmax.f32 %v94_v40, %v206_v36  ;;  %v185_v55 = vld [vmem:[%s487_s0 + $0xe0] sm:$0xff]  ;;  %v170_v60 = vld [vmem:[%s487_s0 + $0x68] sm:$0xff]  ;;  %v223_v0 = vld [vmem:[%s487_s0 + $0x210] sm:$0xff]  ;;  %v79_v1 = vmax.f32 %v62_v53, %v192_v49  ;;  %v112_v4 = vmax.f32 %v95_v57, %v207_v52 }
   0xe   :  { %v46_v58 = vmax.f32 %v29_v50, %v177_v44  ;;  %v178_v61 = vld [vmem:[%s487_s0 + $0xa8] sm:$0xff]  ;;  %v193_v2 = vld [vmem:[%s487_s0 + $0x120] sm:$0xff]  ;;  %v30_v3 = vmax.f32 %v13_v59, %v170_v60  ;;  %v208_v5 = vld [vmem:[%s487_s0 + $0x198] sm:$0xff] }
   0xf   :  { %v127_v45 = vmax.f32 %v110_v35, %v213_v30  ;;  %v128_v62 = vmax.f32 %v111_v51, %v214_v46  ;;  %v201_v7 = vld [vmem:[%s487_s0 + $0x160] sm:$0xff]  ;;  %v186_v8 = vld [vmem:[%s487_s0 + $0xe8] sm:$0xff]  ;;  %v96_v10 = vmax.f32 %v79_v1, %v200_v54  ;;  %v14_v12 = vld [vmem:[%s487_s0 + $0x30] sm:$0xff]  ;;  %v129_v15 = vmax.f32 %v112_v4, %v215_v63 }
  0x10   :  { %v63_v6 = vmax.f32 %v46_v58, %v185_v55  ;;  %v47_v11 = vmax.f32 %v30_v3, %v178_v61  ;;  %v171_v13 = vld [vmem:[%s487_s0 + $0x70] sm:$0xff]  ;;  %v216_v16 = vld [vmem:[%s487_s0 + $0x1d8] sm:$0xff]  ;;  %v194_v19 = vld [vmem:[%s487_s0 + $0x128] sm:$0xff] }
  0x11   :  { %v144_v56 = vmax.f32 %v127_v45, %v221_v31  ;;  %v145_v9 = vmax.f32 %v128_v62, %v222_v47  ;;  %v179_v14 = vld [vmem:[%s487_s0 + $0xb0] sm:$0xff]  ;;  %v224_v17 = vld [vmem:[%s487_s0 + $0x218] sm:$0xff]  ;;  %v31_v20 = vmax.f32 %v14_v12, %v171_v13  ;;  %v113_v21 = vmax.f32 %v96_v10, %v208_v5  ;;  %v209_v22 = vld [vmem:[%s487_s0 + $0x1a0] sm:$0xff] }
  0x12   :  { %v80_v18 = vmax.f32 %v63_v6, %v193_v2  ;;  %v64_v23 = vmax.f32 %v47_v11, %v186_v8  ;;  %v202_v24 = vld [vmem:[%s487_s0 + $0x168] sm:$0xff]  ;;  %v187_v25 = vld [vmem:[%s487_s0 + $0xf0] sm:$0xff]  ;;  %v146_v26 = vmax.f32 %v129_v15, %v223_v0  ;;  %v15_v29 = vld [vmem:[%s487_s0 + $0x38] sm:$0xff] }
  0x13   :  { %153 = vst.msk [vmem:[%s488_s1] sm:$0xff] %vm152_vm0, %v144_v56  ;;  %v48_v28 = vmax.f32 %v31_v20, %v179_v14  ;;  %v172_v30 = vld [vmem:[%s487_s0 + $0x78] sm:$0xff]  ;;  %v130_v32 = vmax.f32 %v113_v21, %v216_v16  ;;  %v217_v33 = vld [vmem:[%s487_s0 + $0x1e0] sm:$0xff]  ;;  %v195_v35 = vld [vmem:[%s487_s0 + $0x130] sm:$0xff] }
  0x14   :  { %154 = vst.msk [vmem:[%s488_s1 + $0x8] sm:$0xff] %vm152_vm0, %v145_v9  ;;  %v97_v27 = vmax.f32 %v80_v18, %v201_v7  ;;  %v180_v31 = vld [vmem:[%s487_s0 + $0xb8] sm:$0xff]  ;;  %v81_v34 = vmax.f32 %v64_v23, %v194_v19  ;;  %v32_v36 = vmax.f32 %v15_v29, %v172_v30  ;;  %v210_v38 = vld [vmem:[%s487_s0 + $0x1a8] sm:$0xff]  ;;  %v225_v42 = vld [vmem:[%s487_s0 + $0x220] sm:$0xff] }
  0x15   :  { %155 = vst.msk [vmem:[%s488_s1 + $0x10] sm:$0xff] %vm152_vm0, %v146_v26  ;;  %v65_v39 = vmax.f32 %v48_v28, %v187_v25  ;;  %v188_v40 = vld [vmem:[%s487_s0 + $0xf8] sm:$0xff]  ;;  %v147_v41 = vmax.f32 %v130_v32, %v224_v17  ;;  %v203_v44 = vld [vmem:[%s487_s0 + $0x170] sm:$0xff]  ;;  %v218_v47 = vld [vmem:[%s487_s0 + $0x1e8] sm:$0xff] }
  0x16   :  { %v114_v37 = vmax.f32 %v97_v27, %v209_v22  ;;  %v98_v43 = vmax.f32 %v81_v34, %v202_v24  ;;  %v49_v45 = vmax.f32 %v32_v36, %v180_v31  ;;  %v196_v49 = vld [vmem:[%s487_s0 + $0x138] sm:$0xff]  ;;  %v211_v51 = vld [vmem:[%s487_s0 + $0x1b0] sm:$0xff]  ;;  %v226_v54 = vld [vmem:[%s487_s0 + $0x228] sm:$0xff] }
  0x17   :  { %v82_v48 = vmax.f32 %v65_v39, %v195_v35  ;;  %156 = vst.msk [vmem:[%s488_s1 + $0x18] sm:$0xff] %vm152_vm0, %v147_v41  ;;  %v204_v56 = vld [vmem:[%s487_s0 + $0x178] sm:$0xff]  ;;  %v219_v58 = vld [vmem:[%s487_s0 + $0x1f0] sm:$0xff] }
  0x18   :  { %v131_v46 = vmax.f32 %v114_v37, %v217_v33  ;;  %v115_v50 = vmax.f32 %v98_v43, %v210_v38  ;;  %v66_v52 = vmax.f32 %v49_v45, %v188_v40  ;;  %v212_v61 = vld [vmem:[%s487_s0 + $0x1b8] sm:$0xff]  ;;  %v227_v63 = vld [vmem:[%s487_s0 + $0x230] sm:$0xff] }
  0x19   :  { %v99_v55 = vmax.f32 %v82_v48, %v203_v44  ;;  %v220_v2 = vld [vmem:[%s487_s0 + $0x1f8] sm:$0xff] }
  0x1a   :  { %v148_v53 = vmax.f32 %v131_v46, %v225_v42  ;;  %v132_v57 = vmax.f32 %v115_v50, %v218_v47  ;;  %v83_v59 = vmax.f32 %v66_v52, %v196_v49  ;;  %v228_v5 = vld [vmem:[%s487_s0 + $0x238] sm:$0xff] }
  0x1b   :  { %v116_v60 = vmax.f32 %v99_v55, %v211_v51 }
  0x1c   :  { %157 = vst.msk [vmem:[%s488_s1 + $0x20] sm:$0xff] %vm152_vm0, %v148_v53  ;;  %v149_v62 = vmax.f32 %v132_v57, %v226_v54  ;;  %v100_v0 = vmax.f32 %v83_v59, %v204_v56 }
  0x1d   :  { %v133_v1 = vmax.f32 %v116_v60, %v219_v58 }
  0x1e   :  { %158 = vst.msk [vmem:[%s488_s1 + $0x28] sm:$0xff] %vm152_vm0, %v149_v62  ;;  %v117_v3 = vmax.f32 %v100_v0, %v212_v61 }
  0x1f   :  { %v150_v4 = vmax.f32 %v133_v1, %v227_v63 }
  0x20   :  { %v134_v6 = vmax.f32 %v117_v3, %v220_v2 }
  0x21   :  { %159 = vst.msk [vmem:[%s488_s1 + $0x30] sm:$0xff] %vm152_vm0, %v150_v4 }
  0x22   :  { %v151_v7 = vmax.f32 %v134_v6, %v228_v5 }
  0x24   :  { %160 = vst.msk [vmem:[%s488_s1 + $0x38] sm:$0xff] %vm152_vm0, %v151_v7 }

// kernel: _lambda_.19
= control target key start
LH: loop header
LB: loop body
LE: loop exit
PB: predicated region body
PF: predicated region fallthrough
CT: control target
= control target key end

     0   :  { %s1375_s24 = smov 0   ;;  %s1708_s0 = inlined_call_operand.vmem [shape: f32[2,74,16], index: 0, kind: input, shape index: {}]   ;;  %s1709_s1 = inlined_call_operand.vmem [shape: bf16[16,16], index: 1, kind: input, shape index: {}]   ;;  %s1710_s2 = inlined_call_operand.vmem [shape: f32[1,16], index: 2, kind: input, shape index: {}]   ;;  %s1711_s3 = inlined_call_operand.vmem [shape: f32[1,16], index: 3, kind: input, shape index: {}]   ;;  %s1712_s4 = inlined_call_operand.vmem [shape: f32[1,16], index: 4, kind: input, shape index: {}]   ;;  %s1713_s5 = inlined_call_operand.vmem [shape: f32[74,1], index: 5, kind: input, shape index: {}]   ;;  %s1714_s6 = inlined_call_operand.vmem [shape: bf16[9,16,8], index: 6, kind: input, shape index: {}]   ;;  %s1715_s7 = inlined_call_operand.vmem [shape: f32[2,60,8], index: 7, kind: output, shape index: {}]  }
   0x1 LB: > { %s1190_s25 = sadd.s32 4294967295, %s1332_s24   ;;  %p1194_p0 = scmp.ge.s32.totalorder %s1332_s24, 1  ;;  %s1332_s24 = sphi %s1375_s24, %s17_s24  }
   0x2   : > { %p237_p1 = scmp.lt.s32.totalorder %s1332_s24, 3 }
   0x4   : > { %p238_p2 = pnand %p1194_p0, %p237_p1 }
   0x5   : > { %p269_p3 = scmp.lt.s32.totalorder (!%p238_p2), %s1190_s25, 1 }
   0x6   : > { %241 = sbr.rel (%p238_p2) target bundleno = 512 (0x200), region = 48 }
   0xb   : > { %v1298_v0 = vld [vmem:[%s1709_s1] sm:$0xff]  ;;  %v407_v1 = vld [vmem:[%s1713_s5 + $0x10] sm:$0xff]  ;;  %v1334_v2 = vmov 0   ;;  %s1717_s25 = smov (!%p269_p3, %s1190_s25), 1  ;;  %v408_v8 = vld [vmem:[%s1713_s5 + $0x18] sm:$0xff]  ;;  %vm345_vm0 = vcmask 130048  }
   0xc   : > { %1320 = vset.pattern.permute.xlu0 %v1334_v2  ;;  %1321 = vset.pattern.permute.xlu1 %v1334_v2  ;;  %v409_v3 = vld [vmem:[%s1713_s5 + $0x20] sm:$0xff]  ;;  %s1310_s9 = smul.u32 80, %s1717_s25  ;;  %v410_v11 = vld [vmem:[%s1713_s5 + $0x28] sm:$0xff]  ;;  %v411_v51 = vld [vmem:[%s1713_s5 + $0x30] sm:$0xff]  ;;  %vm613_vm1 = vcmask 1046528   ;;  %vm898_vm3 = vcmask 1045504  }
   0xd   : > { %368 = vmatpush.bf16.msra.mxu0 %v1298_v0  ;;  %427 = vperm.xlu0 %1320, %v407_v1   ;;  %v1323_v4 = vld [vmem:[%s1710_s2] ss:$0 sm:$0xff]  ;;  %v406_v22 = vld [vmem:[%s1713_s5 + $0x8] sm:$0xff]  ;;  %v412_v54 = vld [vmem:[%s1713_s5 + $0x38] sm:$0xff]  ;;  %vm484_vm2 = vsmask.f32 7424 }
   0xe   : > { %437 = vperm.xlu1 %1321, %v409_v3   ;;  %1322 = vset.pattern.permute.xlu2 %v1334_v2  ;;  %s1401_s14 = scalar_lea.vmem %s1708_s0, %s1310_s9  ;;  %v1324_v5 = vld [vmem:[%s1711_s3] ss:$0 sm:$0xff]  ;;  %v414_v25 = vld [vmem:[%s1713_s5 + $0x48] sm:$0x3]  ;;  %vm681_vm4 = vcmask 1044480   ;;  %s1297_s11 = sshll.u32 %s1717_s25, 6 }
   0xf   : > { %v280_v6 = vld [vmem:[%s1401_s14] sm:$0xff]  ;;  %v281_v7 = vld [vmem:[%s1401_s14 + $0x8] sm:$0xff]  ;;  %v282_v16 = vld [vmem:[%s1401_s14 + $0x10] sm:$0xff]  ;;  %447 = vperm.xlu2 %1322, %v411_v51   ;;  %vm749_vm5 = vsmask.f32 4352  ;;  %vm1125_vm7 = vcmask 64512  }
  0x10   : > { %v294_v9 = vmul.f32 %v1323_v4, %v280_v6  ;;  %v295_v10 = vmul.f32 %v1323_v4, %v281_v7  ;;  %v283_v17 = vld [vmem:[%s1401_s14 + $0x18] sm:$0xff]  ;;  %v405_v19 = vld [vmem:[%s1713_s5] sm:$0xff]  ;;  %v296_v20 = vmul.f32 %v1323_v4, %v282_v16  ;;  %v285_v30 = vld [vmem:[%s1401_s14 + $0x28] sm:$0xff]  ;;  %vm965_vm6 = vsmask.f32 5376 }
  0x11   : > { %v297_v21 = vmul.f32 %v1323_v4, %v283_v17  ;;  %v284_v29 = vld [vmem:[%s1401_s14 + $0x20] sm:$0xff]  ;;  %v299_v32 = vmul.f32 %v1323_v4, %v285_v30  ;;  %v289_v34 = vld [vmem:[%s1401_s14 + $0x48] sm:$0x3]  ;;  %v286_v47 = vld [vmem:[%s1401_s14 + $0x30] sm:$0xff]  ;;  %vm1133_vm8 = vcmask 60416  }
  0x12   : > { %v308_v12 = vadd.f32 %v1324_v5, %v294_v9  ;;  %v309_v13 = vadd.f32 %v1324_v5, %v295_v10  ;;  %v310_v23 = vadd.f32 %v1324_v5, %v296_v20  ;;  %v298_v31 = vmul.f32 %v1323_v4, %v284_v29  ;;  %v288_v33 = vld [vmem:[%s1401_s14 + $0x40] sm:$0xff]  ;;  %v287_v48 = vld [vmem:[%s1401_s14 + $0x38] sm:$0xff]  ;;  %v1300_v2 = vld [vmem:[%s1714_s6 + $0x8] sm:$0xff]  ;;  %s1671_s14 = scalar_lea.vmem %s1715_s7, %s1297_s11 }
  0x13   : > { %v311_v24 = vadd.f32 %v1324_v5, %v297_v21  ;;  %v302_v35 = vmul.f32 %v1323_v4, %v288_v33  ;;  %v303_v36 = vmul.f32 %v1323_v4, %v289_v34  ;;  %v313_v40 = vadd.f32 %v1324_v5, %v299_v32  ;;  %v413_v58 = vld [vmem:[%s1713_s5 + $0x40] sm:$0xff]  ;;  %541 = vmatpush.bf16.msra.mxu1 %v1300_v2  ;;  %v1301_v17 = vld [vmem:[%s1714_s6 + $0x10] sm:$0xff] }
  0x14   : > { %v318_v14 = vmax.f32 %v308_v12, 0.0  ;;  %v319_v15 = vmax.f32 %v309_v13, 0.0  ;;  %v320_v26 = vmax.f32 %v310_v23, 0.0  ;;  %v312_v39 = vadd.f32 %v1324_v5, %v298_v31  ;;  %v1299_v59 = vld [vmem:[%s1714_s6] sm:$0xff]  ;;  %1308 = vmatpush.bf16.msra.mxu3 %v1300_v2 }
  0x15   : > { %432 = vperm.xlu0 %1320, %v408_v8   ;;  %v321_v27 = vmax.f32 %v311_v24, 0.0  ;;  %v316_v37 = vadd.f32 %v1324_v5, %v302_v35  ;;  %v317_v38 = vadd.f32 %v1324_v5, %v303_v36  ;;  %v323_v45 = vmax.f32 %v313_v40, 0.0  ;;  %584 = vmatpush.bf16.msrb.mxu0 %v1299_v59  ;;  %v1451_v1 = vld [vmem:[%s1712_s4] ss:$0 sm:$0xff] }
  0x16   : > { %442 = vperm.xlu1 %1321, %v410_v11   ;;  %v328_v18 = vpack.c.bf16 %v319_v15, %v318_v14  ;;  %v322_v44 = vmax.f32 %v312_v39, 0.0  ;;  %v300_v49 = vmul.f32 %v1323_v4, %v286_v47  ;;  %v301_v50 = vmul.f32 %v1323_v4, %v287_v48  ;;  %1309 = vmatpush.bf16.msra.mxu2 %v1299_v59  ;;  %v1305_v4 = vld [vmem:[%s1714_s6 + $0x30] sm:$0xff]  ;;  %v1302_v15 = vld [vmem:[%s1714_s6 + $0x18] sm:$0xff] }
  0x17   : > { %v329_v28 = vpack.c.bf16 %v321_v27, %v320_v26  ;;  %v326_v41 = vmax.f32 %v316_v37, 0.0  ;;  %v327_v42 = vmax.f32 %v317_v38, 0.0  ;;  %452 = vperm.xlu2 %1322, %v412_v54   ;;  %716 = vmatpush.bf16.msrb.mxu1 %v1302_v15  ;;  %v1303_v27 = vld [vmem:[%s1714_s6 + $0x20] sm:$0xff] }
  0x18   : > { %1202 = vmatmul.msk.bf16.vlgmr.msra.gmra.mxu0 %vm345_vm0, %v328_v18  ;;  %v330_v46 = vpack.c.bf16 %v323_v45, %v322_v44  ;;  %v314_v52 = vadd.f32 %v1324_v5, %v300_v49  ;;  %v315_v53 = vadd.f32 %v1324_v5, %v301_v50  ;;  %646 = vmatpush.bf16.msrb.mxu3 %v1301_v17 }
  0x19   : > { %v332_v43 = vpack.c.bf16 %v327_v42, %v326_v41  ;;  %931 = vmatpush.bf16.msra.mxu0 %v1305_v4 }
  0x1a   : > { %v324_v55 = vmax.f32 %v314_v52, 0.0  ;;  %v325_v56 = vmax.f32 %v315_v53, 0.0  ;;  %799 = vmatpush.bf16.msrb.mxu2 %v1303_v27 }
  0x1c   : > { %v331_v57 = vpack.c.bf16 %v325_v56, %v324_v55 }
  0x1d   : > { %417 = vperm.xlu0 %1320, %v405_v19  }
  0x1e   : > { %422 = vperm.xlu1 %1321, %v406_v22  }
  0x1f   : > { %457 = vperm.xlu2 %1322, %v413_v58  }
  0x25   : > { %462 = vperm.xlu0 %1320, %v414_v25  }
  0x28   : > { %1203 = vmatmul.msk.bf16.gmra.mxu0 %vm345_vm0, %v329_v28 }
  0x38   : > { %1204 = vmatmul.msk.bf16.gmra.mxu0 %vm345_vm0, %v330_v46 }
  0x48   : > { %1205 = vmatmul.msk.bf16.gmra.mxu0 %vm345_vm0, %v331_v57 }
  0x58   : > { %1206 = vmatmul.msk.bf16.gmra.mxu0 %vm345_vm0, %v332_v43 }
  0x69   : > { %v448_v50 = vpop.permute.xlu2 %447 }
  0x7f   : > { %v428_v60 = vpop.permute.xlu0 %427 }
  0x80   : > { %v438_v61 = vpop.permute.xlu1 %437 }
  0x87   : > { %v433_v62 = vpop.permute.xlu0 %432 }
  0x88   : > { %v443_v0 = vpop.permute.xlu1 %442 }
  0x8f   : > { %v418_v8 = vpop.permute.xlu0 %417 }
  0x90   : > { %v423_v9 = vpop.permute.xlu1 %422 }
  0x95   : > { %v370_v63 = vpop.f32.mrf.mxu0 }
  0x96   : > { %v371_v3 = vadd.f32 %v1451_v1, %v370_v63 }
  0x98   : > { %v395_v6 = vmax.f32 %v371_v3, 0.0 }
  0x9a   : > { %v465_v11 = vmul.f32 %v418_v8, %v395_v6  ;;  %v453_v6 = vpop.permute.xlu2 %452 }
  0x9d   : > { %v372_v5 = vpop.f32.mrf.mxu0 }
  0x9e   : > { %v373_v7 = vadd.f32 %v1451_v1, %v372_v5 }
  0xa0   : > { %v396_v10 = vmax.f32 %v373_v7, 0.0 }
  0xa2   : > { %v466_v12 = vmul.f32 %v423_v9, %v396_v10 }
  0xa4   : > { %v1461_v13 = vpack.c.bf16 %v466_v12, %v465_v11 }
  0xa5   : > { %v375_v14 = vpop.f32.mrf.mxu0 }
  0xa6   : > { %1221 = vmatmul.msk.bf16.vlgmr.msrb.gmra.mxu0 %vm345_vm0, %v1461_v13  ;;  %v376_v16 = vadd.f32 %v1451_v1, %v375_v14  ;;  %v488_v22 = vshll.u32 %v1461_v13, 16  ;;  %v486_v30 = vshrl.u32 %v1461_v13, 16  ;;  %v614_v32 = vrot.slane %v1461_v13, 1 }
  0xa8   : > { %v397_v19 = vmax.f32 %v376_v16, 0.0  ;;  %v490_v26 = vrot.slane %v488_v22, 1 }
  0xaa   : > { %v467_v23 = vmul.f32 %v428_v60, %v397_v19  ;;  %v491_v35 = vor.u32 %v490_v26, %v486_v30  ;;  %v682_v60 = vrot.slane %v1461_v13, 3 }
  0xac   : > { %v1495_v38 = vpack.c.bf16 %v467_v23, %v466_v12 }
  0xad   : > { %v377_v18 = vpop.f32.mrf.mxu0 }
  0xae   : > { %v378_v20 = vadd.f32 %v1451_v1, %v377_v18  ;;  %v899_v44 = vrot.slane %v1495_v38, 2 }
  0xb0   : > { %v398_v21 = vmax.f32 %v378_v20, 0.0 }
  0xb2   : > { %v468_v24 = vmul.f32 %v433_v62, %v398_v21  ;;  %v458_v21 = vpop.permute.xlu2 %457 }
  0xb4   : > { %v1474_v25 = vpack.c.bf16 %v468_v24, %v467_v23 }
  0xb5   : > { %v380_v28 = vpop.f32.mrf.mxu0 }
  0xb6   : > { %v381_v29 = vadd.f32 %v1451_v1, %v380_v28  ;;  %1222 = vmatmul.msk.bf16.vlgmr.msra.gmra.mxu2 %vm345_vm0, %v1474_v25  ;;  %v493_v31 = vshll.u32 %v1474_v25, 16  ;;  %v615_v33 = vrot.slane %v1474_v25, 1  ;;  %v497_v53 = vshrl.u32 %v1474_v25, 16  ;;  %v1304_v28 = vld [vmem:[%s1714_s6 + $0x28] sm:$0xff] }
  0xb7   : > { %v683_v55 = vrot.slane %v1474_v25, 3 }
  0xb8   : > { %v399_v34 = vmax.f32 %v381_v29, 0.0  ;;  %v495_v36 = vrot.slane %v493_v31, 1  ;;  %v1493_v37 = vsel %vm613_vm1, %v614_v32, %v615_v33  ;;  %v1307_v29 = vld [vmem:[%s1714_s6 + $0x40] sm:$0xff]  ;;  %v1306_v32 = vld [vmem:[%s1714_s6 + $0x38] sm:$0xff] }
  0xb9   : > { %1095 = vmatpush.bf16.msra.mxu2 %v1307_v29  ;;  %v1061_v29 = vrot.slane %v1495_v38, 3 }
  0xba   : > { %v469_v39 = vmul.f32 %v438_v61, %v399_v34  ;;  %v496_v40 = vsel %vm484_vm2, %v491_v35, %v495_v36  ;;  %v499_v58 = vor.u32 %v497_v53, %v495_v36  ;;  %v753_v34 = vrot.slane %v497_v53, 3 }
  0xbb   : > { %1213 = vmatmul.msk.bf16.vlgmr.msra.gmra.mxu1 %vm345_vm0, %v496_v40  ;;  %v754_v35 = vrot.slane %v493_v31, 4  ;;  %v751_v40 = vrot.slane %v488_v22, 4 }
  0xbc   : > { %v1499_v41 = vpack.c.bf16 %v469_v39, %v468_v24  ;;  %1027 = vmatpush.bf16.msra.mxu1 %v1306_v32 }
  0xbd   : > { %v382_v42 = vpop.f32.mrf.mxu0 }
  0xbe   : > { %v383_v43 = vadd.f32 %v1451_v1, %v382_v42  ;;  %v900_v45 = vrot.slane %v1499_v41, 2 }
  0xc0   : > { %v400_v46 = vmax.f32 %v383_v43, 0.0  ;;  %v901_v47 = vsel %vm898_vm3, %v899_v44, %v900_v45  ;;  %v755_v43 = vor.u32 %v754_v35, %v753_v34  ;;  %v463_v35 = vpop.permute.xlu0 %462 }
  0xc1   : > { %1271 = vmatmul.msk.bf16.vlgmr.msra.gmra.mxu0 %vm345_vm0, %v901_v47 }
  0xc2   : > { %v470_v48 = vmul.f32 %v443_v0, %v400_v46  ;;  %v684_v0 = vsel %vm681_vm4, %v682_v60, %v683_v55 }
  0xc4   : > { %v1506_v49 = vpack.c.bf16 %v470_v48, %v469_v39  ;;  %v750_v39 = vrot.slane %v486_v30, 3 }
  0xc5   : > { %v385_v51 = vpop.f32.mrf.mxu0 }
  0xc6   : > { %v386_v52 = vadd.f32 %v1451_v1, %v385_v51  ;;  %1223 = vmatmul.msk.bf16.gmra.mxu2 %vm345_vm0, %v1506_v49  ;;  %v501_v54 = vshll.u32 %v1506_v49, 16  ;;  %v617_v56 = vrot.slane %v1506_v49, 1  ;;  %v505_v14 = vshrl.u32 %v1506_v49, 16 }
  0xc7   : > { %v685_v16 = vrot.slane %v1506_v49, 3  ;;  %v752_v44 = vor.u32 %v751_v40, %v750_v39  ;;  %v973_v49 = vshrl.u32 %v1499_v41, 16 }
  0xc8   : > { %v401_v57 = vmax.f32 %v386_v52, 0.0  ;;  %v503_v59 = vrot.slane %v501_v54, 1  ;;  %v1519_v61 = vsel %vm613_vm1, %v615_v33, %v617_v56  ;;  %v757_v13 = vrot.slane %v505_v14, 3 }
  0xc9   : > { %v686_v27 = vsel %vm681_vm4, %v683_v55, %v685_v16  ;;  %v756_v25 = vsel %vm749_vm5, %v752_v44, %v755_v43  ;;  %v758_v22 = vrot.slane %v501_v54, 4  ;;  %v976_v54 = vshll.u32 %v1499_v41, 16 }
  0xca   : > { %v471_v62 = vmul.f32 %v448_v50, %v401_v57  ;;  %v504_v63 = vsel %vm484_vm2, %v499_v58, %v503_v59  ;;  %v507_v19 = vor.u32 %v505_v14, %v503_v59  ;;  %v969_v57 = vshll.u32 %v1495_v38, 16 }
  0xcb   : > { %1214 = vmatmul.msk.bf16.vlgmr.msra.gmra.mxu3 %vm345_vm0, %v504_v63  ;;  %1241 = vmatmul.msk.bf16.vlgmr.msrb.gmra.mxu1 %vm345_vm0, %v684_v0  ;;  %v759_v47 = vor.u32 %v758_v22, %v757_v13  ;;  %v975_v59 = vrot.slane %v973_v49, 2  ;;  %v978_v60 = vrot.slane %v976_v54, 3 }
  0xcc   : > { %v1525_v2 = vpack.c.bf16 %v471_v62, %v470_v48  ;;  %861 = vmatpush.bf16.msra.mxu3 %v1304_v28  ;;  %v971_v63 = vrot.slane %v969_v57, 3 }
  0xcd   : > { %v387_v3 = vpop.f32.mrf.mxu0  ;;  %v760_v50 = vsel %vm749_vm5, %v755_v43, %v759_v47 }
  0xce   : > { %v388_v4 = vadd.f32 %v1451_v1, %v387_v3  ;;  %v902_v5 = vrot.slane %v1525_v2, 2  ;;  %v1064_v40 = vrot.slane %v1525_v2, 3 }
  0xd0   : > { %v402_v7 = vmax.f32 %v388_v4, 0.0  ;;  %v903_v8 = vsel %vm898_vm3, %v900_v45, %v902_v5 }
  0xd1   : > { %1272 = vmatmul.msk.bf16.gmra.mxu0 %vm345_vm0, %v903_v8 }
  0xd2   : > { %v472_v9 = vmul.f32 %v453_v6, %v402_v7 }
  0xd4   : > { %v1531_v10 = vpack.c.bf16 %v472_v9, %v471_v62 }
  0xd5   : > { %v390_v11 = vpop.f32.mrf.mxu0 }
  0xd6   : > { %v391_v12 = vadd.f32 %v1451_v1, %v390_v11  ;;  %1224 = vmatmul.msk.bf16.gmra.mxu2 %vm345_vm0, %v1531_v10  ;;  %v509_v15 = vshll.u32 %v1531_v10, 16  ;;  %v619_v17 = vrot.slane %v1531_v10, 1  ;;  %v687_v31 = vrot.slane %v1531_v10, 3 }
  0xd7   : > { %v513_v45 = vshrl.u32 %v1531_v10, 16  ;;  %v984_v11 = vshll.u32 %v1525_v2, 16 }
  0xd8   : > { %v403_v18 = vmax.f32 %v391_v12, 0.0  ;;  %v511_v20 = vrot.slane %v509_v15, 1  ;;  %v1543_v23 = vsel %vm613_vm1, %v617_v56, %v619_v17  ;;  %v688_v30 = vsel %vm681_vm4, %v685_v16, %v687_v31 }
  0xd9   : > { %v761_v53 = vrot.slane %v513_v45, 3  ;;  %v762_v55 = vrot.slane %v509_v15, 4  ;;  %v966_v56 = vshrl.u32 %v1495_v38, 16  ;;  %v986_v15 = vrot.slane %v984_v11, 3 }
  0xda   : > { %v473_v24 = vmul.f32 %v458_v21, %v403_v18  ;;  %v512_v26 = vsel %vm484_vm2, %v507_v19, %v511_v20  ;;  %v515_v46 = vor.u32 %v513_v45, %v511_v20 }
  0xdb   : > { %1215 = vmatmul.msk.bf16.gmra.mxu3 %vm345_vm0, %v512_v26  ;;  %1242 = vmatmul.msk.bf16.gmra.mxu1 %vm345_vm0, %v686_v27  ;;  %v763_v58 = vor.u32 %v762_v55, %v761_v53  ;;  %v968_v62 = vrot.slane %v966_v56, 2 }
  0xdc   : > { %v1558_v33 = vpack.c.bf16 %v473_v24, %v472_v9  ;;  %v676_v48 = vpack.c.bf16 %v473_v24, %v473_v24  ;;  %v981_v9 = vshrl.u32 %v1525_v2, 16  ;;  %v1062_v24 = vrot.slane %v1499_v41, 3 }
  0xdd   : > { %v764_v0 = vsel %vm749_vm5, %v759_v47, %v763_v58  ;;  %v972_v3 = vor.u32 %v971_v63, %v968_v62  ;;  %v392_v21 = vpop.f32.mrf.mxu0 }
  0xde   : > { %v904_v36 = vrot.slane %v1558_v33, 2  ;;  %v689_v51 = vrot.slane %v676_v48, 3  ;;  %v766_v4 = vshrl.u32 %v676_v48, 16  ;;  %v983_v14 = vrot.slane %v981_v9, 2 }
  0xdf   : > { %v992_v20 = vshll.u32 %v1558_v33, 16  ;;  %v393_v26 = vadd.f32 %v1451_v1, %v392_v21  ;;  %v1063_v32 = vsel %vm681_vm4, %v1061_v29, %v1062_v24  ;;  %v1065_v43 = vsel %vm681_vm4, %v1062_v24, %v1064_v40 }
  0xe0   : > { %v905_v42 = vsel %vm898_vm3, %v902_v5, %v904_v36  ;;  %v690_v52 = vsel %vm681_vm4, %v687_v31, %v689_v51  ;;  %v769_v5 = vshll.u32 %v676_v48, 16  ;;  %v768_v7 = vrot.slane %v766_v4, 3 }
  0xe1   : > { %1273 = vmatmul.msk.bf16.gmra.mxu0 %vm345_vm0, %v905_v42  ;;  %v987_v18 = vor.u32 %v986_v15, %v983_v14  ;;  %v994_v28 = vrot.slane %v992_v20, 3  ;;  %v404_v34 = vmax.f32 %v393_v26, 0.0 }
  0xe2   : > { %v771_v8 = vrot.slane %v769_v5, 4 }
  0xe4   : > { %v772_v12 = vor.u32 %v771_v8, %v768_v7 }
  0xe6   : > { %1251 = vmatmul.msk.bf16.vlgmr.msrb.gmra.mxu2 %vm345_vm0, %v756_v25  ;;  %v773_v16 = vsel %vm749_vm5, %v763_v58, %v772_v12 }
  0xeb   : > { %1216 = vmatmul.msk.bf16.gmra.mxu3 %vm345_vm0, %v515_v46  ;;  %1243 = vmatmul.msk.bf16.gmra.mxu1 %vm345_vm0, %v688_v30 }
  0xf1   : > { %1274 = vmatmul.msk.bf16.gmra.mxu0 %vm345_vm0, %v904_v36  ;;  %v474_v36 = vmul.f32 %v463_v35, %v404_v34 }
  0xf3   : > { %v961_v1 = vpack.c.bf16 %v474_v36, %v474_v36 }
  0xf5   : > { %v998_v42 = vshll.u32 %v961_v1, 16  ;;  %v1068_v47 = vrot.slane %v961_v1, 3 }
  0xf6   : > { %1252 = vmatmul.msk.bf16.gmra.mxu2 %vm345_vm0, %v760_v50 }
  0xf7   : > { %v1000_v44 = vrot.slane %v998_v42, 3 }
  0xfb   : > { %1231 = vmatmul.msk.bf16.vlgmr.msrb.gmra.mxu3 %vm345_vm0, %v1493_v37  ;;  %1244 = vmatmul.msk.bf16.gmra.mxu1 %vm345_vm0, %v690_v52  ;;  %v979_v37 = vor.u32 %v978_v60, %v975_v59 }
  0xfd   : > { %v980_v6 = vsel %vm965_vm6, %v972_v3, %v979_v37  ;;  %v988_v19 = vsel %vm965_vm6, %v979_v37, %v987_v18 }
 0x106   : > { %1253 = vmatmul.msk.bf16.gmra.mxu2 %vm345_vm0, %v764_v0 }
 0x10b   : > { %1232 = vmatmul.msk.bf16.gmra.mxu3 %vm345_vm0, %v1519_v61  ;;  %1281 = vmatmul.msk.bf16.vlgmr.msra.gmra.mxu1 %vm345_vm0, %v980_v6  ;;  %v989_v61 = vshrl.u32 %v1558_v33, 16 }
 0x10d   : > { %v991_v27 = vrot.slane %v989_v61, 2 }
 0x116   : > { %1254 = vmatmul.msk.bf16.gmra.mxu2 %vm345_vm0, %v773_v16 }
 0x11b   : > { %1233 = vmatmul.msk.bf16.gmra.mxu3 %vm345_vm0, %v1543_v23  ;;  %1282 = vmatmul.msk.bf16.gmra.mxu1 %vm345_vm0, %v988_v19  ;;  %v995_v23 = vor.u32 %v994_v28, %v991_v27 }
 0x11d   : > { %v996_v39 = vsel %vm965_vm6, %v987_v18, %v995_v23  ;;  %v1001_v31 = vsel %vm965_vm6, %v995_v23, %v1000_v44 }
 0x123   : > { %v586_v16 = vpop.f32.mrf.mxu0 }
 0x126   : > { %1291 = vmatmul.msk.bf16.vlgmr.msra.gmra.mxu2 %vm345_vm0, %v1063_v32 }
 0x12b   : > { %1234 = vmatmul.msk.bf16.gmra.mxu3 %vm345_vm0, %v619_v17  ;;  %1283 = vmatmul.msk.bf16.gmra.mxu1 %vm345_vm0, %v996_v39  ;;  %v1066_v17 = vrot.slane %v1558_v33, 3  ;;  %v588_v20 = vpop.f32.mrf.mxu0 }
 0x12d   : > { %v1067_v45 = vsel %vm681_vm4, %v1064_v40, %v1066_v17 }
 0x136   : > { %1292 = vmatmul.msk.bf16.gmra.mxu2 %vm345_vm0, %v1065_v43 }
 0x138   : > { %v543_v22 = vpop.f32.mrf.mxu1 }
 0x139   : > { %v591_v25 = vpop.f32.mrf.mxu2  ;;  %v587_v28 = vadd.f32 %v586_v16, %v543_v22 }
 0x13b   : > { %1261 = vmatmul.msk.bf16.vlgmr.msra.gmra.mxu3 %vm345_vm0, %v1495_v38  ;;  %1284 = vmatmul.msk.bf16.gmra.mxu1 %vm345_vm0, %v1001_v31  ;;  %v1069_v38 = vsel %vm681_vm4, %v1066_v17, %v1068_v47 }
 0x13e   : > { %v933_v27 = vpop.f32.mrf.mxu0 }
 0x140   : > { %v545_v53 = vpop.f32.mrf.mxu1 }
 0x141   : > { %v593_v10 = vpop.f32.mrf.mxu2  ;;  %v589_v36 = vadd.f32 %v588_v20, %v545_v53 }
 0x146   : > { %1293 = vmatmul.msk.bf16.gmra.mxu2 %vm345_vm0, %v1067_v45  ;;  %v935_v39 = vpop.f32.mrf.mxu0 }
 0x148   : > { %v718_v54 = vpop.f32.mrf.mxu1 }
 0x149   : > { %v596_v46 = vpop.f32.mrf.mxu2 }
 0x14b   : > { %1262 = vmatmul.msk.bf16.gmra.mxu3 %vm345_vm0, %v1499_v41 }
 0x14e   : > { %v548_v30 = vpop.f32.mrf.mxu3  ;;  %v938_v22 = vpop.f32.mrf.mxu0 }
 0x14f   : > { %v1627_v13 = vadd.f32 %v591_v25, %v548_v30 }
 0x150   : > { %v720_v59 = vpop.f32.mrf.mxu1 }
 0x151   : > { %v598_v48 = vpop.f32.mrf.mxu2 }
 0x156   : > { %v550_v50 = vpop.f32.mrf.mxu3  ;;  %1294 = vmatmul.msk.bf16.gmra.mxu2 %vm345_vm0, %v1069_v38 }
 0x157   : > { %v1631_v51 = vadd.f32 %v593_v10, %v550_v50 }
 0x159   : > { %v601_v52 = vpop.f32.mrf.mxu2 }
 0x15b   : > { %1263 = vmatmul.msk.bf16.gmra.mxu3 %vm345_vm0, %v1525_v2  ;;  %v723_v2 = vpop.f32.mrf.mxu1 }
 0x15e   : > { %v553_v55 = vpop.f32.mrf.mxu3 }
 0x15f   : > { %v1635_v41 = vadd.f32 %v596_v46, %v553_v55 }
 0x161   : > { %v603_v49 = vpop.f32.mrf.mxu2 }
 0x163   : > { %v725_v5 = vpop.f32.mrf.mxu1 }
 0x166   : > { %v555_v56 = vpop.f32.mrf.mxu3 }
 0x167   : > { %v1637_v57 = vadd.f32 %v598_v48, %v555_v56 }
 0x169   : > { %v801_v58 = vpop.f32.mrf.mxu2 }
 0x16b   : > { %1264 = vmatmul.msk.bf16.gmra.mxu3 %vm345_vm0, %v1558_v33  ;;  %v1647_v8 = vpop.f32.mrf.mxu1 }
 0x16e   : > { %v558_v60 = vpop.f32.mrf.mxu3 }
 0x16f   : > { %v1641_v62 = vadd.f32 %v601_v52, %v558_v60 }
 0x171   : > { %v803_v63 = vpop.f32.mrf.mxu2 }
 0x173   : > { %v1651_v11 = vpop.f32.mrf.mxu1 }
 0x176   : > { %v560_v0 = vpop.f32.mrf.mxu3 }
 0x177   : > { %v1643_v37 = vadd.f32 %v603_v49, %v560_v0 }
 0x179   : > { %v806_v3 = vpop.f32.mrf.mxu2 }
 0x17b   : > { %v1655_v18 = vpop.f32.mrf.mxu1 }
 0x17e   : > { %v648_v4 = vpop.f32.mrf.mxu3 }
 0x17f   : > { %v668_v32 = vadd.f32 %v648_v4, %v587_v28 }
 0x181   : > { %v1645_v6 = vpop.f32.mrf.mxu2  ;;  %v738_v35 = vadd.f32 %v718_v54, %v668_v32 }
 0x183   : > { %v1659_v21 = vpop.f32.mrf.mxu1  ;;  %v821_v40 = vadd.f32 %v801_v58, %v738_v35 }
 0x186   : > { %v650_v7 = vpop.f32.mrf.mxu3 }
 0x187   : > { %v669_v1 = vadd.f32 %v650_v7, %v589_v36 }
 0x189   : > { %v1649_v9 = vpop.f32.mrf.mxu2  ;;  %v739_v31 = vadd.f32 %v720_v59, %v669_v1  ;;  %v940_v59 = vpop.f32.mrf.mxu0 }
 0x18b   : > { %v1029_v29 = vpop.f32.mrf.mxu1  ;;  %v822_v30 = vadd.f32 %v803_v63, %v739_v31 }
 0x18e   : > { %v653_v33 = vpop.f32.mrf.mxu3 }
 0x18f   : > { %v670_v45 = vadd.f32 %v653_v33, %v1627_v13 }
 0x191   : > { %v1653_v14 = vpop.f32.mrf.mxu2  ;;  %v740_v50 = vadd.f32 %v723_v2, %v670_v45 }
 0x193   : > { %v1031_v42 = vpop.f32.mrf.mxu1  ;;  %v823_v56 = vadd.f32 %v806_v3, %v740_v50 }
 0x196   : > { %v655_v12 = vpop.f32.mrf.mxu3 }
 0x197   : > { %v671_v49 = vadd.f32 %v655_v12, %v1631_v51 }
 0x199   : > { %v1657_v19 = vpop.f32.mrf.mxu2  ;;  %v741_v60 = vadd.f32 %v725_v5, %v671_v49 }
 0x19b   : > { %v1034_v38 = vpop.f32.mrf.mxu1  ;;  %v824_v16 = vadd.f32 %v1645_v6, %v741_v60 }
 0x19e   : > { %v658_v15 = vpop.f32.mrf.mxu3 }
 0x19f   : > { %v672_v2 = vadd.f32 %v658_v15, %v1635_v41 }
 0x1a1   : > { %v1661_v24 = vpop.f32.mrf.mxu2  ;;  %v742_v12 = vadd.f32 %v1647_v8, %v672_v2 }
 0x1a3   : > { %v1036_v0 = vpop.f32.mrf.mxu1  ;;  %v825_v41 = vadd.f32 %v1649_v9, %v742_v12 }
 0x1a6   : > { %v660_v61 = vpop.f32.mrf.mxu3 }
 0x1a9   : > { %v1097_v34 = vpop.f32.mrf.mxu2 }
 0x1ab   : > { %v1039_v5 = vpop.f32.mrf.mxu1 }
 0x1ae   : > { %v1663_v26 = vpop.f32.mrf.mxu3 }
 0x1af   : > { %v674_v1 = vadd.f32 %v1663_v26, %v1641_v62 }
 0x1b1   : > { %v1099_v25 = vpop.f32.mrf.mxu2 }
 0x1b6   : > { %v1665_v23 = vpop.f32.mrf.mxu3 }
 0x1b7   : > { %v675_v31 = vadd.f32 %v1665_v23, %v1643_v37 }
 0x1b9   : > { %v1102_v53 = vpop.f32.mrf.mxu2 }
 0x1be   : > { %v863_v43 = vpop.f32.mrf.mxu3 }
 0x1bf   : > { %v883_v44 = vadd.f32 %v863_v43, %v821_v40 }
 0x1c1   : > { %v953_v10 = vadd.f32 %v933_v27, %v883_v44  ;;  %v1104_v7 = vpop.f32.mrf.mxu2  ;;  %v943_v27 = vpop.f32.mrf.mxu0  ;;  %v744_v44 = vadd.f32 %v1655_v18, %v674_v1 }
 0x1c3   : > { %v1049_v17 = vadd.f32 %v1029_v29, %v953_v10  ;;  %v673_v29 = vadd.f32 %v660_v61, %v1637_v57  ;;  %v1041_v61 = vpop.f32.mrf.mxu1  ;;  %v827_v62 = vadd.f32 %v1657_v19, %v744_v44 }
 0x1c5   : > { %v1117_v46 = vadd.f32 %v1097_v34, %v1049_v17  ;;  %v743_v35 = vadd.f32 %v1651_v11, %v673_v29 }
 0x1c6   : > { %v865_v47 = vpop.f32.mrf.mxu3 }
 0x1c7   : > { %1126 = vst.msk [vmem:[%s1671_s14] sm:$0xff] %vm1125_vm7, %v1117_v46  ;;  %v884_v48 = vadd.f32 %v865_v47, %v822_v30  ;;  %v826_v57 = vadd.f32 %v1653_v14, %v743_v35  ;;  %v745_v46 = vadd.f32 %v1659_v21, %v675_v31 }
 0x1c9   : > { %v954_v52 = vadd.f32 %v935_v39, %v884_v48  ;;  %v1107_v15 = vpop.f32.mrf.mxu2  ;;  %v945_v8 = vpop.f32.mrf.mxu0  ;;  %v828_v48 = vadd.f32 %v1661_v24, %v745_v46 }
 0x1cb   : > { %v1050_v55 = vadd.f32 %v1031_v42, %v954_v52  ;;  %v1044_v45 = vpop.f32.mrf.mxu1 }
 0x1cd   : > { %v1118_v54 = vadd.f32 %v1099_v25, %v1050_v55 }
 0x1ce   : > { %v868_v58 = vpop.f32.mrf.mxu3 }
 0x1cf   : > { %1127 = vst.msk [vmem:[%s1671_s14 + $0x8] sm:$0xff] %vm1125_vm7, %v1118_v54  ;;  %v885_v13 = vadd.f32 %v868_v58, %v823_v56 }
 0x1d1   : > { %v955_v63 = vadd.f32 %v938_v22, %v885_v13  ;;  %v1109_v43 = vpop.f32.mrf.mxu2  ;;  %v948_v26 = vpop.f32.mrf.mxu0 }
 0x1d3   : > { %v1051_v4 = vadd.f32 %v1034_v38, %v955_v63  ;;  %v1046_v50 = vpop.f32.mrf.mxu1 }
 0x1d5   : > { %v1119_v33 = vadd.f32 %v1102_v53, %v1051_v4 }
 0x1d6   : > { %v870_v51 = vpop.f32.mrf.mxu3 }
 0x1d7   : > { %1128 = vst.msk [vmem:[%s1671_s14 + $0x10] sm:$0xff] %vm1125_vm7, %v1119_v33  ;;  %v886_v3 = vadd.f32 %v870_v51, %v824_v16 }
 0x1d9   : > { %v956_v20 = vadd.f32 %v940_v59, %v886_v3  ;;  %v1112_v18 = vpop.f32.mrf.mxu2  ;;  %v950_v19 = vpop.f32.mrf.mxu0 }
 0x1db   : > { %v1052_v28 = vadd.f32 %v1036_v0, %v956_v20 }
 0x1dd   : > { %v1120_v32 = vadd.f32 %v1104_v7, %v1052_v28 }
 0x1de   : > { %v873_v34 = vpop.f32.mrf.mxu3 }
 0x1df   : > { %1129 = vst.msk [vmem:[%s1671_s14 + $0x18] sm:$0xff] %vm1125_vm7, %v1120_v32  ;;  %v887_v6 = vadd.f32 %v873_v34, %v825_v41 }
 0x1e1   : > { %v957_v36 = vadd.f32 %v943_v27, %v887_v6  ;;  %v1114_v53 = vpop.f32.mrf.mxu2 }
 0x1e3   : > { %v1053_v39 = vadd.f32 %v1039_v5, %v957_v36 }
 0x1e5   : > { %v1121_v40 = vadd.f32 %v1107_v15, %v1053_v39 }
 0x1e6   : > { %v875_v42 = vpop.f32.mrf.mxu3 }
 0x1e7   : > { %1130 = vst.msk [vmem:[%s1671_s14 + $0x20] sm:$0xff] %vm1125_vm7, %v1121_v40  ;;  %v888_v9 = vadd.f32 %v875_v42, %v826_v57 }
 0x1e9   : > { %v958_v25 = vadd.f32 %v945_v8, %v888_v9 }
 0x1eb   : > { %v1054_v11 = vadd.f32 %v1041_v61, %v958_v25 }
 0x1ed   : > { %v1122_v10 = vadd.f32 %v1109_v43, %v1054_v11 }
 0x1ee   : > { %v878_v17 = vpop.f32.mrf.mxu3 }
 0x1ef   : > { %1131 = vst.msk [vmem:[%s1671_s14 + $0x28] sm:$0xff] %vm1125_vm7, %v1122_v10  ;;  %v889_v14 = vadd.f32 %v878_v17, %v827_v62 }
 0x1f1   : > { %v959_v30 = vadd.f32 %v948_v26, %v889_v14 }
 0x1f3   : > { %v1055_v22 = vadd.f32 %v1044_v45, %v959_v30 }
 0x1f5   : > { %v1123_v47 = vadd.f32 %v1112_v18, %v1055_v22 }
 0x1f6   : > { %v880_v38 = vpop.f32.mrf.mxu3 }
 0x1f7   : > { %1132 = vst.msk [vmem:[%s1671_s14 + $0x30] sm:$0xff] %vm1125_vm7, %v1123_v47  ;;  %v890_v37 = vadd.f32 %v880_v38, %v828_v48 }
 0x1f9   : > { %v960_v23 = vadd.f32 %v950_v19, %v890_v37 }
 0x1fb   : > { %v1056_v52 = vadd.f32 %v1046_v50, %v960_v23 }
 0x1fd   : > { %v1124_v55 = vadd.f32 %v1114_v53, %v1056_v52 }
 0x1ff   : > { %1134 = vst.msk [vmem:[%s1671_s14 + $0x38] sm:$0xf] %vm1133_vm8, %v1124_v55 }
 0x200 PF: > { %s17_s24 = sadd.s32 1, %s1332_s24  }
 0x201   : > { %p14_p4 = scmp.ge.s32.totalorder %s17_s24, 4  }
 0x203   :  { %16 = sbr.rel (!%p14_p4) target bundleno = 1 (0x1), region = 86 }

// kernel: _lambda_.21
= control target key start
LH: loop header
LB: loop body
LE: loop exit
PB: predicated region body
PF: predicated region fallthrough
CT: control target
= control target key end

     0   :  { %vm85_vm0 = vcmask 261120   ;;  %vm127_vm1 = vcmask 130048   ;;  %s268_s1 = inlined_call_operand.vmem [shape: bf16[32,16], index: 1, kind: input, shape index: {}]   ;;  %s269_s0 = inlined_call_operand.vmem [shape: f32[64,32], index: 0, kind: input, shape index: {}]   ;;  %s270_s2 = inlined_call_operand.vmem [shape: f32[1,32], index: 2, kind: input, shape index: {}]   ;;  %s271_s3 = inlined_call_operand.vmem [shape: f32[1,32], index: 3, kind: input, shape index: {}]   ;;  %s272_s4 = inlined_call_operand.vmem [shape: f32[1,16], index: 4, kind: input, shape index: {}]   ;;  %s273_s5 = inlined_call_operand.vmem [shape: f32[64,16], index: 5, kind: output, shape index: {}]  }
   0x1   :  { %v153_v0 = vld [vmem:[%s268_s1 + $0x8] sm:$0xff]  ;;  %v152_v1 = vld [vmem:[%s268_s1] sm:$0xff]  ;;  %v23_v6 = vld [vmem:[%s269_s0 + $0x10] sm:$0xff] }
   0x2   :  { %v21_v2 = vld [vmem:[%s269_s0] sm:$0xff]  ;;  %v22_v3 = vld [vmem:[%s269_s0 + $0x8] sm:$0xff]  ;;  %104 = vmatpush.bf16.msra.mxu0 %v153_v0  ;;  %154 = vmatpush.bf16.msra.mxu1 %v153_v0  ;;  %v24_v9 = vld [vmem:[%s269_s0 + $0x18] sm:$0xff] }
   0x3   :  { %v160_v4 = vld [vmem:[%s270_s2] ss:$0 sm:$0xff]  ;;  %155 = vmatpush.bf16.msra.mxu2 %v153_v0  ;;  %156 = vmatpush.bf16.msra.mxu3 %v153_v0  ;;  %v26_v12 = vld [vmem:[%s269_s0 + $0x28] sm:$0xff]  ;;  %v27_v16 = vld [vmem:[%s269_s0 + $0x30] sm:$0xff] }
   0x4   :  { %v161_v5 = vld [vmem:[%s271_s3] ss:$0 sm:$0xff]  ;;  %v33_v7 = vmul.f32 %v160_v4, %v21_v2  ;;  %v34_v8 = vmul.f32 %v160_v4, %v22_v3  ;;  %v35_v10 = vmul.f32 %v160_v4, %v23_v6  ;;  %v36_v13 = vmul.f32 %v160_v4, %v24_v9  ;;  %v28_v17 = vld [vmem:[%s269_s0 + $0x38] sm:$0xff] }
   0x5   :  { %v25_v11 = vld [vmem:[%s269_s0 + $0x20] sm:$0xff]  ;;  %v38_v15 = vmul.f32 %v160_v4, %v26_v12  ;;  %v39_v21 = vmul.f32 %v160_v4, %v27_v16  ;;  %v40_v28 = vmul.f32 %v160_v4, %v28_v17 }
   0x6   :  { %v37_v14 = vmul.f32 %v160_v4, %v25_v11  ;;  %v45_v18 = vadd.f32 %v161_v5, %v33_v7  ;;  %v46_v19 = vadd.f32 %v161_v5, %v34_v8  ;;  %v47_v20 = vadd.f32 %v161_v5, %v35_v10  ;;  %105 = vmatpush.bf16.msra.mxu0 %v152_v1  ;;  %v162_v40 = vld [vmem:[%s272_s4] ss:$0 sm:$0xff] }
   0x7   :  { %157 = vmatpush.bf16.msra.mxu1 %v152_v1  ;;  %v48_v22 = vadd.f32 %v161_v5, %v36_v13  ;;  %v50_v24 = vadd.f32 %v161_v5, %v38_v15  ;;  %158 = vmatpush.bf16.msra.mxu2 %v152_v1  ;;  %v51_v32 = vadd.f32 %v161_v5, %v39_v21 }
   0x8   :  { %v49_v23 = vadd.f32 %v161_v5, %v37_v14  ;;  %159 = vmatpush.bf16.msra.mxu3 %v152_v1  ;;  %v53_v25 = vmax.f32 %v45_v18, 0.0  ;;  %v54_v26 = vmax.f32 %v46_v19, 0.0  ;;  %v55_v27 = vmax.f32 %v47_v20, 0.0 }
   0x9   :  { %v56_v29 = vmax.f32 %v48_v22, 0.0  ;;  %v58_v31 = vmax.f32 %v50_v24, 0.0  ;;  %v52_v34 = vadd.f32 %v161_v5, %v40_v28  ;;  %v59_v37 = vmax.f32 %v51_v32, 0.0 }
   0xa   :  { %v57_v30 = vmax.f32 %v49_v23, 0.0  ;;  %v61_v33 = vpack.c.bf16 %v54_v26, %v53_v25 }
   0xb   :  { %v62_v35 = vpack.c.bf16 %v56_v29, %v55_v27  ;;  %v60_v38 = vmax.f32 %v52_v34, 0.0 }
   0xc   :  { %v63_v36 = vpack.c.bf16 %v58_v31, %v57_v30  ;;  %148 = vmatmul.msk.bf16.vlgmr.msra.gmra.mxu0 %vm85_vm0, %v61_v33 }
   0xd   :  { %149 = vmatmul.msk.bf16.vlgmr.msra.gmra.mxu1 %vm85_vm0, %v62_v35  ;;  %v64_v39 = vpack.c.bf16 %v60_v38, %v59_v37 }
   0xe   :  { %150 = vmatmul.msk.bf16.vlgmr.msra.gmra.mxu2 %vm85_vm0, %v63_v36 }
   0xf   :  { %151 = vmatmul.msk.bf16.vlgmr.msra.gmra.mxu3 %vm85_vm0, %v64_v39 }
  0x89   :  { %v107_v41 = vpop.f32.mrf.mxu0 }
  0x8a   :  { %v108_v42 = vadd.f32 %v162_v40, %v107_v41  ;;  %v112_v43 = vpop.f32.mrf.mxu1 }
  0x8b   :  { %v113_v44 = vadd.f32 %v162_v40, %v112_v43 }
  0x8c   :  { %128 = vst.msk [vmem:[%s273_s5] sm:$0xff] %vm127_vm1, %v108_v42 }
  0x8d   :  { %130 = vst.msk [vmem:[%s273_s5 + $0x10] sm:$0xff] %vm127_vm1, %v113_v44 }
  0x91   :  { %v117_v45 = vpop.f32.mrf.mxu2  ;;  %v109_v47 = vpop.f32.mrf.mxu0 }
  0x92   :  { %v118_v46 = vadd.f32 %v162_v40, %v117_v45  ;;  %v110_v48 = vadd.f32 %v162_v40, %v109_v47  ;;  %v114_v49 = vpop.f32.mrf.mxu1  ;;  %v122_v50 = vpop.f32.mrf.mxu3 }
  0x93   :  { %v115_v51 = vadd.f32 %v162_v40, %v114_v49  ;;  %v123_v52 = vadd.f32 %v162_v40, %v122_v50 }
  0x94   :  { %132 = vst.msk [vmem:[%s273_s5 + $0x20] sm:$0xff] %vm127_vm1, %v118_v46 }
  0x95   :  { %129 = vst.msk [vmem:[%s273_s5 + $0x8] sm:$0xff] %vm127_vm1, %v110_v48 }
  0x96   :  { %131 = vst.msk [vmem:[%s273_s5 + $0x18] sm:$0xff] %vm127_vm1, %v115_v51 }
  0x97   :  { %134 = vst.msk [vmem:[%s273_s5 + $0x30] sm:$0xff] %vm127_vm1, %v123_v52 }
  0x99   :  { %v119_v53 = vpop.f32.mrf.mxu2 }
  0x9a   :  { %v120_v54 = vadd.f32 %v162_v40, %v119_v53  ;;  %v124_v55 = vpop.f32.mrf.mxu3 }
  0x9b   :  { %v125_v56 = vadd.f32 %v162_v40, %v124_v55 }
  0x9c   :  { %133 = vst.msk [vmem:[%s273_s5 + $0x28] sm:$0xff] %vm127_vm1, %v120_v54 }
  0x9d   :  { %135 = vst.msk [vmem:[%s273_s5 + $0x38] sm:$0xff] %vm127_vm1, %v125_v56 }

// kernel: _lambda_.22
= control target key start
LH: loop header
LB: loop body
LE: loop exit
PB: predicated region body
PF: predicated region fallthrough
CT: control target
= control target key end

     0   :  { %vm65_vm0 = vcmask 1041409   ;;  %vm68_vm1 = vcmask 1042434   ;;  %vm71_vm2 = vcmask 1043459   ;;  %vm74_vm3 = vcmask 1044484   ;;  %s130_s0 = inlined_call_operand.vmem [shape: f32[8,2,64], index: 0, kind: input, shape index: {}]   ;;  %s131_s1 = inlined_call_operand.vmem [shape: f32[8,64], index: 1, kind: output, shape index: {}]  }
   0x1   :  { %v8_v0 = vld [vmem:[%s130_s0] sm:$0x3]  ;;  %v9_v1 = vld [vmem:[%s130_s0 + $0x2] sm:$0x3]  ;;  %v10_v2 = vld [vmem:[%s130_s0 + $0x4] sm:$0x3] }
   0x2   :  { %v11_v3 = vld [vmem:[%s130_s0 + $0x6] sm:$0x3]  ;;  %v12_v4 = vld [vmem:[%s130_s0 + $0x8] sm:$0x3]  ;;  %v13_v5 = vld [vmem:[%s130_s0 + $0xa] sm:$0x3] }
   0x3   :  { %v14_v6 = vld [vmem:[%s130_s0 + $0xc] sm:$0x3]  ;;  %v15_v7 = vld [vmem:[%s130_s0 + $0xe] sm:$0x3]  ;;  %v24_v8 = vrot.slane %v8_v0, 1  ;;  %v25_v9 = vrot.slane %v9_v1, 1 }
   0x4   :  { %v26_v10 = vrot.slane %v10_v2, 1  ;;  %v27_v11 = vrot.slane %v11_v3, 1  ;;  %v28_v12 = vrot.slane %v12_v4, 1  ;;  %v29_v13 = vrot.slane %v13_v5, 1 }
   0x5   :  { %v30_v14 = vrot.slane %v14_v6, 1  ;;  %v31_v15 = vrot.slane %v15_v7, 1  ;;  %v40_v16 = vadd.f32 %v24_v8, %v8_v0  ;;  %v41_v17 = vadd.f32 %v25_v9, %v9_v1 }
   0x6   :  { %v42_v18 = vadd.f32 %v26_v10, %v10_v2  ;;  %v43_v19 = vadd.f32 %v27_v11, %v11_v3  ;;  %v44_v20 = vadd.f32 %v28_v12, %v12_v4  ;;  %v45_v21 = vadd.f32 %v29_v13, %v13_v5 }
   0x7   :  { %v46_v22 = vadd.f32 %v30_v14, %v14_v6  ;;  %v47_v23 = vadd.f32 %v31_v15, %v15_v7  ;;  %v48_v24 = vmul.f32 0.5, %v40_v16  ;;  %v49_v25 = vmul.f32 0.5, %v41_v17 }
   0x8   :  { %v50_v26 = vmul.f32 0.5, %v42_v18  ;;  %v51_v27 = vmul.f32 0.5, %v43_v19  ;;  %v52_v28 = vmul.f32 0.5, %v44_v20  ;;  %v53_v29 = vmul.f32 0.5, %v45_v21 }
   0x9   :  { %v54_v30 = vmul.f32 0.5, %v46_v22  ;;  %v55_v31 = vmul.f32 0.5, %v47_v23  ;;  %v64_v32 = vrot.slane %v49_v25, 7  ;;  %vm77_vm4 = vcmask 1045509  }
   0xa   :  { %v67_v33 = vrot.slane %v50_v26, 6  ;;  %v70_v34 = vrot.slane %v51_v27, 5  ;;  %v73_v35 = vrot.slane %v52_v28, 4  ;;  %v76_v37 = vrot.slane %v53_v29, 3 }
   0xb   :  { %v66_v36 = vsel %vm65_vm0, %v64_v32, %v48_v24  ;;  %v79_v39 = vrot.slane %v54_v30, 2  ;;  %vm80_vm5 = vcmask 1046534   ;;  %v82_v41 = vrot.slane %v55_v31, 1 }
   0xc   :  { %v69_v38 = vsel %vm68_vm1, %v67_v33, %v66_v36  ;;  %vm83_vm6 = vcmask 1047559   ;;  %vm86_vm7 = vcmask 523264  }
   0xd   :  { %v72_v40 = vsel %vm71_vm2, %v70_v34, %v69_v38 }
   0xe   :  { %v75_v42 = vsel %vm74_vm3, %v73_v35, %v72_v40 }
   0xf   :  { %v78_v43 = vsel %vm77_vm4, %v76_v37, %v75_v42 }
  0x10   :  { %v81_v44 = vsel %vm80_vm5, %v79_v39, %v78_v43 }
  0x11   :  { %v84_v45 = vsel %vm83_vm6, %v82_v41, %v81_v44 }
  0x12   :  { %87 = vst.msk [vmem:[%s131_s1] sm:$0xff] %vm86_vm7, %v84_v45 }

// kernel: _lambda_.20
= control target key start
LH: loop header
LB: loop body
LE: loop exit
PB: predicated region body
PF: predicated region fallthrough
CT: control target
= control target key end

     0   :  { %s1384_s24 = smov 0   ;;  %s1714_s0 = inlined_call_operand.vmem [shape: f32[2,74,24], index: 0, kind: input, shape index: {}]   ;;  %s1715_s1 = inlined_call_operand.vmem [shape: bf16[24,16], index: 1, kind: input, shape index: {}]   ;;  %s1716_s2 = inlined_call_operand.vmem [shape: f32[1,24], index: 2, kind: input, shape index: {}]   ;;  %s1717_s3 = inlined_call_operand.vmem [shape: f32[1,24], index: 3, kind: input, shape index: {}]   ;;  %s1718_s4 = inlined_call_operand.vmem [shape: f32[1,16], index: 4, kind: input, shape index: {}]   ;;  %s1719_s5 = inlined_call_operand.vmem [shape: f32[74,1], index: 5, kind: input, shape index: {}]   ;;  %s1720_s6 = inlined_call_operand.vmem [shape: bf16[9,16,8], index: 6, kind: input, shape index: {}]   ;;  %s1721_s7 = inlined_call_operand.vmem [shape: f32[2,60,8], index: 7, kind: output, shape index: {}]  }
   0x1 LB: > { %s1199_s25 = sadd.s32 4294967295, %s1341_s24   ;;  %p1203_p0 = scmp.ge.s32.totalorder %s1341_s24, 1  ;;  %s1341_s24 = sphi %s1384_s24, %s17_s24  }
   0x2   : > { %p237_p1 = scmp.lt.s32.totalorder %s1341_s24, 3 }
   0x4   : > { %p238_p2 = pnand %p1203_p0, %p237_p1 }
   0x5   : > { %p269_p3 = scmp.lt.s32.totalorder (!%p238_p2), %s1199_s25, 1 }
   0x6   : > { %241 = sbr.rel (%p238_p2) target bundleno = 513 (0x201), region = 48 }
   0xb   : > { %v335_v0 = vld [vmem:[%s1715_s1 + $0x8] sm:$0xf]  ;;  %v415_v1 = vld [vmem:[%s1719_s5 + $0x10] sm:$0xff]  ;;  %v1343_v3 = vmov 0   ;;  %vm365_vm0 = vcmask 1043456   ;;  %v417_v4 = vld [vmem:[%s1719_s5 + $0x20] sm:$0xff] }
   0xc   : > { %v345_v2 = vunpack.c.l.b16 %v335_v0  ;;  %1329 = vset.pattern.permute.xlu0 %v1343_v3  ;;  %1330 = vset.pattern.permute.xlu1 %v1343_v3  ;;  %s1723_s25 = smov (!%p269_p3, %s1199_s25), 1  ;;  %v1332_v7 = vld [vmem:[%s1716_s2] ss:$0 sm:$0xff]  ;;  %v416_v10 = vld [vmem:[%s1719_s5 + $0x18] sm:$0xff]  ;;  %v418_v13 = vld [vmem:[%s1719_s5 + $0x28] sm:$0xff]  ;;  %vm349_vm1 = vcmask 195584  }
   0xd   : > { %435 = vperm.xlu0 %1329, %v415_v1   ;;  %1331 = vset.pattern.permute.xlu2 %v1343_v3  ;;  %s1319_s9 = smul.u32 80, %s1723_s25  ;;  %v1307_v8 = vld [vmem:[%s1715_s1] sm:$0xff]  ;;  %v414_v24 = vld [vmem:[%s1719_s5 + $0x8] sm:$0xff]  ;;  %v419_v55 = vld [vmem:[%s1719_s5 + $0x30] sm:$0xff]  ;;  %vm530_vm2 = vcmask 130048   ;;  %vm622_vm3 = vcmask 1046528  }
   0xe   : > { %v347_v5 = vpack.c.b16 %v345_v2, %v345_v2  ;;  %445 = vperm.xlu1 %1330, %v417_v4   ;;  %v1333_v9 = vld [vmem:[%s1717_s3] ss:$0 sm:$0xff]  ;;  %v422_v29 = vld [vmem:[%s1719_s5 + $0x48] sm:$0x3]  ;;  %455 = vperm.xlu2 %1331, %v419_v55   ;;  %v420_v58 = vld [vmem:[%s1719_s5 + $0x38] sm:$0xff]  ;;  %vm907_vm5 = vcmask 1045504  }
   0xf   : > { %s1413_s16 = scalar_lea.vmem %s1714_s0, %s1319_s9  ;;  %v413_v23 = vld [vmem:[%s1719_s5] sm:$0xff]  ;;  %v1309_v3 = vld [vmem:[%s1720_s6 + $0x8] sm:$0xff]  ;;  %vm492_vm4 = vsmask.f32 7424  ;;  %vm690_vm6 = vcmask 1044480   ;;  %s1306_s13 = sshll.u32 %s1723_s25, 6 }
  0x10   : > { %v367_v6 = vsel %vm365_vm0, %v347_v5, 0  ;;  %v280_v11 = vld [vmem:[%s1413_s16] sm:$0xff]  ;;  %v281_v12 = vld [vmem:[%s1413_s16 + $0x8] sm:$0xff]  ;;  %v282_v20 = vld [vmem:[%s1413_s16 + $0x10] sm:$0xff]  ;;  %550 = vmatpush.bf16.msra.mxu1 %v1309_v3  ;;  %1317 = vmatpush.bf16.msra.mxu3 %v1309_v3  ;;  %vm758_vm7 = vsmask.f32 4352 }
  0x11   : > { %375 = vmatpush.bf16.msra.mxu0 %v367_v6  ;;  %v294_v14 = vmul.f32 %v1332_v7, %v280_v11  ;;  %v295_v15 = vmul.f32 %v1332_v7, %v281_v12  ;;  %v283_v21 = vld [vmem:[%s1413_s16 + $0x18] sm:$0xff]  ;;  %v296_v25 = vmul.f32 %v1332_v7, %v282_v20  ;;  %v284_v33 = vld [vmem:[%s1413_s16 + $0x20] sm:$0xff]  ;;  %v285_v34 = vld [vmem:[%s1413_s16 + $0x28] sm:$0xff]  ;;  %vm974_vm8 = vsmask.f32 5376 }
  0x12   : > { %v297_v26 = vmul.f32 %v1332_v7, %v283_v21  ;;  %v298_v35 = vmul.f32 %v1332_v7, %v284_v33  ;;  %v299_v36 = vmul.f32 %v1332_v7, %v285_v34  ;;  %v288_v37 = vld [vmem:[%s1413_s16 + $0x40] sm:$0xff]  ;;  %v289_v38 = vld [vmem:[%s1413_s16 + $0x48] sm:$0x3]  ;;  %v286_v51 = vld [vmem:[%s1413_s16 + $0x30] sm:$0xff]  ;;  %vm1134_vm9 = vcmask 64512  }
  0x13   : > { %v308_v16 = vadd.f32 %v1333_v9, %v294_v14  ;;  %v309_v17 = vadd.f32 %v1333_v9, %v295_v15  ;;  %v310_v27 = vadd.f32 %v1333_v9, %v296_v25  ;;  %v302_v39 = vmul.f32 %v1332_v7, %v288_v37  ;;  %v287_v52 = vld [vmem:[%s1413_s16 + $0x38] sm:$0xff]  ;;  %v421_v62 = vld [vmem:[%s1719_s5 + $0x40] sm:$0xff]  ;;  %v1314_v5 = vld [vmem:[%s1720_s6 + $0x30] sm:$0xff]  ;;  %s1679_s16 = scalar_lea.vmem %s1721_s7, %s1306_s13 }
  0x14   : > { %v311_v28 = vadd.f32 %v1333_v9, %v297_v26  ;;  %v303_v40 = vmul.f32 %v1332_v7, %v289_v38  ;;  %v312_v43 = vadd.f32 %v1333_v9, %v298_v35  ;;  %v313_v44 = vadd.f32 %v1333_v9, %v299_v36  ;;  %v1308_v0 = vld [vmem:[%s1720_s6] sm:$0xff]  ;;  %v1310_v20 = vld [vmem:[%s1720_s6 + $0x10] sm:$0xff] }
  0x15   : > { %376 = vmatpush.bf16.msra.mxu0 %v1307_v8  ;;  %440 = vperm.xlu0 %1329, %v416_v10   ;;  %v318_v18 = vmax.f32 %v308_v16, 0.0  ;;  %v319_v19 = vmax.f32 %v309_v17, 0.0  ;;  %v320_v30 = vmax.f32 %v310_v27, 0.0  ;;  %v316_v41 = vadd.f32 %v1333_v9, %v302_v39  ;;  %v1469_v8 = vld [vmem:[%s1718_s4] ss:$0 sm:$0xff] }
  0x16   : > { %450 = vperm.xlu1 %1330, %v418_v13   ;;  %v321_v31 = vmax.f32 %v311_v28, 0.0  ;;  %v317_v42 = vadd.f32 %v1333_v9, %v303_v40  ;;  %v322_v48 = vmax.f32 %v312_v43, 0.0  ;;  %v323_v49 = vmax.f32 %v313_v44, 0.0  ;;  %460 = vperm.xlu2 %1331, %v420_v58   ;;  %v1311_v40 = vld [vmem:[%s1720_s6 + $0x18] sm:$0xff] }
  0x17   : > { %v328_v22 = vpack.c.bf16 %v319_v19, %v318_v18  ;;  %v326_v45 = vmax.f32 %v316_v41, 0.0  ;;  %v300_v53 = vmul.f32 %v1332_v7, %v286_v51  ;;  %v301_v54 = vmul.f32 %v1332_v7, %v287_v52  ;;  %1318 = vmatpush.bf16.msra.mxu2 %v1308_v0  ;;  %593 = vmatpush.bf16.msrb.mxu1 %v1308_v0 }
  0x18   : > { %v329_v32 = vpack.c.bf16 %v321_v31, %v320_v30  ;;  %v327_v46 = vmax.f32 %v317_v42, 0.0  ;;  %v330_v50 = vpack.c.bf16 %v323_v49, %v322_v48  ;;  %655 = vmatpush.bf16.msrb.mxu3 %v1310_v20  ;;  %v1312_v30 = vld [vmem:[%s1720_s6 + $0x20] sm:$0xff]  ;;  %vm1142_vm10 = vcmask 60416  }
  0x19   : > { %1211 = vmatmul.msk.bf16.vlgmr.msra.gmra.mxu0 %vm349_vm1, %v328_v22  ;;  %v314_v56 = vadd.f32 %v1333_v9, %v300_v53  ;;  %v315_v57 = vadd.f32 %v1333_v9, %v301_v54 }
  0x1a   : > { %v332_v47 = vpack.c.bf16 %v327_v46, %v326_v45  ;;  %940 = vmatpush.bf16.msrb.mxu0 %v1314_v5 }
  0x1b   : > { %v324_v59 = vmax.f32 %v314_v56, 0.0  ;;  %v325_v60 = vmax.f32 %v315_v57, 0.0  ;;  %808 = vmatpush.bf16.msrb.mxu2 %v1312_v30  ;;  %v1313_v30 = vld [vmem:[%s1720_s6 + $0x28] sm:$0xff] }
  0x1d   : > { %425 = vperm.xlu0 %1329, %v413_v23   ;;  %v331_v61 = vpack.c.bf16 %v325_v60, %v324_v59 }
  0x1e   : > { %430 = vperm.xlu1 %1330, %v414_v24   ;;  %465 = vperm.xlu2 %1331, %v421_v62  }
  0x25   : > { %470 = vperm.xlu0 %1329, %v422_v29  }
  0x29   : > { %1212 = vmatmul.msk.bf16.gmra.mxu0 %vm349_vm1, %v329_v32 }
  0x39   : > { %1213 = vmatmul.msk.bf16.gmra.mxu0 %vm349_vm1, %v330_v50 }
  0x49   : > { %1214 = vmatmul.msk.bf16.gmra.mxu0 %vm349_vm1, %v331_v61 }
  0x59   : > { %1215 = vmatmul.msk.bf16.gmra.mxu0 %vm349_vm1, %v332_v47 }
  0x68   : > { %v456_v54 = vpop.permute.xlu2 %455 }
  0x7f   : > { %v436_v1 = vpop.permute.xlu0 %435 }
  0x80   : > { %v446_v63 = vpop.permute.xlu1 %445 }
  0x87   : > { %v441_v6 = vpop.permute.xlu0 %440 }
  0x88   : > { %v451_v4 = vpop.permute.xlu1 %450 }
  0x8f   : > { %v426_v15 = vpop.permute.xlu0 %425 }
  0x90   : > { %v431_v12 = vpop.permute.xlu1 %430 }
  0x96   : > { %v378_v2 = vpop.f32.mrf.mxu0 }
  0x97   : > { %v379_v10 = vadd.f32 %v1469_v8, %v378_v2 }
  0x99   : > { %v403_v14 = vmax.f32 %v379_v10, 0.0 }
  0x9b   : > { %v473_v17 = vmul.f32 %v426_v15, %v403_v14 }
  0x9e   : > { %v380_v7 = vpop.f32.mrf.mxu0 }
  0x9f   : > { %v381_v9 = vadd.f32 %v1469_v8, %v380_v7 }
  0xa1   : > { %v404_v11 = vmax.f32 %v381_v9, 0.0 }
  0xa3   : > { %v474_v16 = vmul.f32 %v431_v12, %v404_v11 }
  0xa5   : > { %v1474_v19 = vpack.c.bf16 %v474_v16, %v473_v17 }
  0xa6   : > { %v383_v13 = vpop.f32.mrf.mxu0 }
  0xa7   : > { %v384_v18 = vadd.f32 %v1469_v8, %v383_v13  ;;  %v496_v25 = vshll.u32 %v1474_v19, 16  ;;  %v494_v33 = vshrl.u32 %v1474_v19, 16  ;;  %v623_v35 = vrot.slane %v1474_v19, 1 }
  0xa9   : > { %v405_v22 = vmax.f32 %v384_v18, 0.0  ;;  %v498_v29 = vrot.slane %v496_v25, 1 }
  0xab   : > { %v475_v26 = vmul.f32 %v436_v1, %v405_v22  ;;  %v499_v38 = vor.u32 %v498_v29, %v494_v33  ;;  %v691_v22 = vrot.slane %v1474_v19, 3 }
  0xad   : > { %v1505_v42 = vpack.c.bf16 %v475_v26, %v474_v16 }
  0xae   : > { %v385_v21 = vpop.f32.mrf.mxu0 }
  0xaf   : > { %v386_v23 = vadd.f32 %v1469_v8, %v385_v21  ;;  %v908_v48 = vrot.slane %v1505_v42, 2 }
  0xb1   : > { %v406_v24 = vmax.f32 %v386_v23, 0.0 }
  0xb3   : > { %v476_v27 = vmul.f32 %v441_v6, %v406_v24  ;;  %v461_v6 = vpop.permute.xlu2 %460 }
  0xb5   : > { %v1481_v28 = vpack.c.bf16 %v476_v27, %v475_v26 }
  0xb6   : > { %v388_v31 = vpop.f32.mrf.mxu0 }
  0xb7   : > { %v389_v32 = vadd.f32 %v1469_v8, %v388_v31  ;;  %1231 = vmatmul.msk.bf16.vlgmr.msra.gmra.mxu2 %vm530_vm2, %v1481_v28  ;;  %v501_v34 = vshll.u32 %v1481_v28, 16  ;;  %v624_v36 = vrot.slane %v1481_v28, 1  ;;  %v505_v57 = vshrl.u32 %v1481_v28, 16  ;;  %v1316_v31 = vld [vmem:[%s1720_s6 + $0x40] sm:$0xff] }
  0xb8   : > { %v692_v16 = vrot.slane %v1481_v28, 3  ;;  %1104 = vmatpush.bf16.msra.mxu2 %v1316_v31 }
  0xb9   : > { %v407_v37 = vmax.f32 %v389_v32, 0.0  ;;  %v503_v39 = vrot.slane %v501_v34, 1  ;;  %v1503_v41 = vsel %vm622_vm3, %v623_v35, %v624_v36  ;;  %v1315_v32 = vld [vmem:[%s1720_s6 + $0x38] sm:$0xff] }
  0xba   : > { %v693_v29 = vsel %vm690_vm6, %v691_v22, %v692_v16  ;;  %v1070_v22 = vrot.slane %v1505_v42, 3 }
  0xbb   : > { %v477_v43 = vmul.f32 %v446_v63, %v407_v37  ;;  %v504_v44 = vsel %vm492_vm4, %v499_v38, %v503_v39  ;;  %v507_v61 = vor.u32 %v505_v57, %v503_v39  ;;  %v466_v23 = vpop.permute.xlu2 %465  ;;  %v763_v37 = vrot.slane %v501_v34, 4 }
  0xbc   : > { %1222 = vmatmul.msk.bf16.vlgmr.msra.gmra.mxu1 %vm530_vm2, %v504_v44  ;;  %v759_v39 = vrot.slane %v494_v33, 3 }
  0xbd   : > { %v1509_v45 = vpack.c.bf16 %v477_v43, %v476_v27  ;;  %725 = vmatpush.bf16.msra.mxu1 %v1311_v40  ;;  %v760_v40 = vrot.slane %v496_v25, 4 }
  0xbe   : > { %v390_v46 = vpop.f32.mrf.mxu0 }
  0xbf   : > { %v391_v47 = vadd.f32 %v1469_v8, %v390_v46  ;;  %v909_v49 = vrot.slane %v1509_v45, 2  ;;  %v761_v46 = vor.u32 %v760_v40, %v759_v39  ;;  %v471_v40 = vpop.permute.xlu0 %470 }
  0xc1   : > { %v408_v50 = vmax.f32 %v391_v47, 0.0  ;;  %v910_v51 = vsel %vm907_vm5, %v908_v48, %v909_v49 }
  0xc2   : > { %1280 = vmatmul.msk.bf16.vlgmr.msrb.gmra.mxu0 %vm530_vm2, %v910_v51 }
  0xc3   : > { %v478_v52 = vmul.f32 %v451_v4, %v408_v50 }
  0xc5   : > { %v1516_v53 = vpack.c.bf16 %v478_v52, %v477_v43 }
  0xc6   : > { %v393_v55 = vpop.f32.mrf.mxu0 }
  0xc7   : > { %v394_v56 = vadd.f32 %v1469_v8, %v393_v55  ;;  %1232 = vmatmul.msk.bf16.gmra.mxu2 %vm530_vm2, %v1516_v53  ;;  %v509_v58 = vshll.u32 %v1516_v53, 16  ;;  %v626_v59 = vrot.slane %v1516_v53, 1  ;;  %v513_v14 = vshrl.u32 %v1516_v53, 16 }
  0xc8   : > { %v694_v34 = vrot.slane %v1516_v53, 3 }
  0xc9   : > { %v409_v60 = vmax.f32 %v394_v56, 0.0  ;;  %v511_v62 = vrot.slane %v509_v58, 1  ;;  %v1527_v63 = vsel %vm622_vm3, %v624_v36, %v626_v59  ;;  %v762_v36 = vrot.slane %v505_v57, 3 }
  0xca   : > { %v695_v33 = vsel %vm690_vm6, %v692_v16, %v694_v34  ;;  %v767_v25 = vrot.slane %v509_v58, 4 }
  0xcb   : > { %v479_v0 = vmul.f32 %v456_v54, %v409_v60  ;;  %v512_v1 = vsel %vm492_vm4, %v507_v61, %v511_v62  ;;  %v515_v20 = vor.u32 %v513_v14, %v511_v62  ;;  %v764_v44 = vor.u32 %v763_v37, %v762_v36 }
  0xcc   : > { %1223 = vmatmul.msk.bf16.vlgmr.msra.gmra.mxu3 %vm530_vm2, %v512_v1  ;;  %1230 = vmatmul.msk.bf16.vlgmr.msrb.gmra.mxu1 %vm530_vm2, %v1474_v19  ;;  %v766_v19 = vrot.slane %v513_v14, 3  ;;  %v985_v1 = vshll.u32 %v1509_v45, 16 }
  0xcd   : > { %v1533_v2 = vpack.c.bf16 %v479_v0, %v478_v52  ;;  %870 = vmatpush.bf16.msra.mxu3 %v1313_v30  ;;  %1036 = vmatpush.bf16.msrb.mxu1 %v1315_v32  ;;  %v765_v28 = vsel %vm758_vm7, %v761_v46, %v764_v44 }
  0xce   : > { %v395_v3 = vpop.f32.mrf.mxu0 }
  0xcf   : > { %v396_v4 = vadd.f32 %v1469_v8, %v395_v3  ;;  %v911_v5 = vrot.slane %v1533_v2, 2  ;;  %v975_v3 = vshrl.u32 %v1505_v42, 16  ;;  %v993_v16 = vshll.u32 %v1533_v2, 16 }
  0xd0   : > { %v1073_v31 = vrot.slane %v1533_v2, 3 }
  0xd1   : > { %v410_v7 = vmax.f32 %v396_v4, 0.0  ;;  %v912_v9 = vsel %vm907_vm5, %v909_v49, %v911_v5  ;;  %v768_v49 = vor.u32 %v767_v25, %v766_v19  ;;  %v978_v4 = vshll.u32 %v1505_v42, 16 }
  0xd2   : > { %1281 = vmatmul.msk.bf16.gmra.mxu0 %vm530_vm2, %v912_v9  ;;  %v977_v9 = vrot.slane %v975_v3, 2 }
  0xd3   : > { %v480_v10 = vmul.f32 %v461_v6, %v410_v7  ;;  %v769_v50 = vsel %vm758_vm7, %v764_v44, %v768_v49  ;;  %v987_v7 = vrot.slane %v985_v1, 3 }
  0xd5   : > { %v1539_v11 = vpack.c.bf16 %v480_v10, %v479_v0  ;;  %v982_v0 = vshrl.u32 %v1509_v45, 16 }
  0xd6   : > { %v398_v12 = vpop.f32.mrf.mxu0 }
  0xd7   : > { %v399_v13 = vadd.f32 %v1469_v8, %v398_v12  ;;  %1233 = vmatmul.msk.bf16.gmra.mxu2 %vm530_vm2, %v1539_v11  ;;  %v517_v15 = vshll.u32 %v1539_v11, 16  ;;  %v628_v17 = vrot.slane %v1539_v11, 1  ;;  %v521_v47 = vshrl.u32 %v1539_v11, 16 }
  0xd8   : > { %v696_v51 = vrot.slane %v1539_v11, 3  ;;  %v984_v6 = vrot.slane %v982_v0, 2 }
  0xd9   : > { %v411_v18 = vmax.f32 %v399_v13, 0.0  ;;  %v519_v21 = vrot.slane %v517_v15, 1  ;;  %v1552_v24 = vsel %vm622_vm3, %v626_v59, %v628_v17  ;;  %v770_v54 = vrot.slane %v521_v47, 3 }
  0xda   : > { %v697_v52 = vsel %vm690_vm6, %v694_v34, %v696_v51  ;;  %v771_v55 = vrot.slane %v517_v15, 4  ;;  %v990_v15 = vshrl.u32 %v1533_v2, 16 }
  0xdb   : > { %v481_v26 = vmul.f32 %v466_v23, %v411_v18  ;;  %v520_v27 = vsel %vm492_vm4, %v515_v20, %v519_v21  ;;  %v523_v48 = vor.u32 %v521_v47, %v519_v21  ;;  %v1071_v18 = vrot.slane %v1509_v45, 3 }
  0xdc   : > { %1224 = vmatmul.msk.bf16.gmra.mxu3 %vm530_vm2, %v520_v27  ;;  %1250 = vmatmul.msk.bf16.vlgmr.msra.gmra.mxu1 %vm530_vm2, %v693_v29  ;;  %v772_v53 = vor.u32 %v771_v55, %v770_v54  ;;  %v992_v20 = vrot.slane %v990_v15, 2  ;;  %v995_v21 = vrot.slane %v993_v16, 3 }
  0xdd   : > { %v1567_v35 = vpack.c.bf16 %v481_v26, %v480_v10  ;;  %v685_v56 = vpack.c.bf16 %v481_v26, %v481_v26  ;;  %v980_v10 = vrot.slane %v978_v4, 3  ;;  %v1072_v23 = vsel %vm690_vm6, %v1070_v22, %v1071_v18 }
  0xde   : > { %v773_v57 = vsel %vm758_vm7, %v768_v49, %v772_v53  ;;  %v996_v26 = vor.u32 %v995_v21, %v992_v20  ;;  %v400_v30 = vpop.f32.mrf.mxu0 }
  0xdf   : > { %v913_v38 = vrot.slane %v1567_v35, 2  ;;  %v698_v58 = vrot.slane %v685_v56, 3  ;;  %v775_v59 = vshrl.u32 %v685_v56, 16  ;;  %v778_v60 = vshll.u32 %v685_v56, 16 }
  0xe0   : > { %v981_v13 = vor.u32 %v980_v10, %v977_v9  ;;  %v1001_v29 = vshll.u32 %v1567_v35, 16  ;;  %v401_v32 = vadd.f32 %v1469_v8, %v400_v30  ;;  %v1075_v47 = vrot.slane %v1567_v35, 3 }
  0xe1   : > { %v914_v43 = vsel %vm907_vm5, %v911_v5, %v913_v38  ;;  %v699_v61 = vsel %vm690_vm6, %v696_v51, %v698_v58  ;;  %v780_v62 = vrot.slane %v778_v60, 4 }
  0xe2   : > { %1282 = vmatmul.msk.bf16.gmra.mxu0 %vm530_vm2, %v914_v43  ;;  %v1003_v37 = vrot.slane %v1001_v29, 3  ;;  %v412_v39 = vmax.f32 %v401_v32, 0.0 }
  0xe4   : > { %v482_v44 = vmul.f32 %v471_v40, %v412_v39 }
  0xe6   : > { %v970_v8 = vpack.c.bf16 %v482_v44, %v482_v44 }
  0xe7   : > { %1260 = vmatmul.msk.bf16.vlgmr.msrb.gmra.mxu2 %vm530_vm2, %v765_v28 }
  0xe8   : > { %v1077_v55 = vrot.slane %v970_v8, 3 }
  0xec   : > { %1225 = vmatmul.msk.bf16.gmra.mxu3 %vm530_vm2, %v523_v48  ;;  %1251 = vmatmul.msk.bf16.gmra.mxu1 %vm530_vm2, %v695_v33  ;;  %v1007_v48 = vshll.u32 %v970_v8, 16  ;;  %v1076_v33 = vsel %vm690_vm6, %v1073_v31, %v1075_v47 }
  0xee   : > { %v1009_v19 = vrot.slane %v1007_v48, 3 }
  0xf2   : > { %1283 = vmatmul.msk.bf16.gmra.mxu0 %vm530_vm2, %v913_v38  ;;  %v1074_v38 = vsel %vm690_vm6, %v1071_v18, %v1073_v31 }
  0xf7   : > { %1261 = vmatmul.msk.bf16.gmra.mxu2 %vm530_vm2, %v769_v50 }
  0xfc   : > { %1240 = vmatmul.msk.bf16.vlgmr.msrb.gmra.mxu3 %vm530_vm2, %v1503_v41  ;;  %1252 = vmatmul.msk.bf16.gmra.mxu1 %vm530_vm2, %v697_v52  ;;  %v777_v41 = vrot.slane %v775_v59, 3 }
  0xfe   : > { %v781_v5 = vor.u32 %v780_v62, %v777_v41 }
 0x100   : > { %v782_v12 = vsel %vm758_vm7, %v772_v53, %v781_v5 }
 0x107   : > { %1262 = vmatmul.msk.bf16.gmra.mxu2 %vm530_vm2, %v773_v57  ;;  %v1078_v57 = vsel %vm690_vm6, %v1075_v47, %v1077_v55 }
 0x10c   : > { %1241 = vmatmul.msk.bf16.gmra.mxu3 %vm530_vm2, %v1527_v63  ;;  %1253 = vmatmul.msk.bf16.gmra.mxu1 %vm530_vm2, %v699_v61  ;;  %v988_v63 = vor.u32 %v987_v7, %v984_v6 }
 0x10e   : > { %v989_v14 = vsel %vm974_vm8, %v981_v13, %v988_v63  ;;  %v997_v27 = vsel %vm974_vm8, %v988_v63, %v996_v26 }
 0x117   : > { %1263 = vmatmul.msk.bf16.gmra.mxu2 %vm530_vm2, %v782_v12 }
 0x11c   : > { %1242 = vmatmul.msk.bf16.gmra.mxu3 %vm530_vm2, %v1552_v24  ;;  %1290 = vmatmul.msk.bf16.vlgmr.msrb.gmra.mxu1 %vm530_vm2, %v989_v14  ;;  %v998_v24 = vshrl.u32 %v1567_v35, 16 }
 0x11e   : > { %v1000_v36 = vrot.slane %v998_v24, 2 }
 0x120   : > { %v1004_v11 = vor.u32 %v1003_v37, %v1000_v36 }
 0x122   : > { %v1005_v46 = vsel %vm974_vm8, %v996_v26, %v1004_v11  ;;  %v1010_v51 = vsel %vm974_vm8, %v1004_v11, %v1009_v19 }
 0x127   : > { %1300 = vmatmul.msk.bf16.vlgmr.msra.gmra.mxu2 %vm530_vm2, %v1072_v23 }
 0x12c   : > { %1243 = vmatmul.msk.bf16.gmra.mxu3 %vm530_vm2, %v628_v17  ;;  %1291 = vmatmul.msk.bf16.gmra.mxu1 %vm530_vm2, %v997_v27 }
 0x137   : > { %1301 = vmatmul.msk.bf16.gmra.mxu2 %vm530_vm2, %v1074_v38 }
 0x139   : > { %v552_v17 = vpop.f32.mrf.mxu1 }
 0x13a   : > { %v600_v43 = vpop.f32.mrf.mxu2 }
 0x13c   : > { %1270 = vmatmul.msk.bf16.vlgmr.msra.gmra.mxu3 %vm530_vm2, %v1505_v42  ;;  %1292 = vmatmul.msk.bf16.gmra.mxu1 %vm530_vm2, %v1005_v46 }
 0x13f   : > { %v942_v32 = vpop.f32.mrf.mxu0 }
 0x141   : > { %v554_v28 = vpop.f32.mrf.mxu1 }
 0x142   : > { %v602_v34 = vpop.f32.mrf.mxu2 }
 0x147   : > { %1302 = vmatmul.msk.bf16.gmra.mxu2 %vm530_vm2, %v1076_v33 }
 0x149   : > { %v595_v25 = vpop.f32.mrf.mxu1 }
 0x14a   : > { %v596_v49 = vadd.f32 %v595_v25, %v552_v17  ;;  %v605_v50 = vpop.f32.mrf.mxu2  ;;  %v944_v17 = vpop.f32.mrf.mxu0 }
 0x14c   : > { %1271 = vmatmul.msk.bf16.gmra.mxu3 %vm530_vm2, %v1509_v45  ;;  %1293 = vmatmul.msk.bf16.gmra.mxu1 %vm530_vm2, %v1010_v51 }
 0x14f   : > { %v557_v42 = vpop.f32.mrf.mxu3 }
 0x150   : > { %v1639_v52 = vadd.f32 %v600_v43, %v557_v42 }
 0x151   : > { %v597_v54 = vpop.f32.mrf.mxu1 }
 0x152   : > { %v598_v53 = vadd.f32 %v597_v54, %v554_v28  ;;  %v607_v56 = vpop.f32.mrf.mxu2 }
 0x157   : > { %v559_v58 = vpop.f32.mrf.mxu3  ;;  %1303 = vmatmul.msk.bf16.gmra.mxu2 %vm530_vm2, %v1078_v57 }
 0x158   : > { %v1643_v59 = vadd.f32 %v602_v34, %v559_v58 }
 0x159   : > { %v727_v62 = vpop.f32.mrf.mxu1 }
 0x15a   : > { %v610_v60 = vpop.f32.mrf.mxu2 }
 0x15c   : > { %1272 = vmatmul.msk.bf16.gmra.mxu3 %vm530_vm2, %v1533_v2 }
 0x15f   : > { %v562_v45 = vpop.f32.mrf.mxu3 }
 0x160   : > { %v1647_v61 = vadd.f32 %v605_v50, %v562_v45 }
 0x161   : > { %v729_v4 = vpop.f32.mrf.mxu1 }
 0x162   : > { %v612_v41 = vpop.f32.mrf.mxu2 }
 0x167   : > { %v564_v0 = vpop.f32.mrf.mxu3 }
 0x168   : > { %v1649_v1 = vadd.f32 %v607_v56, %v564_v0 }
 0x169   : > { %v732_v2 = vpop.f32.mrf.mxu1 }
 0x16a   : > { %v810_v3 = vpop.f32.mrf.mxu2 }
 0x16c   : > { %1273 = vmatmul.msk.bf16.gmra.mxu3 %vm530_vm2, %v1567_v35 }
 0x16f   : > { %v567_v5 = vpop.f32.mrf.mxu3 }
 0x170   : > { %v1653_v6 = vadd.f32 %v610_v60, %v567_v5 }
 0x171   : > { %v734_v13 = vpop.f32.mrf.mxu1 }
 0x172   : > { %v812_v7 = vpop.f32.mrf.mxu2 }
 0x177   : > { %v569_v9 = vpop.f32.mrf.mxu3 }
 0x178   : > { %v1655_v10 = vadd.f32 %v612_v41, %v569_v9 }
 0x179   : > { %v737_v16 = vpop.f32.mrf.mxu1 }
 0x17a   : > { %v815_v12 = vpop.f32.mrf.mxu2 }
 0x17f   : > { %v657_v63 = vpop.f32.mrf.mxu3 }
 0x180   : > { %v677_v37 = vadd.f32 %v657_v63, %v596_v49  ;;  %v947_v49 = vpop.f32.mrf.mxu0 }
 0x181   : > { %v1659_v21 = vpop.f32.mrf.mxu1 }
 0x182   : > { %v817_v14 = vpop.f32.mrf.mxu2  ;;  %v747_v11 = vadd.f32 %v727_v62, %v677_v37 }
 0x184   : > { %v830_v43 = vadd.f32 %v810_v3, %v747_v11 }
 0x187   : > { %v659_v15 = vpop.f32.mrf.mxu3 }
 0x188   : > { %v678_v40 = vadd.f32 %v659_v15, %v598_v53  ;;  %v949_v41 = vpop.f32.mrf.mxu0 }
 0x189   : > { %v1663_v26 = vpop.f32.mrf.mxu1 }
 0x18a   : > { %v1657_v18 = vpop.f32.mrf.mxu2  ;;  %v748_v34 = vadd.f32 %v729_v4, %v678_v40 }
 0x18c   : > { %v831_v25 = vadd.f32 %v812_v7, %v748_v34 }
 0x18f   : > { %v662_v20 = vpop.f32.mrf.mxu3 }
 0x190   : > { %v679_v33 = vadd.f32 %v662_v20, %v1639_v52  ;;  %v952_v20 = vpop.f32.mrf.mxu0 }
 0x191   : > { %v1667_v29 = vpop.f32.mrf.mxu1 }
 0x192   : > { %v1661_v22 = vpop.f32.mrf.mxu2  ;;  %v749_v54 = vadd.f32 %v732_v2, %v679_v33 }
 0x194   : > { %v832_v60 = vadd.f32 %v815_v12, %v749_v54 }
 0x197   : > { %v664_v35 = vpop.f32.mrf.mxu3 }
 0x198   : > { %v680_v57 = vadd.f32 %v664_v35, %v1643_v59 }
 0x199   : > { %v1038_v36 = vpop.f32.mrf.mxu1 }
 0x19a   : > { %v1665_v27 = vpop.f32.mrf.mxu2  ;;  %v750_v62 = vadd.f32 %v734_v13, %v680_v57 }
 0x19c   : > { %v833_v2 = vadd.f32 %v817_v14, %v750_v62 }
 0x19f   : > { %v667_v23 = vpop.f32.mrf.mxu3 }
 0x1a0   : > { %v681_v7 = vadd.f32 %v667_v23, %v1647_v61 }
 0x1a1   : > { %v1040_v44 = vpop.f32.mrf.mxu1 }
 0x1a2   : > { %v1669_v30 = vpop.f32.mrf.mxu2  ;;  %v751_v12 = vadd.f32 %v737_v16, %v681_v7  ;;  %v954_v16 = vpop.f32.mrf.mxu0 }
 0x1a4   : > { %v834_v37 = vadd.f32 %v1657_v18, %v751_v12 }
 0x1a7   : > { %v669_v24 = vpop.f32.mrf.mxu3 }
 0x1a8   : > { %v682_v13 = vadd.f32 %v669_v24, %v1649_v1 }
 0x1a9   : > { %v1043_v42 = vpop.f32.mrf.mxu1 }
 0x1aa   : > { %v1106_v38 = vpop.f32.mrf.mxu2  ;;  %v752_v23 = vadd.f32 %v1659_v21, %v682_v13 }
 0x1ac   : > { %v835_v1 = vadd.f32 %v1661_v22, %v752_v23 }
 0x1af   : > { %v1671_v31 = vpop.f32.mrf.mxu3 }
 0x1b0   : > { %v683_v40 = vadd.f32 %v1671_v31, %v1653_v6  ;;  %v957_v31 = vpop.f32.mrf.mxu0 }
 0x1b1   : > { %v1045_v3 = vpop.f32.mrf.mxu1 }
 0x1b2   : > { %v1108_v28 = vpop.f32.mrf.mxu2 }
 0x1b7   : > { %v1673_v39 = vpop.f32.mrf.mxu3 }
 0x1b8   : > { %v684_v34 = vadd.f32 %v1673_v39, %v1655_v10 }
 0x1ba   : > { %v1111_v53 = vpop.f32.mrf.mxu2 }
 0x1bf   : > { %v872_v46 = vpop.f32.mrf.mxu3 }
 0x1c0   : > { %v892_v8 = vadd.f32 %v872_v46, %v830_v43 }
 0x1c2   : > { %v962_v47 = vadd.f32 %v942_v32, %v892_v8  ;;  %v1113_v5 = vpop.f32.mrf.mxu2  ;;  %v1048_v32 = vpop.f32.mrf.mxu1  ;;  %v753_v8 = vadd.f32 %v1663_v26, %v683_v40 }
 0x1c4   : > { %v1058_v48 = vadd.f32 %v1038_v36, %v962_v47  ;;  %v836_v6 = vadd.f32 %v1665_v27, %v753_v8  ;;  %v959_v27 = vpop.f32.mrf.mxu0 }
 0x1c6   : > { %v1126_v19 = vadd.f32 %v1106_v38, %v1058_v48 }
 0x1c7   : > { %v874_v50 = vpop.f32.mrf.mxu3 }
 0x1c8   : > { %1135 = vst.msk [vmem:[%s1679_s16] sm:$0xff] %vm1134_vm9, %v1126_v19  ;;  %v893_v51 = vadd.f32 %v874_v50, %v831_v25  ;;  %v754_v19 = vadd.f32 %v1667_v29, %v684_v34 }
 0x1ca   : > { %v963_v55 = vadd.f32 %v944_v17, %v893_v51  ;;  %v1116_v38 = vpop.f32.mrf.mxu2  ;;  %v1050_v24 = vpop.f32.mrf.mxu1  ;;  %v837_v51 = vadd.f32 %v1669_v30, %v754_v19 }
 0x1cc   : > { %v1059_v56 = vadd.f32 %v1040_v44, %v963_v55 }
 0x1ce   : > { %v1127_v58 = vadd.f32 %v1108_v28, %v1059_v56 }
 0x1cf   : > { %v877_v45 = vpop.f32.mrf.mxu3 }
 0x1d0   : > { %1136 = vst.msk [vmem:[%s1679_s16 + $0x8] sm:$0xff] %vm1134_vm9, %v1127_v58  ;;  %v894_v52 = vadd.f32 %v877_v45, %v832_v60 }
 0x1d2   : > { %v964_v0 = vadd.f32 %v947_v49, %v894_v52  ;;  %v1118_v46 = vpop.f32.mrf.mxu2  ;;  %v1053_v33 = vpop.f32.mrf.mxu1 }
 0x1d4   : > { %v1060_v4 = vadd.f32 %v1043_v42, %v964_v0 }
 0x1d6   : > { %v1128_v9 = vadd.f32 %v1111_v53, %v1060_v4 }
 0x1d7   : > { %v879_v63 = vpop.f32.mrf.mxu3 }
 0x1d8   : > { %1137 = vst.msk [vmem:[%s1679_s16 + $0x10] sm:$0xff] %vm1134_vm9, %v1128_v9  ;;  %v895_v59 = vadd.f32 %v879_v63, %v833_v2 }
 0x1da   : > { %v965_v15 = vadd.f32 %v949_v41, %v895_v59  ;;  %v1121_v26 = vpop.f32.mrf.mxu2  ;;  %v1055_v54 = vpop.f32.mrf.mxu1 }
 0x1dc   : > { %v1061_v35 = vadd.f32 %v1045_v3, %v965_v15 }
 0x1de   : > { %v1129_v36 = vadd.f32 %v1113_v5, %v1061_v35 }
 0x1df   : > { %v882_v61 = vpop.f32.mrf.mxu3 }
 0x1e0   : > { %1138 = vst.msk [vmem:[%s1679_s16 + $0x18] sm:$0xff] %vm1134_vm9, %v1129_v36  ;;  %v896_v14 = vadd.f32 %v882_v61, %v834_v37 }
 0x1e2   : > { %v966_v11 = vadd.f32 %v952_v20, %v896_v14  ;;  %v1123_v53 = vpop.f32.mrf.mxu2 }
 0x1e4   : > { %v1062_v17 = vadd.f32 %v1048_v32, %v966_v11 }
 0x1e6   : > { %v1130_v43 = vadd.f32 %v1116_v38, %v1062_v17 }
 0x1e7   : > { %v884_v44 = vpop.f32.mrf.mxu3 }
 0x1e8   : > { %1139 = vst.msk [vmem:[%s1679_s16 + $0x20] sm:$0xff] %vm1134_vm9, %v1130_v43  ;;  %v897_v18 = vadd.f32 %v884_v44, %v835_v1 }
 0x1ea   : > { %v967_v28 = vadd.f32 %v954_v16, %v897_v18 }
 0x1ec   : > { %v1063_v21 = vadd.f32 %v1050_v24, %v967_v28 }
 0x1ee   : > { %v1131_v47 = vadd.f32 %v1118_v46, %v1063_v21 }
 0x1ef   : > { %v887_v48 = vpop.f32.mrf.mxu3 }
 0x1f0   : > { %1140 = vst.msk [vmem:[%s1679_s16 + $0x28] sm:$0xff] %vm1134_vm9, %v1131_v47  ;;  %v898_v22 = vadd.f32 %v887_v48, %v836_v6 }
 0x1f2   : > { %v968_v25 = vadd.f32 %v957_v31, %v898_v22 }
 0x1f4   : > { %v1064_v49 = vadd.f32 %v1053_v33, %v968_v25 }
 0x1f6   : > { %v1132_v50 = vadd.f32 %v1121_v26, %v1064_v49 }
 0x1f7   : > { %v889_v42 = vpop.f32.mrf.mxu3 }
 0x1f8   : > { %1141 = vst.msk [vmem:[%s1679_s16 + $0x30] sm:$0xff] %vm1134_vm9, %v1132_v50  ;;  %v899_v10 = vadd.f32 %v889_v42, %v837_v51 }
 0x1fa   : > { %v969_v39 = vadd.f32 %v959_v27, %v899_v10 }
 0x1fc   : > { %v1065_v55 = vadd.f32 %v1055_v54, %v969_v39 }
 0x1fe   : > { %v1133_v56 = vadd.f32 %v1123_v53, %v1065_v55 }
 0x200   : > { %1143 = vst.msk [vmem:[%s1679_s16 + $0x38] sm:$0xf] %vm1142_vm10, %v1133_v56 }
 0x201 PF: > { %s17_s24 = sadd.s32 1, %s1341_s24  }
 0x202   : > { %p14_p4 = scmp.ge.s32.totalorder %s17_s24, 4  }
 0x204   :  { %16 = sbr.rel (!%p14_p4) target bundleno = 1 (0x1), region = 86 }

// kernel: _lambda_.25
= control target key start
LH: loop header
LB: loop body
LE: loop exit
PB: predicated region body
PF: predicated region fallthrough
CT: control target
= control target key end

     0   :  { %vm67_vm0 = vcmask 261120   ;;  %vm93_vm1 = vcmask 130048   ;;  %s188_s1 = inlined_call_operand.vmem [shape: bf16[32,16], index: 1, kind: input, shape index: {}]   ;;  %s189_s0 = inlined_call_operand.vmem [shape: f32[32,32], index: 0, kind: input, shape index: {}]   ;;  %s190_s2 = inlined_call_operand.vmem [shape: f32[1,32], index: 2, kind: input, shape index: {}]   ;;  %s191_s3 = inlined_call_operand.vmem [shape: f32[1,32], index: 3, kind: input, shape index: {}]   ;;  %s192_s4 = inlined_call_operand.vmem [shape: f32[1,16], index: 4, kind: input, shape index: {}]   ;;  %s193_s5 = inlined_call_operand.vmem [shape: f32[32,16], index: 5, kind: output, shape index: {}]  }
   0x1   :  { %v113_v0 = vld [vmem:[%s188_s1 + $0x8] sm:$0xff]  ;;  %v112_v1 = vld [vmem:[%s188_s1] sm:$0xff]  ;;  %v23_v6 = vld [vmem:[%s189_s0 + $0x10] sm:$0xff] }
   0x2   :  { %v21_v2 = vld [vmem:[%s189_s0] sm:$0xff]  ;;  %v22_v3 = vld [vmem:[%s189_s0 + $0x8] sm:$0xff]  ;;  %80 = vmatpush.bf16.msra.mxu0 %v113_v0  ;;  %114 = vmatpush.bf16.msra.mxu1 %v113_v0  ;;  %v24_v9 = vld [vmem:[%s189_s0 + $0x18] sm:$0xff] }
   0x3   :  { %v116_v4 = vld [vmem:[%s190_s2] ss:$0 sm:$0xff] }
   0x4   :  { %v117_v5 = vld [vmem:[%s191_s3] ss:$0 sm:$0xff]  ;;  %v29_v7 = vmul.f32 %v116_v4, %v21_v2  ;;  %v30_v8 = vmul.f32 %v116_v4, %v22_v3  ;;  %v31_v10 = vmul.f32 %v116_v4, %v23_v6  ;;  %v32_v11 = vmul.f32 %v116_v4, %v24_v9 }
   0x5   :  { %v118_v22 = vld [vmem:[%s192_s4] ss:$0 sm:$0xff] }
   0x6   :  { %v37_v12 = vadd.f32 %v117_v5, %v29_v7  ;;  %v38_v13 = vadd.f32 %v117_v5, %v30_v8  ;;  %v39_v14 = vadd.f32 %v117_v5, %v31_v10  ;;  %81 = vmatpush.bf16.msra.mxu0 %v112_v1  ;;  %115 = vmatpush.bf16.msra.mxu1 %v112_v1 }
   0x7   :  { %v40_v15 = vadd.f32 %v117_v5, %v32_v11 }
   0x8   :  { %v41_v16 = vmax.f32 %v37_v12, 0.0  ;;  %v42_v17 = vmax.f32 %v38_v13, 0.0  ;;  %v43_v18 = vmax.f32 %v39_v14, 0.0 }
   0x9   :  { %v44_v19 = vmax.f32 %v40_v15, 0.0 }
   0xa   :  { %v45_v20 = vpack.c.bf16 %v42_v17, %v41_v16 }
   0xb   :  { %v46_v21 = vpack.c.bf16 %v44_v19, %v43_v18 }
   0xc   :  { %110 = vmatmul.msk.bf16.vlgmr.msra.gmra.mxu0 %vm67_vm0, %v45_v20 }
   0xd   :  { %111 = vmatmul.msk.bf16.vlgmr.msra.gmra.mxu1 %vm67_vm0, %v46_v21 }
  0x89   :  { %v83_v23 = vpop.f32.mrf.mxu0 }
  0x8a   :  { %v84_v24 = vadd.f32 %v118_v22, %v83_v23  ;;  %v88_v25 = vpop.f32.mrf.mxu1 }
  0x8b   :  { %v89_v26 = vadd.f32 %v118_v22, %v88_v25 }
  0x8c   :  { %94 = vst.msk [vmem:[%s193_s5] sm:$0xff] %vm93_vm1, %v84_v24 }
  0x8d   :  { %96 = vst.msk [vmem:[%s193_s5 + $0x10] sm:$0xff] %vm93_vm1, %v89_v26 }
  0x91   :  { %v85_v27 = vpop.f32.mrf.mxu0 }
  0x92   :  { %v86_v28 = vadd.f32 %v118_v22, %v85_v27  ;;  %v90_v29 = vpop.f32.mrf.mxu1 }
  0x93   :  { %v91_v30 = vadd.f32 %v118_v22, %v90_v29 }
  0x94   :  { %95 = vst.msk [vmem:[%s193_s5 + $0x8] sm:$0xff] %vm93_vm1, %v86_v28 }
  0x95   :  { %97 = vst.msk [vmem:[%s193_s5 + $0x18] sm:$0xff] %vm93_vm1, %v91_v30 }

// kernel: _lambda_.23
= control target key start
LH: loop header
LB: loop body
LE: loop exit
PB: predicated region body
PF: predicated region fallthrough
CT: control target
= control target key end

     0   :  { %s1170_s24 = smov 0   ;;  %s1384_s0 = inlined_call_operand.vmem [shape: f32[2,50,16], index: 0, kind: input, shape index: {}]   ;;  %s1385_s1 = inlined_call_operand.vmem [shape: bf16[16,16], index: 1, kind: input, shape index: {}]   ;;  %s1386_s2 = inlined_call_operand.vmem [shape: f32[1,16], index: 2, kind: input, shape index: {}]   ;;  %s1387_s3 = inlined_call_operand.vmem [shape: f32[1,16], index: 3, kind: input, shape index: {}]   ;;  %s1388_s4 = inlined_call_operand.vmem [shape: f32[1,16], index: 4, kind: input, shape index: {}]   ;;  %s1389_s5 = inlined_call_operand.vmem [shape: f32[50,1], index: 5, kind: input, shape index: {}]   ;;  %s1390_s6 = inlined_call_operand.vmem [shape: bf16[9,16,8], index: 6, kind: input, shape index: {}]   ;;  %s1391_s7 = inlined_call_operand.vmem [shape: f32[2,36,8], index: 7, kind: output, shape index: {}]  }
   0x1 LB: > { %s996_s25 = sadd.s32 4294967295, %s1127_s24   ;;  %p1000_p0 = scmp.ge.s32.totalorder %s1127_s24, 1  ;;  %s1127_s24 = sphi %s1170_s24, %s17_s24  }
   0x2   : > { %p237_p1 = scmp.lt.s32.totalorder %s1127_s24, 3 }
   0x4   : > { %p238_p2 = pnand %p1000_p0, %p237_p1 }
   0x5   : > { %p269_p3 = scmp.lt.s32.totalorder (!%p238_p2), %s996_s25, 1 }
   0x6   : > { %241 = sbr.rel (%p238_p2) target bundleno = 448 (0x1c0), region = 48 }
   0xb   : > { %v1092_v0 = vld [vmem:[%s1385_s1] sm:$0xff]  ;;  %s1393_s25 = smov (!%p269_p3, %s996_s25), 1  ;;  %v1129_v1 = vmov 0   ;;  %v382_v3 = vld [vmem:[%s1389_s5 + $0x10] sm:$0xff]  ;;  %v383_v11 = vld [vmem:[%s1389_s5 + $0x18] sm:$0xff]  ;;  %vm332_vm0 = vcmask 130048  }
   0xc   : > { %352 = vmatpush.bf16.msra.mxu0 %v1092_v0  ;;  %1116 = vset.pattern.permute.xlu1 %v1129_v1  ;;  %v384_v2 = vld [vmem:[%s1389_s5 + $0x20] sm:$0xff]  ;;  %s1104_s9 = smul.u32 56, %s1393_s25  ;;  %v381_v21 = vld [vmem:[%s1389_s5 + $0x8] sm:$0xff]  ;;  %v386_v22 = vld [vmem:[%s1389_s5 + $0x30] sm:$0x3]  ;;  %vm761_vm2 = vcmask 1045504  }
   0xd   : > { %409 = vperm.xlu1 %1116, %v384_v2   ;;  %1115 = vset.pattern.permute.xlu0 %v1129_v1  ;;  %v1118_v4 = vld [vmem:[%s1386_s2] ss:$0 sm:$0xff]  ;;  %v385_v32 = vld [vmem:[%s1389_s5 + $0x28] sm:$0xff]  ;;  %v1099_v49 = vld [vmem:[%s1390_s6 + $0x30] sm:$0xff]  ;;  %vm437_vm1 = vsmask.f32 7424 }
   0xe   : > { %399 = vperm.xlu0 %1115, %v382_v3   ;;  %1117 = vset.pattern.permute.xlu2 %v1129_v1  ;;  %s1196_s14 = scalar_lea.vmem %s1384_s0, %s1104_s9  ;;  %v1119_v5 = vld [vmem:[%s1387_s3] ss:$0 sm:$0xff]  ;;  %v1094_v47 = vld [vmem:[%s1390_s6 + $0x8] sm:$0xff]  ;;  %v1095_v59 = vld [vmem:[%s1390_s6 + $0x10] sm:$0xff]  ;;  %vm594_vm3 = vcmask 1044480   ;;  %vm540_vm5 = vcmask 1046528  }
   0xf   : > { %v280_v6 = vld [vmem:[%s1196_s14] sm:$0xff]  ;;  %v281_v7 = vld [vmem:[%s1196_s14 + $0x8] sm:$0xff]  ;;  %v282_v16 = vld [vmem:[%s1196_s14 + $0x10] sm:$0xff]  ;;  %394 = vperm.xlu2 %1117, %v381_v21   ;;  %483 = vmatpush.bf16.msra.mxu1 %v1094_v47  ;;  %vm646_vm4 = vsmask.f32 4352  ;;  %s1105_s28 = smul.u32 40, %s1393_s25 }
  0x10   : > { %v291_v8 = vmul.f32 %v1118_v4, %v280_v6  ;;  %v292_v9 = vmul.f32 %v1118_v4, %v281_v7  ;;  %v380_v10 = vld [vmem:[%s1389_s5] sm:$0xff]  ;;  %v283_v17 = vld [vmem:[%s1196_s14 + $0x18] sm:$0xff]  ;;  %v293_v19 = vmul.f32 %v1118_v4, %v282_v16  ;;  %v285_v29 = vld [vmem:[%s1196_s14 + $0x28] sm:$0xff]  ;;  %1102 = vmatpush.bf16.msra.mxu3 %v1094_v47  ;;  %vm814_vm6 = vsmask.f32 5376 }
  0x11   : > { %v294_v20 = vmul.f32 %v1118_v4, %v283_v17  ;;  %v284_v28 = vld [vmem:[%s1196_s14 + $0x20] sm:$0xff]  ;;  %v296_v31 = vmul.f32 %v1118_v4, %v285_v29  ;;  %v286_v38 = vld [vmem:[%s1196_s14 + $0x30] sm:$0x3]  ;;  %v1096_v62 = vld [vmem:[%s1390_s6 + $0x18] sm:$0xff]  ;;  %s1366_s8 = scalar_lea.vmem %s1391_s7, %s1105_s28  ;;  %vm934_vm7 = vcmask 64512   ;;  %vm939_vm8 = vcmask 60416  }
  0x12   : > { %v302_v12 = vadd.f32 %v1119_v5, %v291_v8  ;;  %v303_v13 = vadd.f32 %v1119_v5, %v292_v9  ;;  %v304_v23 = vadd.f32 %v1119_v5, %v293_v19  ;;  %v295_v30 = vmul.f32 %v1118_v4, %v284_v28  ;;  %v1093_v43 = vld [vmem:[%s1390_s6] sm:$0xff] }
  0x13   : > { %v305_v24 = vadd.f32 %v1119_v5, %v294_v20  ;;  %v307_v34 = vadd.f32 %v1119_v5, %v296_v31  ;;  %v297_v39 = vmul.f32 %v1118_v4, %v286_v38  ;;  %518 = vmatpush.bf16.msrb.mxu0 %v1093_v43  ;;  %1103 = vmatpush.bf16.msra.mxu2 %v1093_v43  ;;  %v1233_v46 = vld [vmem:[%s1388_s4] ss:$0 sm:$0xff] }
  0x14   : > { %v309_v14 = vmax.f32 %v302_v12, 0.0  ;;  %v310_v15 = vmax.f32 %v303_v13, 0.0  ;;  %v311_v25 = vmax.f32 %v304_v23, 0.0  ;;  %v306_v33 = vadd.f32 %v1119_v5, %v295_v30  ;;  %v1097_v60 = vld [vmem:[%s1390_s6 + $0x20] sm:$0xff]  ;;  %568 = vmatpush.bf16.msrb.mxu3 %v1095_v59  ;;  %622 = vmatpush.bf16.msrb.mxu1 %v1096_v62 }
  0x15   : > { %389 = vperm.xlu1 %1116, %v380_v10   ;;  %v312_v26 = vmax.f32 %v305_v24, 0.0  ;;  %v314_v36 = vmax.f32 %v307_v34, 0.0  ;;  %v308_v40 = vadd.f32 %v1119_v5, %v297_v39 }
  0x16   : > { %404 = vperm.xlu0 %1115, %v383_v11   ;;  %v316_v18 = vpack.c.bf16 %v310_v15, %v309_v14  ;;  %v313_v35 = vmax.f32 %v306_v33, 0.0 }
  0x17   : > { %v317_v27 = vpack.c.bf16 %v312_v26, %v311_v25  ;;  %414 = vperm.xlu2 %1117, %v385_v32   ;;  %v315_v41 = vmax.f32 %v308_v40, 0.0  ;;  %685 = vmatpush.bf16.msrb.mxu2 %v1097_v60 }
  0x18   : > { %1007 = vmatmul.msk.bf16.vlgmr.msra.gmra.mxu0 %vm332_vm0, %v316_v18  ;;  %v318_v37 = vpack.c.bf16 %v314_v36, %v313_v35  ;;  %v1098_v35 = vld [vmem:[%s1390_s6 + $0x28] sm:$0xff]  ;;  %v1101_v36 = vld [vmem:[%s1390_s6 + $0x40] sm:$0xff] }
  0x19   : > { %v319_v42 = vpack.c.bf16 %v315_v41, %v315_v41  ;;  %789 = vmatpush.bf16.msra.mxu0 %v1099_v49  ;;  %v1100_v41 = vld [vmem:[%s1390_s6 + $0x38] sm:$0xff] }
  0x1e   : > { %419 = vperm.xlu0 %1115, %v386_v22  }
  0x28   : > { %1008 = vmatmul.msk.bf16.gmra.mxu0 %vm332_vm0, %v317_v27 }
  0x38   : > { %1009 = vmatmul.msk.bf16.gmra.mxu0 %vm332_vm0, %v318_v37 }
  0x48   : > { %1010 = vmatmul.msk.bf16.gmra.mxu0 %vm332_vm0, %v319_v42 }
  0x69   : > { %v395_v54 = vpop.permute.xlu2 %394 }
  0x71   : > { %v415_v33 = vpop.permute.xlu2 %414 }
  0x7f   : > { %v410_v44 = vpop.permute.xlu1 %409 }
  0x80   : > { %v400_v63 = vpop.permute.xlu0 %399 }
  0x87   : > { %v390_v53 = vpop.permute.xlu1 %389 }
  0x88   : > { %v405_v6 = vpop.permute.xlu0 %404 }
  0x95   : > { %v354_v45 = vpop.f32.mrf.mxu0 }
  0x96   : > { %v355_v48 = vadd.f32 %v1233_v46, %v354_v45  ;;  %v420_v45 = vpop.permute.xlu0 %419 }
  0x98   : > { %v373_v51 = vmax.f32 %v355_v48, 0.0 }
  0x9a   : > { %v422_v56 = vmul.f32 %v390_v53, %v373_v51 }
  0x9d   : > { %v356_v50 = vpop.f32.mrf.mxu0 }
  0x9e   : > { %v357_v52 = vadd.f32 %v1233_v46, %v356_v50 }
  0xa0   : > { %v374_v55 = vmax.f32 %v357_v52, 0.0 }
  0xa2   : > { %v423_v57 = vmul.f32 %v395_v54, %v374_v55 }
  0xa4   : > { %v1243_v58 = vpack.c.bf16 %v423_v57, %v422_v56 }
  0xa5   : > { %v359_v61 = vpop.f32.mrf.mxu0 }
  0xa6   : > { %1024 = vmatmul.msk.bf16.vlgmr.msrb.gmra.mxu0 %vm332_vm0, %v1243_v58  ;;  %v360_v0 = vadd.f32 %v1233_v46, %v359_v61  ;;  %v441_v5 = vshll.u32 %v1243_v58, 16  ;;  %v439_v13 = vshrl.u32 %v1243_v58, 16 }
  0xa8   : > { %v375_v2 = vmax.f32 %v360_v0, 0.0  ;;  %v443_v10 = vrot.slane %v441_v5, 1  ;;  %v647_v56 = vrot.slane %v439_v13, 3 }
  0xaa   : > { %v424_v7 = vmul.f32 %v400_v63, %v375_v2  ;;  %v444_v16 = vor.u32 %v443_v10, %v439_v13  ;;  %v541_v10 = vrot.slane %v1243_v58, 1 }
  0xac   : > { %v1268_v18 = vpack.c.bf16 %v424_v7, %v423_v57  ;;  %v648_v57 = vrot.slane %v441_v5, 4 }
  0xad   : > { %v361_v1 = vpop.f32.mrf.mxu0 }
  0xae   : > { %v362_v3 = vadd.f32 %v1233_v46, %v361_v1  ;;  %v762_v24 = vrot.slane %v1268_v18, 2  ;;  %v649_v0 = vor.u32 %v648_v57, %v647_v56 }
  0xb0   : > { %v376_v4 = vmax.f32 %v362_v3, 0.0 }
  0xb2   : > { %v425_v8 = vmul.f32 %v405_v6, %v376_v4 }
  0xb4   : > { %v1259_v9 = vpack.c.bf16 %v425_v8, %v424_v7 }
  0xb5   : > { %v364_v11 = vpop.f32.mrf.mxu0 }
  0xb6   : > { %v365_v12 = vadd.f32 %v1233_v46, %v364_v11  ;;  %1025 = vmatmul.msk.bf16.vlgmr.msra.gmra.mxu2 %vm332_vm0, %v1259_v9  ;;  %v446_v14 = vshll.u32 %v1259_v9, 16  ;;  %v450_v27 = vshrl.u32 %v1259_v9, 16  ;;  %v596_v40 = vrot.slane %v1259_v9, 3 }
  0xb7   : > { %913 = vmatpush.bf16.msra.mxu2 %v1101_v36 }
  0xb8   : > { %v377_v15 = vmax.f32 %v365_v12, 0.0  ;;  %v448_v17 = vrot.slane %v446_v14, 1  ;;  %v650_v50 = vrot.slane %v450_v27, 3  ;;  %v651_v51 = vrot.slane %v446_v14, 4 }
  0xba   : > { %v426_v19 = vmul.f32 %v410_v44, %v377_v15  ;;  %v449_v20 = vsel %vm437_vm1, %v444_v16, %v448_v17  ;;  %v452_v31 = vor.u32 %v450_v27, %v448_v17  ;;  %v595_v44 = vrot.slane %v1243_v58, 3 }
  0xbb   : > { %1017 = vmatmul.msk.bf16.vlgmr.msra.gmra.mxu1 %vm332_vm0, %v449_v20  ;;  %v652_v62 = vor.u32 %v651_v51, %v650_v50  ;;  %v815_v58 = vshrl.u32 %v1268_v18, 16  ;;  %v818_v16 = vshll.u32 %v1268_v18, 16 }
  0xbc   : > { %v1272_v21 = vpack.c.bf16 %v426_v19, %v426_v19  ;;  %v1274_v22 = vpack.c.bf16 %v426_v19, %v425_v8  ;;  %861 = vmatpush.bf16.msra.mxu1 %v1100_v41  ;;  %v542_v8 = vrot.slane %v1259_v9, 1 }
  0xbd   : > { %v366_v23 = vpop.f32.mrf.mxu0  ;;  %v653_v1 = vsel %vm646_vm4, %v649_v0, %v652_v62 }
  0xbe   : > { %v367_v25 = vadd.f32 %v1233_v46, %v366_v23  ;;  %v763_v26 = vrot.slane %v1274_v22, 2  ;;  %v454_v28 = vshll.u32 %v1272_v21, 16  ;;  %v887_v53 = vrot.slane %v1274_v22, 3 }
  0xbf   : > { %v458_v55 = vshrl.u32 %v1272_v21, 16  ;;  %v543_v12 = vsel %vm540_vm5, %v541_v10, %v542_v8  ;;  %v544_v14 = vrot.slane %v1272_v21, 1  ;;  %v822_v15 = vshrl.u32 %v1274_v22, 16 }
  0xc0   : > { %v378_v29 = vmax.f32 %v367_v25, 0.0  ;;  %v764_v30 = vsel %vm761_vm2, %v762_v24, %v763_v26  ;;  %v456_v32 = vrot.slane %v454_v28, 1  ;;  %v825_v9 = vshll.u32 %v1274_v22, 16 }
  0xc1   : > { %1069 = vmatmul.msk.bf16.vlgmr.msra.gmra.mxu0 %vm332_vm0, %v764_v30  ;;  %v545_v17 = vsel %vm540_vm5, %v542_v8, %v544_v14  ;;  %v817_v23 = vrot.slane %v815_v58, 2  ;;  %v820_v24 = vrot.slane %v818_v16, 3 }
  0xc2   : > { %v457_v34 = vsel %vm437_vm1, %v452_v31, %v456_v32  ;;  %v427_v37 = vmul.f32 %v415_v33, %v378_v29  ;;  %v460_v61 = vor.u32 %v458_v55, %v456_v32  ;;  %v827_v20 = vrot.slane %v825_v9, 3 }
  0xc3   : > { %1018 = vmatmul.msk.bf16.vlgmr.msra.gmra.mxu3 %vm332_vm0, %v457_v34  ;;  %v886_v31 = vrot.slane %v1268_v18, 3 }
  0xc4   : > { %734 = vmatpush.bf16.msra.mxu3 %v1098_v35  ;;  %v1298_v42 = vpack.c.bf16 %v427_v37, %v427_v37  ;;  %v589_v63 = vpack.c.bf16 %v427_v37, %v426_v19  ;;  %v824_v19 = vrot.slane %v822_v15, 2 }
  0xc5   : > { %v369_v38 = vpop.f32.mrf.mxu0  ;;  %v888_v32 = vsel %vm594_vm3, %v886_v31, %v887_v53 }
  0xc6   : > { %v370_v39 = vadd.f32 %v1233_v46, %v369_v38  ;;  %1026 = vmatmul.msk.bf16.gmra.mxu2 %vm332_vm0, %v1272_v21  ;;  %v597_v46 = vsel %vm594_vm3, %v595_v44, %v596_v40  ;;  %v765_v49 = vrot.slane %v1298_v42, 2  ;;  %v598_v2 = vrot.slane %v589_v63, 3 }
  0xc7   : > { %v655_v3 = vshrl.u32 %v589_v63, 16  ;;  %v658_v4 = vshll.u32 %v589_v63, 16  ;;  %v828_v25 = vor.u32 %v827_v20, %v824_v19  ;;  %v821_v21 = vor.u32 %v820_v24, %v817_v23 }
  0xc8   : > { %v379_v43 = vmax.f32 %v370_v39, 0.0  ;;  %v766_v59 = vsel %vm761_vm2, %v763_v26, %v765_v49  ;;  %v599_v5 = vsel %vm594_vm3, %v596_v40, %v598_v2 }
  0xc9   : > { %v657_v6 = vrot.slane %v655_v3, 3  ;;  %v660_v7 = vrot.slane %v658_v4, 4  ;;  %v829_v26 = vsel %vm814_vm6, %v821_v21, %v828_v25 }
  0xca   : > { %v428_v47 = vmul.f32 %v420_v45, %v379_v43 }
  0xcb   : > { %1042 = vmatmul.msk.bf16.vlgmr.msrb.gmra.mxu1 %vm332_vm0, %v597_v46  ;;  %v661_v11 = vor.u32 %v660_v7, %v657_v6 }
  0xcc   : > { %v1303_v48 = vpack.c.bf16 %v428_v47, %v427_v37 }
  0xcd   : > { %v371_v52 = vpop.f32.mrf.mxu0  ;;  %v662_v13 = vsel %vm646_vm4, %v652_v62, %v661_v11 }
  0xce   : > { %v889_v54 = vrot.slane %v1303_v48, 3  ;;  %v831_v27 = vshrl.u32 %v1303_v48, 16  ;;  %v834_v28 = vshll.u32 %v1303_v48, 16 }
  0xd0   : > { %v890_v60 = vsel %vm594_vm3, %v887_v53, %v889_v54  ;;  %v833_v29 = vrot.slane %v831_v27, 2  ;;  %v836_v30 = vrot.slane %v834_v28, 3 }
  0xd1   : > { %1070 = vmatmul.msk.bf16.gmra.mxu0 %vm332_vm0, %v766_v59 }
  0xd2   : > { %v837_v33 = vor.u32 %v836_v30, %v833_v29 }
  0xd3   : > { %1019 = vmatmul.msk.bf16.gmra.mxu3 %vm332_vm0, %v460_v61 }
  0xd4   : > { %v838_v34 = vsel %vm814_vm6, %v828_v25, %v837_v33 }
  0xd6   : > { %1051 = vmatmul.msk.bf16.vlgmr.msrb.gmra.mxu2 %vm332_vm0, %v653_v1 }
  0xdb   : > { %1043 = vmatmul.msk.bf16.gmra.mxu1 %vm332_vm0, %v599_v5 }
  0xe1   : > { %1071 = vmatmul.msk.bf16.gmra.mxu0 %vm332_vm0, %v765_v49 }
  0xe3   : > { %1033 = vmatmul.msk.bf16.vlgmr.msrb.gmra.mxu3 %vm332_vm0, %v543_v12 }
  0xe6   : > { %1052 = vmatmul.msk.bf16.gmra.mxu2 %vm332_vm0, %v662_v13 }
  0xeb   : > { %1044 = vmatmul.msk.bf16.gmra.mxu1 %vm332_vm0, %v598_v2 }
  0xf3   : > { %1034 = vmatmul.msk.bf16.gmra.mxu3 %vm332_vm0, %v545_v17 }
  0xf6   : > { %1053 = vmatmul.msk.bf16.gmra.mxu2 %vm332_vm0, %v661_v11 }
  0xfb   : > { %1078 = vmatmul.msk.bf16.vlgmr.msra.gmra.mxu1 %vm332_vm0, %v829_v26 }
 0x103   : > { %1035 = vmatmul.msk.bf16.gmra.mxu3 %vm332_vm0, %v544_v14 }
 0x106   : > { %1087 = vmatmul.msk.bf16.vlgmr.msra.gmra.mxu2 %vm332_vm0, %v888_v32 }
 0x10b   : > { %1079 = vmatmul.msk.bf16.gmra.mxu1 %vm332_vm0, %v838_v34 }
 0x113   : > { %1060 = vmatmul.msk.bf16.vlgmr.msra.gmra.mxu3 %vm332_vm0, %v1268_v18 }
 0x116   : > { %1088 = vmatmul.msk.bf16.gmra.mxu2 %vm332_vm0, %v890_v60 }
 0x11b   : > { %1080 = vmatmul.msk.bf16.gmra.mxu1 %vm332_vm0, %v837_v33 }
 0x123   : > { %1061 = vmatmul.msk.bf16.gmra.mxu3 %vm332_vm0, %v1274_v22  ;;  %v520_v35 = vpop.f32.mrf.mxu0 }
 0x126   : > { %1089 = vmatmul.msk.bf16.gmra.mxu2 %vm332_vm0, %v889_v54 }
 0x12b   : > { %v522_v36 = vpop.f32.mrf.mxu0 }
 0x133   : > { %1062 = vmatmul.msk.bf16.gmra.mxu3 %vm332_vm0, %v1298_v42 }
 0x138   : > { %v485_v37 = vpop.f32.mrf.mxu1 }
 0x139   : > { %v521_v38 = vadd.f32 %v520_v35, %v485_v37  ;;  %v525_v39 = vpop.f32.mrf.mxu2 }
 0x13e   : > { %v791_v18 = vpop.f32.mrf.mxu0 }
 0x140   : > { %v487_v40 = vpop.f32.mrf.mxu1 }
 0x141   : > { %v523_v41 = vadd.f32 %v522_v36, %v487_v40  ;;  %v527_v43 = vpop.f32.mrf.mxu2 }
 0x146   : > { %v490_v44 = vpop.f32.mrf.mxu3  ;;  %v1354_v45 = vpop.f32.mrf.mxu0 }
 0x147   : > { %v526_v22 = vadd.f32 %v525_v39, %v490_v44 }
 0x148   : > { %v624_v47 = vpop.f32.mrf.mxu1 }
 0x149   : > { %v530_v46 = vpop.f32.mrf.mxu2 }
 0x14e   : > { %v492_v48 = vpop.f32.mrf.mxu3  ;;  %v1356_v49 = vpop.f32.mrf.mxu0 }
 0x14f   : > { %v528_v50 = vadd.f32 %v527_v43, %v492_v48 }
 0x150   : > { %v626_v51 = vpop.f32.mrf.mxu1 }
 0x151   : > { %v532_v42 = vpop.f32.mrf.mxu2 }
 0x156   : > { %v495_v52 = vpop.f32.mrf.mxu3  ;;  %v1358_v53 = vpop.f32.mrf.mxu0 }
 0x157   : > { %v531_v54 = vadd.f32 %v530_v46, %v495_v52 }
 0x158   : > { %v629_v55 = vpop.f32.mrf.mxu1 }
 0x159   : > { %v687_v56 = vpop.f32.mrf.mxu2 }
 0x15e   : > { %v497_v57 = vpop.f32.mrf.mxu3  ;;  %v1360_v59 = vpop.f32.mrf.mxu0 }
 0x160   : > { %v631_v60 = vpop.f32.mrf.mxu1 }
 0x161   : > { %v689_v61 = vpop.f32.mrf.mxu2 }
 0x166   : > { %v570_v62 = vpop.f32.mrf.mxu3  ;;  %v803_v63 = vpop.f32.mrf.mxu0 }
 0x167   : > { %v584_v0 = vadd.f32 %v570_v62, %v521_v38 }
 0x168   : > { %v634_v1 = vpop.f32.mrf.mxu1 }
 0x169   : > { %v638_v2 = vadd.f32 %v624_v47, %v584_v0  ;;  %v692_v3 = vpop.f32.mrf.mxu2 }
 0x16b   : > { %v701_v28 = vadd.f32 %v687_v56, %v638_v2 }
 0x16e   : > { %v572_v4 = vpop.f32.mrf.mxu3 }
 0x16f   : > { %v585_v5 = vadd.f32 %v572_v4, %v523_v41 }
 0x170   : > { %v636_v6 = vpop.f32.mrf.mxu1 }
 0x171   : > { %v639_v7 = vadd.f32 %v626_v51, %v585_v5  ;;  %v694_v8 = vpop.f32.mrf.mxu2 }
 0x173   : > { %v702_v36 = vadd.f32 %v689_v61, %v639_v7 }
 0x176   : > { %v575_v10 = vpop.f32.mrf.mxu3 }
 0x177   : > { %v586_v11 = vadd.f32 %v575_v10, %v526_v22 }
 0x178   : > { %v863_v12 = vpop.f32.mrf.mxu1 }
 0x179   : > { %v640_v13 = vadd.f32 %v629_v55, %v586_v11  ;;  %v697_v14 = vpop.f32.mrf.mxu2 }
 0x17b   : > { %v703_v44 = vadd.f32 %v692_v3, %v640_v13 }
 0x17e   : > { %v577_v15 = vpop.f32.mrf.mxu3 }
 0x17f   : > { %v587_v9 = vadd.f32 %v577_v15, %v528_v50 }
 0x180   : > { %v865_v58 = vpop.f32.mrf.mxu1 }
 0x181   : > { %v641_v16 = vadd.f32 %v631_v60, %v587_v9  ;;  %v699_v17 = vpop.f32.mrf.mxu2 }
 0x183   : > { %v704_v42 = vadd.f32 %v694_v8, %v641_v16 }
 0x186   : > { %v580_v19 = vpop.f32.mrf.mxu3 }
 0x187   : > { %v588_v20 = vadd.f32 %v580_v19, %v531_v54 }
 0x188   : > { %v868_v23 = vpop.f32.mrf.mxu1 }
 0x189   : > { %v642_v24 = vadd.f32 %v634_v1, %v588_v20  ;;  %v915_v25 = vpop.f32.mrf.mxu2 }
 0x18b   : > { %v705_v60 = vadd.f32 %v697_v14, %v642_v24 }
 0x18e   : > { %v582_v21 = vpop.f32.mrf.mxu3 }
 0x190   : > { %v870_v26 = vpop.f32.mrf.mxu1 }
 0x191   : > { %v917_v27 = vpop.f32.mrf.mxu2 }
 0x196   : > { %v736_v29 = vpop.f32.mrf.mxu3 }
 0x197   : > { %v750_v30 = vadd.f32 %v736_v29, %v701_v28 }
 0x198   : > { %v873_v31 = vpop.f32.mrf.mxu1 }
 0x199   : > { %v805_v32 = vadd.f32 %v791_v18, %v750_v30  ;;  %v920_v33 = vpop.f32.mrf.mxu2 }
 0x19b   : > { %v877_v34 = vadd.f32 %v863_v12, %v805_v32 }
 0x19d   : > { %v929_v35 = vadd.f32 %v915_v25, %v877_v34 }
 0x19e   : > { %v738_v37 = vpop.f32.mrf.mxu3 }
 0x19f   : > { %935 = vst.msk [vmem:[%s1366_s8] sm:$0xff] %vm934_vm7, %v929_v35  ;;  %v751_v38 = vadd.f32 %v738_v37, %v702_v36 }
 0x1a0   : > { %v875_v39 = vpop.f32.mrf.mxu1 }
 0x1a1   : > { %v806_v18 = vadd.f32 %v1354_v45, %v751_v38  ;;  %v922_v40 = vpop.f32.mrf.mxu2 }
 0x1a3   : > { %v878_v41 = vadd.f32 %v865_v58, %v806_v18 }
 0x1a5   : > { %v930_v43 = vadd.f32 %v917_v27, %v878_v41 }
 0x1a6   : > { %v741_v22 = vpop.f32.mrf.mxu3 }
 0x1a7   : > { %936 = vst.msk [vmem:[%s1366_s8 + $0x8] sm:$0xff] %vm934_vm7, %v930_v43  ;;  %v752_v47 = vadd.f32 %v741_v22, %v703_v44 }
 0x1a9   : > { %v807_v46 = vadd.f32 %v1356_v49, %v752_v47  ;;  %v925_v48 = vpop.f32.mrf.mxu2 }
 0x1ab   : > { %v879_v50 = vadd.f32 %v868_v23, %v807_v46 }
 0x1ad   : > { %v931_v51 = vadd.f32 %v920_v33, %v879_v50 }
 0x1ae   : > { %v743_v52 = vpop.f32.mrf.mxu3 }
 0x1af   : > { %937 = vst.msk [vmem:[%s1366_s8 + $0x10] sm:$0xff] %vm934_vm7, %v931_v51  ;;  %v753_v45 = vadd.f32 %v743_v52, %v704_v42 }
 0x1b1   : > { %v808_v54 = vadd.f32 %v1358_v53, %v753_v45  ;;  %v927_v55 = vpop.f32.mrf.mxu2 }
 0x1b3   : > { %v880_v56 = vadd.f32 %v870_v26, %v808_v54 }
 0x1b5   : > { %v932_v57 = vadd.f32 %v922_v40, %v880_v56 }
 0x1b6   : > { %v746_v61 = vpop.f32.mrf.mxu3 }
 0x1b7   : > { %938 = vst.msk [vmem:[%s1366_s8 + $0x18] sm:$0xff] %vm934_vm7, %v932_v57  ;;  %v754_v62 = vadd.f32 %v746_v61, %v705_v60 }
 0x1b9   : > { %v809_v49 = vadd.f32 %v1360_v59, %v754_v62 }
 0x1bb   : > { %v881_v63 = vadd.f32 %v873_v31, %v809_v49 }
 0x1bd   : > { %v933_v0 = vadd.f32 %v925_v48, %v881_v63 }
 0x1be   : > { %v748_v1 = vpop.f32.mrf.mxu3 }
 0x1bf   : > { %940 = vst.msk [vmem:[%s1366_s8 + $0x20] sm:$0xf] %vm939_vm8, %v933_v0 }
 0x1c0 PF: > { %s17_s24 = sadd.s32 1, %s1127_s24  }
 0x1c1   : > { %p14_p4 = scmp.ge.s32.totalorder %s17_s24, 4  }
 0x1c3   :  { %16 = sbr.rel (!%p14_p4) target bundleno = 1 (0x1), region = 86 }

// kernel: _lambda_.26
= control target key start
LH: loop header
LB: loop body
LE: loop exit
PB: predicated region body
PF: predicated region fallthrough
CT: control target
= control target key end

     0   :  { %vm37_vm0 = vcmask 1041409   ;;  %vm40_vm1 = vcmask 1042434   ;;  %vm43_vm2 = vcmask 1043459   ;;  %vm46_vm3 = vcmask 519168   ;;  %s77_s0 = inlined_call_operand.vmem [shape: f32[4,2,64], index: 0, kind: input, shape index: {}]   ;;  %s78_s1 = inlined_call_operand.vmem [shape: f32[4,64], index: 1, kind: output, shape index: {}]  }
   0x1   :  { %v8_v0 = vld [vmem:[%s77_s0] sm:$0x3]  ;;  %v9_v1 = vld [vmem:[%s77_s0 + $0x2] sm:$0x3]  ;;  %v10_v2 = vld [vmem:[%s77_s0 + $0x4] sm:$0x3] }
   0x2   :  { %v11_v3 = vld [vmem:[%s77_s0 + $0x6] sm:$0x3]  ;;  %v16_v4 = vrot.slane %v8_v0, 1  ;;  %v17_v5 = vrot.slane %v9_v1, 1  ;;  %v18_v6 = vrot.slane %v10_v2, 1 }
   0x3   :  { %v19_v7 = vrot.slane %v11_v3, 1 }
   0x4   :  { %v24_v8 = vadd.f32 %v16_v4, %v8_v0  ;;  %v25_v9 = vadd.f32 %v17_v5, %v9_v1  ;;  %v26_v10 = vadd.f32 %v18_v6, %v10_v2 }
   0x5   :  { %v27_v11 = vadd.f32 %v19_v7, %v11_v3 }
   0x6   :  { %v28_v12 = vmul.f32 0.5, %v24_v8  ;;  %v29_v13 = vmul.f32 0.5, %v25_v9  ;;  %v30_v14 = vmul.f32 0.5, %v26_v10 }
   0x7   :  { %v31_v15 = vmul.f32 0.5, %v27_v11 }
   0x8   :  { %v36_v16 = vrot.slane %v29_v13, 7  ;;  %v39_v17 = vrot.slane %v30_v14, 6 }
   0x9   :  { %v42_v18 = vrot.slane %v31_v15, 5 }
   0xa   :  { %v38_v19 = vsel %vm37_vm0, %v36_v16, %v28_v12 }
   0xb   :  { %v41_v20 = vsel %vm40_vm1, %v39_v17, %v38_v19 }
   0xc   :  { %v44_v21 = vsel %vm43_vm2, %v42_v18, %v41_v20 }
   0xd   :  { %47 = vst.msk [vmem:[%s78_s1] sm:$0xf] %vm46_vm3, %v44_v21 }

// kernel: _lambda_.24
= control target key start
LH: loop header
LB: loop body
LE: loop exit
PB: predicated region body
PF: predicated region fallthrough
CT: control target
= control target key end

     0   :  { %s1179_s24 = smov 0   ;;  %s1385_s0 = inlined_call_operand.vmem [shape: f32[2,50,24], index: 0, kind: input, shape index: {}]   ;;  %s1386_s1 = inlined_call_operand.vmem [shape: bf16[24,16], index: 1, kind: input, shape index: {}]   ;;  %s1387_s2 = inlined_call_operand.vmem [shape: f32[1,24], index: 2, kind: input, shape index: {}]   ;;  %s1388_s3 = inlined_call_operand.vmem [shape: f32[1,24], index: 3, kind: input, shape index: {}]   ;;  %s1389_s4 = inlined_call_operand.vmem [shape: f32[1,16], index: 4, kind: input, shape index: {}]   ;;  %s1390_s5 = inlined_call_operand.vmem [shape: f32[50,1], index: 5, kind: input, shape index: {}]   ;;  %s1391_s6 = inlined_call_operand.vmem [shape: bf16[9,16,8], index: 6, kind: input, shape index: {}]   ;;  %s1392_s7 = inlined_call_operand.vmem [shape: f32[2,36,8], index: 7, kind: output, shape index: {}]  }
   0x1 LB: > { %s1005_s25 = sadd.s32 4294967295, %s1136_s24   ;;  %p1009_p0 = scmp.ge.s32.totalorder %s1136_s24, 1  ;;  %s1136_s24 = sphi %s1179_s24, %s17_s24  }
   0x2   : > { %p237_p1 = scmp.lt.s32.totalorder %s1136_s24, 3 }
   0x4   : > { %p238_p2 = pnand %p1009_p0, %p237_p1 }
   0x5   : > { %p269_p3 = scmp.lt.s32.totalorder (!%p238_p2), %s1005_s25, 1 }
   0x6   : > { %241 = sbr.rel (%p238_p2) target bundleno = 448 (0x1c0), region = 48 }
   0xb   : > { %v322_v0 = vld [vmem:[%s1386_s1 + $0x8] sm:$0xf]  ;;  %vm349_vm0 = vcmask 1043456   ;;  %s1394_s25 = smov (!%p269_p3, %s1005_s25), 1  ;;  %v392_v2 = vld [vmem:[%s1390_s5 + $0x20] sm:$0xff]  ;;  %v1138_v4 = vmov 0  }
   0xc   : > { %v332_v1 = vunpack.c.l.b16 %v322_v0  ;;  %1125 = vset.pattern.permute.xlu1 %v1138_v4  ;;  %1124 = vset.pattern.permute.xlu0 %v1138_v4  ;;  %v390_v5 = vld [vmem:[%s1390_s5 + $0x10] sm:$0xff]  ;;  %s1113_s9 = smul.u32 56, %s1394_s25  ;;  %v1127_v6 = vld [vmem:[%s1387_s2] ss:$0 sm:$0xff]  ;;  %v391_v15 = vld [vmem:[%s1390_s5 + $0x18] sm:$0xff]  ;;  %vm336_vm1 = vcmask 195584  }
   0xd   : > { %417 = vperm.xlu1 %1125, %v392_v2   ;;  %407 = vperm.xlu0 %1124, %v390_v5   ;;  %v1101_v8 = vld [vmem:[%s1386_s1] sm:$0xff]  ;;  %v389_v25 = vld [vmem:[%s1390_s5 + $0x8] sm:$0xff]  ;;  %v394_v26 = vld [vmem:[%s1390_s5 + $0x30] sm:$0x3]  ;;  %vm475_vm2 = vcmask 130048   ;;  %vm770_vm4 = vcmask 1045504  }
   0xe   : > { %v334_v3 = vpack.c.b16 %v332_v1, %v332_v1  ;;  %1126 = vset.pattern.permute.xlu2 %v1138_v4  ;;  %s1208_s16 = scalar_lea.vmem %s1385_s0, %s1113_s9  ;;  %v1128_v9 = vld [vmem:[%s1388_s3] ss:$0 sm:$0xff]  ;;  %v393_v36 = vld [vmem:[%s1390_s5 + $0x28] sm:$0xff]  ;;  %v1108_v50 = vld [vmem:[%s1391_s6 + $0x30] sm:$0xff]  ;;  %vm445_vm3 = vsmask.f32 7424 }
   0xf   : > { %v280_v10 = vld [vmem:[%s1208_s16] sm:$0xff]  ;;  %v281_v11 = vld [vmem:[%s1208_s16 + $0x8] sm:$0xff]  ;;  %v282_v20 = vld [vmem:[%s1208_s16 + $0x10] sm:$0xff]  ;;  %402 = vperm.xlu2 %1126, %v389_v25   ;;  %vm655_vm5 = vsmask.f32 4352  ;;  %vm603_vm6 = vcmask 1044480  }
  0x10   : > { %v351_v7 = vsel %vm349_vm0, %v334_v3, 0  ;;  %v291_v12 = vmul.f32 %v1127_v6, %v280_v10  ;;  %v292_v13 = vmul.f32 %v1127_v6, %v281_v11  ;;  %v388_v14 = vld [vmem:[%s1390_s5] sm:$0xff]  ;;  %v283_v21 = vld [vmem:[%s1208_s16 + $0x18] sm:$0xff]  ;;  %v293_v23 = vmul.f32 %v1127_v6, %v282_v20  ;;  %v285_v33 = vld [vmem:[%s1208_s16 + $0x28] sm:$0xff]  ;;  %s1114_s30 = smul.u32 40, %s1394_s25 }
  0x11   : > { %359 = vmatpush.bf16.msra.mxu0 %v351_v7  ;;  %v294_v24 = vmul.f32 %v1127_v6, %v283_v21  ;;  %v284_v32 = vld [vmem:[%s1208_s16 + $0x20] sm:$0xff]  ;;  %v296_v35 = vmul.f32 %v1127_v6, %v285_v33  ;;  %v286_v42 = vld [vmem:[%s1208_s16 + $0x30] sm:$0x3]  ;;  %v1103_v49 = vld [vmem:[%s1391_s6 + $0x8] sm:$0xff]  ;;  %vm549_vm7 = vcmask 1046528   ;;  %vm943_vm9 = vcmask 64512  }
  0x12   : > { %v302_v16 = vadd.f32 %v1128_v9, %v291_v12  ;;  %v303_v17 = vadd.f32 %v1128_v9, %v292_v13  ;;  %v304_v27 = vadd.f32 %v1128_v9, %v293_v23  ;;  %v295_v34 = vmul.f32 %v1127_v6, %v284_v32  ;;  %v1102_v47 = vld [vmem:[%s1391_s6] sm:$0xff]  ;;  %492 = vmatpush.bf16.msra.mxu1 %v1103_v49  ;;  %v1104_v57 = vld [vmem:[%s1391_s6 + $0x10] sm:$0xff]  ;;  %v1105_v21 = vld [vmem:[%s1391_s6 + $0x18] sm:$0xff]  ;;  %s1368_s10 = scalar_lea.vmem %s1392_s7, %s1114_s30 }
  0x13   : > { %v305_v28 = vadd.f32 %v1128_v9, %v294_v24  ;;  %v307_v38 = vadd.f32 %v1128_v9, %v296_v35  ;;  %v297_v43 = vmul.f32 %v1127_v6, %v286_v42  ;;  %1112 = vmatpush.bf16.msra.mxu2 %v1102_v47  ;;  %1111 = vmatpush.bf16.msra.mxu3 %v1103_v49  ;;  %v1251_v53 = vld [vmem:[%s1389_s4] ss:$0 sm:$0xff]  ;;  %vm823_vm8 = vsmask.f32 5376 }
  0x14   : > { %v309_v18 = vmax.f32 %v302_v16, 0.0  ;;  %v310_v19 = vmax.f32 %v303_v17, 0.0  ;;  %v311_v29 = vmax.f32 %v304_v27, 0.0  ;;  %v306_v37 = vadd.f32 %v1128_v9, %v295_v34  ;;  %v1106_v58 = vld [vmem:[%s1391_s6 + $0x20] sm:$0xff] }
  0x15   : > { %360 = vmatpush.bf16.msra.mxu0 %v1101_v8  ;;  %397 = vperm.xlu1 %1125, %v388_v14   ;;  %v312_v30 = vmax.f32 %v305_v28, 0.0  ;;  %v314_v40 = vmax.f32 %v307_v38, 0.0  ;;  %v308_v44 = vadd.f32 %v1128_v9, %v297_v43  ;;  %vm948_vm10 = vcmask 60416  }
  0x16   : > { %412 = vperm.xlu0 %1124, %v391_v15   ;;  %v316_v22 = vpack.c.bf16 %v310_v19, %v309_v18  ;;  %v313_v39 = vmax.f32 %v306_v37, 0.0  ;;  %527 = vmatpush.bf16.msrb.mxu1 %v1102_v47 }
  0x17   : > { %v317_v31 = vpack.c.bf16 %v312_v30, %v311_v29  ;;  %422 = vperm.xlu2 %1126, %v393_v36   ;;  %v315_v45 = vmax.f32 %v308_v44, 0.0  ;;  %577 = vmatpush.bf16.msrb.mxu3 %v1104_v57 }
  0x18   : > { %1016 = vmatmul.msk.bf16.vlgmr.msra.gmra.mxu0 %vm336_vm1, %v316_v22  ;;  %v318_v41 = vpack.c.bf16 %v314_v40, %v313_v39  ;;  %694 = vmatpush.bf16.msrb.mxu2 %v1106_v58  ;;  %v1107_v39 = vld [vmem:[%s1391_s6 + $0x28] sm:$0xff]  ;;  %v1110_v40 = vld [vmem:[%s1391_s6 + $0x40] sm:$0xff] }
  0x19   : > { %v319_v46 = vpack.c.bf16 %v315_v45, %v315_v45  ;;  %798 = vmatpush.bf16.msrb.mxu0 %v1108_v50 }
  0x1e   : > { %427 = vperm.xlu0 %1124, %v394_v26  }
  0x28   : > { %1017 = vmatmul.msk.bf16.gmra.mxu0 %vm336_vm1, %v317_v31 }
  0x38   : > { %1018 = vmatmul.msk.bf16.gmra.mxu0 %vm336_vm1, %v318_v41 }
  0x48   : > { %1019 = vmatmul.msk.bf16.gmra.mxu0 %vm336_vm1, %v319_v46  ;;  %v1109_v46 = vld [vmem:[%s1391_s6 + $0x38] sm:$0xff] }
  0x69   : > { %v403_v59 = vpop.permute.xlu2 %402 }
  0x71   : > { %v423_v38 = vpop.permute.xlu2 %422 }
  0x7f   : > { %v418_v51 = vpop.permute.xlu1 %417  ;;  %v408_v63 = vpop.permute.xlu0 %407 }
  0x87   : > { %v398_v62 = vpop.permute.xlu1 %397 }
  0x88   : > { %v413_v9 = vpop.permute.xlu0 %412 }
  0x90   : > { %v428_v47 = vpop.permute.xlu0 %427 }
  0x95   : > { %v362_v48 = vpop.f32.mrf.mxu0 }
  0x96   : > { %v363_v55 = vadd.f32 %v1251_v53, %v362_v48 }
  0x98   : > { %v381_v61 = vmax.f32 %v363_v55, 0.0 }
  0x9a   : > { %v430_v1 = vmul.f32 %v398_v62, %v381_v61 }
  0x9d   : > { %v364_v52 = vpop.f32.mrf.mxu0 }
  0x9e   : > { %v365_v54 = vadd.f32 %v1251_v53, %v364_v52 }
  0xa0   : > { %v382_v56 = vmax.f32 %v365_v54, 0.0 }
  0xa2   : > { %v431_v0 = vmul.f32 %v403_v59, %v382_v56 }
  0xa4   : > { %v1262_v3 = vpack.c.bf16 %v431_v0, %v430_v1 }
  0xa5   : > { %v367_v60 = vpop.f32.mrf.mxu0 }
  0xa6   : > { %v368_v2 = vadd.f32 %v1251_v53, %v367_v60  ;;  %v449_v8 = vshll.u32 %v1262_v3, 16  ;;  %v447_v16 = vshrl.u32 %v1262_v3, 16 }
  0xa8   : > { %v383_v5 = vmax.f32 %v368_v2, 0.0  ;;  %v451_v13 = vrot.slane %v449_v8, 1  ;;  %v656_v55 = vrot.slane %v447_v16, 3  ;;  %v657_v56 = vrot.slane %v449_v8, 4 }
  0xa9   : > { %v550_v8 = vrot.slane %v1262_v3, 1 }
  0xaa   : > { %v432_v10 = vmul.f32 %v408_v63, %v383_v5  ;;  %v452_v19 = vor.u32 %v451_v13, %v447_v16  ;;  %v658_v60 = vor.u32 %v657_v56, %v656_v55 }
  0xac   : > { %v1276_v22 = vpack.c.bf16 %v432_v10, %v431_v0  ;;  %v604_v0 = vrot.slane %v1262_v3, 3 }
  0xad   : > { %v369_v4 = vpop.f32.mrf.mxu0 }
  0xae   : > { %v370_v6 = vadd.f32 %v1251_v53, %v369_v4  ;;  %v771_v28 = vrot.slane %v1276_v22, 2 }
  0xb0   : > { %v384_v7 = vmax.f32 %v370_v6, 0.0 }
  0xb2   : > { %v433_v11 = vmul.f32 %v413_v9, %v384_v7 }
  0xb4   : > { %v1266_v12 = vpack.c.bf16 %v433_v11, %v432_v10 }
  0xb5   : > { %v372_v14 = vpop.f32.mrf.mxu0 }
  0xb6   : > { %v373_v15 = vadd.f32 %v1251_v53, %v372_v14  ;;  %1034 = vmatmul.msk.bf16.vlgmr.msra.gmra.mxu2 %vm475_vm2, %v1266_v12  ;;  %v454_v17 = vshll.u32 %v1266_v12, 16  ;;  %v458_v31 = vshrl.u32 %v1266_v12, 16  ;;  %v605_v63 = vrot.slane %v1266_v12, 3 }
  0xb7   : > { %922 = vmatpush.bf16.msra.mxu2 %v1110_v40  ;;  %v551_v7 = vrot.slane %v1266_v12, 1 }
  0xb8   : > { %v385_v18 = vmax.f32 %v373_v15, 0.0  ;;  %v456_v20 = vrot.slane %v454_v17, 1  ;;  %v660_v52 = vrot.slane %v454_v17, 4  ;;  %v606_v4 = vsel %vm603_vm6, %v604_v0, %v605_v63 }
  0xb9   : > { %v552_v10 = vsel %vm549_vm7, %v550_v8, %v551_v7  ;;  %v824_v17 = vshrl.u32 %v1276_v22, 16 }
  0xba   : > { %v434_v23 = vmul.f32 %v418_v51, %v385_v18  ;;  %v457_v24 = vsel %vm445_vm3, %v452_v19, %v456_v20  ;;  %v460_v35 = vor.u32 %v458_v31, %v456_v20  ;;  %v659_v51 = vrot.slane %v458_v31, 3 }
  0xbb   : > { %1026 = vmatmul.msk.bf16.vlgmr.msra.gmra.mxu1 %vm475_vm2, %v457_v24  ;;  %v827_v18 = vshll.u32 %v1276_v22, 16  ;;  %v826_v24 = vrot.slane %v824_v17, 2 }
  0xbc   : > { %v1280_v25 = vpack.c.bf16 %v434_v23, %v434_v23  ;;  %v1282_v26 = vpack.c.bf16 %v434_v23, %v433_v11  ;;  %631 = vmatpush.bf16.msra.mxu1 %v1105_v21  ;;  %v661_v59 = vor.u32 %v660_v52, %v659_v51 }
  0xbd   : > { %v374_v27 = vpop.f32.mrf.mxu0 }
  0xbe   : > { %v375_v29 = vadd.f32 %v1251_v53, %v374_v27  ;;  %v772_v30 = vrot.slane %v1282_v26, 2  ;;  %v462_v32 = vshll.u32 %v1280_v25, 16  ;;  %v466_v54 = vshrl.u32 %v1280_v25, 16 }
  0xbf   : > { %v662_v62 = vsel %vm655_vm5, %v658_v60, %v661_v59  ;;  %v553_v12 = vrot.slane %v1280_v25, 1  ;;  %v834_v16 = vshll.u32 %v1282_v26, 16  ;;  %v896_v19 = vrot.slane %v1282_v26, 3 }
  0xc0   : > { %v386_v33 = vmax.f32 %v375_v29, 0.0  ;;  %v773_v34 = vsel %vm770_vm4, %v771_v28, %v772_v30  ;;  %v464_v36 = vrot.slane %v462_v32, 1 }
  0xc1   : > { %1078 = vmatmul.msk.bf16.vlgmr.msrb.gmra.mxu0 %vm475_vm2, %v773_v34  ;;  %v554_v15 = vsel %vm549_vm7, %v551_v7, %v553_v12  ;;  %v836_v21 = vrot.slane %v834_v16, 3 }
  0xc2   : > { %v465_v37 = vsel %vm445_vm3, %v460_v35, %v464_v36  ;;  %v435_v41 = vmul.f32 %v423_v38, %v386_v33  ;;  %v468_v58 = vor.u32 %v466_v54, %v464_v36 }
  0xc3   : > { %1027 = vmatmul.msk.bf16.vlgmr.msra.gmra.mxu3 %vm475_vm2, %v465_v37 }
  0xc4   : > { %743 = vmatpush.bf16.msra.mxu3 %v1107_v39  ;;  %v1302_v44 = vpack.c.bf16 %v435_v41, %v435_v41  ;;  %v598_v61 = vpack.c.bf16 %v435_v41, %v434_v23  ;;  %v895_v23 = vrot.slane %v1276_v22, 3 }
  0xc5   : > { %v377_v42 = vpop.f32.mrf.mxu0 }
  0xc6   : > { %v378_v43 = vadd.f32 %v1251_v53, %v377_v42  ;;  %1035 = vmatmul.msk.bf16.gmra.mxu2 %vm475_vm2, %v1280_v25  ;;  %v774_v50 = vrot.slane %v1302_v44, 2  ;;  %v664_v1 = vshrl.u32 %v598_v61, 16  ;;  %v667_v2 = vshll.u32 %v598_v61, 16 }
  0xc7   : > { %v607_v13 = vrot.slane %v598_v61, 3  ;;  %v829_v25 = vrot.slane %v827_v18, 3  ;;  %v897_v27 = vsel %vm603_vm6, %v895_v23, %v896_v19 }
  0xc8   : > { %v387_v45 = vmax.f32 %v378_v43, 0.0  ;;  %v775_v57 = vsel %vm770_vm4, %v772_v30, %v774_v50  ;;  %v666_v5 = vrot.slane %v664_v1, 3  ;;  %v669_v6 = vrot.slane %v667_v2, 4 }
  0xc9   : > { %v608_v14 = vsel %vm603_vm6, %v605_v63, %v607_v13  ;;  %v830_v29 = vor.u32 %v829_v25, %v826_v24 }
  0xca   : > { %v436_v48 = vmul.f32 %v428_v47, %v387_v45  ;;  %v670_v9 = vor.u32 %v669_v6, %v666_v5 }
  0xcb   : > { %1033 = vmatmul.msk.bf16.vlgmr.msrb.gmra.mxu1 %vm475_vm2, %v1262_v3  ;;  %v831_v3 = vshrl.u32 %v1282_v26, 16 }
  0xcc   : > { %v1309_v49 = vpack.c.bf16 %v436_v48, %v435_v41  ;;  %870 = vmatpush.bf16.msrb.mxu1 %v1109_v46  ;;  %v671_v11 = vsel %vm655_vm5, %v661_v59, %v670_v9 }
  0xcd   : > { %v379_v53 = vpop.f32.mrf.mxu0  ;;  %v833_v20 = vrot.slane %v831_v3, 2 }
  0xce   : > { %v840_v31 = vshrl.u32 %v1309_v49, 16  ;;  %v843_v32 = vshll.u32 %v1309_v49, 16  ;;  %v898_v33 = vrot.slane %v1309_v49, 3 }
  0xcf   : > { %v837_v28 = vor.u32 %v836_v21, %v833_v20 }
  0xd0   : > { %v842_v34 = vrot.slane %v840_v31, 2  ;;  %v845_v35 = vrot.slane %v843_v32, 3  ;;  %v899_v36 = vsel %vm603_vm6, %v896_v19, %v898_v33 }
  0xd1   : > { %1079 = vmatmul.msk.bf16.gmra.mxu0 %vm475_vm2, %v775_v57  ;;  %v838_v30 = vsel %vm823_vm8, %v830_v29, %v837_v28 }
  0xd2   : > { %v846_v37 = vor.u32 %v845_v35, %v842_v34 }
  0xd3   : > { %1028 = vmatmul.msk.bf16.gmra.mxu3 %vm475_vm2, %v468_v58 }
  0xd4   : > { %v847_v38 = vsel %vm823_vm8, %v837_v28, %v846_v37 }
  0xd6   : > { %1060 = vmatmul.msk.bf16.vlgmr.msrb.gmra.mxu2 %vm475_vm2, %v662_v62 }
  0xdb   : > { %1051 = vmatmul.msk.bf16.vlgmr.msra.gmra.mxu1 %vm475_vm2, %v606_v4 }
  0xe1   : > { %1080 = vmatmul.msk.bf16.gmra.mxu0 %vm475_vm2, %v774_v50 }
  0xe3   : > { %1042 = vmatmul.msk.bf16.vlgmr.msrb.gmra.mxu3 %vm475_vm2, %v552_v10 }
  0xe6   : > { %1061 = vmatmul.msk.bf16.gmra.mxu2 %vm475_vm2, %v671_v11 }
  0xeb   : > { %1052 = vmatmul.msk.bf16.gmra.mxu1 %vm475_vm2, %v608_v14 }
  0xf3   : > { %1043 = vmatmul.msk.bf16.gmra.mxu3 %vm475_vm2, %v554_v15 }
  0xf6   : > { %1062 = vmatmul.msk.bf16.gmra.mxu2 %vm475_vm2, %v670_v9 }
  0xfb   : > { %1053 = vmatmul.msk.bf16.gmra.mxu1 %vm475_vm2, %v607_v13 }
 0x103   : > { %1044 = vmatmul.msk.bf16.gmra.mxu3 %vm475_vm2, %v553_v12 }
 0x106   : > { %1096 = vmatmul.msk.bf16.vlgmr.msra.gmra.mxu2 %vm475_vm2, %v897_v27 }
 0x10b   : > { %1087 = vmatmul.msk.bf16.vlgmr.msrb.gmra.mxu1 %vm475_vm2, %v838_v30 }
 0x113   : > { %1069 = vmatmul.msk.bf16.vlgmr.msra.gmra.mxu3 %vm475_vm2, %v1276_v22 }
 0x116   : > { %1097 = vmatmul.msk.bf16.gmra.mxu2 %vm475_vm2, %v899_v36 }
 0x11b   : > { %1088 = vmatmul.msk.bf16.gmra.mxu1 %vm475_vm2, %v847_v38 }
 0x123   : > { %1070 = vmatmul.msk.bf16.gmra.mxu3 %vm475_vm2, %v1282_v26 }
 0x126   : > { %1098 = vmatmul.msk.bf16.gmra.mxu2 %vm475_vm2, %v898_v33 }
 0x12b   : > { %1089 = vmatmul.msk.bf16.gmra.mxu1 %vm475_vm2, %v846_v37 }
 0x133   : > { %1071 = vmatmul.msk.bf16.gmra.mxu3 %vm475_vm2, %v1302_v44 }
 0x138   : > { %v494_v39 = vpop.f32.mrf.mxu1 }
 0x139   : > { %v534_v22 = vpop.f32.mrf.mxu2 }
 0x13e   : > { %v800_v40 = vpop.f32.mrf.mxu0 }
 0x140   : > { %v496_v41 = vpop.f32.mrf.mxu1 }
 0x141   : > { %v536_v42 = vpop.f32.mrf.mxu2 }
 0x146   : > { %v499_v43 = vpop.f32.mrf.mxu3  ;;  %v802_v45 = vpop.f32.mrf.mxu0 }
 0x147   : > { %v535_v46 = vadd.f32 %v534_v22, %v499_v43 }
 0x148   : > { %v529_v47 = vpop.f32.mrf.mxu1 }
 0x149   : > { %v530_v48 = vadd.f32 %v529_v47, %v494_v39  ;;  %v539_v49 = vpop.f32.mrf.mxu2 }
 0x14e   : > { %v501_v50 = vpop.f32.mrf.mxu3  ;;  %v1358_v26 = vpop.f32.mrf.mxu0 }
 0x14f   : > { %v537_v51 = vadd.f32 %v536_v42, %v501_v50 }
 0x150   : > { %v531_v52 = vpop.f32.mrf.mxu1 }
 0x151   : > { %v532_v53 = vadd.f32 %v531_v52, %v496_v41  ;;  %v541_v54 = vpop.f32.mrf.mxu2 }
 0x156   : > { %v504_v55 = vpop.f32.mrf.mxu3  ;;  %v1360_v44 = vpop.f32.mrf.mxu0 }
 0x157   : > { %v540_v56 = vadd.f32 %v539_v49, %v504_v55 }
 0x158   : > { %v633_v57 = vpop.f32.mrf.mxu1 }
 0x159   : > { %v696_v58 = vpop.f32.mrf.mxu2 }
 0x15e   : > { %v506_v59 = vpop.f32.mrf.mxu3  ;;  %v1362_v60 = vpop.f32.mrf.mxu0 }
 0x160   : > { %v635_v61 = vpop.f32.mrf.mxu1 }
 0x161   : > { %v698_v62 = vpop.f32.mrf.mxu2 }
 0x166   : > { %v579_v63 = vpop.f32.mrf.mxu3  ;;  %v812_v0 = vpop.f32.mrf.mxu0 }
 0x167   : > { %v593_v3 = vadd.f32 %v579_v63, %v530_v48 }
 0x168   : > { %v638_v1 = vpop.f32.mrf.mxu1 }
 0x169   : > { %v701_v2 = vpop.f32.mrf.mxu2  ;;  %v647_v18 = vadd.f32 %v633_v57, %v593_v3 }
 0x16b   : > { %v710_v21 = vadd.f32 %v696_v58, %v647_v18 }
 0x16e   : > { %v581_v4 = vpop.f32.mrf.mxu3 }
 0x16f   : > { %v594_v20 = vadd.f32 %v581_v4, %v532_v53 }
 0x170   : > { %v640_v5 = vpop.f32.mrf.mxu1 }
 0x171   : > { %v703_v6 = vpop.f32.mrf.mxu2  ;;  %v648_v27 = vadd.f32 %v635_v61, %v594_v20 }
 0x173   : > { %v711_v33 = vadd.f32 %v698_v62, %v648_v27 }
 0x176   : > { %v584_v7 = vpop.f32.mrf.mxu3 }
 0x177   : > { %v595_v31 = vadd.f32 %v584_v7, %v535_v46 }
 0x178   : > { %v643_v8 = vpop.f32.mrf.mxu1 }
 0x179   : > { %v706_v9 = vpop.f32.mrf.mxu2  ;;  %v649_v37 = vadd.f32 %v638_v1, %v595_v31 }
 0x17b   : > { %v712_v42 = vadd.f32 %v701_v2, %v649_v37 }
 0x17e   : > { %v586_v10 = vpop.f32.mrf.mxu3 }
 0x180   : > { %v645_v11 = vpop.f32.mrf.mxu1 }
 0x181   : > { %v708_v13 = vpop.f32.mrf.mxu2 }
 0x186   : > { %v589_v14 = vpop.f32.mrf.mxu3 }
 0x187   : > { %v597_v53 = vadd.f32 %v589_v14, %v540_v56 }
 0x188   : > { %v872_v12 = vpop.f32.mrf.mxu1 }
 0x189   : > { %v924_v15 = vpop.f32.mrf.mxu2  ;;  %v651_v58 = vadd.f32 %v643_v8, %v597_v53 }
 0x18b   : > { %v714_v0 = vadd.f32 %v706_v9, %v651_v58 }
 0x18e   : > { %v591_v16 = vpop.f32.mrf.mxu3 }
 0x190   : > { %v874_v17 = vpop.f32.mrf.mxu1 }
 0x191   : > { %v926_v19 = vpop.f32.mrf.mxu2 }
 0x196   : > { %v745_v23 = vpop.f32.mrf.mxu3 }
 0x197   : > { %v759_v24 = vadd.f32 %v745_v23, %v710_v21 }
 0x198   : > { %v877_v25 = vpop.f32.mrf.mxu1 }
 0x199   : > { %v814_v28 = vadd.f32 %v800_v40, %v759_v24  ;;  %v929_v29 = vpop.f32.mrf.mxu2  ;;  %v596_v40 = vadd.f32 %v586_v10, %v537_v51 }
 0x19b   : > { %v886_v30 = vadd.f32 %v872_v12, %v814_v28  ;;  %v650_v48 = vadd.f32 %v640_v5, %v596_v40 }
 0x19d   : > { %v938_v32 = vadd.f32 %v924_v15, %v886_v30 }
 0x19e   : > { %v747_v34 = vpop.f32.mrf.mxu3 }
 0x19f   : > { %944 = vst.msk [vmem:[%s1368_s10] sm:$0xff] %vm943_vm9, %v938_v32  ;;  %v760_v35 = vadd.f32 %v747_v34, %v711_v33 }
 0x1a0   : > { %v879_v36 = vpop.f32.mrf.mxu1 }
 0x1a1   : > { %v815_v38 = vadd.f32 %v802_v45, %v760_v35  ;;  %v931_v39 = vpop.f32.mrf.mxu2  ;;  %v713_v45 = vadd.f32 %v703_v6, %v650_v48 }
 0x1a3   : > { %v887_v22 = vadd.f32 %v874_v17, %v815_v38 }
 0x1a5   : > { %v939_v41 = vadd.f32 %v926_v19, %v887_v22 }
 0x1a6   : > { %v750_v43 = vpop.f32.mrf.mxu3 }
 0x1a7   : > { %945 = vst.msk [vmem:[%s1368_s10 + $0x8] sm:$0xff] %vm943_vm9, %v939_v41  ;;  %v761_v47 = vadd.f32 %v750_v43, %v712_v42 }
 0x1a8   : > { %v882_v46 = vpop.f32.mrf.mxu1 }
 0x1a9   : > { %v816_v49 = vadd.f32 %v1358_v26, %v761_v47  ;;  %v934_v50 = vpop.f32.mrf.mxu2 }
 0x1ab   : > { %v888_v52 = vadd.f32 %v877_v25, %v816_v49 }
 0x1ad   : > { %v940_v54 = vadd.f32 %v929_v29, %v888_v52 }
 0x1ae   : > { %v752_v55 = vpop.f32.mrf.mxu3 }
 0x1af   : > { %946 = vst.msk [vmem:[%s1368_s10 + $0x10] sm:$0xff] %vm943_vm9, %v940_v54  ;;  %v762_v51 = vadd.f32 %v752_v55, %v713_v45 }
 0x1b0   : > { %v884_v57 = vpop.f32.mrf.mxu1 }
 0x1b1   : > { %v817_v59 = vadd.f32 %v1360_v44, %v762_v51  ;;  %v936_v61 = vpop.f32.mrf.mxu2 }
 0x1b3   : > { %v889_v62 = vadd.f32 %v879_v36, %v817_v59 }
 0x1b5   : > { %v941_v63 = vadd.f32 %v931_v39, %v889_v62 }
 0x1b6   : > { %v755_v26 = vpop.f32.mrf.mxu3 }
 0x1b7   : > { %947 = vst.msk [vmem:[%s1368_s10 + $0x18] sm:$0xff] %vm943_vm9, %v941_v63  ;;  %v763_v1 = vadd.f32 %v755_v26, %v714_v0 }
 0x1b9   : > { %v818_v56 = vadd.f32 %v1362_v60, %v763_v1 }
 0x1bb   : > { %v890_v2 = vadd.f32 %v882_v46, %v818_v56 }
 0x1bd   : > { %v942_v4 = vadd.f32 %v934_v50, %v890_v2 }
 0x1be   : > { %v757_v5 = vpop.f32.mrf.mxu3 }
 0x1bf   : > { %949 = vst.msk [vmem:[%s1368_s10 + $0x20] sm:$0xf] %vm948_vm10, %v942_v4 }
 0x1c0 PF: > { %s17_s24 = sadd.s32 1, %s1136_s24  }
 0x1c1   : > { %p14_p4 = scmp.ge.s32.totalorder %s17_s24, 4  }
 0x1c3   :  { %16 = sbr.rel (!%p14_p4) target bundleno = 1 (0x1), region = 86 }

// kernel: _lambda_.29
= control target key start
LH: loop header
LB: loop body
LE: loop exit
PB: predicated region body
PF: predicated region fallthrough
CT: control target
= control target key end

     0   :  { %vm58_vm0 = vcmask 261120   ;;  %vm76_vm1 = vcmask 130048   ;;  %s154_s1 = inlined_call_operand.vmem [shape: bf16[32,16], index: 1, kind: input, shape index: {}]   ;;  %s155_s0 = inlined_call_operand.vmem [shape: f32[16,32], index: 0, kind: input, shape index: {}]   ;;  %s156_s2 = inlined_call_operand.vmem [shape: f32[1,32], index: 2, kind: input, shape index: {}]   ;;  %s157_s3 = inlined_call_operand.vmem [shape: f32[1,32], index: 3, kind: input, shape index: {}]   ;;  %s158_s4 = inlined_call_operand.vmem [shape: f32[1,16], index: 4, kind: input, shape index: {}]   ;;  %s159_s5 = inlined_call_operand.vmem [shape: f32[16,16], index: 5, kind: output, shape index: {}]  }
   0x1   :  { %v93_v0 = vld [vmem:[%s154_s1 + $0x8] sm:$0xff]  ;;  %v92_v1 = vld [vmem:[%s154_s1] sm:$0xff] }
   0x2   :  { %v21_v2 = vld [vmem:[%s155_s0] sm:$0xff]  ;;  %v22_v3 = vld [vmem:[%s155_s0 + $0x8] sm:$0xff]  ;;  %68 = vmatpush.bf16.msra.mxu0 %v93_v0 }
   0x3   :  { %v94_v4 = vld [vmem:[%s156_s2] ss:$0 sm:$0xff] }
   0x4   :  { %v95_v5 = vld [vmem:[%s157_s3] ss:$0 sm:$0xff]  ;;  %v27_v6 = vmul.f32 %v94_v4, %v21_v2  ;;  %v28_v7 = vmul.f32 %v94_v4, %v22_v3 }
   0x5   :  { %v96_v13 = vld [vmem:[%s158_s4] ss:$0 sm:$0xff] }
   0x6   :  { %v33_v8 = vadd.f32 %v95_v5, %v27_v6  ;;  %v34_v9 = vadd.f32 %v95_v5, %v28_v7  ;;  %69 = vmatpush.bf16.msra.mxu0 %v92_v1 }
   0x8   :  { %v35_v10 = vmax.f32 %v33_v8, 0.0  ;;  %v36_v11 = vmax.f32 %v34_v9, 0.0 }
   0xa   :  { %v37_v12 = vpack.c.bf16 %v36_v11, %v35_v10 }
   0xc   :  { %91 = vmatmul.msk.bf16.vlgmr.msra.gmra.mxu0 %vm58_vm0, %v37_v12 }
  0x89   :  { %v71_v14 = vpop.f32.mrf.mxu0 }
  0x8a   :  { %v72_v15 = vadd.f32 %v96_v13, %v71_v14 }
  0x8c   :  { %77 = vst.msk [vmem:[%s159_s5] sm:$0xff] %vm76_vm1, %v72_v15 }
  0x91   :  { %v73_v16 = vpop.f32.mrf.mxu0 }
  0x92   :  { %v74_v17 = vadd.f32 %v96_v13, %v73_v16 }
  0x94   :  { %78 = vst.msk [vmem:[%s159_s5 + $0x8] sm:$0xff] %vm76_vm1, %v74_v17 }

// kernel: _lambda_.30
= control target key start
LH: loop header
LB: loop body
LE: loop exit
PB: predicated region body
PF: predicated region fallthrough
CT: control target
= control target key end

     0   :  { %vm23_vm0 = vcmask 1041409   ;;  %vm26_vm1 = vcmask 517120   ;;  %s51_s0 = inlined_call_operand.vmem [shape: f32[2,2,64], index: 0, kind: input, shape index: {}]   ;;  %s52_s1 = inlined_call_operand.vmem [shape: f32[2,64], index: 1, kind: output, shape index: {}]  }
   0x1   :  { %v8_v0 = vld [vmem:[%s51_s0] sm:$0x3]  ;;  %v9_v1 = vld [vmem:[%s51_s0 + $0x2] sm:$0x3] }
   0x2   :  { %v12_v2 = vrot.slane %v8_v0, 1  ;;  %v13_v3 = vrot.slane %v9_v1, 1 }
   0x4   :  { %v16_v4 = vadd.f32 %v12_v2, %v8_v0  ;;  %v17_v5 = vadd.f32 %v13_v3, %v9_v1 }
   0x6   :  { %v18_v6 = vmul.f32 0.5, %v16_v4  ;;  %v19_v7 = vmul.f32 0.5, %v17_v5 }
   0x8   :  { %v22_v8 = vrot.slane %v19_v7, 7 }
   0xa   :  { %v24_v9 = vsel %vm23_vm0, %v22_v8, %v18_v6 }
   0xb   :  { %27 = vst.msk [vmem:[%s52_s1] sm:$0x3] %vm26_vm1, %v24_v9 }

// kernel: _lambda_.27
= control target key start
LH: loop header
LB: loop body
LE: loop exit
PB: predicated region body
PF: predicated region fallthrough
CT: control target
= control target key end

     0   :  { %s1000_s24 = smov 0   ;;  %s1114_s0 = inlined_call_operand.vmem [shape: f32[2,38,16], index: 0, kind: input, shape index: {}]   ;;  %s1115_s1 = inlined_call_operand.vmem [shape: bf16[16,16], index: 1, kind: input, shape index: {}]   ;;  %s1116_s2 = inlined_call_operand.vmem [shape: f32[1,16], index: 2, kind: input, shape index: {}]   ;;  %s1117_s3 = inlined_call_operand.vmem [shape: f32[1,16], index: 3, kind: input, shape index: {}]   ;;  %s1118_s4 = inlined_call_operand.vmem [shape: f32[1,16], index: 4, kind: input, shape index: {}]   ;;  %s1119_s5 = inlined_call_operand.vmem [shape: f32[38,1], index: 5, kind: input, shape index: {}]   ;;  %s1120_s6 = inlined_call_operand.vmem [shape: bf16[9,16,8], index: 6, kind: input, shape index: {}]   ;;  %s1121_s7 = inlined_call_operand.vmem [shape: f32[2,24,8], index: 7, kind: output, shape index: {}]  }
   0x1 LB: > { %s837_s25 = sadd.s32 4294967295, %s957_s24   ;;  %p841_p0 = scmp.ge.s32.totalorder %s957_s24, 1  ;;  %s957_s24 = sphi %s1000_s24, %s17_s24  }
   0x2   : > { %p237_p1 = scmp.lt.s32.totalorder %s957_s24, 3 }
   0x4   : > { %p238_p2 = pnand %p841_p0, %p237_p1 }
   0x5   : > { %p269_p3 = scmp.lt.s32.totalorder (!%p238_p2), %s837_s25, 1 }
   0x6   : > { %241 = sbr.rel (%p238_p2) target bundleno = 393 (0x189), region = 48 }
   0xb   : > { %v923_v0 = vld [vmem:[%s1115_s1] sm:$0xff]  ;;  %s1123_s25 = smov (!%p269_p3, %s837_s25), 1  ;;  %v959_v1 = vmov 0   ;;  %v363_v3 = vld [vmem:[%s1119_s5 + $0x10] sm:$0xff]  ;;  %v362_v10 = vld [vmem:[%s1119_s5 + $0x8] sm:$0xff]  ;;  %vm323_vm0 = vcmask 130048  }
   0xc   : > { %340 = vmatpush.bf16.msra.mxu0 %v923_v0  ;;  %945 = vset.pattern.permute.xlu0 %v959_v1  ;;  %v361_v2 = vld [vmem:[%s1119_s5] sm:$0xff]  ;;  %s934_s9 = smul.u32 40, %s1123_s25  ;;  %v364_v11 = vld [vmem:[%s1119_s5 + $0x18] sm:$0xff]  ;;  %v925_v37 = vld [vmem:[%s1120_s6 + $0x8] sm:$0xff]  ;;  %vm404_vm1 = vsmask.f32 7424 }
   0xd   : > { %368 = vperm.xlu0 %945, %v361_v2   ;;  %946 = vset.pattern.permute.xlu1 %v959_v1  ;;  %v948_v4 = vld [vmem:[%s1116_s2] ss:$0 sm:$0xff]  ;;  %v930_v39 = vld [vmem:[%s1120_s6 + $0x30] sm:$0xff]  ;;  %v927_v46 = vld [vmem:[%s1120_s6 + $0x18] sm:$0xff]  ;;  %vm649_vm2 = vcmask 1045504   ;;  %vm524_vm4 = vcmask 1044480  }
   0xe   : > { %378 = vperm.xlu1 %946, %v363_v3   ;;  %947 = vset.pattern.permute.xlu2 %v959_v1  ;;  %s273_s14 = scalar_lea.vmem %s1114_s0, %s934_s9  ;;  %v949_v5 = vld [vmem:[%s1117_s3] ss:$0 sm:$0xff]  ;;  %v926_v45 = vld [vmem:[%s1120_s6 + $0x10] sm:$0xff]  ;;  %vm564_vm3 = vsmask.f32 4352  ;;  %vm484_vm5 = vcmask 1046528  }
   0xf   : > { %v280_v6 = vld [vmem:[%s273_s14] sm:$0xff]  ;;  %v281_v7 = vld [vmem:[%s273_s14 + $0x8] sm:$0xff]  ;;  %v282_v16 = vld [vmem:[%s273_s14 + $0x10] sm:$0xff]  ;;  %439 = vmatpush.bf16.msra.mxu1 %v925_v37  ;;  %933 = vmatpush.bf16.msra.mxu3 %v925_v37  ;;  %vm689_vm6 = vsmask.f32 5376  ;;  %s935_s22 = smul.u32 24, %s1123_s25 }
  0x10   : > { %v289_v8 = vmul.f32 %v948_v4, %v280_v6  ;;  %v290_v9 = vmul.f32 %v948_v4, %v281_v7  ;;  %v283_v17 = vld [vmem:[%s273_s14 + $0x18] sm:$0xff]  ;;  %v291_v19 = vmul.f32 %v948_v4, %v282_v16  ;;  %v365_v21 = vld [vmem:[%s1119_s5 + $0x20] sm:$0x3f]  ;;  %672 = vmatpush.bf16.msrb.mxu0 %v930_v39  ;;  %vm778_vm7 = vcmask 64512  }
  0x11   : > { %v292_v20 = vmul.f32 %v948_v4, %v283_v17  ;;  %388 = vperm.xlu2 %947, %v365_v21   ;;  %v284_v27 = vld [vmem:[%s273_s14 + $0x20] sm:$0x3f]  ;;  %s278_s27 = scalar_lea.vmem %s1121_s7, %s935_s22 }
  0x12   : > { %v298_v12 = vadd.f32 %v949_v5, %v289_v8  ;;  %v299_v13 = vadd.f32 %v949_v5, %v290_v9  ;;  %v300_v22 = vadd.f32 %v949_v5, %v291_v19  ;;  %v293_v28 = vmul.f32 %v948_v4, %v284_v27  ;;  %v924_v32 = vld [vmem:[%s1120_s6] sm:$0xff] }
  0x13   : > { %v301_v23 = vadd.f32 %v949_v5, %v292_v20  ;;  %468 = vmatpush.bf16.msra.mxu2 %v924_v32  ;;  %v928_v33 = vld [vmem:[%s1120_s6 + $0x20] sm:$0xff]  ;;  %507 = vmatpush.bf16.msrb.mxu3 %v926_v45 }
  0x14   : > { %v303_v14 = vmax.f32 %v298_v12, 0.0  ;;  %v304_v15 = vmax.f32 %v299_v13, 0.0  ;;  %v305_v24 = vmax.f32 %v300_v22, 0.0  ;;  %v302_v29 = vadd.f32 %v949_v5, %v293_v28  ;;  %v950_v36 = vld [vmem:[%s1118_s4] ss:$0 sm:$0xff]  ;;  %547 = vmatpush.bf16.msrb.mxu1 %v927_v46 }
  0x15   : > { %373 = vperm.xlu0 %945, %v362_v10   ;;  %v306_v25 = vmax.f32 %v301_v23, 0.0  ;;  %v932_v54 = vld [vmem:[%s1120_s6 + $0x40] sm:$0xff]  ;;  %v931_v10 = vld [vmem:[%s1120_s6 + $0x38] sm:$0xff] }
  0x16   : > { %383 = vperm.xlu1 %946, %v364_v11   ;;  %v308_v18 = vpack.c.bf16 %v304_v15, %v303_v14  ;;  %v307_v30 = vmax.f32 %v302_v29, 0.0  ;;  %v929_v11 = vld [vmem:[%s1120_s6 + $0x28] sm:$0xff] }
  0x17   : > { %v309_v26 = vpack.c.bf16 %v306_v25, %v305_v24  ;;  %591 = vmatpush.bf16.msrb.mxu2 %v928_v33 }
  0x18   : > { %848 = vmatmul.msk.bf16.vlgmr.msra.gmra.mxu0 %vm323_vm0, %v308_v18  ;;  %v310_v31 = vpack.c.bf16 %v307_v30, %v307_v30 }
  0x28   : > { %849 = vmatmul.msk.bf16.gmra.mxu0 %vm323_vm0, %v309_v26 }
  0x38   : > { %850 = vmatmul.msk.bf16.gmra.mxu0 %vm323_vm0, %v310_v31 }
  0x6b   : > { %v389_v5 = vpop.permute.xlu2 %388 }
  0x7f   : > { %v369_v35 = vpop.permute.xlu0 %368 }
  0x80   : > { %v379_v51 = vpop.permute.xlu1 %378 }
  0x87   : > { %v374_v43 = vpop.permute.xlu0 %373 }
  0x88   : > { %v384_v60 = vpop.permute.xlu1 %383 }
  0x95   : > { %v342_v34 = vpop.f32.mrf.mxu0 }
  0x96   : > { %v343_v38 = vadd.f32 %v950_v36, %v342_v34 }
  0x98   : > { %v356_v41 = vmax.f32 %v343_v38, 0.0 }
  0x9a   : > { %v391_v47 = vmul.f32 %v369_v35, %v356_v41 }
  0x9d   : > { %v344_v40 = vpop.f32.mrf.mxu0 }
  0x9e   : > { %v345_v42 = vadd.f32 %v950_v36, %v344_v40 }
  0xa0   : > { %v357_v44 = vmax.f32 %v345_v42, 0.0 }
  0xa2   : > { %v392_v48 = vmul.f32 %v374_v43, %v357_v44 }
  0xa4   : > { %v1062_v49 = vpack.c.bf16 %v392_v48, %v391_v47 }
  0xa5   : > { %v347_v50 = vpop.f32.mrf.mxu0 }
  0xa6   : > { %863 = vmatmul.msk.bf16.vlgmr.msra.gmra.mxu2 %vm323_vm0, %v1062_v49  ;;  %v348_v52 = vadd.f32 %v950_v36, %v347_v50  ;;  %v408_v59 = vshll.u32 %v1062_v49, 16  ;;  %v406_v3 = vshrl.u32 %v1062_v49, 16  ;;  %v525_v30 = vrot.slane %v1062_v49, 3 }
  0xa7   : > { %764 = vmatpush.bf16.msra.mxu2 %v932_v54  ;;  %v485_v31 = vrot.slane %v1062_v49, 1 }
  0xa8   : > { %v358_v53 = vmax.f32 %v348_v52, 0.0  ;;  %v410_v0 = vrot.slane %v408_v59, 1  ;;  %v565_v22 = vrot.slane %v406_v3, 3  ;;  %v566_v23 = vrot.slane %v408_v59, 4 }
  0xaa   : > { %v393_v57 = vmul.f32 %v379_v51, %v358_v53  ;;  %v411_v7 = vor.u32 %v410_v0, %v406_v3  ;;  %v567_v26 = vor.u32 %v566_v23, %v565_v22 }
  0xac   : > { %v397_v63 = vpack.c.bf16 %v393_v57, %v393_v57  ;;  %v605_v12 = vpack.c.bf16 %v393_v57, %v392_v48 }
  0xad   : > { %v349_v55 = vpop.f32.mrf.mxu0 }
  0xae   : > { %v350_v56 = vadd.f32 %v950_v36, %v349_v55  ;;  %v650_v20 = vrot.slane %v605_v12, 2  ;;  %v693_v37 = vshll.u32 %v605_v12, 16  ;;  %v742_v41 = vrot.slane %v605_v12, 3 }
  0xb0   : > { %v359_v58 = vmax.f32 %v350_v56, 0.0  ;;  %v695_v43 = vrot.slane %v693_v37, 3 }
  0xb2   : > { %v1070_v61 = vmul.f32 %v384_v60, %v359_v58 }
  0xb4   : > { %v400_v62 = vpack.c.bf16 %v1070_v61, %v393_v57  ;;  %v606_v48 = vpack.c.bf16 %v1070_v61, %v1070_v61 }
  0xb5   : > { %v352_v1 = vpop.f32.mrf.mxu0 }
  0xb6   : > { %v353_v2 = vadd.f32 %v950_v36, %v352_v1  ;;  %864 = vmatmul.msk.bf16.gmra.mxu2 %vm323_vm0, %v397_v63  ;;  %v413_v4 = vshll.u32 %v400_v62, 16  ;;  %v417_v9 = vshrl.u32 %v400_v62, 16  ;;  %v526_v28 = vrot.slane %v400_v62, 3 }
  0xb7   : > { %v486_v29 = vrot.slane %v400_v62, 1  ;;  %v690_v36 = vshrl.u32 %v605_v12, 16 }
  0xb8   : > { %v360_v6 = vmax.f32 %v353_v2, 0.0  ;;  %v415_v8 = vrot.slane %v413_v4, 1  ;;  %v568_v17 = vrot.slane %v417_v9, 3  ;;  %v569_v18 = vrot.slane %v413_v4, 4 }
  0xb9   : > { %v527_v32 = vsel %vm524_vm4, %v525_v30, %v526_v28  ;;  %v487_v33 = vsel %vm484_vm5, %v485_v31, %v486_v29  ;;  %v692_v42 = vrot.slane %v690_v36, 2 }
  0xba   : > { %v395_v13 = vmul.f32 %v389_v5, %v360_v6  ;;  %v416_v14 = vsel %vm404_vm1, %v411_v7, %v415_v8  ;;  %v419_v15 = vor.u32 %v417_v9, %v415_v8  ;;  %v570_v25 = vor.u32 %v569_v18, %v568_v17 }
  0xbb   : > { %857 = vmatmul.msk.bf16.vlgmr.msra.gmra.mxu1 %vm323_vm0, %v416_v14  ;;  %v696_v46 = vor.u32 %v695_v43, %v692_v42 }
  0xbc   : > { %v643_v16 = vpack.c.bf16 %v395_v13, %v1070_v61  ;;  %858 = vmatmul.msk.bf16.vlgmr.msra.gmra.mxu3 %vm323_vm0, %v419_v15  ;;  %725 = vmatpush.bf16.msra.mxu1 %v931_v10  ;;  %v571_v27 = vsel %vm564_vm3, %v567_v26, %v570_v25 }
  0xbd   : > { %629 = vmatpush.bf16.msra.mxu3 %v929_v11  ;;  %v354_v19 = vpop.f32.mrf.mxu0 }
  0xbe   : > { %v651_v21 = vrot.slane %v643_v16, 2  ;;  %v698_v34 = vshrl.u32 %v643_v16, 16  ;;  %v701_v35 = vshll.u32 %v643_v16, 16  ;;  %v743_v38 = vrot.slane %v643_v16, 3 }
  0xc0   : > { %v652_v24 = vsel %vm649_vm2, %v650_v20, %v651_v21  ;;  %v700_v39 = vrot.slane %v698_v34, 2  ;;  %v703_v40 = vrot.slane %v701_v35, 3  ;;  %v744_v44 = vsel %vm524_vm4, %v742_v41, %v743_v38 }
  0xc1   : > { %903 = vmatmul.msk.bf16.vlgmr.msrb.gmra.mxu0 %vm323_vm0, %v652_v24 }
  0xc2   : > { %v704_v45 = vor.u32 %v703_v40, %v700_v39 }
  0xc4   : > { %v705_v47 = vsel %vm689_vm6, %v696_v46, %v704_v45 }
  0xc6   : > { %887 = vmatmul.msk.bf16.vlgmr.msrb.gmra.mxu2 %vm323_vm0, %v571_v27 }
  0xcb   : > { %879 = vmatmul.msk.bf16.vlgmr.msrb.gmra.mxu1 %vm323_vm0, %v527_v32 }
  0xcc   : > { %871 = vmatmul.msk.bf16.vlgmr.msrb.gmra.mxu3 %vm323_vm0, %v487_v33 }
  0xd1   : > { %904 = vmatmul.msk.bf16.gmra.mxu0 %vm323_vm0, %v651_v21 }
  0xd6   : > { %888 = vmatmul.msk.bf16.gmra.mxu2 %vm323_vm0, %v570_v25 }
  0xdb   : > { %880 = vmatmul.msk.bf16.gmra.mxu1 %vm323_vm0, %v526_v28 }
  0xdc   : > { %872 = vmatmul.msk.bf16.gmra.mxu3 %vm323_vm0, %v486_v29 }
  0xe6   : > { %919 = vmatmul.msk.bf16.vlgmr.msra.gmra.mxu2 %vm323_vm0, %v744_v44 }
  0xeb   : > { %911 = vmatmul.msk.bf16.vlgmr.msra.gmra.mxu1 %vm323_vm0, %v705_v47 }
  0xec   : > { %895 = vmatmul.msk.bf16.vlgmr.msra.gmra.mxu3 %vm323_vm0, %v605_v12 }
  0xf6   : > { %920 = vmatmul.msk.bf16.gmra.mxu2 %vm323_vm0, %v743_v38 }
  0xfb   : > { %912 = vmatmul.msk.bf16.gmra.mxu1 %vm323_vm0, %v704_v45 }
  0xfc   : > { %896 = vmatmul.msk.bf16.gmra.mxu3 %vm323_vm0, %v606_v48 }
 0x129   : > { %v470_v49 = vpop.f32.mrf.mxu2 }
 0x131   : > { %v472_v50 = vpop.f32.mrf.mxu2 }
 0x138   : > { %v441_v51 = vpop.f32.mrf.mxu1 }
 0x139   : > { %v475_v52 = vpop.f32.mrf.mxu2  ;;  %v471_v8 = vadd.f32 %v470_v49, %v441_v51 }
 0x13e   : > { %v674_v53 = vpop.f32.mrf.mxu0 }
 0x13f   : > { %v446_v54 = vpop.f32.mrf.mxu3 }
 0x140   : > { %v443_v55 = vpop.f32.mrf.mxu1  ;;  %v476_v23 = vadd.f32 %v475_v52, %v446_v54 }
 0x141   : > { %v477_v56 = vpop.f32.mrf.mxu2  ;;  %v473_v14 = vadd.f32 %v472_v50, %v443_v55 }
 0x146   : > { %v676_v57 = vpop.f32.mrf.mxu0 }
 0x147   : > { %v448_v58 = vpop.f32.mrf.mxu3 }
 0x148   : > { %v549_v59 = vpop.f32.mrf.mxu1 }
 0x149   : > { %v593_v60 = vpop.f32.mrf.mxu2 }
 0x14e   : > { %v679_v62 = vpop.f32.mrf.mxu0 }
 0x14f   : > { %v509_v63 = vpop.f32.mrf.mxu3 }
 0x150   : > { %v551_v0 = vpop.f32.mrf.mxu1  ;;  %v518_v9 = vadd.f32 %v509_v63, %v471_v8 }
 0x151   : > { %v595_v61 = vpop.f32.mrf.mxu2 }
 0x152   : > { %v558_v13 = vadd.f32 %v549_v59, %v518_v9 }
 0x154   : > { %v602_v16 = vadd.f32 %v593_v60, %v558_v13 }
 0x156   : > { %v681_v1 = vpop.f32.mrf.mxu0 }
 0x157   : > { %v511_v2 = vpop.f32.mrf.mxu3 }
 0x158   : > { %v554_v3 = vpop.f32.mrf.mxu1  ;;  %v519_v15 = vadd.f32 %v511_v2, %v473_v14 }
 0x159   : > { %v598_v4 = vpop.f32.mrf.mxu2 }
 0x15a   : > { %v559_v21 = vadd.f32 %v551_v0, %v519_v15 }
 0x15c   : > { %v603_v27 = vadd.f32 %v595_v61, %v559_v21 }
 0x15f   : > { %v514_v5 = vpop.f32.mrf.mxu3 }
 0x160   : > { %v556_v6 = vpop.f32.mrf.mxu1  ;;  %v520_v25 = vadd.f32 %v514_v5, %v476_v23 }
 0x161   : > { %v600_v7 = vpop.f32.mrf.mxu2 }
 0x162   : > { %v560_v32 = vadd.f32 %v554_v3, %v520_v25 }
 0x164   : > { %v604_v36 = vadd.f32 %v598_v4, %v560_v32 }
 0x167   : > { %v516_v10 = vpop.f32.mrf.mxu3 }
 0x168   : > { %v727_v11 = vpop.f32.mrf.mxu1 }
 0x169   : > { %v766_v12 = vpop.f32.mrf.mxu2 }
 0x16f   : > { %v631_v17 = vpop.f32.mrf.mxu3 }
 0x170   : > { %v640_v18 = vadd.f32 %v631_v17, %v602_v16  ;;  %v729_v19 = vpop.f32.mrf.mxu1 }
 0x171   : > { %v768_v20 = vpop.f32.mrf.mxu2 }
 0x172   : > { %v683_v22 = vadd.f32 %v674_v53, %v640_v18 }
 0x174   : > { %v736_v24 = vadd.f32 %v727_v11, %v683_v22 }
 0x176   : > { %v775_v26 = vadd.f32 %v766_v12, %v736_v24 }
 0x177   : > { %v633_v28 = vpop.f32.mrf.mxu3 }
 0x178   : > { %779 = vst.msk [vmem:[%s278_s27] sm:$0xff] %vm778_vm7, %v775_v26  ;;  %v641_v29 = vadd.f32 %v633_v28, %v603_v27  ;;  %v732_v30 = vpop.f32.mrf.mxu1 }
 0x179   : > { %v771_v31 = vpop.f32.mrf.mxu2 }
 0x17a   : > { %v684_v33 = vadd.f32 %v676_v57, %v641_v29 }
 0x17c   : > { %v737_v34 = vadd.f32 %v729_v19, %v684_v33 }
 0x17e   : > { %v776_v35 = vadd.f32 %v768_v20, %v737_v34 }
 0x17f   : > { %v636_v37 = vpop.f32.mrf.mxu3 }
 0x180   : > { %780 = vst.msk [vmem:[%s278_s27 + $0x8] sm:$0xff] %vm778_vm7, %v776_v35  ;;  %v642_v38 = vadd.f32 %v636_v37, %v604_v36  ;;  %v734_v39 = vpop.f32.mrf.mxu1 }
 0x181   : > { %v773_v40 = vpop.f32.mrf.mxu2 }
 0x182   : > { %v685_v41 = vadd.f32 %v679_v62, %v642_v38 }
 0x184   : > { %v738_v42 = vadd.f32 %v732_v30, %v685_v41 }
 0x186   : > { %v777_v43 = vadd.f32 %v771_v31, %v738_v42 }
 0x187   : > { %v638_v44 = vpop.f32.mrf.mxu3 }
 0x188   : > { %781 = vst.msk [vmem:[%s278_s27 + $0x10] sm:$0xff] %vm778_vm7, %v777_v43 }
 0x189 PF: > { %s17_s24 = sadd.s32 1, %s957_s24  }
 0x18a   : > { %p14_p4 = scmp.ge.s32.totalorder %s17_s24, 4  }
 0x18c   :  { %16 = sbr.rel (!%p14_p4) target bundleno = 1 (0x1), region = 86 }

// kernel: _lambda_.28
= control target key start
LH: loop header
LB: loop body
LE: loop exit
PB: predicated region body
PF: predicated region fallthrough
CT: control target
= control target key end

     0   :  { %s1009_s24 = smov 0   ;;  %s1126_s0 = inlined_call_operand.vmem [shape: f32[2,38,24], index: 0, kind: input, shape index: {}]   ;;  %s1127_s1 = inlined_call_operand.vmem [shape: bf16[24,16], index: 1, kind: input, shape index: {}]   ;;  %s1128_s2 = inlined_call_operand.vmem [shape: f32[1,24], index: 2, kind: input, shape index: {}]   ;;  %s1129_s3 = inlined_call_operand.vmem [shape: f32[1,24], index: 3, kind: input, shape index: {}]   ;;  %s1130_s4 = inlined_call_operand.vmem [shape: f32[1,16], index: 4, kind: input, shape index: {}]   ;;  %s1131_s5 = inlined_call_operand.vmem [shape: f32[38,1], index: 5, kind: input, shape index: {}]   ;;  %s1132_s6 = inlined_call_operand.vmem [shape: bf16[9,16,8], index: 6, kind: input, shape index: {}]   ;;  %s1133_s7 = inlined_call_operand.vmem [shape: f32[2,24,8], index: 7, kind: output, shape index: {}]  }
   0x1 LB: > { %s846_s25 = sadd.s32 4294967295, %s966_s24   ;;  %p850_p0 = scmp.ge.s32.totalorder %s966_s24, 1  ;;  %s966_s24 = sphi %s1009_s24, %s17_s24  }
   0x2   : > { %p237_p1 = scmp.lt.s32.totalorder %s966_s24, 3 }
   0x4   : > { %p238_p2 = pnand %p850_p0, %p237_p1 }
   0x5   : > { %p269_p3 = scmp.lt.s32.totalorder (!%p238_p2), %s846_s25, 1 }
   0x6   : > { %241 = sbr.rel (%p238_p2) target bundleno = 393 (0x189), region = 48 }
   0xb   : > { %v313_v0 = vld [vmem:[%s1127_s1 + $0x8] sm:$0xf]  ;;  %vm337_vm0 = vcmask 1043456   ;;  %s1135_s25 = smov (!%p269_p3, %s846_s25), 1  ;;  %v369_v2 = vld [vmem:[%s1131_s5] sm:$0xff]  ;;  %v968_v4 = vmov 0  }
   0xc   : > { %v323_v1 = vunpack.c.l.b16 %v313_v0  ;;  %954 = vset.pattern.permute.xlu0 %v968_v4  ;;  %955 = vset.pattern.permute.xlu1 %v968_v4  ;;  %v371_v5 = vld [vmem:[%s1131_s5 + $0x10] sm:$0xff]  ;;  %s943_s9 = smul.u32 40, %s1135_s25  ;;  %v957_v6 = vld [vmem:[%s1128_s2] ss:$0 sm:$0xff]  ;;  %v370_v14 = vld [vmem:[%s1131_s5 + $0x8] sm:$0xff]  ;;  %vm327_vm1 = vcmask 195584  }
   0xd   : > { %376 = vperm.xlu0 %954, %v369_v2   ;;  %386 = vperm.xlu1 %955, %v371_v5   ;;  %v932_v8 = vld [vmem:[%s1127_s1] sm:$0xff]  ;;  %v372_v15 = vld [vmem:[%s1131_s5 + $0x18] sm:$0xff]  ;;  %v934_v41 = vld [vmem:[%s1132_s6 + $0x8] sm:$0xff]  ;;  %vm434_vm2 = vcmask 130048   ;;  %vm412_vm3 = vsmask.f32 7424 }
   0xe   : > { %v325_v3 = vpack.c.b16 %v323_v1, %v323_v1  ;;  %956 = vset.pattern.permute.xlu2 %v968_v4  ;;  %s273_s16 = scalar_lea.vmem %s1126_s0, %s943_s9  ;;  %v958_v9 = vld [vmem:[%s1129_s3] ss:$0 sm:$0xff]  ;;  %448 = vmatpush.bf16.msra.mxu1 %v934_v41  ;;  %v939_v43 = vld [vmem:[%s1132_s6 + $0x30] sm:$0xff]  ;;  %v936_v50 = vld [vmem:[%s1132_s6 + $0x18] sm:$0xff]  ;;  %vm658_vm4 = vcmask 1045504   ;;  %vm533_vm6 = vcmask 1044480  }
   0xf   : > { %v280_v10 = vld [vmem:[%s273_s16] sm:$0xff]  ;;  %v281_v11 = vld [vmem:[%s273_s16 + $0x8] sm:$0xff]  ;;  %v282_v20 = vld [vmem:[%s273_s16 + $0x10] sm:$0xff]  ;;  %942 = vmatpush.bf16.msra.mxu3 %v934_v41  ;;  %vm573_vm5 = vsmask.f32 4352  ;;  %vm493_vm7 = vcmask 1046528  }
  0x10   : > { %v339_v7 = vsel %vm337_vm0, %v325_v3, 0  ;;  %v289_v12 = vmul.f32 %v957_v6, %v280_v10  ;;  %v290_v13 = vmul.f32 %v957_v6, %v281_v11  ;;  %v283_v21 = vld [vmem:[%s273_s16 + $0x18] sm:$0xff]  ;;  %v291_v23 = vmul.f32 %v957_v6, %v282_v20  ;;  %v373_v25 = vld [vmem:[%s1131_s5 + $0x20] sm:$0x3f]  ;;  %v935_v49 = vld [vmem:[%s1132_s6 + $0x10] sm:$0xff]  ;;  %s944_s26 = smul.u32 24, %s1135_s25 }
  0x11   : > { %347 = vmatpush.bf16.msra.mxu0 %v339_v7  ;;  %v292_v24 = vmul.f32 %v957_v6, %v283_v21  ;;  %396 = vperm.xlu2 %956, %v373_v25   ;;  %v284_v31 = vld [vmem:[%s273_s16 + $0x20] sm:$0x3f]  ;;  %vm698_vm8 = vsmask.f32 5376  ;;  %vm787_vm9 = vcmask 64512  }
  0x12   : > { %v298_v16 = vadd.f32 %v958_v9, %v289_v12  ;;  %v299_v17 = vadd.f32 %v958_v9, %v290_v13  ;;  %v300_v26 = vadd.f32 %v958_v9, %v291_v23  ;;  %v293_v32 = vmul.f32 %v957_v6, %v284_v31  ;;  %v933_v36 = vld [vmem:[%s1132_s6] sm:$0xff]  ;;  %556 = vmatpush.bf16.msrb.mxu1 %v936_v50  ;;  %s278_s29 = scalar_lea.vmem %s1133_s7, %s944_s26 }
  0x13   : > { %v301_v27 = vadd.f32 %v958_v9, %v292_v24  ;;  %477 = vmatpush.bf16.msra.mxu2 %v933_v36  ;;  %v937_v37 = vld [vmem:[%s1132_s6 + $0x20] sm:$0xff]  ;;  %516 = vmatpush.bf16.msrb.mxu3 %v935_v49 }
  0x14   : > { %v303_v18 = vmax.f32 %v298_v16, 0.0  ;;  %v304_v19 = vmax.f32 %v299_v17, 0.0  ;;  %v305_v28 = vmax.f32 %v300_v26, 0.0  ;;  %v302_v33 = vadd.f32 %v958_v9, %v293_v32  ;;  %v959_v40 = vld [vmem:[%s1130_s4] ss:$0 sm:$0xff] }
  0x15   : > { %348 = vmatpush.bf16.msra.mxu0 %v932_v8  ;;  %381 = vperm.xlu0 %954, %v370_v14   ;;  %v306_v29 = vmax.f32 %v301_v27, 0.0  ;;  %v941_v58 = vld [vmem:[%s1132_s6 + $0x40] sm:$0xff]  ;;  %v940_v14 = vld [vmem:[%s1132_s6 + $0x38] sm:$0xff] }
  0x16   : > { %391 = vperm.xlu1 %955, %v372_v15   ;;  %v308_v22 = vpack.c.bf16 %v304_v19, %v303_v18  ;;  %v307_v34 = vmax.f32 %v302_v33, 0.0  ;;  %v938_v15 = vld [vmem:[%s1132_s6 + $0x28] sm:$0xff] }
  0x17   : > { %v309_v30 = vpack.c.bf16 %v306_v29, %v305_v28  ;;  %600 = vmatpush.bf16.msrb.mxu2 %v937_v37 }
  0x18   : > { %857 = vmatmul.msk.bf16.vlgmr.msra.gmra.mxu0 %vm327_vm1, %v308_v22  ;;  %v310_v35 = vpack.c.bf16 %v307_v34, %v307_v34 }
  0x19   : > { %681 = vmatpush.bf16.msrb.mxu0 %v939_v43 }
  0x28   : > { %858 = vmatmul.msk.bf16.gmra.mxu0 %vm327_vm1, %v309_v30 }
  0x38   : > { %859 = vmatmul.msk.bf16.gmra.mxu0 %vm327_vm1, %v310_v35 }
  0x6b   : > { %v397_v9 = vpop.permute.xlu2 %396 }
  0x7f   : > { %v377_v39 = vpop.permute.xlu0 %376  ;;  %v387_v55 = vpop.permute.xlu1 %386 }
  0x87   : > { %v382_v47 = vpop.permute.xlu0 %381 }
  0x88   : > { %v392_v0 = vpop.permute.xlu1 %391 }
  0x95   : > { %v350_v38 = vpop.f32.mrf.mxu0 }
  0x96   : > { %v351_v42 = vadd.f32 %v959_v40, %v350_v38 }
  0x98   : > { %v364_v45 = vmax.f32 %v351_v42, 0.0 }
  0x9a   : > { %v399_v51 = vmul.f32 %v377_v39, %v364_v45 }
  0x9d   : > { %v352_v44 = vpop.f32.mrf.mxu0 }
  0x9e   : > { %v353_v46 = vadd.f32 %v959_v40, %v352_v44 }
  0xa0   : > { %v365_v48 = vmax.f32 %v353_v46, 0.0 }
  0xa2   : > { %v400_v52 = vmul.f32 %v382_v47, %v365_v48 }
  0xa4   : > { %v1074_v53 = vpack.c.bf16 %v400_v52, %v399_v51 }
  0xa5   : > { %v355_v54 = vpop.f32.mrf.mxu0 }
  0xa6   : > { %872 = vmatmul.msk.bf16.vlgmr.msra.gmra.mxu2 %vm434_vm2, %v1074_v53  ;;  %v356_v56 = vadd.f32 %v959_v40, %v355_v54  ;;  %v416_v63 = vshll.u32 %v1074_v53, 16  ;;  %v414_v7 = vshrl.u32 %v1074_v53, 16  ;;  %v534_v34 = vrot.slane %v1074_v53, 3 }
  0xa7   : > { %773 = vmatpush.bf16.msra.mxu2 %v941_v58  ;;  %v494_v35 = vrot.slane %v1074_v53, 1 }
  0xa8   : > { %v366_v57 = vmax.f32 %v356_v56, 0.0  ;;  %v418_v4 = vrot.slane %v416_v63, 1  ;;  %v574_v26 = vrot.slane %v414_v7, 3  ;;  %v575_v27 = vrot.slane %v416_v63, 4 }
  0xaa   : > { %v401_v61 = vmul.f32 %v387_v55, %v366_v57  ;;  %v419_v11 = vor.u32 %v418_v4, %v414_v7  ;;  %v576_v30 = vor.u32 %v575_v27, %v574_v26 }
  0xac   : > { %v405_v3 = vpack.c.bf16 %v401_v61, %v401_v61  ;;  %v614_v16 = vpack.c.bf16 %v401_v61, %v400_v52 }
  0xad   : > { %v357_v59 = vpop.f32.mrf.mxu0 }
  0xae   : > { %v358_v60 = vadd.f32 %v959_v40, %v357_v59  ;;  %v659_v24 = vrot.slane %v614_v16, 2  ;;  %v702_v41 = vshll.u32 %v614_v16, 16  ;;  %v751_v45 = vrot.slane %v614_v16, 3 }
  0xb0   : > { %v367_v62 = vmax.f32 %v358_v60, 0.0  ;;  %v704_v47 = vrot.slane %v702_v41, 3 }
  0xb2   : > { %v1082_v1 = vmul.f32 %v392_v0, %v367_v62 }
  0xb4   : > { %v408_v2 = vpack.c.bf16 %v1082_v1, %v401_v61  ;;  %v615_v52 = vpack.c.bf16 %v1082_v1, %v1082_v1 }
  0xb5   : > { %v360_v5 = vpop.f32.mrf.mxu0 }
  0xb6   : > { %v361_v6 = vadd.f32 %v959_v40, %v360_v5  ;;  %873 = vmatmul.msk.bf16.gmra.mxu2 %vm434_vm2, %v405_v3  ;;  %v421_v8 = vshll.u32 %v408_v2, 16  ;;  %v425_v13 = vshrl.u32 %v408_v2, 16  ;;  %v535_v32 = vrot.slane %v408_v2, 3 }
  0xb7   : > { %v495_v33 = vrot.slane %v408_v2, 1  ;;  %v699_v40 = vshrl.u32 %v614_v16, 16 }
  0xb8   : > { %v368_v10 = vmax.f32 %v361_v6, 0.0  ;;  %v423_v12 = vrot.slane %v421_v8, 1  ;;  %v577_v21 = vrot.slane %v425_v13, 3  ;;  %v578_v22 = vrot.slane %v421_v8, 4 }
  0xb9   : > { %v536_v36 = vsel %vm533_vm6, %v534_v34, %v535_v32  ;;  %v496_v37 = vsel %vm493_vm7, %v494_v35, %v495_v33  ;;  %v701_v46 = vrot.slane %v699_v40, 2 }
  0xba   : > { %v403_v17 = vmul.f32 %v397_v9, %v368_v10  ;;  %v424_v18 = vsel %vm412_vm3, %v419_v11, %v423_v12  ;;  %v427_v19 = vor.u32 %v425_v13, %v423_v12  ;;  %v579_v29 = vor.u32 %v578_v22, %v577_v21 }
  0xbb   : > { %866 = vmatmul.msk.bf16.vlgmr.msra.gmra.mxu1 %vm434_vm2, %v424_v18  ;;  %v705_v50 = vor.u32 %v704_v47, %v701_v46 }
  0xbc   : > { %v652_v20 = vpack.c.bf16 %v403_v17, %v1082_v1  ;;  %867 = vmatmul.msk.bf16.vlgmr.msra.gmra.mxu3 %vm434_vm2, %v427_v19  ;;  %734 = vmatpush.bf16.msra.mxu1 %v940_v14  ;;  %v580_v31 = vsel %vm573_vm5, %v576_v30, %v579_v29 }
  0xbd   : > { %638 = vmatpush.bf16.msra.mxu3 %v938_v15  ;;  %v362_v23 = vpop.f32.mrf.mxu0 }
  0xbe   : > { %v660_v25 = vrot.slane %v652_v20, 2  ;;  %v707_v38 = vshrl.u32 %v652_v20, 16  ;;  %v710_v39 = vshll.u32 %v652_v20, 16  ;;  %v752_v42 = vrot.slane %v652_v20, 3 }
  0xc0   : > { %v661_v28 = vsel %vm658_vm4, %v659_v24, %v660_v25  ;;  %v709_v43 = vrot.slane %v707_v38, 2  ;;  %v712_v44 = vrot.slane %v710_v39, 3  ;;  %v753_v48 = vsel %vm533_vm6, %v751_v45, %v752_v42 }
  0xc1   : > { %912 = vmatmul.msk.bf16.vlgmr.msrb.gmra.mxu0 %vm434_vm2, %v661_v28 }
  0xc2   : > { %v713_v49 = vor.u32 %v712_v44, %v709_v43 }
  0xc4   : > { %v714_v51 = vsel %vm698_vm8, %v705_v50, %v713_v49 }
  0xc6   : > { %896 = vmatmul.msk.bf16.vlgmr.msrb.gmra.mxu2 %vm434_vm2, %v580_v31 }
  0xcb   : > { %888 = vmatmul.msk.bf16.vlgmr.msrb.gmra.mxu1 %vm434_vm2, %v536_v36 }
  0xcc   : > { %880 = vmatmul.msk.bf16.vlgmr.msrb.gmra.mxu3 %vm434_vm2, %v496_v37 }
  0xd1   : > { %913 = vmatmul.msk.bf16.gmra.mxu0 %vm434_vm2, %v660_v25 }
  0xd6   : > { %897 = vmatmul.msk.bf16.gmra.mxu2 %vm434_vm2, %v579_v29 }
  0xdb   : > { %889 = vmatmul.msk.bf16.gmra.mxu1 %vm434_vm2, %v535_v32 }
  0xdc   : > { %881 = vmatmul.msk.bf16.gmra.mxu3 %vm434_vm2, %v495_v33 }
  0xe6   : > { %928 = vmatmul.msk.bf16.vlgmr.msra.gmra.mxu2 %vm434_vm2, %v753_v48 }
  0xeb   : > { %920 = vmatmul.msk.bf16.vlgmr.msra.gmra.mxu1 %vm434_vm2, %v714_v51 }
  0xec   : > { %904 = vmatmul.msk.bf16.vlgmr.msra.gmra.mxu3 %vm434_vm2, %v614_v16 }
  0xf6   : > { %929 = vmatmul.msk.bf16.gmra.mxu2 %vm434_vm2, %v752_v42 }
  0xfb   : > { %921 = vmatmul.msk.bf16.gmra.mxu1 %vm434_vm2, %v713_v49 }
  0xfc   : > { %905 = vmatmul.msk.bf16.gmra.mxu3 %vm434_vm2, %v615_v52 }
 0x129   : > { %v479_v53 = vpop.f32.mrf.mxu2 }
 0x131   : > { %v481_v54 = vpop.f32.mrf.mxu2 }
 0x138   : > { %v450_v55 = vpop.f32.mrf.mxu1 }
 0x139   : > { %v484_v56 = vpop.f32.mrf.mxu2  ;;  %v480_v12 = vadd.f32 %v479_v53, %v450_v55 }
 0x13e   : > { %v683_v57 = vpop.f32.mrf.mxu0 }
 0x13f   : > { %v455_v58 = vpop.f32.mrf.mxu3 }
 0x140   : > { %v452_v59 = vpop.f32.mrf.mxu1  ;;  %v485_v27 = vadd.f32 %v484_v56, %v455_v58 }
 0x141   : > { %v486_v60 = vpop.f32.mrf.mxu2  ;;  %v482_v18 = vadd.f32 %v481_v54, %v452_v59 }
 0x146   : > { %v685_v61 = vpop.f32.mrf.mxu0 }
 0x147   : > { %v457_v62 = vpop.f32.mrf.mxu3 }
 0x148   : > { %v558_v63 = vpop.f32.mrf.mxu1 }
 0x149   : > { %v602_v0 = vpop.f32.mrf.mxu2 }
 0x14e   : > { %v688_v2 = vpop.f32.mrf.mxu0 }
 0x14f   : > { %v518_v3 = vpop.f32.mrf.mxu3 }
 0x150   : > { %v560_v4 = vpop.f32.mrf.mxu1  ;;  %v527_v13 = vadd.f32 %v518_v3, %v480_v12 }
 0x151   : > { %v604_v1 = vpop.f32.mrf.mxu2 }
 0x152   : > { %v567_v17 = vadd.f32 %v558_v63, %v527_v13 }
 0x154   : > { %v611_v20 = vadd.f32 %v602_v0, %v567_v17 }
 0x156   : > { %v690_v5 = vpop.f32.mrf.mxu0 }
 0x157   : > { %v520_v6 = vpop.f32.mrf.mxu3 }
 0x158   : > { %v563_v7 = vpop.f32.mrf.mxu1  ;;  %v528_v19 = vadd.f32 %v520_v6, %v482_v18 }
 0x159   : > { %v607_v8 = vpop.f32.mrf.mxu2 }
 0x15a   : > { %v568_v25 = vadd.f32 %v560_v4, %v528_v19 }
 0x15c   : > { %v612_v31 = vadd.f32 %v604_v1, %v568_v25 }
 0x15f   : > { %v523_v9 = vpop.f32.mrf.mxu3 }
 0x160   : > { %v565_v10 = vpop.f32.mrf.mxu1  ;;  %v529_v29 = vadd.f32 %v523_v9, %v485_v27 }
 0x161   : > { %v609_v11 = vpop.f32.mrf.mxu2 }
 0x162   : > { %v569_v36 = vadd.f32 %v563_v7, %v529_v29 }
 0x164   : > { %v613_v40 = vadd.f32 %v607_v8, %v569_v36 }
 0x167   : > { %v525_v14 = vpop.f32.mrf.mxu3 }
 0x168   : > { %v736_v15 = vpop.f32.mrf.mxu1 }
 0x169   : > { %v775_v16 = vpop.f32.mrf.mxu2 }
 0x16f   : > { %v640_v21 = vpop.f32.mrf.mxu3 }
 0x170   : > { %v649_v22 = vadd.f32 %v640_v21, %v611_v20  ;;  %v738_v23 = vpop.f32.mrf.mxu1 }
 0x171   : > { %v777_v24 = vpop.f32.mrf.mxu2 }
 0x172   : > { %v692_v26 = vadd.f32 %v683_v57, %v649_v22 }
 0x174   : > { %v745_v28 = vadd.f32 %v736_v15, %v692_v26 }
 0x176   : > { %v784_v30 = vadd.f32 %v775_v16, %v745_v28 }
 0x177   : > { %v642_v32 = vpop.f32.mrf.mxu3 }
 0x178   : > { %788 = vst.msk [vmem:[%s278_s29] sm:$0xff] %vm787_vm9, %v784_v30  ;;  %v650_v33 = vadd.f32 %v642_v32, %v612_v31  ;;  %v741_v34 = vpop.f32.mrf.mxu1 }
 0x179   : > { %v780_v35 = vpop.f32.mrf.mxu2 }
 0x17a   : > { %v693_v37 = vadd.f32 %v685_v61, %v650_v33 }
 0x17c   : > { %v746_v38 = vadd.f32 %v738_v23, %v693_v37 }
 0x17e   : > { %v785_v39 = vadd.f32 %v777_v24, %v746_v38 }
 0x17f   : > { %v645_v41 = vpop.f32.mrf.mxu3 }
 0x180   : > { %789 = vst.msk [vmem:[%s278_s29 + $0x8] sm:$0xff] %vm787_vm9, %v785_v39  ;;  %v651_v42 = vadd.f32 %v645_v41, %v613_v40  ;;  %v743_v43 = vpop.f32.mrf.mxu1 }
 0x181   : > { %v782_v44 = vpop.f32.mrf.mxu2 }
 0x182   : > { %v694_v45 = vadd.f32 %v688_v2, %v651_v42 }
 0x184   : > { %v747_v46 = vadd.f32 %v741_v34, %v694_v45 }
 0x186   : > { %v786_v47 = vadd.f32 %v780_v35, %v747_v46 }
 0x187   : > { %v647_v48 = vpop.f32.mrf.mxu3 }
 0x188   : > { %790 = vst.msk [vmem:[%s278_s29 + $0x10] sm:$0xff] %vm787_vm9, %v786_v47 }
 0x189 PF: > { %s17_s24 = sadd.s32 1, %s966_s24  }
 0x18a   : > { %p14_p4 = scmp.ge.s32.totalorder %s17_s24, 4  }
 0x18c   :  { %16 = sbr.rel (!%p14_p4) target bundleno = 1 (0x1), region = 86 }

// kernel: _lambda_.33
= control target key start
LH: loop header
LB: loop body
LE: loop exit
PB: predicated region body
PF: predicated region fallthrough
CT: control target
= control target key end

     0   :  { %s183_s0 = inlined_call_operand.vmem [shape: f32[8,32], index: 0, kind: input, shape index: {}]   ;;  %s184_s1 = inlined_call_operand.vmem [shape: bf16[32,32], index: 1, kind: input, shape index: {}]   ;;  %s185_s2 = inlined_call_operand.vmem [shape: f32[1,32], index: 2, kind: input, shape index: {}]   ;;  %s186_s3 = inlined_call_operand.vmem [shape: f32[1,32], index: 3, kind: input, shape index: {}]   ;;  %s187_s4 = inlined_call_operand.vmem [shape: f32[1,32], index: 4, kind: input, shape index: {}]   ;;  %s188_s5 = inlined_call_operand.hbm [shape: f32[8,32], index: 5, kind: output, shape index: {}]  }
   0x1   :  { %v100_v0 = vld [vmem:[%s184_s1 + $0x8] sm:$0xff]  ;;  %v22_v1 = vld [vmem:[%s183_s0] sm:$0xff] }
   0x2   :  { %v102_v2 = vld [vmem:[%s185_s2] ss:$0 sm:$0xff]  ;;  %65 = vmatpush.bf16.msra.mxu0 %v100_v0 }
   0x3   :  { %v99_v3 = vld [vmem:[%s184_s1] sm:$0xff]  ;;  %v27_v5 = vmul.f32 %v102_v2, %v22_v1 }
   0x4   :  { %v103_v4 = vld [vmem:[%s186_s3] ss:$0 sm:$0xff] }
   0x5   :  { %10 = vsyncpa [#allocation3], 0  ;;  %v32_v6 = vadd.f32 %v103_v4, %v27_v5  ;;  %vm55_vm0 = vcmask 261120   ;;  %v104_v9 = vld [vmem:[%s187_s4] ss:$0 sm:$0xff]  ;;  %s131_s2 = smov [#allocation2]  }
   0x6   :  { %66 = vmatpush.bf16.msra.mxu0 %v99_v3  ;;  %s79_s29 = sshll.u32 %s131_s2, 4  ;;  %s81_s6 = sshll.u32 %s188_s5, 4  ;;  %s80_s29 = int_to_ptr.vmem [resolvable:$true] %s79_s29  ;;  %s82_s6 = int_to_ptr.hbm [resolvable:$true] %s81_s6 }
   0x7   :  { %v33_v7 = vmax.f32 %v32_v6, 0.0 }
   0x9   :  { %v34_v8 = vpack.c.bf16 %v33_v7, %v33_v7 }
   0xb   :  { %98 = vmatmul.msk.bf16.vlgmr.msra.gmra.mxu0 %vm55_vm0, %v34_v8 }
  0x88   :  { %v68_v10 = vpop.f32.mrf.mxu0 }
  0x89   :  { %v69_v11 = vadd.f32 %v104_v9, %v68_v10 }
  0x8b   :  { %v72_v12 = vmax.f32 %v69_v11, 0.0 }
  0x8d   :  { %73 = vst.msk [vmem:[#allocation2] sm:$0xff] %vm55_vm0, %v72_v12 }
  0x8e   :  { %84 = dma.vmem_to_hbm [thread:$0]  %s80_s29, 128, %s82_s6, [#allocation3]  }
  0x90   :  { %v70_v13 = vpop.f32.mrf.mxu0 }
  0x91   :  { %129 = dma.done.wait [#allocation3], 128  }
  0x92   :  { %130 = vsyncadd [#allocation3], 4294967168 }
  0x93   :  { %89 = vsyncpa [#allocation3], 1 }

// kernel: _lambda_.31
= control target key start
LH: loop header
LB: loop body
LE: loop exit
PB: predicated region body
PF: predicated region fallthrough
CT: control target
= control target key end

     0   :  { %s983_s24 = smov 0   ;;  %s1084_s0 = inlined_call_operand.vmem [shape: f32[2,32,16], index: 0, kind: input, shape index: {}]   ;;  %s1085_s1 = inlined_call_operand.vmem [shape: bf16[16,16], index: 1, kind: input, shape index: {}]   ;;  %s1086_s2 = inlined_call_operand.vmem [shape: f32[1,16], index: 2, kind: input, shape index: {}]   ;;  %s1087_s3 = inlined_call_operand.vmem [shape: f32[1,16], index: 3, kind: input, shape index: {}]   ;;  %s1088_s4 = inlined_call_operand.vmem [shape: f32[1,16], index: 4, kind: input, shape index: {}]   ;;  %s1089_s5 = inlined_call_operand.vmem [shape: f32[32,1], index: 5, kind: input, shape index: {}]   ;;  %s1090_s6 = inlined_call_operand.vmem [shape: bf16[9,16,8], index: 6, kind: input, shape index: {}]   ;;  %s1091_s7 = inlined_call_operand.vmem [shape: f32[2,18,8], index: 7, kind: output, shape index: {}]  }
   0x1 LB: > { %s820_s25 = sadd.s32 4294967295, %s940_s24   ;;  %p824_p0 = scmp.ge.s32.totalorder %s940_s24, 1  ;;  %s940_s24 = sphi %s983_s24, %s17_s24  }
   0x2   : > { %p237_p1 = scmp.lt.s32.totalorder %s940_s24, 3 }
   0x4   : > { %p238_p2 = pnand %p824_p0, %p237_p1 }
   0x5   : > { %p269_p3 = scmp.lt.s32.totalorder (!%p238_p2), %s820_s25, 1 }
   0x6   : > { %241 = sbr.rel (%p238_p2) target bundleno = 374 (0x176), region = 48 }
   0xb   : > { %v907_v0 = vld [vmem:[%s1085_s1] sm:$0xff]  ;;  %s1093_s25 = smov (!%p269_p3, %s820_s25), 1  ;;  %v350_v1 = vld [vmem:[%s1089_s5 + $0x10] sm:$0xff]  ;;  %v349_v2 = vld [vmem:[%s1089_s5 + $0x8] sm:$0xff]  ;;  %v942_v4 = vmov 0   ;;  %vm318_vm0 = vcmask 130048  }
   0xc   : > { %332 = vmatpush.bf16.msra.mxu0 %v907_v0  ;;  %917 = vmatpush.bf16.msra.mxu2 %v907_v0  ;;  %v931_v3 = vld [vmem:[%s1086_s2] ss:$0 sm:$0xff]  ;;  %s906_s11 = sshll.u32 %s1093_s25, 5  ;;  %v351_v18 = vld [vmem:[%s1089_s5 + $0x18] sm:$0xff]  ;;  %v909_v28 = vld [vmem:[%s1090_s6 + $0x8] sm:$0xff]  ;;  %vm502_vm1 = vcmask 1044480  }
   0xd   : > { %929 = vset.pattern.permute.xlu0 %v942_v4  ;;  %930 = vset.pattern.permute.xlu1 %v942_v4  ;;  %s273_s14 = scalar_lea.vmem %s1084_s0, %s906_s11  ;;  %v932_v5 = vld [vmem:[%s1087_s3] ss:$0 sm:$0xff]  ;;  %v911_v27 = vld [vmem:[%s1090_s6 + $0x18] sm:$0xff]  ;;  %v910_v29 = vld [vmem:[%s1090_s6 + $0x10] sm:$0xff]  ;;  %vm383_vm2 = vsmask.f32 7424 }
   0xe   : > { %364 = vperm.xlu0 %929, %v350_v1   ;;  %359 = vperm.xlu1 %930, %v349_v2   ;;  %v280_v6 = vld [vmem:[%s273_s14] sm:$0xff]  ;;  %v281_v7 = vld [vmem:[%s273_s14 + $0x8] sm:$0xff]  ;;  %v282_v8 = vld [vmem:[%s273_s14 + $0x10] sm:$0xff]  ;;  %vm462_vm3 = vcmask 1046528   ;;  %vm543_vm4 = vsmask.f32 4352 }
   0xf   : > { %v288_v9 = vmul.f32 %v931_v3, %v280_v6  ;;  %v289_v10 = vmul.f32 %v931_v3, %v281_v7  ;;  %v283_v11 = vld [vmem:[%s273_s14 + $0x18] sm:$0xff]  ;;  %v290_v12 = vmul.f32 %v931_v3, %v282_v8  ;;  %v348_v17 = vld [vmem:[%s1089_s5] sm:$0xff]  ;;  %918 = vmatpush.bf16.msra.mxu3 %v909_v28  ;;  %418 = vmatpush.bf16.msra.mxu1 %v909_v28  ;;  %v913_v34 = vld [vmem:[%s1090_s6 + $0x28] sm:$0xff]  ;;  %vm672_vm5 = vsmask.f32 5376  ;;  %s919_s20 = smul.u32 24, %s1093_s25 }
  0x10   : > { %v291_v13 = vmul.f32 %v931_v3, %v283_v11  ;;  %v908_v26 = vld [vmem:[%s1090_s6] sm:$0xff]  ;;  %525 = vmatpush.bf16.msrb.mxu0 %v911_v27  ;;  %v915_v39 = vld [vmem:[%s1090_s6 + $0x38] sm:$0xff]  ;;  %v914_v0 = vld [vmem:[%s1090_s6 + $0x30] sm:$0xff]  ;;  %vm632_vm6 = vcmask 1045504   ;;  %vm760_vm7 = vcmask 64512   ;;  %vm763_vm8 = vcmask 58368  }
  0x11   : > { %v296_v14 = vadd.f32 %v932_v5, %v288_v9  ;;  %v297_v15 = vadd.f32 %v932_v5, %v289_v10  ;;  %v298_v16 = vadd.f32 %v932_v5, %v290_v12  ;;  %446 = vmatpush.bf16.msrb.mxu2 %v908_v26  ;;  %v912_v30 = vld [vmem:[%s1090_s6 + $0x20] sm:$0xff]  ;;  %s278_s23 = scalar_lea.vmem %s1091_s7, %s919_s20 }
  0x12   : > { %v299_v19 = vadd.f32 %v932_v5, %v291_v13  ;;  %v933_v33 = vld [vmem:[%s1088_s4] ss:$0 sm:$0xff] }
  0x13   : > { %v300_v20 = vmax.f32 %v296_v14, 0.0  ;;  %v301_v21 = vmax.f32 %v297_v15, 0.0  ;;  %v302_v22 = vmax.f32 %v298_v16, 0.0  ;;  %485 = vmatpush.bf16.msrb.mxu3 %v910_v29  ;;  %575 = vmatpush.bf16.msrb.mxu1 %v912_v30  ;;  %v916_v4 = vld [vmem:[%s1090_s6 + $0x40] sm:$0xff] }
  0x14   : > { %v303_v23 = vmax.f32 %v299_v19, 0.0 }
  0x15   : > { %v304_v24 = vpack.c.bf16 %v301_v21, %v300_v20 }
  0x16   : > { %354 = vperm.xlu0 %929, %v348_v17   ;;  %369 = vperm.xlu1 %930, %v351_v18   ;;  %v305_v25 = vpack.c.bf16 %v303_v23, %v302_v22 }
  0x17   : > { %832 = vmatmul.msk.bf16.vlgmr.msra.gmra.mxu0 %vm318_vm0, %v304_v24 }
  0x18   : > { %833 = vmatmul.msk.bf16.vlgmr.msra.gmra.mxu2 %vm318_vm0, %v305_v25  ;;  %707 = vmatpush.bf16.msra.mxu0 %v915_v39 }
  0x19   : > { %613 = vmatpush.bf16.msra.mxu2 %v913_v34 }
  0x80   : > { %v365_v31 = vpop.permute.xlu0 %364  ;;  %v360_v41 = vpop.permute.xlu1 %359 }
  0x88   : > { %v355_v44 = vpop.permute.xlu0 %354  ;;  %v370_v60 = vpop.permute.xlu1 %369 }
  0x94   : > { %v334_v32 = vpop.f32.mrf.mxu0 }
  0x95   : > { %v335_v35 = vadd.f32 %v933_v33, %v334_v32 }
  0x97   : > { %v344_v40 = vmax.f32 %v335_v35, 0.0 }
  0x99   : > { %v372_v47 = vmul.f32 %v355_v44, %v344_v40 }
  0x9b   : > { %v339_v36 = vpop.f32.mrf.mxu2 }
  0x9c   : > { %v340_v37 = vadd.f32 %v933_v33, %v339_v36  ;;  %v336_v38 = vpop.f32.mrf.mxu0 }
  0x9d   : > { %v337_v42 = vadd.f32 %v933_v33, %v336_v38 }
  0x9e   : > { %v346_v43 = vmax.f32 %v340_v37, 0.0 }
  0x9f   : > { %v345_v45 = vmax.f32 %v337_v42, 0.0 }
  0xa0   : > { %v374_v46 = vmul.f32 %v365_v31, %v346_v43 }
  0xa1   : > { %v373_v48 = vmul.f32 %v360_v41, %v345_v45 }
  0xa2   : > { %v1044_v49 = vpack.c.bf16 %v374_v46, %v374_v46 }
  0xa3   : > { %v376_v50 = vpack.c.bf16 %v373_v48, %v372_v47  ;;  %v341_v51 = vpop.f32.mrf.mxu2  ;;  %v589_v17 = vpack.c.bf16 %v374_v46, %v373_v48 }
  0xa4   : > { %v342_v52 = vadd.f32 %v933_v33, %v341_v51  ;;  %v392_v53 = vshll.u32 %v1044_v49, 16  ;;  %v504_v55 = vrot.slane %v1044_v49, 3  ;;  %v396_v59 = vshrl.u32 %v1044_v49, 16 }
  0xa5   : > { %846 = vmatmul.msk.bf16.vlgmr.msrb.gmra.mxu2 %vm318_vm0, %v376_v50  ;;  %v503_v54 = vrot.slane %v376_v50, 3  ;;  %v387_v56 = vshll.u32 %v376_v50, 16  ;;  %v385_v62 = vshrl.u32 %v376_v50, 16  ;;  %v463_v11 = vrot.slane %v376_v50, 1 }
  0xa6   : > { %v347_v57 = vmax.f32 %v342_v52, 0.0  ;;  %v394_v58 = vrot.slane %v392_v53, 1  ;;  %v464_v16 = vrot.slane %v1044_v49, 1  ;;  %v673_v23 = vshrl.u32 %v589_v17, 16 }
  0xa7   : > { %v505_v61 = vsel %vm502_vm1, %v503_v54, %v504_v55  ;;  %v389_v63 = vrot.slane %v387_v56, 1  ;;  %v544_v12 = vrot.slane %v385_v62, 3  ;;  %v545_v13 = vrot.slane %v387_v56, 4 }
  0xa8   : > { %v375_v1 = vmul.f32 %v370_v60, %v347_v57  ;;  %862 = vmatmul.msk.bf16.vlgmr.msrb.gmra.mxu0 %vm318_vm0, %v505_v61  ;;  %v398_v2 = vor.u32 %v396_v59, %v394_v58  ;;  %v465_v18 = vsel %vm462_vm3, %v463_v11, %v464_v16  ;;  %v676_v24 = vshll.u32 %v589_v17, 16 }
  0xa9   : > { %v390_v3 = vor.u32 %v389_v63, %v385_v62  ;;  %v546_v19 = vor.u32 %v545_v13, %v544_v12  ;;  %v675_v27 = vrot.slane %v673_v23, 2  ;;  %v633_v33 = vrot.slane %v589_v17, 2 }
  0xaa   : > { %841 = vmatmul.msk.bf16.vlgmr.msra.gmra.mxu3 %vm318_vm0, %v398_v2  ;;  %v539_v5 = vpack.c.bf16 %v375_v1, %v374_v46  ;;  %v590_v15 = vpack.c.bf16 %v375_v1, %v375_v1  ;;  %v678_v28 = vrot.slane %v676_v24, 3  ;;  %v724_v36 = vrot.slane %v589_v17, 3 }
  0xab   : > { %v395_v6 = vsel %vm383_vm2, %v390_v3, %v394_v58  ;;  %655 = vmatpush.bf16.msra.mxu3 %v914_v0 }
  0xac   : > { %840 = vmatmul.msk.bf16.vlgmr.msra.gmra.mxu1 %vm318_vm0, %v395_v6  ;;  %v548_v7 = vshrl.u32 %v539_v5, 16  ;;  %v551_v8 = vshll.u32 %v539_v5, 16  ;;  %v680_v21 = vshrl.u32 %v590_v15, 16  ;;  %v683_v22 = vshll.u32 %v590_v15, 16 }
  0xad   : > { %746 = vmatpush.bf16.msra.mxu1 %v916_v4  ;;  %v679_v30 = vor.u32 %v678_v28, %v675_v27  ;;  %v634_v32 = vrot.slane %v590_v15, 2  ;;  %v725_v34 = vrot.slane %v590_v15, 3 }
  0xae   : > { %v550_v9 = vrot.slane %v548_v7, 3  ;;  %v553_v10 = vrot.slane %v551_v8, 4  ;;  %v682_v25 = vrot.slane %v680_v21, 2  ;;  %v685_v26 = vrot.slane %v683_v22, 3 }
  0xaf   : > { %v635_v35 = vsel %vm632_vm6, %v633_v33, %v634_v32  ;;  %v726_v37 = vsel %vm502_vm1, %v724_v36, %v725_v34 }
  0xb0   : > { %v554_v14 = vor.u32 %v553_v10, %v550_v9  ;;  %v686_v29 = vor.u32 %v685_v26, %v682_v25 }
  0xb2   : > { %v555_v20 = vsel %vm543_vm4, %v546_v19, %v554_v14  ;;  %v687_v31 = vsel %vm672_vm5, %v679_v30, %v686_v29 }
  0xb5   : > { %847 = vmatmul.msk.bf16.gmra.mxu2 %vm318_vm0, %v1044_v49 }
  0xb8   : > { %863 = vmatmul.msk.bf16.gmra.mxu0 %vm318_vm0, %v504_v55 }
  0xba   : > { %854 = vmatmul.msk.bf16.vlgmr.msrb.gmra.mxu3 %vm318_vm0, %v465_v18 }
  0xbc   : > { %870 = vmatmul.msk.bf16.vlgmr.msrb.gmra.mxu1 %vm318_vm0, %v555_v20 }
  0xc5   : > { %878 = vmatmul.msk.bf16.vlgmr.msra.gmra.mxu2 %vm318_vm0, %v589_v17 }
  0xc8   : > { %894 = vmatmul.msk.bf16.vlgmr.msra.gmra.mxu0 %vm318_vm0, %v687_v31 }
  0xca   : > { %855 = vmatmul.msk.bf16.gmra.mxu3 %vm318_vm0, %v464_v16 }
  0xcc   : > { %871 = vmatmul.msk.bf16.gmra.mxu1 %vm318_vm0, %v554_v14 }
  0xd5   : > { %879 = vmatmul.msk.bf16.gmra.mxu2 %vm318_vm0, %v590_v15 }
  0xd8   : > { %895 = vmatmul.msk.bf16.gmra.mxu0 %vm318_vm0, %v686_v29 }
  0xda   : > { %886 = vmatmul.msk.bf16.vlgmr.msra.gmra.mxu3 %vm318_vm0, %v635_v35 }
  0xdc   : > { %902 = vmatmul.msk.bf16.vlgmr.msra.gmra.mxu1 %vm318_vm0, %v726_v37 }
  0xea   : > { %887 = vmatmul.msk.bf16.gmra.mxu3 %vm318_vm0, %v634_v32 }
  0xec   : > { %903 = vmatmul.msk.bf16.gmra.mxu1 %vm318_vm0, %v725_v34 }
 0x125   : > { %v527_v38 = vpop.f32.mrf.mxu0 }
 0x128   : > { %v448_v39 = vpop.f32.mrf.mxu2 }
 0x129   : > { %v420_v40 = vpop.f32.mrf.mxu1 }
 0x12a   : > { %v449_v59 = vadd.f32 %v448_v39, %v420_v40 }
 0x12d   : > { %v425_v41 = vpop.f32.mrf.mxu3  ;;  %v529_v42 = vpop.f32.mrf.mxu0 }
 0x130   : > { %v450_v43 = vpop.f32.mrf.mxu2 }
 0x131   : > { %v422_v44 = vpop.f32.mrf.mxu1 }
 0x132   : > { %v451_v2 = vadd.f32 %v450_v43, %v422_v44 }
 0x135   : > { %v427_v45 = vpop.f32.mrf.mxu3  ;;  %v532_v46 = vpop.f32.mrf.mxu0 }
 0x138   : > { %v453_v47 = vpop.f32.mrf.mxu2 }
 0x139   : > { %v577_v48 = vpop.f32.mrf.mxu1  ;;  %v454_v12 = vadd.f32 %v453_v47, %v425_v41 }
 0x13d   : > { %v487_v49 = vpop.f32.mrf.mxu3  ;;  %v534_v50 = vpop.f32.mrf.mxu0 }
 0x13e   : > { %v496_v62 = vadd.f32 %v487_v49, %v449_v59 }
 0x140   : > { %v455_v51 = vpop.f32.mrf.mxu2  ;;  %v536_v1 = vadd.f32 %v527_v38, %v496_v62 }
 0x141   : > { %v579_v52 = vpop.f32.mrf.mxu1 }
 0x142   : > { %v586_v6 = vadd.f32 %v577_v48, %v536_v1 }
 0x145   : > { %v489_v53 = vpop.f32.mrf.mxu3  ;;  %v709_v54 = vpop.f32.mrf.mxu0 }
 0x146   : > { %v497_v5 = vadd.f32 %v489_v53, %v451_v2 }
 0x148   : > { %v615_v55 = vpop.f32.mrf.mxu2  ;;  %v537_v10 = vadd.f32 %v529_v42, %v497_v5 }
 0x149   : > { %v582_v56 = vpop.f32.mrf.mxu1  ;;  %v624_v7 = vadd.f32 %v615_v55, %v586_v6 }
 0x14a   : > { %v587_v17 = vadd.f32 %v579_v52, %v537_v10 }
 0x14d   : > { %v492_v57 = vpop.f32.mrf.mxu3  ;;  %v711_v58 = vpop.f32.mrf.mxu0 }
 0x14e   : > { %v498_v16 = vadd.f32 %v492_v57, %v454_v12 }
 0x150   : > { %v617_v60 = vpop.f32.mrf.mxu2  ;;  %v538_v21 = vadd.f32 %v532_v46, %v498_v16 }
 0x151   : > { %v584_v61 = vpop.f32.mrf.mxu1  ;;  %v625_v19 = vadd.f32 %v617_v60, %v587_v17 }
 0x152   : > { %v588_v25 = vadd.f32 %v582_v56, %v538_v21 }
 0x155   : > { %v494_v63 = vpop.f32.mrf.mxu3  ;;  %v714_v0 = vpop.f32.mrf.mxu0 }
 0x158   : > { %v620_v3 = vpop.f32.mrf.mxu2 }
 0x159   : > { %v748_v4 = vpop.f32.mrf.mxu1  ;;  %v626_v27 = vadd.f32 %v620_v3, %v588_v25 }
 0x15d   : > { %v657_v8 = vpop.f32.mrf.mxu3  ;;  %v716_v9 = vpop.f32.mrf.mxu0 }
 0x15e   : > { %v666_v11 = vadd.f32 %v657_v8, %v624_v7 }
 0x160   : > { %v718_v13 = vadd.f32 %v709_v54, %v666_v11  ;;  %v622_v14 = vpop.f32.mrf.mxu2 }
 0x161   : > { %v750_v15 = vpop.f32.mrf.mxu1 }
 0x162   : > { %v757_v18 = vadd.f32 %v748_v4, %v718_v13 }
 0x164   : > { %761 = vst.msk [vmem:[%s278_s23] sm:$0xff] %vm760_vm7, %v757_v18 }
 0x165   : > { %v659_v20 = vpop.f32.mrf.mxu3 }
 0x166   : > { %v667_v22 = vadd.f32 %v659_v20, %v625_v19 }
 0x168   : > { %v719_v23 = vadd.f32 %v711_v58, %v667_v22 }
 0x169   : > { %v753_v24 = vpop.f32.mrf.mxu1 }
 0x16a   : > { %v758_v26 = vadd.f32 %v750_v15, %v719_v23 }
 0x16c   : > { %762 = vst.msk [vmem:[%s278_s23 + $0x8] sm:$0xff] %vm760_vm7, %v758_v26 }
 0x16d   : > { %v662_v28 = vpop.f32.mrf.mxu3 }
 0x16e   : > { %v668_v29 = vadd.f32 %v662_v28, %v626_v27 }
 0x170   : > { %v720_v30 = vadd.f32 %v714_v0, %v668_v29 }
 0x171   : > { %v755_v31 = vpop.f32.mrf.mxu1 }
 0x172   : > { %v759_v32 = vadd.f32 %v753_v24, %v720_v30 }
 0x174   : > { %764 = vst.msk [vmem:[%s278_s23 + $0x10] sm:$0x3] %vm763_vm8, %v759_v32 }
 0x175   : > { %v664_v33 = vpop.f32.mrf.mxu3 }
 0x176 PF: > { %s17_s24 = sadd.s32 1, %s940_s24  }
 0x177   : > { %p14_p4 = scmp.ge.s32.totalorder %s17_s24, 4  }
 0x179   :  { %16 = sbr.rel (!%p14_p4) target bundleno = 1 (0x1), region = 86 }

// kernel: _lambda_.32
= control target key start
LH: loop header
LB: loop body
LE: loop exit
PB: predicated region body
PF: predicated region fallthrough
CT: control target
= control target key end

     0   :  { %s992_s24 = smov 0   ;;  %s1087_s0 = inlined_call_operand.vmem [shape: f32[2,32,24], index: 0, kind: input, shape index: {}]   ;;  %s1088_s1 = inlined_call_operand.vmem [shape: bf16[24,16], index: 1, kind: input, shape index: {}]   ;;  %s1089_s2 = inlined_call_operand.vmem [shape: f32[1,24], index: 2, kind: input, shape index: {}]   ;;  %s1090_s3 = inlined_call_operand.vmem [shape: f32[1,24], index: 3, kind: input, shape index: {}]   ;;  %s1091_s4 = inlined_call_operand.vmem [shape: f32[1,16], index: 4, kind: input, shape index: {}]   ;;  %s1092_s5 = inlined_call_operand.vmem [shape: f32[32,1], index: 5, kind: input, shape index: {}]   ;;  %s1093_s6 = inlined_call_operand.vmem [shape: bf16[9,16,8], index: 6, kind: input, shape index: {}]   ;;  %s1094_s7 = inlined_call_operand.vmem [shape: f32[2,18,8], index: 7, kind: output, shape index: {}]  }
   0x1 LB: > { %s829_s25 = sadd.s32 4294967295, %s949_s24   ;;  %p833_p0 = scmp.ge.s32.totalorder %s949_s24, 1  ;;  %s949_s24 = sphi %s992_s24, %s17_s24  }
   0x2   : > { %p237_p1 = scmp.lt.s32.totalorder %s949_s24, 3 }
   0x4   : > { %p238_p2 = pnand %p833_p0, %p237_p1 }
   0x5   : > { %p269_p3 = scmp.lt.s32.totalorder (!%p238_p2), %s829_s25, 1 }
   0x6   : > { %241 = sbr.rel (%p238_p2) target bundleno = 385 (0x181), region = 48 }
   0xb   : > { %v308_v0 = vld [vmem:[%s1088_s1 + $0x8] sm:$0xf]  ;;  %vm329_vm0 = vcmask 1043456   ;;  %s1096_s25 = smov (!%p269_p3, %s829_s25), 1  ;;  %v358_v2 = vld [vmem:[%s1092_s5 + $0x10] sm:$0xff]  ;;  %v951_v5 = vmov 0  }
   0xc   : > { %v318_v1 = vunpack.c.l.b16 %v308_v0  ;;  %v940_v4 = vld [vmem:[%s1089_s2] ss:$0 sm:$0xff]  ;;  %938 = vset.pattern.permute.xlu0 %v951_v5  ;;  %939 = vset.pattern.permute.xlu1 %v951_v5  ;;  %v357_v6 = vld [vmem:[%s1092_s5 + $0x8] sm:$0xff]  ;;  %s915_s11 = sshll.u32 %s1096_s25, 5  ;;  %v359_v17 = vld [vmem:[%s1092_s5 + $0x18] sm:$0xff]  ;;  %vm322_vm1 = vcmask 195584  }
   0xd   : > { %372 = vperm.xlu0 %938, %v358_v2   ;;  %367 = vperm.xlu1 %939, %v357_v6   ;;  %s273_s14 = scalar_lea.vmem %s1087_s0, %s915_s11  ;;  %v941_v8 = vld [vmem:[%s1090_s3] ss:$0 sm:$0xff]  ;;  %v918_v31 = vld [vmem:[%s1093_s6 + $0x8] sm:$0xff]  ;;  %v923_v32 = vld [vmem:[%s1093_s6 + $0x30] sm:$0xff]  ;;  %vm413_vm2 = vcmask 130048   ;;  %vm641_vm4 = vcmask 1045504  }
   0xe   : > { %v320_v3 = vpack.c.b16 %v318_v1, %v318_v1  ;;  %v916_v9 = vld [vmem:[%s1088_s1] sm:$0xff]  ;;  %v281_v11 = vld [vmem:[%s273_s14 + $0x8] sm:$0xff]  ;;  %v282_v20 = vld [vmem:[%s273_s14 + $0x10] sm:$0xff]  ;;  %427 = vmatpush.bf16.msra.mxu1 %v918_v31  ;;  %926 = vmatpush.bf16.msra.mxu3 %v918_v31  ;;  %vm391_vm3 = vsmask.f32 7424  ;;  %vm511_vm6 = vcmask 1044480  }
   0xf   : > { %v280_v10 = vld [vmem:[%s273_s14] sm:$0xff]  ;;  %v289_v13 = vmul.f32 %v940_v4, %v281_v11  ;;  %v283_v21 = vld [vmem:[%s273_s14 + $0x18] sm:$0xff]  ;;  %v290_v23 = vmul.f32 %v940_v4, %v282_v20  ;;  %v919_v38 = vld [vmem:[%s1093_s6 + $0x10] sm:$0xff]  ;;  %vm552_vm5 = vsmask.f32 4352  ;;  %vm471_vm7 = vcmask 1046528  }
  0x10   : > { %v331_v7 = vsel %vm329_vm0, %v320_v3, 0  ;;  %v288_v12 = vmul.f32 %v940_v4, %v280_v10  ;;  %v356_v16 = vld [vmem:[%s1092_s5] sm:$0xff]  ;;  %v291_v24 = vmul.f32 %v940_v4, %v283_v21  ;;  %v920_v39 = vld [vmem:[%s1093_s6 + $0x18] sm:$0xff]  ;;  %v922_v3 = vld [vmem:[%s1093_s6 + $0x28] sm:$0xff]  ;;  %vm681_vm8 = vsmask.f32 5376 }
  0x11   : > { %339 = vmatpush.bf16.msra.mxu0 %v331_v7  ;;  %v297_v15 = vadd.f32 %v941_v8, %v289_v13  ;;  %v298_v25 = vadd.f32 %v941_v8, %v290_v23  ;;  %v917_v30 = vld [vmem:[%s1093_s6] sm:$0xff]  ;;  %v924_v1 = vld [vmem:[%s1093_s6 + $0x38] sm:$0xff]  ;;  %s928_s22 = smul.u32 24, %s1096_s25  ;;  %vm769_vm9 = vcmask 64512   ;;  %vm772_vm10 = vcmask 58368  }
  0x12   : > { %v296_v14 = vadd.f32 %v941_v8, %v288_v12  ;;  %v299_v26 = vadd.f32 %v941_v8, %v291_v24  ;;  %927 = vmatpush.bf16.msra.mxu2 %v917_v30  ;;  %v942_v35 = vld [vmem:[%s1091_s4] ss:$0 sm:$0xff]  ;;  %494 = vmatpush.bf16.msrb.mxu3 %v919_v38 }
  0x13   : > { %v301_v19 = vmax.f32 %v297_v15, 0.0  ;;  %v302_v27 = vmax.f32 %v298_v25, 0.0  ;;  %v921_v36 = vld [vmem:[%s1093_s6 + $0x20] sm:$0xff]  ;;  %534 = vmatpush.bf16.msrb.mxu1 %v920_v39  ;;  %s278_s27 = scalar_lea.vmem %s1094_s7, %s928_s22 }
  0x14   : > { %v300_v18 = vmax.f32 %v296_v14, 0.0  ;;  %v303_v28 = vmax.f32 %v299_v26, 0.0  ;;  %v925_v54 = vld [vmem:[%s1093_s6 + $0x40] sm:$0xff] }
  0x15   : > { %340 = vmatpush.bf16.msra.mxu0 %v916_v9  ;;  %362 = vperm.xlu0 %938, %v356_v16  }
  0x16   : > { %377 = vperm.xlu1 %939, %v359_v17   ;;  %v304_v22 = vpack.c.bf16 %v301_v19, %v300_v18  ;;  %v305_v29 = vpack.c.bf16 %v303_v28, %v302_v27  ;;  %584 = vmatpush.bf16.msrb.mxu2 %v921_v36 }
  0x18   : > { %841 = vmatmul.msk.bf16.vlgmr.msra.gmra.mxu0 %vm322_vm1, %v304_v22 }
  0x19   : > { %455 = vmatpush.bf16.msrb.mxu0 %v917_v30 }
  0x1d   : > { %664 = vmatpush.bf16.msra.mxu0 %v923_v32 }
  0x28   : > { %842 = vmatmul.msk.bf16.gmra.mxu0 %vm322_vm1, %v305_v29 }
  0x7f   : > { %v373_v33 = vpop.permute.xlu0 %372  ;;  %v368_v44 = vpop.permute.xlu1 %367 }
  0x87   : > { %v363_v43 = vpop.permute.xlu0 %362 }
  0x88   : > { %v378_v2 = vpop.permute.xlu1 %377 }
  0x95   : > { %v342_v34 = vpop.f32.mrf.mxu0 }
  0x96   : > { %v343_v37 = vadd.f32 %v942_v35, %v342_v34 }
  0x98   : > { %v352_v41 = vmax.f32 %v343_v37, 0.0 }
  0x9a   : > { %v380_v46 = vmul.f32 %v363_v43, %v352_v41 }
  0x9d   : > { %v344_v40 = vpop.f32.mrf.mxu0 }
  0x9e   : > { %v345_v42 = vadd.f32 %v942_v35, %v344_v40 }
  0xa0   : > { %v353_v45 = vmax.f32 %v345_v42, 0.0 }
  0xa2   : > { %v381_v47 = vmul.f32 %v368_v44, %v353_v45 }
  0xa4   : > { %v384_v48 = vpack.c.bf16 %v381_v47, %v380_v46 }
  0xa5   : > { %v347_v49 = vpop.f32.mrf.mxu0 }
  0xa6   : > { %v348_v50 = vadd.f32 %v942_v35, %v347_v49  ;;  %855 = vmatmul.msk.bf16.vlgmr.msrb.gmra.mxu0 %vm413_vm2, %v384_v48  ;;  %v395_v52 = vshll.u32 %v384_v48, 16  ;;  %v393_v59 = vshrl.u32 %v384_v48, 16  ;;  %v512_v24 = vrot.slane %v384_v48, 3 }
  0xa7   : > { %v472_v25 = vrot.slane %v384_v48, 1 }
  0xa8   : > { %v354_v51 = vmax.f32 %v348_v50, 0.0  ;;  %v397_v56 = vrot.slane %v395_v52, 1  ;;  %v553_v10 = vrot.slane %v393_v59, 3  ;;  %v554_v11 = vrot.slane %v395_v52, 4 }
  0xaa   : > { %v382_v53 = vmul.f32 %v373_v33, %v354_v51  ;;  %v398_v62 = vor.u32 %v397_v56, %v393_v59  ;;  %v555_v20 = vor.u32 %v554_v11, %v553_v10 }
  0xac   : > { %v385_v55 = vpack.c.bf16 %v382_v53, %v382_v53  ;;  %v598_v4 = vpack.c.bf16 %v382_v53, %v381_v47 }
  0xad   : > { %v349_v57 = vpop.f32.mrf.mxu0 }
  0xae   : > { %v350_v58 = vadd.f32 %v942_v35, %v349_v57  ;;  %856 = vmatmul.msk.bf16.vlgmr.msra.gmra.mxu2 %vm413_vm2, %v385_v55  ;;  %v400_v60 = vshll.u32 %v385_v55, 16  ;;  %v404_v0 = vshrl.u32 %v385_v55, 16  ;;  %v642_v14 = vrot.slane %v598_v4, 2 }
  0xaf   : > { %755 = vmatpush.bf16.msra.mxu2 %v925_v54  ;;  %v513_v22 = vrot.slane %v385_v55, 3  ;;  %v473_v23 = vrot.slane %v385_v55, 1  ;;  %v682_v30 = vshrl.u32 %v598_v4, 16  ;;  %v685_v31 = vshll.u32 %v598_v4, 16 }
  0xb0   : > { %v355_v61 = vmax.f32 %v350_v58, 0.0  ;;  %v402_v63 = vrot.slane %v400_v60, 1  ;;  %v733_v35 = vrot.slane %v598_v4, 3 }
  0xb1   : > { %v514_v26 = vsel %vm511_vm6, %v512_v24, %v513_v22  ;;  %v474_v27 = vsel %vm471_vm7, %v472_v25, %v473_v23  ;;  %v684_v36 = vrot.slane %v682_v30, 2  ;;  %v687_v37 = vrot.slane %v685_v31, 3 }
  0xb2   : > { %v383_v5 = vmul.f32 %v378_v2, %v355_v61  ;;  %v403_v6 = vsel %vm391_vm3, %v398_v62, %v402_v63  ;;  %v406_v7 = vor.u32 %v404_v0, %v402_v63 }
  0xb3   : > { %849 = vmatmul.msk.bf16.vlgmr.msra.gmra.mxu1 %vm413_vm2, %v403_v6  ;;  %v688_v40 = vor.u32 %v687_v37, %v684_v36 }
  0xb4   : > { %v548_v8 = vpack.c.bf16 %v383_v5, %v382_v53  ;;  %v599_v9 = vpack.c.bf16 %v383_v5, %v383_v5  ;;  %850 = vmatmul.msk.bf16.vlgmr.msra.gmra.mxu3 %vm413_vm2, %v406_v7  ;;  %716 = vmatpush.bf16.msra.mxu1 %v924_v1 }
  0xb5   : > { %622 = vmatpush.bf16.msra.mxu3 %v922_v3 }
  0xb6   : > { %v557_v12 = vshrl.u32 %v548_v8, 16  ;;  %v560_v13 = vshll.u32 %v548_v8, 16  ;;  %v643_v15 = vrot.slane %v599_v9, 2  ;;  %v689_v28 = vshrl.u32 %v599_v9, 16 }
  0xb7   : > { %v692_v29 = vshll.u32 %v599_v9, 16  ;;  %v734_v32 = vrot.slane %v599_v9, 3 }
  0xb8   : > { %v559_v16 = vrot.slane %v557_v12, 3  ;;  %v562_v17 = vrot.slane %v560_v13, 4  ;;  %v644_v18 = vsel %vm641_vm4, %v642_v14, %v643_v15  ;;  %v691_v33 = vrot.slane %v689_v28, 2 }
  0xb9   : > { %895 = vmatmul.msk.bf16.vlgmr.msra.gmra.mxu0 %vm413_vm2, %v644_v18  ;;  %v694_v34 = vrot.slane %v692_v29, 3  ;;  %v735_v38 = vsel %vm511_vm6, %v733_v35, %v734_v32 }
  0xba   : > { %v563_v19 = vor.u32 %v562_v17, %v559_v16 }
  0xbb   : > { %v695_v39 = vor.u32 %v694_v34, %v691_v33 }
  0xbc   : > { %v564_v21 = vsel %vm552_vm5, %v555_v20, %v563_v19 }
  0xbd   : > { %v696_v41 = vsel %vm681_vm8, %v688_v40, %v695_v39 }
  0xbe   : > { %879 = vmatmul.msk.bf16.vlgmr.msrb.gmra.mxu2 %vm413_vm2, %v564_v21 }
  0xc3   : > { %871 = vmatmul.msk.bf16.vlgmr.msrb.gmra.mxu1 %vm413_vm2, %v514_v26 }
  0xc4   : > { %863 = vmatmul.msk.bf16.vlgmr.msrb.gmra.mxu3 %vm413_vm2, %v474_v27 }
  0xc9   : > { %896 = vmatmul.msk.bf16.gmra.mxu0 %vm413_vm2, %v643_v15 }
  0xce   : > { %880 = vmatmul.msk.bf16.gmra.mxu2 %vm413_vm2, %v563_v19 }
  0xd3   : > { %872 = vmatmul.msk.bf16.gmra.mxu1 %vm413_vm2, %v513_v22 }
  0xd4   : > { %864 = vmatmul.msk.bf16.gmra.mxu3 %vm413_vm2, %v473_v23 }
  0xde   : > { %911 = vmatmul.msk.bf16.vlgmr.msra.gmra.mxu2 %vm413_vm2, %v735_v38 }
  0xe3   : > { %903 = vmatmul.msk.bf16.vlgmr.msra.gmra.mxu1 %vm413_vm2, %v696_v41 }
  0xe4   : > { %887 = vmatmul.msk.bf16.vlgmr.msra.gmra.mxu3 %vm413_vm2, %v598_v4 }
  0xee   : > { %912 = vmatmul.msk.bf16.gmra.mxu2 %vm413_vm2, %v734_v32 }
  0xf3   : > { %904 = vmatmul.msk.bf16.gmra.mxu1 %vm413_vm2, %v695_v39 }
  0xf4   : > { %888 = vmatmul.msk.bf16.gmra.mxu3 %vm413_vm2, %v599_v9 }
 0x123   : > { %v457_v42 = vpop.f32.mrf.mxu0 }
 0x12b   : > { %v459_v43 = vpop.f32.mrf.mxu0 }
 0x130   : > { %v429_v44 = vpop.f32.mrf.mxu1 }
 0x131   : > { %v462_v45 = vpop.f32.mrf.mxu2  ;;  %v458_v1 = vadd.f32 %v457_v42, %v429_v44 }
 0x136   : > { %v666_v46 = vpop.f32.mrf.mxu0 }
 0x137   : > { %v434_v47 = vpop.f32.mrf.mxu3 }
 0x138   : > { %v431_v48 = vpop.f32.mrf.mxu1  ;;  %v463_v16 = vadd.f32 %v462_v45, %v434_v47 }
 0x139   : > { %v464_v49 = vpop.f32.mrf.mxu2  ;;  %v460_v7 = vadd.f32 %v459_v43, %v431_v48 }
 0x13e   : > { %v668_v50 = vpop.f32.mrf.mxu0 }
 0x13f   : > { %v436_v51 = vpop.f32.mrf.mxu3 }
 0x140   : > { %v536_v52 = vpop.f32.mrf.mxu1 }
 0x141   : > { %v586_v53 = vpop.f32.mrf.mxu2 }
 0x146   : > { %v671_v54 = vpop.f32.mrf.mxu0 }
 0x147   : > { %v496_v55 = vpop.f32.mrf.mxu3 }
 0x148   : > { %v538_v56 = vpop.f32.mrf.mxu1  ;;  %v505_v2 = vadd.f32 %v496_v55, %v458_v1 }
 0x149   : > { %v588_v57 = vpop.f32.mrf.mxu2 }
 0x14a   : > { %v545_v6 = vadd.f32 %v536_v52, %v505_v2 }
 0x14c   : > { %v595_v9 = vadd.f32 %v586_v53, %v545_v6 }
 0x14e   : > { %v673_v58 = vpop.f32.mrf.mxu0 }
 0x14f   : > { %v498_v59 = vpop.f32.mrf.mxu3 }
 0x150   : > { %v541_v60 = vpop.f32.mrf.mxu1  ;;  %v506_v8 = vadd.f32 %v498_v59, %v460_v7 }
 0x151   : > { %v591_v61 = vpop.f32.mrf.mxu2 }
 0x152   : > { %v546_v14 = vadd.f32 %v538_v56, %v506_v8 }
 0x154   : > { %v596_v20 = vadd.f32 %v588_v57, %v546_v14 }
 0x157   : > { %v501_v62 = vpop.f32.mrf.mxu3 }
 0x158   : > { %v543_v63 = vpop.f32.mrf.mxu1  ;;  %v507_v18 = vadd.f32 %v501_v62, %v463_v16 }
 0x159   : > { %v593_v0 = vpop.f32.mrf.mxu2 }
 0x15a   : > { %v547_v25 = vadd.f32 %v541_v60, %v507_v18 }
 0x15c   : > { %v597_v29 = vadd.f32 %v591_v61, %v547_v25 }
 0x15f   : > { %v503_v3 = vpop.f32.mrf.mxu3 }
 0x160   : > { %v718_v4 = vpop.f32.mrf.mxu1 }
 0x161   : > { %v757_v5 = vpop.f32.mrf.mxu2 }
 0x167   : > { %v624_v10 = vpop.f32.mrf.mxu3 }
 0x168   : > { %v633_v11 = vadd.f32 %v624_v10, %v595_v9  ;;  %v720_v12 = vpop.f32.mrf.mxu1 }
 0x169   : > { %v759_v13 = vpop.f32.mrf.mxu2 }
 0x16a   : > { %v675_v15 = vadd.f32 %v666_v46, %v633_v11 }
 0x16c   : > { %v727_v17 = vadd.f32 %v718_v4, %v675_v15 }
 0x16e   : > { %v766_v19 = vadd.f32 %v757_v5, %v727_v17 }
 0x16f   : > { %v626_v21 = vpop.f32.mrf.mxu3 }
 0x170   : > { %770 = vst.msk [vmem:[%s278_s27] sm:$0xff] %vm769_vm9, %v766_v19  ;;  %v634_v22 = vadd.f32 %v626_v21, %v596_v20  ;;  %v723_v23 = vpop.f32.mrf.mxu1 }
 0x171   : > { %v762_v24 = vpop.f32.mrf.mxu2 }
 0x172   : > { %v676_v26 = vadd.f32 %v668_v50, %v634_v22 }
 0x174   : > { %v728_v27 = vadd.f32 %v720_v12, %v676_v26 }
 0x176   : > { %v767_v28 = vadd.f32 %v759_v13, %v728_v27 }
 0x177   : > { %v629_v30 = vpop.f32.mrf.mxu3 }
 0x178   : > { %771 = vst.msk [vmem:[%s278_s27 + $0x8] sm:$0xff] %vm769_vm9, %v767_v28  ;;  %v635_v31 = vadd.f32 %v629_v30, %v597_v29  ;;  %v725_v32 = vpop.f32.mrf.mxu1 }
 0x179   : > { %v764_v33 = vpop.f32.mrf.mxu2 }
 0x17a   : > { %v677_v34 = vadd.f32 %v671_v54, %v635_v31 }
 0x17c   : > { %v729_v35 = vadd.f32 %v723_v23, %v677_v34 }
 0x17e   : > { %v768_v36 = vadd.f32 %v762_v24, %v729_v35 }
 0x17f   : > { %v631_v37 = vpop.f32.mrf.mxu3 }
 0x180   : > { %773 = vst.msk [vmem:[%s278_s27 + $0x10] sm:$0x3] %vm772_vm10, %v768_v36 }
 0x181 PF: > { %s17_s24 = sadd.s32 1, %s949_s24  }
 0x182   : > { %p14_p4 = scmp.ge.s32.totalorder %s17_s24, 4  }
 0x184   :  { %16 = sbr.rel (!%p14_p4) target bundleno = 1 (0x1), region = 86 }

</bundles_post_ra>
